<compile_context>
chip_gen: v6e
topology: v6e:2x2x1
jax: 0.10.0
libtpu: 0.0.40
codegen_flags: <defaults>
</compile_context>

<pallas_src>
import functools
import math

import jax
import jax.numpy as jnp
from jax.experimental import pallas as pl
from jax.experimental.pallas import tpu as pltpu


# -----------------------------------------------------------------------------
# Fused bidirectional-LSTM-layer kernel (one grid step = one time chunk, both
# directions)
# -----------------------------------------------------------------------------
def _bilstm_kernel(gxf_ref, gxb_ref, whh_ref, *refs, nc, seq_len, emit_hseq):
    """gxf_ref/gxb_ref: (TC, B, 4H) f32 precomputed x@W_ih + b for this chunk
    (forward chunk c / backward chunk nc-1-c).  whh_ref: (2, H, 4H) bf16.
    Outputs: [hseq_f (TC,B,H) bf16, hseq_b (TC,B,H) bf16,] hlast (B,2H) f32.
    Scratch: state_s (4, B, H) f32 = [h_f, c_f, h_b, c_b] across chunks."""
    if emit_hseq:
        hseqf_ref, hseqb_ref, hlast_ref, state_s = refs
    else:
        hlast_ref, state_s = refs
        hseqf_ref = hseqb_ref = None

    c = pl.program_id(0)
    tc, _, four_h = gxf_ref.shape
    H = four_h // 4
    needs_mask = (nc * tc) != seq_len          # static Python bool (padded T)

    # Start of the layer's pass over the sequence: reset the recurrent state.
    @pl.when(c == 0)
    def _():
        state_s[...] = jnp.zeros_like(state_s)

    # Recurrent state lives in vregs for the whole chunk; VMEM scratch is only
    # touched once per chunk (load here, store at the end).
    h_f = state_s[0]
    c_f = state_s[1]
    h_b = state_s[2]
    c_b = state_s[3]

    whh_f = whh_ref[0]                         # (H, 4H) bf16, loaded once/chunk
    whh_b = whh_ref[1]
    wdt = whh_f.dtype

    fwd_t0 = c * tc                            # global t of local index 0 (fwd)
    bwd_t0 = (nc - 1 - c) * tc                 # global t of local index 0 (bwd)

    # Fully unrolled (tc is a static Python int): static slice indices, and the
    # two independent direction chains interleaved so MXU/EUP latency overlaps.
    for i in range(tc):
        tf = i                                 # forward walks the chunk 0..tc-1
        tb = tc - 1 - i                        # backward walks it tc-1..0

        gf = gxf_ref[tf] + jnp.dot(h_f.astype(wdt), whh_f,
                                   preferred_element_type=jnp.float32)
        gb = gxb_ref[tb] + jnp.dot(h_b.astype(wdt), whh_b,
                                   preferred_element_type=jnp.float32)

        # Gate columns were permuted offline to (i, f, o, g): one sigmoid over
        # 3H contiguous lanes and one tanh over H lanes per direction.
        sf = jax.nn.sigmoid(gf[:, :3 * H])
        sb = jax.nn.sigmoid(gb[:, :3 * H])
        cf_n = sf[:, H:2 * H] * c_f + sf[:, :H] * jnp.tanh(gf[:, 3 * H:])
        hf_n = sf[:, 2 * H:3 * H] * jnp.tanh(cf_n)
        cb_n = sb[:, H:2 * H] * c_b + sb[:, :H] * jnp.tanh(gb[:, 3 * H:])
        hb_n = sb[:, 2 * H:3 * H] * jnp.tanh(cb_n)

        if needs_mask:
            # Padded tail timesteps (t >= seq_len) must not advance the state.
            vf = (fwd_t0 + tf) < seq_len
            vb = (bwd_t0 + tb) < seq_len
            h_f = jnp.where(vf, hf_n, h_f)
            c_f = jnp.where(vf, cf_n, c_f)
            h_b = jnp.where(vb, hb_n, h_b)
            c_b = jnp.where(vb, cb_n, c_b)
        else:
            h_f, c_f, h_b, c_b = hf_n, cf_n, hb_n, cb_n

        if hseqf_ref is not None:
            # Direct per-step store into the chunk's output block (no hbuf slab);
            # HBM writeback still happens once per chunk via the pipeline.
            hseqf_ref[tf] = h_f.astype(hseqf_ref.dtype)
            hseqb_ref[tb] = h_b.astype(hseqb_ref.dtype)

    # Persist state across chunks (one store per chunk).
    state_s[0] = h_f
    state_s[1] = c_f
    state_s[2] = h_b
    state_s[3] = c_b

    @pl.when(c == nc - 1)
    def _():
        # Both directions finish on the last grid step (backward walks chunks
        # in reverse) -> exactly torch.cat((hn[-2], hn[-1]), dim=1).
        hlast_ref[:, :H] = h_f
        hlast_ref[:, H:] = h_b


# -----------------------------------------------------------------------------
# Layer wrapper
# -----------------------------------------------------------------------------
def _bilstm_layer(gx, whh, *, t_chunk, seq_len, emit_hseq):
    """gx: (2, T_pad, B, 4H) f32 precomputed x@W_ih + b (fwd, bwd stacked);
    whh: (2, H, 4H) bf16.  Returns (hseq_f, hseq_b, hlast) or just hlast."""
    _, t_pad, B, four_h = gx.shape
    H = four_h // 4
    assert t_pad % t_chunk == 0
    nc = t_pad // t_chunk

    gx_f, gx_b = gx[0], gx[1]

    kernel = functools.partial(_bilstm_kernel, nc=nc, seq_len=seq_len,
                               emit_hseq=emit_hseq)

    in_specs = [
        pl.BlockSpec((t_chunk, B, four_h), lambda c: (c, 0, 0)),           # fwd
        pl.BlockSpec((t_chunk, B, four_h), lambda c: (nc - 1 - c, 0, 0)),  # bwd
        pl.BlockSpec((2, H, four_h), lambda c: (0, 0, 0)),                 # W_hh
    ]
    hlast_spec = pl.BlockSpec((B, 2 * H), lambda c: (0, 0))   # resident output
    hlast_shape = jax.ShapeDtypeStruct((B, 2 * H), jnp.float32)

    if emit_hseq:
        out_specs = (
            pl.BlockSpec((t_chunk, B, H), lambda c: (c, 0, 0)),
            pl.BlockSpec((t_chunk, B, H), lambda c: (nc - 1 - c, 0, 0)),
            hlast_spec,
        )
        out_shape = (jax.ShapeDtypeStruct((t_pad, B, H), jnp.bfloat16),
                     jax.ShapeDtypeStruct((t_pad, B, H), jnp.bfloat16),
                     hlast_shape)
    else:
        out_specs = hlast_spec
        out_shape = hlast_shape

    return pl.pallas_call(
        kernel,
        grid=(nc,),
        in_specs=in_specs,
        out_specs=out_specs,
        out_shape=out_shape,
        scratch_shapes=[pltpu.VMEM((4, B, H), jnp.float32)],   # h/c fwd+bwd
        compiler_params=pltpu.CompilerParams(
            dimension_semantics=("arbitrary",)),               # recurrence axis
    )(gx_f, gx_b, whh)


# -----------------------------------------------------------------------------
# Model forward (== LSTMModel.forward)
# -----------------------------------------------------------------------------
def lstm_model_forward(x, params, *, t_chunk=32):
    """x: (B, T, input_size) f32 (batch_first) -> logits (B, num_classes) f32."""
    _, T, _ = x.shape
    layers = params["layers"]

    # Chunk the (padded) time axis; padded steps are masked inside the kernel.
    nc = pl.cdiv(T, min(t_chunk, T))
    tc = pl.cdiv(T, nc)
    t_pad = nc * tc

    layer_in = jnp.transpose(x, (1, 0, 2))                     # (T, B, D)
    if t_pad != T:
        layer_in = jnp.pad(layer_in, ((0, t_pad - T), (0, 0), (0, 0)))
    parts = [layer_in.astype(jnp.bfloat16)]

    hlast = None
    for li, lp in enumerate(layers):
        # Hoisted input projection: one large (T*B, d_in) x (d_in, 4H) MXU
        # matmul per direction (plain XLA), bias folded in.  Splitting W_ih per
        # input part avoids ever materializing the concat [h_fwd | h_bwd].
        # TODO(synk): optionally fuse this projection into the kernel on v5e to
        # avoid the gx HBM round trip for very long sequences.
        gx = lp["b"][:, None, None, :].astype(jnp.float32)      # (2,1,1,4H)
        off = 0
        for p in parts:
            d = p.shape[-1]
            gx = gx + jnp.einsum("tbd,xdg->xtbg", p, lp["wih"][:, off:off + d],
                                 preferred_element_type=jnp.float32)
            off += d

        last = li == len(layers) - 1
        out = _bilstm_layer(gx, lp["whh"], t_chunk=tc, seq_len=T,
                            emit_hseq=not last)
        if last:
            hlast = out
        else:
            hseq_f, hseq_b, hlast = out
            parts = [hseq_f, hseq_b]

    # (B, 2H) @ (2H, C) classifier head: too small to deserve a kernel launch.
    w_fc, b_fc = params["fc"]
    return hlast @ w_fc + b_fc


# -----------------------------------------------------------------------------
# Deterministic parameter init (mirrors nn.LSTM / nn.Linear)
# -----------------------------------------------------------------------------
def _permute_gates(w):
    """Reorder the last (4H) axis from PyTorch (i, f, g, o) to (i, f, o, g)."""
    i, f, g, o = jnp.split(w, 4, axis=-1)
    return jnp.concatenate([i, f, o, g], axis=-1)


def init_params(key, input_size, hidden_size, num_layers, num_classes,
                dtype=jnp.bfloat16):
    """Weights stored transposed ((d_in,4H)/(H,4H)), stacked per direction,
    gate columns permuted to (i,f,o,g), LSTM biases pre-summed (b_ih + b_hh)."""
    stdv = 1.0 / math.sqrt(hidden_size)
    layers = []
    for layer in range(num_layers):
        d_in = input_size if layer == 0 else 2 * hidden_size
        wih, whh, b = [], [], []
        for _ in range(2):                                      # fwd, bwd
            key, k1, k2, k3, k4 = jax.random.split(key, 5)
            wih.append(jax.random.uniform(k1, (d_in, 4 * hidden_size),
                                          jnp.float32, -stdv, stdv))
            whh.append(jax.random.uniform(k2, (hidden_size, 4 * hidden_size),
                                          jnp.float32, -stdv, stdv))
            b_ih = jax.random.uniform(k3, (4 * hidden_size,), jnp.float32,
                                      -stdv, stdv)
            b_hh = jax.random.uniform(k4, (4 * hidden_size,), jnp.float32,
                                      -stdv, stdv)
            b.append(b_ih + b_hh)
        layers.append({
            "wih": _permute_gates(jnp.stack(wih)).astype(dtype),   # (2,d_in,4H)
            "whh": _permute_gates(jnp.stack(whh)).astype(dtype),   # (2,H,4H)
            "b":   _permute_gates(jnp.stack(b)),                   # (2,4H) f32
        })

    key, kw, kb = jax.random.split(key, 3)
    fan_in = 2 * hidden_size
    bound = 1.0 / math.sqrt(fan_in)
    w_fc = jax.random.uniform(kw, (fan_in, num_classes), jnp.float32,
                              -bound, bound)
    b_fc = jax.random.uniform(kb, (num_classes,), jnp.float32, -bound, bound)
    return {"layers": layers, "fc": (w_fc, b_fc)}


# -----------------------------------------------------------------------------
# Demo
# -----------------------------------------------------------------------------
if __name__ == "__main__":
    # Module defaults: input_size=102, hidden_size=128, num_layers=2, classes=10.
    # B=8 fills sublanes better; T=20 with t_chunk=8 exercises multi-chunk
    # scanning, the reversed backward chunk order, and the padded-tail masking.
    batch, seq_len = 8, 20
    input_size, hidden_size, num_layers, num_classes = 102, 128, 2, 10

    key = jax.random.PRNGKey(0)
    key, kx = jax.random.split(key)
    x = jax.random.normal(kx, (batch, seq_len, input_size), jnp.float32)
    params = init_params(key, input_size, hidden_size, num_layers, num_classes)

    fwd = jax.jit(functools.partial(lstm_model_forward, t_chunk=8))
    logits = fwd(x, params)
    jax.block_until_ready(logits)
    assert logits.shape == (batch, num_classes)
    print("KERNEL_OK")
</pallas_src>

<mosaic_0001>
module attributes {stable_mosaic.version = 11 : i64} {
  func.func @_bilstm_kernel(%arg0: i32, %arg1: memref<7x8x512xf32, #tpu.memory_space<vmem>>, %arg2: memref<7x8x512xf32, #tpu.memory_space<vmem>>, %arg3: memref<2x128x512xbf16, #tpu.memory_space<vmem>>, %arg4: memref<7x8x128xbf16, #tpu.memory_space<vmem>>, %arg5: memref<7x8x128xbf16, #tpu.memory_space<vmem>>, %arg6: memref<8x256xf32, #tpu.memory_space<vmem>>, %arg7: memref<4x8x128xf32, #tpu.memory_space<vmem>>) attributes {dimension_semantics = [#tpu.dimension_semantics<arbitrary>], iteration_bounds = array<i64: 3>, scalar_prefetch = 0 : i64, scratch_operands = 1 : i64, tpu.core_type = #tpu.core_type<tc>, window_params = [{transform_indices = @transform_0, window_bounds = array<i64: 7, 8, 512>}, {transform_indices = @transform_1, window_bounds = array<i64: 7, 8, 512>}, {pipeline_mode = #tpu.pipeline_mode<synchronous>, transform_indices = @transform_2, window_bounds = array<i64: 2, 128, 512>}, {transform_indices = @transform_3, window_bounds = array<i64: 7, 8, 128>}, {transform_indices = @transform_4, window_bounds = array<i64: 7, 8, 128>}, {pipeline_mode = #tpu.pipeline_mode<synchronous>, transform_indices = @transform_5, window_bounds = array<i64: 8, 256>}]} {
    %c0_i32 = arith.constant 0 : i32
    %0 = arith.cmpi eq, %arg0, %c0_i32 : i32
    %1 = arith.extui %0 : i1 to i32
    %c0_i32_0 = arith.constant 0 : i32
    %2 = arith.cmpi ne, %1, %c0_i32_0 : i32
    scf.if %2 {
      %cst_160 = arith.constant 0.000000e+00 : f32
      %439 = vector.broadcast %cst_160 : f32 to vector<4x8x128xf32>
      %c0_161 = arith.constant 0 : index
      %c0_162 = arith.constant 0 : index
      %c0_163 = arith.constant 0 : index
      %440 = vector.load %arg7[%c0_161, %c0_162, %c0_163] : memref<4x8x128xf32, #tpu.memory_space<vmem>>, vector<4x8x128xf32>
      tpu.vector_store %arg7[%c0_161, %c0_162, %c0_163], %439 {strides = array<i32>} : memref<4x8x128xf32, #tpu.memory_space<vmem>>, vector<4x8x128xf32>,
    } else {
    }
    %c0 = arith.constant 0 : index
    %c0_1 = arith.constant 0 : index
    %c0_2 = arith.constant 0 : index
    %3 = vector.load %arg7[%c0, %c0_1, %c0_2] : memref<4x8x128xf32, #tpu.memory_space<vmem>>, vector<1x8x128xf32>
    %4 = vector.shape_cast %3 : vector<1x8x128xf32> to vector<8x128xf32>
    %c1 = arith.constant 1 : index
    %c0_3 = arith.constant 0 : index
    %c0_4 = arith.constant 0 : index
    %5 = vector.load %arg7[%c1, %c0_3, %c0_4] : memref<4x8x128xf32, #tpu.memory_space<vmem>>, vector<1x8x128xf32>
    %6 = vector.shape_cast %5 : vector<1x8x128xf32> to vector<8x128xf32>
    %c2 = arith.constant 2 : index
    %c0_5 = arith.constant 0 : index
    %c0_6 = arith.constant 0 : index
    %7 = vector.load %arg7[%c2, %c0_5, %c0_6] : memref<4x8x128xf32, #tpu.memory_space<vmem>>, vector<1x8x128xf32>
    %8 = vector.shape_cast %7 : vector<1x8x128xf32> to vector<8x128xf32>
    %c3 = arith.constant 3 : index
    %c0_7 = arith.constant 0 : index
    %c0_8 = arith.constant 0 : index
    %9 = vector.load %arg7[%c3, %c0_7, %c0_8] : memref<4x8x128xf32, #tpu.memory_space<vmem>>, vector<1x8x128xf32>
    %10 = vector.shape_cast %9 : vector<1x8x128xf32> to vector<8x128xf32>
    %c0_9 = arith.constant 0 : index
    %c0_10 = arith.constant 0 : index
    %c0_11 = arith.constant 0 : index
    %11 = vector.load %arg3[%c0_9, %c0_10, %c0_11] : memref<2x128x512xbf16, #tpu.memory_space<vmem>>, vector<1x128x512xbf16>
    %12 = vector.shape_cast %11 : vector<1x128x512xbf16> to vector<128x512xbf16>
    %c1_12 = arith.constant 1 : index
    %c0_13 = arith.constant 0 : index
    %c0_14 = arith.constant 0 : index
    %13 = vector.load %arg3[%c1_12, %c0_13, %c0_14] : memref<2x128x512xbf16, #tpu.memory_space<vmem>>, vector<1x128x512xbf16>
    %14 = vector.shape_cast %13 : vector<1x128x512xbf16> to vector<128x512xbf16>
    %c7_i32 = arith.constant 7 : i32
    %15 = arith.muli %arg0, %c7_i32 : i32
    %c2_i32 = arith.constant 2 : i32
    %16 = arith.subi %c2_i32, %arg0 : i32
    %c7_i32_15 = arith.constant 7 : i32
    %17 = arith.muli %16, %c7_i32_15 : i32
    %c0_16 = arith.constant 0 : index
    %c0_17 = arith.constant 0 : index
    %c0_18 = arith.constant 0 : index
    %18 = vector.load %arg1[%c0_16, %c0_17, %c0_18] : memref<7x8x512xf32, #tpu.memory_space<vmem>>, vector<1x8x512xf32>
    %19 = vector.shape_cast %18 : vector<1x8x512xf32> to vector<8x512xf32>
    %20 = arith.truncf %4 : vector<8x128xf32> to vector<8x128xbf16>
    %cst = arith.constant dense<0.000000e+00> : vector<8x512xf32>
    %21 = tpu.matmul %20, %12, %cst {dimension_numbers = #tpu.dot_dimension_numbers<[1], [0], [0], [1], [0, 0, 1, 1], [], []>} : vector<8x128xbf16>, vector<128x512xbf16>, vector<8x512xf32> -> vector<8x512xf32>
    %22 = arith.addf %19, %21 : vector<8x512xf32>
    %c6 = arith.constant 6 : index
    %c0_19 = arith.constant 0 : index
    %c0_20 = arith.constant 0 : index
    %23 = vector.load %arg2[%c6, %c0_19, %c0_20] : memref<7x8x512xf32, #tpu.memory_space<vmem>>, vector<1x8x512xf32>
    %24 = vector.shape_cast %23 : vector<1x8x512xf32> to vector<8x512xf32>
    %25 = arith.truncf %8 : vector<8x128xf32> to vector<8x128xbf16>
    %cst_21 = arith.constant dense<0.000000e+00> : vector<8x512xf32>
    %26 = tpu.matmul %25, %14, %cst_21 {dimension_numbers = #tpu.dot_dimension_numbers<[1], [0], [0], [1], [0, 0, 1, 1], [], []>} : vector<8x128xbf16>, vector<128x512xbf16>, vector<8x512xf32> -> vector<8x512xf32>
    %27 = arith.addf %24, %26 : vector<8x512xf32>
    %28 = vector.extract_strided_slice %22 {offsets = [0, 0], sizes = [8, 384], strides = [1, 1]} : vector<8x512xf32> to vector<8x384xf32>
    %29 = arith.negf %28 : vector<8x384xf32>
    %30 = math.exp %29 : vector<8x384xf32>
    %cst_22 = arith.constant 1.000000e+00 : f32
    %31 = vector.broadcast %cst_22 : f32 to vector<8x384xf32>
    %32 = arith.addf %31, %30 : vector<8x384xf32>
    %33 = arith.divf %31, %32 : vector<8x384xf32>
    %34 = vector.extract_strided_slice %27 {offsets = [0, 0], sizes = [8, 384], strides = [1, 1]} : vector<8x512xf32> to vector<8x384xf32>
    %35 = arith.negf %34 : vector<8x384xf32>
    %36 = math.exp %35 : vector<8x384xf32>
    %cst_23 = arith.constant 1.000000e+00 : f32
    %37 = vector.broadcast %cst_23 : f32 to vector<8x384xf32>
    %38 = arith.addf %37, %36 : vector<8x384xf32>
    %39 = arith.divf %37, %38 : vector<8x384xf32>
    %40 = vector.extract_strided_slice %33 {offsets = [0, 128], sizes = [8, 128], strides = [1, 1]} : vector<8x384xf32> to vector<8x128xf32>
    %41 = arith.mulf %40, %6 : vector<8x128xf32>
    %42 = vector.extract_strided_slice %33 {offsets = [0, 0], sizes = [8, 128], strides = [1, 1]} : vector<8x384xf32> to vector<8x128xf32>
    %43 = vector.extract_strided_slice %22 {offsets = [0, 384], sizes = [8, 128], strides = [1, 1]} : vector<8x512xf32> to vector<8x128xf32>
    %44 = math.tanh %43 : vector<8x128xf32>
    %45 = arith.mulf %42, %44 : vector<8x128xf32>
    %46 = arith.addf %41, %45 : vector<8x128xf32>
    %47 = vector.extract_strided_slice %33 {offsets = [0, 256], sizes = [8, 128], strides = [1, 1]} : vector<8x384xf32> to vector<8x128xf32>
    %48 = math.tanh %46 : vector<8x128xf32>
    %49 = arith.mulf %47, %48 : vector<8x128xf32>
    %50 = vector.extract_strided_slice %39 {offsets = [0, 128], sizes = [8, 128], strides = [1, 1]} : vector<8x384xf32> to vector<8x128xf32>
    %51 = arith.mulf %50, %10 : vector<8x128xf32>
    %52 = vector.extract_strided_slice %39 {offsets = [0, 0], sizes = [8, 128], strides = [1, 1]} : vector<8x384xf32> to vector<8x128xf32>
    %53 = vector.extract_strided_slice %27 {offsets = [0, 384], sizes = [8, 128], strides = [1, 1]} : vector<8x512xf32> to vector<8x128xf32>
    %54 = math.tanh %53 : vector<8x128xf32>
    %55 = arith.mulf %52, %54 : vector<8x128xf32>
    %56 = arith.addf %51, %55 : vector<8x128xf32>
    %57 = vector.extract_strided_slice %39 {offsets = [0, 256], sizes = [8, 128], strides = [1, 1]} : vector<8x384xf32> to vector<8x128xf32>
    %58 = math.tanh %56 : vector<8x128xf32>
    %59 = arith.mulf %57, %58 : vector<8x128xf32>
    %c0_i32_24 = arith.constant 0 : i32
    %60 = arith.addi %15, %c0_i32_24 : i32
    %c20_i32 = arith.constant 20 : i32
    %61 = arith.cmpi slt, %60, %c20_i32 : i32
    %c6_i32 = arith.constant 6 : i32
    %62 = arith.addi %17, %c6_i32 : i32
    %c20_i32_25 = arith.constant 20 : i32
    %63 = arith.cmpi slt, %62, %c20_i32_25 : i32
    %64 = arith.select %61, %49, %4 : vector<8x128xf32>
    %65 = arith.select %61, %46, %6 : vector<8x128xf32>
    %66 = arith.select %63, %59, %8 : vector<8x128xf32>
    %67 = arith.select %63, %56, %10 : vector<8x128xf32>
    %68 = arith.truncf %64 : vector<8x128xf32> to vector<8x128xbf16>
    %c0_26 = arith.constant 0 : index
    %c0_27 = arith.constant 0 : index
    %c0_28 = arith.constant 0 : index
    %69 = vector.load %arg4[%c0_26, %c0_27, %c0_28] : memref<7x8x128xbf16, #tpu.memory_space<vmem>>, vector<1x8x128xbf16>
    %70 = vector.shape_cast %69 : vector<1x8x128xbf16> to vector<8x128xbf16>
    %71 = vector.shape_cast %68 : vector<8x128xbf16> to vector<1x8x128xbf16>
    tpu.vector_store %arg4[%c0_26, %c0_27, %c0_28], %71 {strides = array<i32>} : memref<7x8x128xbf16, #tpu.memory_space<vmem>>, vector<1x8x128xbf16>,
    %72 = arith.truncf %66 : vector<8x128xf32> to vector<8x128xbf16>
    %c6_29 = arith.constant 6 : index
    %c0_30 = arith.constant 0 : index
    %c0_31 = arith.constant 0 : index
    %73 = vector.load %arg5[%c6_29, %c0_30, %c0_31] : memref<7x8x128xbf16, #tpu.memory_space<vmem>>, vector<1x8x128xbf16>
    %74 = vector.shape_cast %73 : vector<1x8x128xbf16> to vector<8x128xbf16>
    %75 = vector.shape_cast %72 : vector<8x128xbf16> to vector<1x8x128xbf16>
    tpu.vector_store %arg5[%c6_29, %c0_30, %c0_31], %75 {strides = array<i32>} : memref<7x8x128xbf16, #tpu.memory_space<vmem>>, vector<1x8x128xbf16>,
    %c1_32 = arith.constant 1 : index
    %c0_33 = arith.constant 0 : index
    %c0_34 = arith.constant 0 : index
    %76 = vector.load %arg1[%c1_32, %c0_33, %c0_34] : memref<7x8x512xf32, #tpu.memory_space<vmem>>, vector<1x8x512xf32>
    %77 = vector.shape_cast %76 : vector<1x8x512xf32> to vector<8x512xf32>
    %78 = arith.truncf %64 : vector<8x128xf32> to vector<8x128xbf16>
    %cst_35 = arith.constant dense<0.000000e+00> : vector<8x512xf32>
    %79 = tpu.matmul %78, %12, %cst_35 {dimension_numbers = #tpu.dot_dimension_numbers<[1], [0], [0], [1], [0, 0, 1, 1], [], []>} : vector<8x128xbf16>, vector<128x512xbf16>, vector<8x512xf32> -> vector<8x512xf32>
    %80 = arith.addf %77, %79 : vector<8x512xf32>
    %c5 = arith.constant 5 : index
    %c0_36 = arith.constant 0 : index
    %c0_37 = arith.constant 0 : index
    %81 = vector.load %arg2[%c5, %c0_36, %c0_37] : memref<7x8x512xf32, #tpu.memory_space<vmem>>, vector<1x8x512xf32>
    %82 = vector.shape_cast %81 : vector<1x8x512xf32> to vector<8x512xf32>
    %83 = arith.truncf %66 : vector<8x128xf32> to vector<8x128xbf16>
    %cst_38 = arith.constant dense<0.000000e+00> : vector<8x512xf32>
    %84 = tpu.matmul %83, %14, %cst_38 {dimension_numbers = #tpu.dot_dimension_numbers<[1], [0], [0], [1], [0, 0, 1, 1], [], []>} : vector<8x128xbf16>, vector<128x512xbf16>, vector<8x512xf32> -> vector<8x512xf32>
    %85 = arith.addf %82, %84 : vector<8x512xf32>
    %86 = vector.extract_strided_slice %80 {offsets = [0, 0], sizes = [8, 384], strides = [1, 1]} : vector<8x512xf32> to vector<8x384xf32>
    %87 = arith.negf %86 : vector<8x384xf32>
    %88 = math.exp %87 : vector<8x384xf32>
    %cst_39 = arith.constant 1.000000e+00 : f32
    %89 = vector.broadcast %cst_39 : f32 to vector<8x384xf32>
    %90 = arith.addf %89, %88 : vector<8x384xf32>
    %91 = arith.divf %89, %90 : vector<8x384xf32>
    %92 = vector.extract_strided_slice %85 {offsets = [0, 0], sizes = [8, 384], strides = [1, 1]} : vector<8x512xf32> to vector<8x384xf32>
    %93 = arith.negf %92 : vector<8x384xf32>
    %94 = math.exp %93 : vector<8x384xf32>
    %cst_40 = arith.constant 1.000000e+00 : f32
    %95 = vector.broadcast %cst_40 : f32 to vector<8x384xf32>
    %96 = arith.addf %95, %94 : vector<8x384xf32>
    %97 = arith.divf %95, %96 : vector<8x384xf32>
    %98 = vector.extract_strided_slice %91 {offsets = [0, 128], sizes = [8, 128], strides = [1, 1]} : vector<8x384xf32> to vector<8x128xf32>
    %99 = arith.mulf %98, %65 : vector<8x128xf32>
    %100 = vector.extract_strided_slice %91 {offsets = [0, 0], sizes = [8, 128], strides = [1, 1]} : vector<8x384xf32> to vector<8x128xf32>
    %101 = vector.extract_strided_slice %80 {offsets = [0, 384], sizes = [8, 128], strides = [1, 1]} : vector<8x512xf32> to vector<8x128xf32>
    %102 = math.tanh %101 : vector<8x128xf32>
    %103 = arith.mulf %100, %102 : vector<8x128xf32>
    %104 = arith.addf %99, %103 : vector<8x128xf32>
    %105 = vector.extract_strided_slice %91 {offsets = [0, 256], sizes = [8, 128], strides = [1, 1]} : vector<8x384xf32> to vector<8x128xf32>
    %106 = math.tanh %104 : vector<8x128xf32>
    %107 = arith.mulf %105, %106 : vector<8x128xf32>
    %108 = vector.extract_strided_slice %97 {offsets = [0, 128], sizes = [8, 128], strides = [1, 1]} : vector<8x384xf32> to vector<8x128xf32>
    %109 = arith.mulf %108, %67 : vector<8x128xf32>
    %110 = vector.extract_strided_slice %97 {offsets = [0, 0], sizes = [8, 128], strides = [1, 1]} : vector<8x384xf32> to vector<8x128xf32>
    %111 = vector.extract_strided_slice %85 {offsets = [0, 384], sizes = [8, 128], strides = [1, 1]} : vector<8x512xf32> to vector<8x128xf32>
    %112 = math.tanh %111 : vector<8x128xf32>
    %113 = arith.mulf %110, %112 : vector<8x128xf32>
    %114 = arith.addf %109, %113 : vector<8x128xf32>
    %115 = vector.extract_strided_slice %97 {offsets = [0, 256], sizes = [8, 128], strides = [1, 1]} : vector<8x384xf32> to vector<8x128xf32>
    %116 = math.tanh %114 : vector<8x128xf32>
    %117 = arith.mulf %115, %116 : vector<8x128xf32>
    %c1_i32 = arith.constant 1 : i32
    %118 = arith.addi %15, %c1_i32 : i32
    %c20_i32_41 = arith.constant 20 : i32
    %119 = arith.cmpi slt, %118, %c20_i32_41 : i32
    %c5_i32 = arith.constant 5 : i32
    %120 = arith.addi %17, %c5_i32 : i32
    %c20_i32_42 = arith.constant 20 : i32
    %121 = arith.cmpi slt, %120, %c20_i32_42 : i32
    %122 = arith.select %119, %107, %64 : vector<8x128xf32>
    %123 = arith.select %119, %104, %65 : vector<8x128xf32>
    %124 = arith.select %121, %117, %66 : vector<8x128xf32>
    %125 = arith.select %121, %114, %67 : vector<8x128xf32>
    %126 = arith.truncf %122 : vector<8x128xf32> to vector<8x128xbf16>
    %c1_43 = arith.constant 1 : index
    %c0_44 = arith.constant 0 : index
    %c0_45 = arith.constant 0 : index
    %127 = vector.load %arg4[%c1_43, %c0_44, %c0_45] : memref<7x8x128xbf16, #tpu.memory_space<vmem>>, vector<1x8x128xbf16>
    %128 = vector.shape_cast %127 : vector<1x8x128xbf16> to vector<8x128xbf16>
    %129 = vector.shape_cast %126 : vector<8x128xbf16> to vector<1x8x128xbf16>
    tpu.vector_store %arg4[%c1_43, %c0_44, %c0_45], %129 {strides = array<i32>} : memref<7x8x128xbf16, #tpu.memory_space<vmem>>, vector<1x8x128xbf16>,
    %130 = arith.truncf %124 : vector<8x128xf32> to vector<8x128xbf16>
    %c5_46 = arith.constant 5 : index
    %c0_47 = arith.constant 0 : index
    %c0_48 = arith.constant 0 : index
    %131 = vector.load %arg5[%c5_46, %c0_47, %c0_48] : memref<7x8x128xbf16, #tpu.memory_space<vmem>>, vector<1x8x128xbf16>
    %132 = vector.shape_cast %131 : vector<1x8x128xbf16> to vector<8x128xbf16>
    %133 = vector.shape_cast %130 : vector<8x128xbf16> to vector<1x8x128xbf16>
    tpu.vector_store %arg5[%c5_46, %c0_47, %c0_48], %133 {strides = array<i32>} : memref<7x8x128xbf16, #tpu.memory_space<vmem>>, vector<1x8x128xbf16>,
    %c2_49 = arith.constant 2 : index
    %c0_50 = arith.constant 0 : index
    %c0_51 = arith.constant 0 : index
    %134 = vector.load %arg1[%c2_49, %c0_50, %c0_51] : memref<7x8x512xf32, #tpu.memory_space<vmem>>, vector<1x8x512xf32>
    %135 = vector.shape_cast %134 : vector<1x8x512xf32> to vector<8x512xf32>
    %136 = arith.truncf %122 : vector<8x128xf32> to vector<8x128xbf16>
    %cst_52 = arith.constant dense<0.000000e+00> : vector<8x512xf32>
    %137 = tpu.matmul %136, %12, %cst_52 {dimension_numbers = #tpu.dot_dimension_numbers<[1], [0], [0], [1], [0, 0, 1, 1], [], []>} : vector<8x128xbf16>, vector<128x512xbf16>, vector<8x512xf32> -> vector<8x512xf32>
    %138 = arith.addf %135, %137 : vector<8x512xf32>
    %c4 = arith.constant 4 : index
    %c0_53 = arith.constant 0 : index
    %c0_54 = arith.constant 0 : index
    %139 = vector.load %arg2[%c4, %c0_53, %c0_54] : memref<7x8x512xf32, #tpu.memory_space<vmem>>, vector<1x8x512xf32>
    %140 = vector.shape_cast %139 : vector<1x8x512xf32> to vector<8x512xf32>
    %141 = arith.truncf %124 : vector<8x128xf32> to vector<8x128xbf16>
    %cst_55 = arith.constant dense<0.000000e+00> : vector<8x512xf32>
    %142 = tpu.matmul %141, %14, %cst_55 {dimension_numbers = #tpu.dot_dimension_numbers<[1], [0], [0], [1], [0, 0, 1, 1], [], []>} : vector<8x128xbf16>, vector<128x512xbf16>, vector<8x512xf32> -> vector<8x512xf32>
    %143 = arith.addf %140, %142 : vector<8x512xf32>
    %144 = vector.extract_strided_slice %138 {offsets = [0, 0], sizes = [8, 384], strides = [1, 1]} : vector<8x512xf32> to vector<8x384xf32>
    %145 = arith.negf %144 : vector<8x384xf32>
    %146 = math.exp %145 : vector<8x384xf32>
    %cst_56 = arith.constant 1.000000e+00 : f32
    %147 = vector.broadcast %cst_56 : f32 to vector<8x384xf32>
    %148 = arith.addf %147, %146 : vector<8x384xf32>
    %149 = arith.divf %147, %148 : vector<8x384xf32>
    %150 = vector.extract_strided_slice %143 {offsets = [0, 0], sizes = [8, 384], strides = [1, 1]} : vector<8x512xf32> to vector<8x384xf32>
    %151 = arith.negf %150 : vector<8x384xf32>
    %152 = math.exp %151 : vector<8x384xf32>
    %cst_57 = arith.constant 1.000000e+00 : f32
    %153 = vector.broadcast %cst_57 : f32 to vector<8x384xf32>
    %154 = arith.addf %153, %152 : vector<8x384xf32>
    %155 = arith.divf %153, %154 : vector<8x384xf32>
    %156 = vector.extract_strided_slice %149 {offsets = [0, 128], sizes = [8, 128], strides = [1, 1]} : vector<8x384xf32> to vector<8x128xf32>
    %157 = arith.mulf %156, %123 : vector<8x128xf32>
    %158 = vector.extract_strided_slice %149 {offsets = [0, 0], sizes = [8, 128], strides = [1, 1]} : vector<8x384xf32> to vector<8x128xf32>
    %159 = vector.extract_strided_slice %138 {offsets = [0, 384], sizes = [8, 128], strides = [1, 1]} : vector<8x512xf32> to vector<8x128xf32>
    %160 = math.tanh %159 : vector<8x128xf32>
    %161 = arith.mulf %158, %160 : vector<8x128xf32>
    %162 = arith.addf %157, %161 : vector<8x128xf32>
    %163 = vector.extract_strided_slice %149 {offsets = [0, 256], sizes = [8, 128], strides = [1, 1]} : vector<8x384xf32> to vector<8x128xf32>
    %164 = math.tanh %162 : vector<8x128xf32>
    %165 = arith.mulf %163, %164 : vector<8x128xf32>
    %166 = vector.extract_strided_slice %155 {offsets = [0, 128], sizes = [8, 128], strides = [1, 1]} : vector<8x384xf32> to vector<8x128xf32>
    %167 = arith.mulf %166, %125 : vector<8x128xf32>
    %168 = vector.extract_strided_slice %155 {offsets = [0, 0], sizes = [8, 128], strides = [1, 1]} : vector<8x384xf32> to vector<8x128xf32>
    %169 = vector.extract_strided_slice %143 {offsets = [0, 384], sizes = [8, 128], strides = [1, 1]} : vector<8x512xf32> to vector<8x128xf32>
    %170 = math.tanh %169 : vector<8x128xf32>
    %171 = arith.mulf %168, %170 : vector<8x128xf32>
    %172 = arith.addf %167, %171 : vector<8x128xf32>
    %173 = vector.extract_strided_slice %155 {offsets = [0, 256], sizes = [8, 128], strides = [1, 1]} : vector<8x384xf32> to vector<8x128xf32>
    %174 = math.tanh %172 : vector<8x128xf32>
    %175 = arith.mulf %173, %174 : vector<8x128xf32>
    %c2_i32_58 = arith.constant 2 : i32
    %176 = arith.addi %15, %c2_i32_58 : i32
    %c20_i32_59 = arith.constant 20 : i32
    %177 = arith.cmpi slt, %176, %c20_i32_59 : i32
    %c4_i32 = arith.constant 4 : i32
    %178 = arith.addi %17, %c4_i32 : i32
    %c20_i32_60 = arith.constant 20 : i32
    %179 = arith.cmpi slt, %178, %c20_i32_60 : i32
    %180 = arith.select %177, %165, %122 : vector<8x128xf32>
    %181 = arith.select %177, %162, %123 : vector<8x128xf32>
    %182 = arith.select %179, %175, %124 : vector<8x128xf32>
    %183 = arith.select %179, %172, %125 : vector<8x128xf32>
    %184 = arith.truncf %180 : vector<8x128xf32> to vector<8x128xbf16>
    %c2_61 = arith.constant 2 : index
    %c0_62 = arith.constant 0 : index
    %c0_63 = arith.constant 0 : index
    %185 = vector.load %arg4[%c2_61, %c0_62, %c0_63] : memref<7x8x128xbf16, #tpu.memory_space<vmem>>, vector<1x8x128xbf16>
    %186 = vector.shape_cast %185 : vector<1x8x128xbf16> to vector<8x128xbf16>
    %187 = vector.shape_cast %184 : vector<8x128xbf16> to vector<1x8x128xbf16>
    tpu.vector_store %arg4[%c2_61, %c0_62, %c0_63], %187 {strides = array<i32>} : memref<7x8x128xbf16, #tpu.memory_space<vmem>>, vector<1x8x128xbf16>,
    %188 = arith.truncf %182 : vector<8x128xf32> to vector<8x128xbf16>
    %c4_64 = arith.constant 4 : index
    %c0_65 = arith.constant 0 : index
    %c0_66 = arith.constant 0 : index
    %189 = vector.load %arg5[%c4_64, %c0_65, %c0_66] : memref<7x8x128xbf16, #tpu.memory_space<vmem>>, vector<1x8x128xbf16>
    %190 = vector.shape_cast %189 : vector<1x8x128xbf16> to vector<8x128xbf16>
    %191 = vector.shape_cast %188 : vector<8x128xbf16> to vector<1x8x128xbf16>
    tpu.vector_store %arg5[%c4_64, %c0_65, %c0_66], %191 {strides = array<i32>} : memref<7x8x128xbf16, #tpu.memory_space<vmem>>, vector<1x8x128xbf16>,
    %c3_67 = arith.constant 3 : index
    %c0_68 = arith.constant 0 : index
    %c0_69 = arith.constant 0 : index
    %192 = vector.load %arg1[%c3_67, %c0_68, %c0_69] : memref<7x8x512xf32, #tpu.memory_space<vmem>>, vector<1x8x512xf32>
    %193 = vector.shape_cast %192 : vector<1x8x512xf32> to vector<8x512xf32>
    %194 = arith.truncf %180 : vector<8x128xf32> to vector<8x128xbf16>
    %cst_70 = arith.constant dense<0.000000e+00> : vector<8x512xf32>
    %195 = tpu.matmul %194, %12, %cst_70 {dimension_numbers = #tpu.dot_dimension_numbers<[1], [0], [0], [1], [0, 0, 1, 1], [], []>} : vector<8x128xbf16>, vector<128x512xbf16>, vector<8x512xf32> -> vector<8x512xf32>
    %196 = arith.addf %193, %195 : vector<8x512xf32>
    %c3_71 = arith.constant 3 : index
    %c0_72 = arith.constant 0 : index
    %c0_73 = arith.constant 0 : index
    %197 = vector.load %arg2[%c3_71, %c0_72, %c0_73] : memref<7x8x512xf32, #tpu.memory_space<vmem>>, vector<1x8x512xf32>
    %198 = vector.shape_cast %197 : vector<1x8x512xf32> to vector<8x512xf32>
    %199 = arith.truncf %182 : vector<8x128xf32> to vector<8x128xbf16>
    %cst_74 = arith.constant dense<0.000000e+00> : vector<8x512xf32>
    %200 = tpu.matmul %199, %14, %cst_74 {dimension_numbers = #tpu.dot_dimension_numbers<[1], [0], [0], [1], [0, 0, 1, 1], [], []>} : vector<8x128xbf16>, vector<128x512xbf16>, vector<8x512xf32> -> vector<8x512xf32>
    %201 = arith.addf %198, %200 : vector<8x512xf32>
    %202 = vector.extract_strided_slice %196 {offsets = [0, 0], sizes = [8, 384], strides = [1, 1]} : vector<8x512xf32> to vector<8x384xf32>
    %203 = arith.negf %202 : vector<8x384xf32>
    %204 = math.exp %203 : vector<8x384xf32>
    %cst_75 = arith.constant 1.000000e+00 : f32
    %205 = vector.broadcast %cst_75 : f32 to vector<8x384xf32>
    %206 = arith.addf %205, %204 : vector<8x384xf32>
    %207 = arith.divf %205, %206 : vector<8x384xf32>
    %208 = vector.extract_strided_slice %201 {offsets = [0, 0], sizes = [8, 384], strides = [1, 1]} : vector<8x512xf32> to vector<8x384xf32>
    %209 = arith.negf %208 : vector<8x384xf32>
    %210 = math.exp %209 : vector<8x384xf32>
    %cst_76 = arith.constant 1.000000e+00 : f32
    %211 = vector.broadcast %cst_76 : f32 to vector<8x384xf32>
    %212 = arith.addf %211, %210 : vector<8x384xf32>
    %213 = arith.divf %211, %212 : vector<8x384xf32>
    %214 = vector.extract_strided_slice %207 {offsets = [0, 128], sizes = [8, 128], strides = [1, 1]} : vector<8x384xf32> to vector<8x128xf32>
    %215 = arith.mulf %214, %181 : vector<8x128xf32>
    %216 = vector.extract_strided_slice %207 {offsets = [0, 0], sizes = [8, 128], strides = [1, 1]} : vector<8x384xf32> to vector<8x128xf32>
    %217 = vector.extract_strided_slice %196 {offsets = [0, 384], sizes = [8, 128], strides = [1, 1]} : vector<8x512xf32> to vector<8x128xf32>
    %218 = math.tanh %217 : vector<8x128xf32>
    %219 = arith.mulf %216, %218 : vector<8x128xf32>
    %220 = arith.addf %215, %219 : vector<8x128xf32>
    %221 = vector.extract_strided_slice %207 {offsets = [0, 256], sizes = [8, 128], strides = [1, 1]} : vector<8x384xf32> to vector<8x128xf32>
    %222 = math.tanh %220 : vector<8x128xf32>
    %223 = arith.mulf %221, %222 : vector<8x128xf32>
    %224 = vector.extract_strided_slice %213 {offsets = [0, 128], sizes = [8, 128], strides = [1, 1]} : vector<8x384xf32> to vector<8x128xf32>
    %225 = arith.mulf %224, %183 : vector<8x128xf32>
    %226 = vector.extract_strided_slice %213 {offsets = [0, 0], sizes = [8, 128], strides = [1, 1]} : vector<8x384xf32> to vector<8x128xf32>
    %227 = vector.extract_strided_slice %201 {offsets = [0, 384], sizes = [8, 128], strides = [1, 1]} : vector<8x512xf32> to vector<8x128xf32>
    %228 = math.tanh %227 : vector<8x128xf32>
    %229 = arith.mulf %226, %228 : vector<8x128xf32>
    %230 = arith.addf %225, %229 : vector<8x128xf32>
    %231 = vector.extract_strided_slice %213 {offsets = [0, 256], sizes = [8, 128], strides = [1, 1]} : vector<8x384xf32> to vector<8x128xf32>
    %232 = math.tanh %230 : vector<8x128xf32>
    %233 = arith.mulf %231, %232 : vector<8x128xf32>
    %c3_i32 = arith.constant 3 : i32
    %234 = arith.addi %15, %c3_i32 : i32
    %c20_i32_77 = arith.constant 20 : i32
    %235 = arith.cmpi slt, %234, %c20_i32_77 : i32
    %c3_i32_78 = arith.constant 3 : i32
    %236 = arith.addi %17, %c3_i32_78 : i32
    %c20_i32_79 = arith.constant 20 : i32
    %237 = arith.cmpi slt, %236, %c20_i32_79 : i32
    %238 = arith.select %235, %223, %180 : vector<8x128xf32>
    %239 = arith.select %235, %220, %181 : vector<8x128xf32>
    %240 = arith.select %237, %233, %182 : vector<8x128xf32>
    %241 = arith.select %237, %230, %183 : vector<8x128xf32>
    %242 = arith.truncf %238 : vector<8x128xf32> to vector<8x128xbf16>
    %c3_80 = arith.constant 3 : index
    %c0_81 = arith.constant 0 : index
    %c0_82 = arith.constant 0 : index
    %243 = vector.load %arg4[%c3_80, %c0_81, %c0_82] : memref<7x8x128xbf16, #tpu.memory_space<vmem>>, vector<1x8x128xbf16>
    %244 = vector.shape_cast %243 : vector<1x8x128xbf16> to vector<8x128xbf16>
    %245 = vector.shape_cast %242 : vector<8x128xbf16> to vector<1x8x128xbf16>
    tpu.vector_store %arg4[%c3_80, %c0_81, %c0_82], %245 {strides = array<i32>} : memref<7x8x128xbf16, #tpu.memory_space<vmem>>, vector<1x8x128xbf16>,
    %246 = arith.truncf %240 : vector<8x128xf32> to vector<8x128xbf16>
    %c3_83 = arith.constant 3 : index
    %c0_84 = arith.constant 0 : index
    %c0_85 = arith.constant 0 : index
    %247 = vector.load %arg5[%c3_83, %c0_84, %c0_85] : memref<7x8x128xbf16, #tpu.memory_space<vmem>>, vector<1x8x128xbf16>
    %248 = vector.shape_cast %247 : vector<1x8x128xbf16> to vector<8x128xbf16>
    %249 = vector.shape_cast %246 : vector<8x128xbf16> to vector<1x8x128xbf16>
    tpu.vector_store %arg5[%c3_83, %c0_84, %c0_85], %249 {strides = array<i32>} : memref<7x8x128xbf16, #tpu.memory_space<vmem>>, vector<1x8x128xbf16>,
    %c4_86 = arith.constant 4 : index
    %c0_87 = arith.constant 0 : index
    %c0_88 = arith.constant 0 : index
    %250 = vector.load %arg1[%c4_86, %c0_87, %c0_88] : memref<7x8x512xf32, #tpu.memory_space<vmem>>, vector<1x8x512xf32>
    %251 = vector.shape_cast %250 : vector<1x8x512xf32> to vector<8x512xf32>
    %252 = arith.truncf %238 : vector<8x128xf32> to vector<8x128xbf16>
    %cst_89 = arith.constant dense<0.000000e+00> : vector<8x512xf32>
    %253 = tpu.matmul %252, %12, %cst_89 {dimension_numbers = #tpu.dot_dimension_numbers<[1], [0], [0], [1], [0, 0, 1, 1], [], []>} : vector<8x128xbf16>, vector<128x512xbf16>, vector<8x512xf32> -> vector<8x512xf32>
    %254 = arith.addf %251, %253 : vector<8x512xf32>
    %c2_90 = arith.constant 2 : index
    %c0_91 = arith.constant 0 : index
    %c0_92 = arith.constant 0 : index
    %255 = vector.load %arg2[%c2_90, %c0_91, %c0_92] : memref<7x8x512xf32, #tpu.memory_space<vmem>>, vector<1x8x512xf32>
    %256 = vector.shape_cast %255 : vector<1x8x512xf32> to vector<8x512xf32>
    %257 = arith.truncf %240 : vector<8x128xf32> to vector<8x128xbf16>
    %cst_93 = arith.constant dense<0.000000e+00> : vector<8x512xf32>
    %258 = tpu.matmul %257, %14, %cst_93 {dimension_numbers = #tpu.dot_dimension_numbers<[1], [0], [0], [1], [0, 0, 1, 1], [], []>} : vector<8x128xbf16>, vector<128x512xbf16>, vector<8x512xf32> -> vector<8x512xf32>
    %259 = arith.addf %256, %258 : vector<8x512xf32>
    %260 = vector.extract_strided_slice %254 {offsets = [0, 0], sizes = [8, 384], strides = [1, 1]} : vector<8x512xf32> to vector<8x384xf32>
    %261 = arith.negf %260 : vector<8x384xf32>
    %262 = math.exp %261 : vector<8x384xf32>
    %cst_94 = arith.constant 1.000000e+00 : f32
    %263 = vector.broadcast %cst_94 : f32 to vector<8x384xf32>
    %264 = arith.addf %263, %262 : vector<8x384xf32>
    %265 = arith.divf %263, %264 : vector<8x384xf32>
    %266 = vector.extract_strided_slice %259 {offsets = [0, 0], sizes = [8, 384], strides = [1, 1]} : vector<8x512xf32> to vector<8x384xf32>
    %267 = arith.negf %266 : vector<8x384xf32>
    %268 = math.exp %267 : vector<8x384xf32>
    %cst_95 = arith.constant 1.000000e+00 : f32
    %269 = vector.broadcast %cst_95 : f32 to vector<8x384xf32>
    %270 = arith.addf %269, %268 : vector<8x384xf32>
    %271 = arith.divf %269, %270 : vector<8x384xf32>
    %272 = vector.extract_strided_slice %265 {offsets = [0, 128], sizes = [8, 128], strides = [1, 1]} : vector<8x384xf32> to vector<8x128xf32>
    %273 = arith.mulf %272, %239 : vector<8x128xf32>
    %274 = vector.extract_strided_slice %265 {offsets = [0, 0], sizes = [8, 128], strides = [1, 1]} : vector<8x384xf32> to vector<8x128xf32>
    %275 = vector.extract_strided_slice %254 {offsets = [0, 384], sizes = [8, 128], strides = [1, 1]} : vector<8x512xf32> to vector<8x128xf32>
    %276 = math.tanh %275 : vector<8x128xf32>
    %277 = arith.mulf %274, %276 : vector<8x128xf32>
    %278 = arith.addf %273, %277 : vector<8x128xf32>
    %279 = vector.extract_strided_slice %265 {offsets = [0, 256], sizes = [8, 128], strides = [1, 1]} : vector<8x384xf32> to vector<8x128xf32>
    %280 = math.tanh %278 : vector<8x128xf32>
    %281 = arith.mulf %279, %280 : vector<8x128xf32>
    %282 = vector.extract_strided_slice %271 {offsets = [0, 128], sizes = [8, 128], strides = [1, 1]} : vector<8x384xf32> to vector<8x128xf32>
    %283 = arith.mulf %282, %241 : vector<8x128xf32>
    %284 = vector.extract_strided_slice %271 {offsets = [0, 0], sizes = [8, 128], strides = [1, 1]} : vector<8x384xf32> to vector<8x128xf32>
    %285 = vector.extract_strided_slice %259 {offsets = [0, 384], sizes = [8, 128], strides = [1, 1]} : vector<8x512xf32> to vector<8x128xf32>
    %286 = math.tanh %285 : vector<8x128xf32>
    %287 = arith.mulf %284, %286 : vector<8x128xf32>
    %288 = arith.addf %283, %287 : vector<8x128xf32>
    %289 = vector.extract_strided_slice %271 {offsets = [0, 256], sizes = [8, 128], strides = [1, 1]} : vector<8x384xf32> to vector<8x128xf32>
    %290 = math.tanh %288 : vector<8x128xf32>
    %291 = arith.mulf %289, %290 : vector<8x128xf32>
    %c4_i32_96 = arith.constant 4 : i32
    %292 = arith.addi %15, %c4_i32_96 : i32
    %c20_i32_97 = arith.constant 20 : i32
    %293 = arith.cmpi slt, %292, %c20_i32_97 : i32
    %c2_i32_98 = arith.constant 2 : i32
    %294 = arith.addi %17, %c2_i32_98 : i32
    %c20_i32_99 = arith.constant 20 : i32
    %295 = arith.cmpi slt, %294, %c20_i32_99 : i32
    %296 = arith.select %293, %281, %238 : vector<8x128xf32>
    %297 = arith.select %293, %278, %239 : vector<8x128xf32>
    %298 = arith.select %295, %291, %240 : vector<8x128xf32>
    %299 = arith.select %295, %288, %241 : vector<8x128xf32>
    %300 = arith.truncf %296 : vector<8x128xf32> to vector<8x128xbf16>
    %c4_100 = arith.constant 4 : index
    %c0_101 = arith.constant 0 : index
    %c0_102 = arith.constant 0 : index
    %301 = vector.load %arg4[%c4_100, %c0_101, %c0_102] : memref<7x8x128xbf16, #tpu.memory_space<vmem>>, vector<1x8x128xbf16>
    %302 = vector.shape_cast %301 : vector<1x8x128xbf16> to vector<8x128xbf16>
    %303 = vector.shape_cast %300 : vector<8x128xbf16> to vector<1x8x128xbf16>
    tpu.vector_store %arg4[%c4_100, %c0_101, %c0_102], %303 {strides = array<i32>} : memref<7x8x128xbf16, #tpu.memory_space<vmem>>, vector<1x8x128xbf16>,
    %304 = arith.truncf %298 : vector<8x128xf32> to vector<8x128xbf16>
    %c2_103 = arith.constant 2 : index
    %c0_104 = arith.constant 0 : index
    %c0_105 = arith.constant 0 : index
    %305 = vector.load %arg5[%c2_103, %c0_104, %c0_105] : memref<7x8x128xbf16, #tpu.memory_space<vmem>>, vector<1x8x128xbf16>
    %306 = vector.shape_cast %305 : vector<1x8x128xbf16> to vector<8x128xbf16>
    %307 = vector.shape_cast %304 : vector<8x128xbf16> to vector<1x8x128xbf16>
    tpu.vector_store %arg5[%c2_103, %c0_104, %c0_105], %307 {strides = array<i32>} : memref<7x8x128xbf16, #tpu.memory_space<vmem>>, vector<1x8x128xbf16>,
    %c5_106 = arith.constant 5 : index
    %c0_107 = arith.constant 0 : index
    %c0_108 = arith.constant 0 : index
    %308 = vector.load %arg1[%c5_106, %c0_107, %c0_108] : memref<7x8x512xf32, #tpu.memory_space<vmem>>, vector<1x8x512xf32>
    %309 = vector.shape_cast %308 : vector<1x8x512xf32> to vector<8x512xf32>
    %310 = arith.truncf %296 : vector<8x128xf32> to vector<8x128xbf16>
    %cst_109 = arith.constant dense<0.000000e+00> : vector<8x512xf32>
    %311 = tpu.matmul %310, %12, %cst_109 {dimension_numbers = #tpu.dot_dimension_numbers<[1], [0], [0], [1], [0, 0, 1, 1], [], []>} : vector<8x128xbf16>, vector<128x512xbf16>, vector<8x512xf32> -> vector<8x512xf32>
    %312 = arith.addf %309, %311 : vector<8x512xf32>
    %c1_110 = arith.constant 1 : index
    %c0_111 = arith.constant 0 : index
    %c0_112 = arith.constant 0 : index
    %313 = vector.load %arg2[%c1_110, %c0_111, %c0_112] : memref<7x8x512xf32, #tpu.memory_space<vmem>>, vector<1x8x512xf32>
    %314 = vector.shape_cast %313 : vector<1x8x512xf32> to vector<8x512xf32>
    %315 = arith.truncf %298 : vector<8x128xf32> to vector<8x128xbf16>
    %cst_113 = arith.constant dense<0.000000e+00> : vector<8x512xf32>
    %316 = tpu.matmul %315, %14, %cst_113 {dimension_numbers = #tpu.dot_dimension_numbers<[1], [0], [0], [1], [0, 0, 1, 1], [], []>} : vector<8x128xbf16>, vector<128x512xbf16>, vector<8x512xf32> -> vector<8x512xf32>
    %317 = arith.addf %314, %316 : vector<8x512xf32>
    %318 = vector.extract_strided_slice %312 {offsets = [0, 0], sizes = [8, 384], strides = [1, 1]} : vector<8x512xf32> to vector<8x384xf32>
    %319 = arith.negf %318 : vector<8x384xf32>
    %320 = math.exp %319 : vector<8x384xf32>
    %cst_114 = arith.constant 1.000000e+00 : f32
    %321 = vector.broadcast %cst_114 : f32 to vector<8x384xf32>
    %322 = arith.addf %321, %320 : vector<8x384xf32>
    %323 = arith.divf %321, %322 : vector<8x384xf32>
    %324 = vector.extract_strided_slice %317 {offsets = [0, 0], sizes = [8, 384], strides = [1, 1]} : vector<8x512xf32> to vector<8x384xf32>
    %325 = arith.negf %324 : vector<8x384xf32>
    %326 = math.exp %325 : vector<8x384xf32>
    %cst_115 = arith.constant 1.000000e+00 : f32
    %327 = vector.broadcast %cst_115 : f32 to vector<8x384xf32>
    %328 = arith.addf %327, %326 : vector<8x384xf32>
    %329 = arith.divf %327, %328 : vector<8x384xf32>
    %330 = vector.extract_strided_slice %323 {offsets = [0, 128], sizes = [8, 128], strides = [1, 1]} : vector<8x384xf32> to vector<8x128xf32>
    %331 = arith.mulf %330, %297 : vector<8x128xf32>
    %332 = vector.extract_strided_slice %323 {offsets = [0, 0], sizes = [8, 128], strides = [1, 1]} : vector<8x384xf32> to vector<8x128xf32>
    %333 = vector.extract_strided_slice %312 {offsets = [0, 384], sizes = [8, 128], strides = [1, 1]} : vector<8x512xf32> to vector<8x128xf32>
    %334 = math.tanh %333 : vector<8x128xf32>
    %335 = arith.mulf %332, %334 : vector<8x128xf32>
    %336 = arith.addf %331, %335 : vector<8x128xf32>
    %337 = vector.extract_strided_slice %323 {offsets = [0, 256], sizes = [8, 128], strides = [1, 1]} : vector<8x384xf32> to vector<8x128xf32>
    %338 = math.tanh %336 : vector<8x128xf32>
    %339 = arith.mulf %337, %338 : vector<8x128xf32>
    %340 = vector.extract_strided_slice %329 {offsets = [0, 128], sizes = [8, 128], strides = [1, 1]} : vector<8x384xf32> to vector<8x128xf32>
    %341 = arith.mulf %340, %299 : vector<8x128xf32>
    %342 = vector.extract_strided_slice %329 {offsets = [0, 0], sizes = [8, 128], strides = [1, 1]} : vector<8x384xf32> to vector<8x128xf32>
    %343 = vector.extract_strided_slice %317 {offsets = [0, 384], sizes = [8, 128], strides = [1, 1]} : vector<8x512xf32> to vector<8x128xf32>
    %344 = math.tanh %343 : vector<8x128xf32>
    %345 = arith.mulf %342, %344 : vector<8x128xf32>
    %346 = arith.addf %341, %345 : vector<8x128xf32>
    %347 = vector.extract_strided_slice %329 {offsets = [0, 256], sizes = [8, 128], strides = [1, 1]} : vector<8x384xf32> to vector<8x128xf32>
    %348 = math.tanh %346 : vector<8x128xf32>
    %349 = arith.mulf %347, %348 : vector<8x128xf32>
    %c5_i32_116 = arith.constant 5 : i32
    %350 = arith.addi %15, %c5_i32_116 : i32
    %c20_i32_117 = arith.constant 20 : i32
    %351 = arith.cmpi slt, %350, %c20_i32_117 : i32
    %c1_i32_118 = arith.constant 1 : i32
    %352 = arith.addi %17, %c1_i32_118 : i32
    %c20_i32_119 = arith.constant 20 : i32
    %353 = arith.cmpi slt, %352, %c20_i32_119 : i32
    %354 = arith.select %351, %339, %296 : vector<8x128xf32>
    %355 = arith.select %351, %336, %297 : vector<8x128xf32>
    %356 = arith.select %353, %349, %298 : vector<8x128xf32>
    %357 = arith.select %353, %346, %299 : vector<8x128xf32>
    %358 = arith.truncf %354 : vector<8x128xf32> to vector<8x128xbf16>
    %c5_120 = arith.constant 5 : index
    %c0_121 = arith.constant 0 : index
    %c0_122 = arith.constant 0 : index
    %359 = vector.load %arg4[%c5_120, %c0_121, %c0_122] : memref<7x8x128xbf16, #tpu.memory_space<vmem>>, vector<1x8x128xbf16>
    %360 = vector.shape_cast %359 : vector<1x8x128xbf16> to vector<8x128xbf16>
    %361 = vector.shape_cast %358 : vector<8x128xbf16> to vector<1x8x128xbf16>
    tpu.vector_store %arg4[%c5_120, %c0_121, %c0_122], %361 {strides = array<i32>} : memref<7x8x128xbf16, #tpu.memory_space<vmem>>, vector<1x8x128xbf16>,
    %362 = arith.truncf %356 : vector<8x128xf32> to vector<8x128xbf16>
    %c1_123 = arith.constant 1 : index
    %c0_124 = arith.constant 0 : index
    %c0_125 = arith.constant 0 : index
    %363 = vector.load %arg5[%c1_123, %c0_124, %c0_125] : memref<7x8x128xbf16, #tpu.memory_space<vmem>>, vector<1x8x128xbf16>
    %364 = vector.shape_cast %363 : vector<1x8x128xbf16> to vector<8x128xbf16>
    %365 = vector.shape_cast %362 : vector<8x128xbf16> to vector<1x8x128xbf16>
    tpu.vector_store %arg5[%c1_123, %c0_124, %c0_125], %365 {strides = array<i32>} : memref<7x8x128xbf16, #tpu.memory_space<vmem>>, vector<1x8x128xbf16>,
    %c6_126 = arith.constant 6 : index
    %c0_127 = arith.constant 0 : index
    %c0_128 = arith.constant 0 : index
    %366 = vector.load %arg1[%c6_126, %c0_127, %c0_128] : memref<7x8x512xf32, #tpu.memory_space<vmem>>, vector<1x8x512xf32>
    %367 = vector.shape_cast %366 : vector<1x8x512xf32> to vector<8x512xf32>
    %368 = arith.truncf %354 : vector<8x128xf32> to vector<8x128xbf16>
    %cst_129 = arith.constant dense<0.000000e+00> : vector<8x512xf32>
    %369 = tpu.matmul %368, %12, %cst_129 {dimension_numbers = #tpu.dot_dimension_numbers<[1], [0], [0], [1], [0, 0, 1, 1], [], []>} : vector<8x128xbf16>, vector<128x512xbf16>, vector<8x512xf32> -> vector<8x512xf32>
    %370 = arith.addf %367, %369 : vector<8x512xf32>
    %c0_130 = arith.constant 0 : index
    %c0_131 = arith.constant 0 : index
    %c0_132 = arith.constant 0 : index
    %371 = vector.load %arg2[%c0_130, %c0_131, %c0_132] : memref<7x8x512xf32, #tpu.memory_space<vmem>>, vector<1x8x512xf32>
    %372 = vector.shape_cast %371 : vector<1x8x512xf32> to vector<8x512xf32>
    %373 = arith.truncf %356 : vector<8x128xf32> to vector<8x128xbf16>
    %cst_133 = arith.constant dense<0.000000e+00> : vector<8x512xf32>
    %374 = tpu.matmul %373, %14, %cst_133 {dimension_numbers = #tpu.dot_dimension_numbers<[1], [0], [0], [1], [0, 0, 1, 1], [], []>} : vector<8x128xbf16>, vector<128x512xbf16>, vector<8x512xf32> -> vector<8x512xf32>
    %375 = arith.addf %372, %374 : vector<8x512xf32>
    %376 = vector.extract_strided_slice %370 {offsets = [0, 0], sizes = [8, 384], strides = [1, 1]} : vector<8x512xf32> to vector<8x384xf32>
    %377 = arith.negf %376 : vector<8x384xf32>
    %378 = math.exp %377 : vector<8x384xf32>
    %cst_134 = arith.constant 1.000000e+00 : f32
    %379 = vector.broadcast %cst_134 : f32 to vector<8x384xf32>
    %380 = arith.addf %379, %378 : vector<8x384xf32>
    %381 = arith.divf %379, %380 : vector<8x384xf32>
    %382 = vector.extract_strided_slice %375 {offsets = [0, 0], sizes = [8, 384], strides = [1, 1]} : vector<8x512xf32> to vector<8x384xf32>
    %383 = arith.negf %382 : vector<8x384xf32>
    %384 = math.exp %383 : vector<8x384xf32>
    %cst_135 = arith.constant 1.000000e+00 : f32
    %385 = vector.broadcast %cst_135 : f32 to vector<8x384xf32>
    %386 = arith.addf %385, %384 : vector<8x384xf32>
    %387 = arith.divf %385, %386 : vector<8x384xf32>
    %388 = vector.extract_strided_slice %381 {offsets = [0, 128], sizes = [8, 128], strides = [1, 1]} : vector<8x384xf32> to vector<8x128xf32>
    %389 = arith.mulf %388, %355 : vector<8x128xf32>
    %390 = vector.extract_strided_slice %381 {offsets = [0, 0], sizes = [8, 128], strides = [1, 1]} : vector<8x384xf32> to vector<8x128xf32>
    %391 = vector.extract_strided_slice %370 {offsets = [0, 384], sizes = [8, 128], strides = [1, 1]} : vector<8x512xf32> to vector<8x128xf32>
    %392 = math.tanh %391 : vector<8x128xf32>
    %393 = arith.mulf %390, %392 : vector<8x128xf32>
    %394 = arith.addf %389, %393 : vector<8x128xf32>
    %395 = vector.extract_strided_slice %381 {offsets = [0, 256], sizes = [8, 128], strides = [1, 1]} : vector<8x384xf32> to vector<8x128xf32>
    %396 = math.tanh %394 : vector<8x128xf32>
    %397 = arith.mulf %395, %396 : vector<8x128xf32>
    %398 = vector.extract_strided_slice %387 {offsets = [0, 128], sizes = [8, 128], strides = [1, 1]} : vector<8x384xf32> to vector<8x128xf32>
    %399 = arith.mulf %398, %357 : vector<8x128xf32>
    %400 = vector.extract_strided_slice %387 {offsets = [0, 0], sizes = [8, 128], strides = [1, 1]} : vector<8x384xf32> to vector<8x128xf32>
    %401 = vector.extract_strided_slice %375 {offsets = [0, 384], sizes = [8, 128], strides = [1, 1]} : vector<8x512xf32> to vector<8x128xf32>
    %402 = math.tanh %401 : vector<8x128xf32>
    %403 = arith.mulf %400, %402 : vector<8x128xf32>
    %404 = arith.addf %399, %403 : vector<8x128xf32>
    %405 = vector.extract_strided_slice %387 {offsets = [0, 256], sizes = [8, 128], strides = [1, 1]} : vector<8x384xf32> to vector<8x128xf32>
    %406 = math.tanh %404 : vector<8x128xf32>
    %407 = arith.mulf %405, %406 : vector<8x128xf32>
    %c6_i32_136 = arith.constant 6 : i32
    %408 = arith.addi %15, %c6_i32_136 : i32
    %c20_i32_137 = arith.constant 20 : i32
    %409 = arith.cmpi slt, %408, %c20_i32_137 : i32
    %c0_i32_138 = arith.constant 0 : i32
    %410 = arith.addi %17, %c0_i32_138 : i32
    %c20_i32_139 = arith.constant 20 : i32
    %411 = arith.cmpi slt, %410, %c20_i32_139 : i32
    %412 = arith.select %409, %397, %354 : vector<8x128xf32>
    %413 = arith.select %409, %394, %355 : vector<8x128xf32>
    %414 = arith.select %411, %407, %356 : vector<8x128xf32>
    %415 = arith.select %411, %404, %357 : vector<8x128xf32>
    %416 = arith.truncf %412 : vector<8x128xf32> to vector<8x128xbf16>
    %c6_140 = arith.constant 6 : index
    %c0_141 = arith.constant 0 : index
    %c0_142 = arith.constant 0 : index
    %417 = vector.load %arg4[%c6_140, %c0_141, %c0_142] : memref<7x8x128xbf16, #tpu.memory_space<vmem>>, vector<1x8x128xbf16>
    %418 = vector.shape_cast %417 : vector<1x8x128xbf16> to vector<8x128xbf16>
    %419 = vector.shape_cast %416 : vector<8x128xbf16> to vector<1x8x128xbf16>
    tpu.vector_store %arg4[%c6_140, %c0_141, %c0_142], %419 {strides = array<i32>} : memref<7x8x128xbf16, #tpu.memory_space<vmem>>, vector<1x8x128xbf16>,
    %420 = arith.truncf %414 : vector<8x128xf32> to vector<8x128xbf16>
    %c0_143 = arith.constant 0 : index
    %c0_144 = arith.constant 0 : index
    %c0_145 = arith.constant 0 : index
    %421 = vector.load %arg5[%c0_143, %c0_144, %c0_145] : memref<7x8x128xbf16, #tpu.memory_space<vmem>>, vector<1x8x128xbf16>
    %422 = vector.shape_cast %421 : vector<1x8x128xbf16> to vector<8x128xbf16>
    %423 = vector.shape_cast %420 : vector<8x128xbf16> to vector<1x8x128xbf16>
    tpu.vector_store %arg5[%c0_143, %c0_144, %c0_145], %423 {strides = array<i32>} : memref<7x8x128xbf16, #tpu.memory_space<vmem>>, vector<1x8x128xbf16>,
    %c0_146 = arith.constant 0 : index
    %c0_147 = arith.constant 0 : index
    %c0_148 = arith.constant 0 : index
    %424 = vector.load %arg7[%c0_146, %c0_147, %c0_148] : memref<4x8x128xf32, #tpu.memory_space<vmem>>, vector<1x8x128xf32>
    %425 = vector.shape_cast %424 : vector<1x8x128xf32> to vector<8x128xf32>
    %426 = vector.shape_cast %412 : vector<8x128xf32> to vector<1x8x128xf32>
    tpu.vector_store %arg7[%c0_146, %c0_147, %c0_148], %426 {strides = array<i32>} : memref<4x8x128xf32, #tpu.memory_space<vmem>>, vector<1x8x128xf32>,
    %c1_149 = arith.constant 1 : index
    %c0_150 = arith.constant 0 : index
    %c0_151 = arith.constant 0 : index
    %427 = vector.load %arg7[%c1_149, %c0_150, %c0_151] : memref<4x8x128xf32, #tpu.memory_space<vmem>>, vector<1x8x128xf32>
    %428 = vector.shape_cast %427 : vector<1x8x128xf32> to vector<8x128xf32>
    %429 = vector.shape_cast %413 : vector<8x128xf32> to vector<1x8x128xf32>
    tpu.vector_store %arg7[%c1_149, %c0_150, %c0_151], %429 {strides = array<i32>} : memref<4x8x128xf32, #tpu.memory_space<vmem>>, vector<1x8x128xf32>,
    %c2_152 = arith.constant 2 : index
    %c0_153 = arith.constant 0 : index
    %c0_154 = arith.constant 0 : index
    %430 = vector.load %arg7[%c2_152, %c0_153, %c0_154] : memref<4x8x128xf32, #tpu.memory_space<vmem>>, vector<1x8x128xf32>
    %431 = vector.shape_cast %430 : vector<1x8x128xf32> to vector<8x128xf32>
    %432 = vector.shape_cast %414 : vector<8x128xf32> to vector<1x8x128xf32>
    tpu.vector_store %arg7[%c2_152, %c0_153, %c0_154], %432 {strides = array<i32>} : memref<4x8x128xf32, #tpu.memory_space<vmem>>, vector<1x8x128xf32>,
    %c3_155 = arith.constant 3 : index
    %c0_156 = arith.constant 0 : index
    %c0_157 = arith.constant 0 : index
    %433 = vector.load %arg7[%c3_155, %c0_156, %c0_157] : memref<4x8x128xf32, #tpu.memory_space<vmem>>, vector<1x8x128xf32>
    %434 = vector.shape_cast %433 : vector<1x8x128xf32> to vector<8x128xf32>
    %435 = vector.shape_cast %415 : vector<8x128xf32> to vector<1x8x128xf32>
    tpu.vector_store %arg7[%c3_155, %c0_156, %c0_157], %435 {strides = array<i32>} : memref<4x8x128xf32, #tpu.memory_space<vmem>>, vector<1x8x128xf32>,
    %c2_i32_158 = arith.constant 2 : i32
    %436 = arith.cmpi eq, %arg0, %c2_i32_158 : i32
    %437 = arith.extui %436 : i1 to i32
    %c0_i32_159 = arith.constant 0 : i32
    %438 = arith.cmpi ne, %437, %c0_i32_159 : i32
    scf.if %438 {
      %c0_160 = arith.constant 0 : index
      %c0_161 = arith.constant 0 : index
      %439 = vector.load %arg6[%c0_160, %c0_161] : memref<8x256xf32, #tpu.memory_space<vmem>>, vector<8x128xf32>
      tpu.vector_store %arg6[%c0_160, %c0_161], %412 {strides = array<i32>} : memref<8x256xf32, #tpu.memory_space<vmem>>, vector<8x128xf32>,
      %c0_162 = arith.constant 0 : index
      %c128 = arith.constant 128 : index
      %440 = vector.load %arg6[%c0_162, %c128] : memref<8x256xf32, #tpu.memory_space<vmem>>, vector<8x128xf32>
      tpu.vector_store %arg6[%c0_162, %c128], %414 {strides = array<i32>} : memref<8x256xf32, #tpu.memory_space<vmem>>, vector<8x128xf32>,
    } else {
    }
    return
  }
  func.func @transform_0(%arg0: i32) -> (i32, i32, i32) {
    %c0_i32 = arith.constant 0 : i32
    %c0_i32_0 = arith.constant 0 : i32
    %c0_i32_1 = arith.constant 0 : i32
    return %arg0, %c0_i32, %c0_i32_0 : i32, i32, i32
  }
  func.func @transform_1(%arg0: i32) -> (i32, i32, i32) {
    %c2_i32 = arith.constant 2 : i32
    %0 = arith.subi %c2_i32, %arg0 : i32
    %c0_i32 = arith.constant 0 : i32
    %c0_i32_0 = arith.constant 0 : i32
    %c0_i32_1 = arith.constant 0 : i32
    return %0, %c0_i32, %c0_i32_0 : i32, i32, i32
  }
  func.func @transform_2(%arg0: i32) -> (i32, i32, i32) {
    %c0_i32 = arith.constant 0 : i32
    %c0_i32_0 = arith.constant 0 : i32
    %c0_i32_1 = arith.constant 0 : i32
    %c0_i32_2 = arith.constant 0 : i32
    return %c0_i32, %c0_i32_0, %c0_i32_1 : i32, i32, i32
  }
  func.func @transform_3(%arg0: i32) -> (i32, i32, i32) {
    %c0_i32 = arith.constant 0 : i32
    %c0_i32_0 = arith.constant 0 : i32
    %c0_i32_1 = arith.constant 0 : i32
    return %arg0, %c0_i32, %c0_i32_0 : i32, i32, i32
  }
  func.func @transform_4(%arg0: i32) -> (i32, i32, i32) {
    %c2_i32 = arith.constant 2 : i32
    %0 = arith.subi %c2_i32, %arg0 : i32
    %c0_i32 = arith.constant 0 : i32
    %c0_i32_0 = arith.constant 0 : i32
    %c0_i32_1 = arith.constant 0 : i32
    return %0, %c0_i32, %c0_i32_0 : i32, i32, i32
  }
  func.func @transform_5(%arg0: i32) -> (i32, i32) {
    %c0_i32 = arith.constant 0 : i32
    %c0_i32_0 = arith.constant 0 : i32
    %c0_i32_1 = arith.constant 0 : i32
    return %c0_i32, %c0_i32_0 : i32, i32
  }
}

module attributes {stable_mosaic.version = 11 : i64} {
  func.func @_bilstm_kernel(%arg0: i32, %arg1: memref<7x8x512xf32, #tpu.memory_space<vmem>>, %arg2: memref<7x8x512xf32, #tpu.memory_space<vmem>>, %arg3: memref<2x128x512xbf16, #tpu.memory_space<vmem>>, %arg4: memref<8x256xf32, #tpu.memory_space<vmem>>, %arg5: memref<4x8x128xf32, #tpu.memory_space<vmem>>) attributes {dimension_semantics = [#tpu.dimension_semantics<arbitrary>], iteration_bounds = array<i64: 3>, scalar_prefetch = 0 : i64, scratch_operands = 1 : i64, tpu.core_type = #tpu.core_type<tc>, window_params = [{transform_indices = @transform_0, window_bounds = array<i64: 7, 8, 512>}, {transform_indices = @transform_1, window_bounds = array<i64: 7, 8, 512>}, {pipeline_mode = #tpu.pipeline_mode<synchronous>, transform_indices = @transform_2, window_bounds = array<i64: 2, 128, 512>}, {pipeline_mode = #tpu.pipeline_mode<synchronous>, transform_indices = @transform_3, window_bounds = array<i64: 8, 256>}]} {
    %c0_i32 = arith.constant 0 : i32
    %0 = arith.cmpi eq, %arg0, %c0_i32 : i32
    %1 = arith.extui %0 : i1 to i32
    %c0_i32_0 = arith.constant 0 : i32
    %2 = arith.cmpi ne, %1, %c0_i32_0 : i32
    scf.if %2 {
      %cst_118 = arith.constant 0.000000e+00 : f32
      %383 = vector.broadcast %cst_118 : f32 to vector<4x8x128xf32>
      %c0_119 = arith.constant 0 : index
      %c0_120 = arith.constant 0 : index
      %c0_121 = arith.constant 0 : index
      %384 = vector.load %arg5[%c0_119, %c0_120, %c0_121] : memref<4x8x128xf32, #tpu.memory_space<vmem>>, vector<4x8x128xf32>
      tpu.vector_store %arg5[%c0_119, %c0_120, %c0_121], %383 {strides = array<i32>} : memref<4x8x128xf32, #tpu.memory_space<vmem>>, vector<4x8x128xf32>,
    } else {
    }
    %c0 = arith.constant 0 : index
    %c0_1 = arith.constant 0 : index
    %c0_2 = arith.constant 0 : index
    %3 = vector.load %arg5[%c0, %c0_1, %c0_2] : memref<4x8x128xf32, #tpu.memory_space<vmem>>, vector<1x8x128xf32>
    %4 = vector.shape_cast %3 : vector<1x8x128xf32> to vector<8x128xf32>
    %c1 = arith.constant 1 : index
    %c0_3 = arith.constant 0 : index
    %c0_4 = arith.constant 0 : index
    %5 = vector.load %arg5[%c1, %c0_3, %c0_4] : memref<4x8x128xf32, #tpu.memory_space<vmem>>, vector<1x8x128xf32>
    %6 = vector.shape_cast %5 : vector<1x8x128xf32> to vector<8x128xf32>
    %c2 = arith.constant 2 : index
    %c0_5 = arith.constant 0 : index
    %c0_6 = arith.constant 0 : index
    %7 = vector.load %arg5[%c2, %c0_5, %c0_6] : memref<4x8x128xf32, #tpu.memory_space<vmem>>, vector<1x8x128xf32>
    %8 = vector.shape_cast %7 : vector<1x8x128xf32> to vector<8x128xf32>
    %c3 = arith.constant 3 : index
    %c0_7 = arith.constant 0 : index
    %c0_8 = arith.constant 0 : index
    %9 = vector.load %arg5[%c3, %c0_7, %c0_8] : memref<4x8x128xf32, #tpu.memory_space<vmem>>, vector<1x8x128xf32>
    %10 = vector.shape_cast %9 : vector<1x8x128xf32> to vector<8x128xf32>
    %c0_9 = arith.constant 0 : index
    %c0_10 = arith.constant 0 : index
    %c0_11 = arith.constant 0 : index
    %11 = vector.load %arg3[%c0_9, %c0_10, %c0_11] : memref<2x128x512xbf16, #tpu.memory_space<vmem>>, vector<1x128x512xbf16>
    %12 = vector.shape_cast %11 : vector<1x128x512xbf16> to vector<128x512xbf16>
    %c1_12 = arith.constant 1 : index
    %c0_13 = arith.constant 0 : index
    %c0_14 = arith.constant 0 : index
    %13 = vector.load %arg3[%c1_12, %c0_13, %c0_14] : memref<2x128x512xbf16, #tpu.memory_space<vmem>>, vector<1x128x512xbf16>
    %14 = vector.shape_cast %13 : vector<1x128x512xbf16> to vector<128x512xbf16>
    %c7_i32 = arith.constant 7 : i32
    %15 = arith.muli %arg0, %c7_i32 : i32
    %c2_i32 = arith.constant 2 : i32
    %16 = arith.subi %c2_i32, %arg0 : i32
    %c7_i32_15 = arith.constant 7 : i32
    %17 = arith.muli %16, %c7_i32_15 : i32
    %c0_16 = arith.constant 0 : index
    %c0_17 = arith.constant 0 : index
    %c0_18 = arith.constant 0 : index
    %18 = vector.load %arg1[%c0_16, %c0_17, %c0_18] : memref<7x8x512xf32, #tpu.memory_space<vmem>>, vector<1x8x512xf32>
    %19 = vector.shape_cast %18 : vector<1x8x512xf32> to vector<8x512xf32>
    %20 = arith.truncf %4 : vector<8x128xf32> to vector<8x128xbf16>
    %cst = arith.constant dense<0.000000e+00> : vector<8x512xf32>
    %21 = tpu.matmul %20, %12, %cst {dimension_numbers = #tpu.dot_dimension_numbers<[1], [0], [0], [1], [0, 0, 1, 1], [], []>} : vector<8x128xbf16>, vector<128x512xbf16>, vector<8x512xf32> -> vector<8x512xf32>
    %22 = arith.addf %19, %21 : vector<8x512xf32>
    %c6 = arith.constant 6 : index
    %c0_19 = arith.constant 0 : index
    %c0_20 = arith.constant 0 : index
    %23 = vector.load %arg2[%c6, %c0_19, %c0_20] : memref<7x8x512xf32, #tpu.memory_space<vmem>>, vector<1x8x512xf32>
    %24 = vector.shape_cast %23 : vector<1x8x512xf32> to vector<8x512xf32>
    %25 = arith.truncf %8 : vector<8x128xf32> to vector<8x128xbf16>
    %cst_21 = arith.constant dense<0.000000e+00> : vector<8x512xf32>
    %26 = tpu.matmul %25, %14, %cst_21 {dimension_numbers = #tpu.dot_dimension_numbers<[1], [0], [0], [1], [0, 0, 1, 1], [], []>} : vector<8x128xbf16>, vector<128x512xbf16>, vector<8x512xf32> -> vector<8x512xf32>
    %27 = arith.addf %24, %26 : vector<8x512xf32>
    %28 = vector.extract_strided_slice %22 {offsets = [0, 0], sizes = [8, 384], strides = [1, 1]} : vector<8x512xf32> to vector<8x384xf32>
    %29 = arith.negf %28 : vector<8x384xf32>
    %30 = math.exp %29 : vector<8x384xf32>
    %cst_22 = arith.constant 1.000000e+00 : f32
    %31 = vector.broadcast %cst_22 : f32 to vector<8x384xf32>
    %32 = arith.addf %31, %30 : vector<8x384xf32>
    %33 = arith.divf %31, %32 : vector<8x384xf32>
    %34 = vector.extract_strided_slice %27 {offsets = [0, 0], sizes = [8, 384], strides = [1, 1]} : vector<8x512xf32> to vector<8x384xf32>
    %35 = arith.negf %34 : vector<8x384xf32>
    %36 = math.exp %35 : vector<8x384xf32>
    %cst_23 = arith.constant 1.000000e+00 : f32
    %37 = vector.broadcast %cst_23 : f32 to vector<8x384xf32>
    %38 = arith.addf %37, %36 : vector<8x384xf32>
    %39 = arith.divf %37, %38 : vector<8x384xf32>
    %40 = vector.extract_strided_slice %33 {offsets = [0, 128], sizes = [8, 128], strides = [1, 1]} : vector<8x384xf32> to vector<8x128xf32>
    %41 = arith.mulf %40, %6 : vector<8x128xf32>
    %42 = vector.extract_strided_slice %33 {offsets = [0, 0], sizes = [8, 128], strides = [1, 1]} : vector<8x384xf32> to vector<8x128xf32>
    %43 = vector.extract_strided_slice %22 {offsets = [0, 384], sizes = [8, 128], strides = [1, 1]} : vector<8x512xf32> to vector<8x128xf32>
    %44 = math.tanh %43 : vector<8x128xf32>
    %45 = arith.mulf %42, %44 : vector<8x128xf32>
    %46 = arith.addf %41, %45 : vector<8x128xf32>
    %47 = vector.extract_strided_slice %33 {offsets = [0, 256], sizes = [8, 128], strides = [1, 1]} : vector<8x384xf32> to vector<8x128xf32>
    %48 = math.tanh %46 : vector<8x128xf32>
    %49 = arith.mulf %47, %48 : vector<8x128xf32>
    %50 = vector.extract_strided_slice %39 {offsets = [0, 128], sizes = [8, 128], strides = [1, 1]} : vector<8x384xf32> to vector<8x128xf32>
    %51 = arith.mulf %50, %10 : vector<8x128xf32>
    %52 = vector.extract_strided_slice %39 {offsets = [0, 0], sizes = [8, 128], strides = [1, 1]} : vector<8x384xf32> to vector<8x128xf32>
    %53 = vector.extract_strided_slice %27 {offsets = [0, 384], sizes = [8, 128], strides = [1, 1]} : vector<8x512xf32> to vector<8x128xf32>
    %54 = math.tanh %53 : vector<8x128xf32>
    %55 = arith.mulf %52, %54 : vector<8x128xf32>
    %56 = arith.addf %51, %55 : vector<8x128xf32>
    %57 = vector.extract_strided_slice %39 {offsets = [0, 256], sizes = [8, 128], strides = [1, 1]} : vector<8x384xf32> to vector<8x128xf32>
    %58 = math.tanh %56 : vector<8x128xf32>
    %59 = arith.mulf %57, %58 : vector<8x128xf32>
    %c0_i32_24 = arith.constant 0 : i32
    %60 = arith.addi %15, %c0_i32_24 : i32
    %c20_i32 = arith.constant 20 : i32
    %61 = arith.cmpi slt, %60, %c20_i32 : i32
    %c6_i32 = arith.constant 6 : i32
    %62 = arith.addi %17, %c6_i32 : i32
    %c20_i32_25 = arith.constant 20 : i32
    %63 = arith.cmpi slt, %62, %c20_i32_25 : i32
    %64 = arith.select %61, %49, %4 : vector<8x128xf32>
    %65 = arith.select %61, %46, %6 : vector<8x128xf32>
    %66 = arith.select %63, %59, %8 : vector<8x128xf32>
    %67 = arith.select %63, %56, %10 : vector<8x128xf32>
    %c1_26 = arith.constant 1 : index
    %c0_27 = arith.constant 0 : index
    %c0_28 = arith.constant 0 : index
    %68 = vector.load %arg1[%c1_26, %c0_27, %c0_28] : memref<7x8x512xf32, #tpu.memory_space<vmem>>, vector<1x8x512xf32>
    %69 = vector.shape_cast %68 : vector<1x8x512xf32> to vector<8x512xf32>
    %70 = arith.truncf %64 : vector<8x128xf32> to vector<8x128xbf16>
    %cst_29 = arith.constant dense<0.000000e+00> : vector<8x512xf32>
    %71 = tpu.matmul %70, %12, %cst_29 {dimension_numbers = #tpu.dot_dimension_numbers<[1], [0], [0], [1], [0, 0, 1, 1], [], []>} : vector<8x128xbf16>, vector<128x512xbf16>, vector<8x512xf32> -> vector<8x512xf32>
    %72 = arith.addf %69, %71 : vector<8x512xf32>
    %c5 = arith.constant 5 : index
    %c0_30 = arith.constant 0 : index
    %c0_31 = arith.constant 0 : index
    %73 = vector.load %arg2[%c5, %c0_30, %c0_31] : memref<7x8x512xf32, #tpu.memory_space<vmem>>, vector<1x8x512xf32>
    %74 = vector.shape_cast %73 : vector<1x8x512xf32> to vector<8x512xf32>
    %75 = arith.truncf %66 : vector<8x128xf32> to vector<8x128xbf16>
    %cst_32 = arith.constant dense<0.000000e+00> : vector<8x512xf32>
    %76 = tpu.matmul %75, %14, %cst_32 {dimension_numbers = #tpu.dot_dimension_numbers<[1], [0], [0], [1], [0, 0, 1, 1], [], []>} : vector<8x128xbf16>, vector<128x512xbf16>, vector<8x512xf32> -> vector<8x512xf32>
    %77 = arith.addf %74, %76 : vector<8x512xf32>
    %78 = vector.extract_strided_slice %72 {offsets = [0, 0], sizes = [8, 384], strides = [1, 1]} : vector<8x512xf32> to vector<8x384xf32>
    %79 = arith.negf %78 : vector<8x384xf32>
    %80 = math.exp %79 : vector<8x384xf32>
    %cst_33 = arith.constant 1.000000e+00 : f32
    %81 = vector.broadcast %cst_33 : f32 to vector<8x384xf32>
    %82 = arith.addf %81, %80 : vector<8x384xf32>
    %83 = arith.divf %81, %82 : vector<8x384xf32>
    %84 = vector.extract_strided_slice %77 {offsets = [0, 0], sizes = [8, 384], strides = [1, 1]} : vector<8x512xf32> to vector<8x384xf32>
    %85 = arith.negf %84 : vector<8x384xf32>
    %86 = math.exp %85 : vector<8x384xf32>
    %cst_34 = arith.constant 1.000000e+00 : f32
    %87 = vector.broadcast %cst_34 : f32 to vector<8x384xf32>
    %88 = arith.addf %87, %86 : vector<8x384xf32>
    %89 = arith.divf %87, %88 : vector<8x384xf32>
    %90 = vector.extract_strided_slice %83 {offsets = [0, 128], sizes = [8, 128], strides = [1, 1]} : vector<8x384xf32> to vector<8x128xf32>
    %91 = arith.mulf %90, %65 : vector<8x128xf32>
    %92 = vector.extract_strided_slice %83 {offsets = [0, 0], sizes = [8, 128], strides = [1, 1]} : vector<8x384xf32> to vector<8x128xf32>
    %93 = vector.extract_strided_slice %72 {offsets = [0, 384], sizes = [8, 128], strides = [1, 1]} : vector<8x512xf32> to vector<8x128xf32>
    %94 = math.tanh %93 : vector<8x128xf32>
    %95 = arith.mulf %92, %94 : vector<8x128xf32>
    %96 = arith.addf %91, %95 : vector<8x128xf32>
    %97 = vector.extract_strided_slice %83 {offsets = [0, 256], sizes = [8, 128], strides = [1, 1]} : vector<8x384xf32> to vector<8x128xf32>
    %98 = math.tanh %96 : vector<8x128xf32>
    %99 = arith.mulf %97, %98 : vector<8x128xf32>
    %100 = vector.extract_strided_slice %89 {offsets = [0, 128], sizes = [8, 128], strides = [1, 1]} : vector<8x384xf32> to vector<8x128xf32>
    %101 = arith.mulf %100, %67 : vector<8x128xf32>
    %102 = vector.extract_strided_slice %89 {offsets = [0, 0], sizes = [8, 128], strides = [1, 1]} : vector<8x384xf32> to vector<8x128xf32>
    %103 = vector.extract_strided_slice %77 {offsets = [0, 384], sizes = [8, 128], strides = [1, 1]} : vector<8x512xf32> to vector<8x128xf32>
    %104 = math.tanh %103 : vector<8x128xf32>
    %105 = arith.mulf %102, %104 : vector<8x128xf32>
    %106 = arith.addf %101, %105 : vector<8x128xf32>
    %107 = vector.extract_strided_slice %89 {offsets = [0, 256], sizes = [8, 128], strides = [1, 1]} : vector<8x384xf32> to vector<8x128xf32>
    %108 = math.tanh %106 : vector<8x128xf32>
    %109 = arith.mulf %107, %108 : vector<8x128xf32>
    %c1_i32 = arith.constant 1 : i32
    %110 = arith.addi %15, %c1_i32 : i32
    %c20_i32_35 = arith.constant 20 : i32
    %111 = arith.cmpi slt, %110, %c20_i32_35 : i32
    %c5_i32 = arith.constant 5 : i32
    %112 = arith.addi %17, %c5_i32 : i32
    %c20_i32_36 = arith.constant 20 : i32
    %113 = arith.cmpi slt, %112, %c20_i32_36 : i32
    %114 = arith.select %111, %99, %64 : vector<8x128xf32>
    %115 = arith.select %111, %96, %65 : vector<8x128xf32>
    %116 = arith.select %113, %109, %66 : vector<8x128xf32>
    %117 = arith.select %113, %106, %67 : vector<8x128xf32>
    %c2_37 = arith.constant 2 : index
    %c0_38 = arith.constant 0 : index
    %c0_39 = arith.constant 0 : index
    %118 = vector.load %arg1[%c2_37, %c0_38, %c0_39] : memref<7x8x512xf32, #tpu.memory_space<vmem>>, vector<1x8x512xf32>
    %119 = vector.shape_cast %118 : vector<1x8x512xf32> to vector<8x512xf32>
    %120 = arith.truncf %114 : vector<8x128xf32> to vector<8x128xbf16>
    %cst_40 = arith.constant dense<0.000000e+00> : vector<8x512xf32>
    %121 = tpu.matmul %120, %12, %cst_40 {dimension_numbers = #tpu.dot_dimension_numbers<[1], [0], [0], [1], [0, 0, 1, 1], [], []>} : vector<8x128xbf16>, vector<128x512xbf16>, vector<8x512xf32> -> vector<8x512xf32>
    %122 = arith.addf %119, %121 : vector<8x512xf32>
    %c4 = arith.constant 4 : index
    %c0_41 = arith.constant 0 : index
    %c0_42 = arith.constant 0 : index
    %123 = vector.load %arg2[%c4, %c0_41, %c0_42] : memref<7x8x512xf32, #tpu.memory_space<vmem>>, vector<1x8x512xf32>
    %124 = vector.shape_cast %123 : vector<1x8x512xf32> to vector<8x512xf32>
    %125 = arith.truncf %116 : vector<8x128xf32> to vector<8x128xbf16>
    %cst_43 = arith.constant dense<0.000000e+00> : vector<8x512xf32>
    %126 = tpu.matmul %125, %14, %cst_43 {dimension_numbers = #tpu.dot_dimension_numbers<[1], [0], [0], [1], [0, 0, 1, 1], [], []>} : vector<8x128xbf16>, vector<128x512xbf16>, vector<8x512xf32> -> vector<8x512xf32>
    %127 = arith.addf %124, %126 : vector<8x512xf32>
    %128 = vector.extract_strided_slice %122 {offsets = [0, 0], sizes = [8, 384], strides = [1, 1]} : vector<8x512xf32> to vector<8x384xf32>
    %129 = arith.negf %128 : vector<8x384xf32>
    %130 = math.exp %129 : vector<8x384xf32>
    %cst_44 = arith.constant 1.000000e+00 : f32
    %131 = vector.broadcast %cst_44 : f32 to vector<8x384xf32>
    %132 = arith.addf %131, %130 : vector<8x384xf32>
    %133 = arith.divf %131, %132 : vector<8x384xf32>
    %134 = vector.extract_strided_slice %127 {offsets = [0, 0], sizes = [8, 384], strides = [1, 1]} : vector<8x512xf32> to vector<8x384xf32>
    %135 = arith.negf %134 : vector<8x384xf32>
    %136 = math.exp %135 : vector<8x384xf32>
    %cst_45 = arith.constant 1.000000e+00 : f32
    %137 = vector.broadcast %cst_45 : f32 to vector<8x384xf32>
    %138 = arith.addf %137, %136 : vector<8x384xf32>
    %139 = arith.divf %137, %138 : vector<8x384xf32>
    %140 = vector.extract_strided_slice %133 {offsets = [0, 128], sizes = [8, 128], strides = [1, 1]} : vector<8x384xf32> to vector<8x128xf32>
    %141 = arith.mulf %140, %115 : vector<8x128xf32>
    %142 = vector.extract_strided_slice %133 {offsets = [0, 0], sizes = [8, 128], strides = [1, 1]} : vector<8x384xf32> to vector<8x128xf32>
    %143 = vector.extract_strided_slice %122 {offsets = [0, 384], sizes = [8, 128], strides = [1, 1]} : vector<8x512xf32> to vector<8x128xf32>
    %144 = math.tanh %143 : vector<8x128xf32>
    %145 = arith.mulf %142, %144 : vector<8x128xf32>
    %146 = arith.addf %141, %145 : vector<8x128xf32>
    %147 = vector.extract_strided_slice %133 {offsets = [0, 256], sizes = [8, 128], strides = [1, 1]} : vector<8x384xf32> to vector<8x128xf32>
    %148 = math.tanh %146 : vector<8x128xf32>
    %149 = arith.mulf %147, %148 : vector<8x128xf32>
    %150 = vector.extract_strided_slice %139 {offsets = [0, 128], sizes = [8, 128], strides = [1, 1]} : vector<8x384xf32> to vector<8x128xf32>
    %151 = arith.mulf %150, %117 : vector<8x128xf32>
    %152 = vector.extract_strided_slice %139 {offsets = [0, 0], sizes = [8, 128], strides = [1, 1]} : vector<8x384xf32> to vector<8x128xf32>
    %153 = vector.extract_strided_slice %127 {offsets = [0, 384], sizes = [8, 128], strides = [1, 1]} : vector<8x512xf32> to vector<8x128xf32>
    %154 = math.tanh %153 : vector<8x128xf32>
    %155 = arith.mulf %152, %154 : vector<8x128xf32>
    %156 = arith.addf %151, %155 : vector<8x128xf32>
    %157 = vector.extract_strided_slice %139 {offsets = [0, 256], sizes = [8, 128], strides = [1, 1]} : vector<8x384xf32> to vector<8x128xf32>
    %158 = math.tanh %156 : vector<8x128xf32>
    %159 = arith.mulf %157, %158 : vector<8x128xf32>
    %c2_i32_46 = arith.constant 2 : i32
    %160 = arith.addi %15, %c2_i32_46 : i32
    %c20_i32_47 = arith.constant 20 : i32
    %161 = arith.cmpi slt, %160, %c20_i32_47 : i32
    %c4_i32 = arith.constant 4 : i32
    %162 = arith.addi %17, %c4_i32 : i32
    %c20_i32_48 = arith.constant 20 : i32
    %163 = arith.cmpi slt, %162, %c20_i32_48 : i32
    %164 = arith.select %161, %149, %114 : vector<8x128xf32>
    %165 = arith.select %161, %146, %115 : vector<8x128xf32>
    %166 = arith.select %163, %159, %116 : vector<8x128xf32>
    %167 = arith.select %163, %156, %117 : vector<8x128xf32>
    %c3_49 = arith.constant 3 : index
    %c0_50 = arith.constant 0 : index
    %c0_51 = arith.constant 0 : index
    %168 = vector.load %arg1[%c3_49, %c0_50, %c0_51] : memref<7x8x512xf32, #tpu.memory_space<vmem>>, vector<1x8x512xf32>
    %169 = vector.shape_cast %168 : vector<1x8x512xf32> to vector<8x512xf32>
    %170 = arith.truncf %164 : vector<8x128xf32> to vector<8x128xbf16>
    %cst_52 = arith.constant dense<0.000000e+00> : vector<8x512xf32>
    %171 = tpu.matmul %170, %12, %cst_52 {dimension_numbers = #tpu.dot_dimension_numbers<[1], [0], [0], [1], [0, 0, 1, 1], [], []>} : vector<8x128xbf16>, vector<128x512xbf16>, vector<8x512xf32> -> vector<8x512xf32>
    %172 = arith.addf %169, %171 : vector<8x512xf32>
    %c3_53 = arith.constant 3 : index
    %c0_54 = arith.constant 0 : index
    %c0_55 = arith.constant 0 : index
    %173 = vector.load %arg2[%c3_53, %c0_54, %c0_55] : memref<7x8x512xf32, #tpu.memory_space<vmem>>, vector<1x8x512xf32>
    %174 = vector.shape_cast %173 : vector<1x8x512xf32> to vector<8x512xf32>
    %175 = arith.truncf %166 : vector<8x128xf32> to vector<8x128xbf16>
    %cst_56 = arith.constant dense<0.000000e+00> : vector<8x512xf32>
    %176 = tpu.matmul %175, %14, %cst_56 {dimension_numbers = #tpu.dot_dimension_numbers<[1], [0], [0], [1], [0, 0, 1, 1], [], []>} : vector<8x128xbf16>, vector<128x512xbf16>, vector<8x512xf32> -> vector<8x512xf32>
    %177 = arith.addf %174, %176 : vector<8x512xf32>
    %178 = vector.extract_strided_slice %172 {offsets = [0, 0], sizes = [8, 384], strides = [1, 1]} : vector<8x512xf32> to vector<8x384xf32>
    %179 = arith.negf %178 : vector<8x384xf32>
    %180 = math.exp %179 : vector<8x384xf32>
    %cst_57 = arith.constant 1.000000e+00 : f32
    %181 = vector.broadcast %cst_57 : f32 to vector<8x384xf32>
    %182 = arith.addf %181, %180 : vector<8x384xf32>
    %183 = arith.divf %181, %182 : vector<8x384xf32>
    %184 = vector.extract_strided_slice %177 {offsets = [0, 0], sizes = [8, 384], strides = [1, 1]} : vector<8x512xf32> to vector<8x384xf32>
    %185 = arith.negf %184 : vector<8x384xf32>
    %186 = math.exp %185 : vector<8x384xf32>
    %cst_58 = arith.constant 1.000000e+00 : f32
    %187 = vector.broadcast %cst_58 : f32 to vector<8x384xf32>
    %188 = arith.addf %187, %186 : vector<8x384xf32>
    %189 = arith.divf %187, %188 : vector<8x384xf32>
    %190 = vector.extract_strided_slice %183 {offsets = [0, 128], sizes = [8, 128], strides = [1, 1]} : vector<8x384xf32> to vector<8x128xf32>
    %191 = arith.mulf %190, %165 : vector<8x128xf32>
    %192 = vector.extract_strided_slice %183 {offsets = [0, 0], sizes = [8, 128], strides = [1, 1]} : vector<8x384xf32> to vector<8x128xf32>
    %193 = vector.extract_strided_slice %172 {offsets = [0, 384], sizes = [8, 128], strides = [1, 1]} : vector<8x512xf32> to vector<8x128xf32>
    %194 = math.tanh %193 : vector<8x128xf32>
    %195 = arith.mulf %192, %194 : vector<8x128xf32>
    %196 = arith.addf %191, %195 : vector<8x128xf32>
    %197 = vector.extract_strided_slice %183 {offsets = [0, 256], sizes = [8, 128], strides = [1, 1]} : vector<8x384xf32> to vector<8x128xf32>
    %198 = math.tanh %196 : vector<8x128xf32>
    %199 = arith.mulf %197, %198 : vector<8x128xf32>
    %200 = vector.extract_strided_slice %189 {offsets = [0, 128], sizes = [8, 128], strides = [1, 1]} : vector<8x384xf32> to vector<8x128xf32>
    %201 = arith.mulf %200, %167 : vector<8x128xf32>
    %202 = vector.extract_strided_slice %189 {offsets = [0, 0], sizes = [8, 128], strides = [1, 1]} : vector<8x384xf32> to vector<8x128xf32>
    %203 = vector.extract_strided_slice %177 {offsets = [0, 384], sizes = [8, 128], strides = [1, 1]} : vector<8x512xf32> to vector<8x128xf32>
    %204 = math.tanh %203 : vector<8x128xf32>
    %205 = arith.mulf %202, %204 : vector<8x128xf32>
    %206 = arith.addf %201, %205 : vector<8x128xf32>
    %207 = vector.extract_strided_slice %189 {offsets = [0, 256], sizes = [8, 128], strides = [1, 1]} : vector<8x384xf32> to vector<8x128xf32>
    %208 = math.tanh %206 : vector<8x128xf32>
    %209 = arith.mulf %207, %208 : vector<8x128xf32>
    %c3_i32 = arith.constant 3 : i32
    %210 = arith.addi %15, %c3_i32 : i32
    %c20_i32_59 = arith.constant 20 : i32
    %211 = arith.cmpi slt, %210, %c20_i32_59 : i32
    %c3_i32_60 = arith.constant 3 : i32
    %212 = arith.addi %17, %c3_i32_60 : i32
    %c20_i32_61 = arith.constant 20 : i32
    %213 = arith.cmpi slt, %212, %c20_i32_61 : i32
    %214 = arith.select %211, %199, %164 : vector<8x128xf32>
    %215 = arith.select %211, %196, %165 : vector<8x128xf32>
    %216 = arith.select %213, %209, %166 : vector<8x128xf32>
    %217 = arith.select %213, %206, %167 : vector<8x128xf32>
    %c4_62 = arith.constant 4 : index
    %c0_63 = arith.constant 0 : index
    %c0_64 = arith.constant 0 : index
    %218 = vector.load %arg1[%c4_62, %c0_63, %c0_64] : memref<7x8x512xf32, #tpu.memory_space<vmem>>, vector<1x8x512xf32>
    %219 = vector.shape_cast %218 : vector<1x8x512xf32> to vector<8x512xf32>
    %220 = arith.truncf %214 : vector<8x128xf32> to vector<8x128xbf16>
    %cst_65 = arith.constant dense<0.000000e+00> : vector<8x512xf32>
    %221 = tpu.matmul %220, %12, %cst_65 {dimension_numbers = #tpu.dot_dimension_numbers<[1], [0], [0], [1], [0, 0, 1, 1], [], []>} : vector<8x128xbf16>, vector<128x512xbf16>, vector<8x512xf32> -> vector<8x512xf32>
    %222 = arith.addf %219, %221 : vector<8x512xf32>
    %c2_66 = arith.constant 2 : index
    %c0_67 = arith.constant 0 : index
    %c0_68 = arith.constant 0 : index
    %223 = vector.load %arg2[%c2_66, %c0_67, %c0_68] : memref<7x8x512xf32, #tpu.memory_space<vmem>>, vector<1x8x512xf32>
    %224 = vector.shape_cast %223 : vector<1x8x512xf32> to vector<8x512xf32>
    %225 = arith.truncf %216 : vector<8x128xf32> to vector<8x128xbf16>
    %cst_69 = arith.constant dense<0.000000e+00> : vector<8x512xf32>
    %226 = tpu.matmul %225, %14, %cst_69 {dimension_numbers = #tpu.dot_dimension_numbers<[1], [0], [0], [1], [0, 0, 1, 1], [], []>} : vector<8x128xbf16>, vector<128x512xbf16>, vector<8x512xf32> -> vector<8x512xf32>
    %227 = arith.addf %224, %226 : vector<8x512xf32>
    %228 = vector.extract_strided_slice %222 {offsets = [0, 0], sizes = [8, 384], strides = [1, 1]} : vector<8x512xf32> to vector<8x384xf32>
    %229 = arith.negf %228 : vector<8x384xf32>
    %230 = math.exp %229 : vector<8x384xf32>
    %cst_70 = arith.constant 1.000000e+00 : f32
    %231 = vector.broadcast %cst_70 : f32 to vector<8x384xf32>
    %232 = arith.addf %231, %230 : vector<8x384xf32>
    %233 = arith.divf %231, %232 : vector<8x384xf32>
    %234 = vector.extract_strided_slice %227 {offsets = [0, 0], sizes = [8, 384], strides = [1, 1]} : vector<8x512xf32> to vector<8x384xf32>
    %235 = arith.negf %234 : vector<8x384xf32>
    %236 = math.exp %235 : vector<8x384xf32>
    %cst_71 = arith.constant 1.000000e+00 : f32
    %237 = vector.broadcast %cst_71 : f32 to vector<8x384xf32>
    %238 = arith.addf %237, %236 : vector<8x384xf32>
    %239 = arith.divf %237, %238 : vector<8x384xf32>
    %240 = vector.extract_strided_slice %233 {offsets = [0, 128], sizes = [8, 128], strides = [1, 1]} : vector<8x384xf32> to vector<8x128xf32>
    %241 = arith.mulf %240, %215 : vector<8x128xf32>
    %242 = vector.extract_strided_slice %233 {offsets = [0, 0], sizes = [8, 128], strides = [1, 1]} : vector<8x384xf32> to vector<8x128xf32>
    %243 = vector.extract_strided_slice %222 {offsets = [0, 384], sizes = [8, 128], strides = [1, 1]} : vector<8x512xf32> to vector<8x128xf32>
    %244 = math.tanh %243 : vector<8x128xf32>
    %245 = arith.mulf %242, %244 : vector<8x128xf32>
    %246 = arith.addf %241, %245 : vector<8x128xf32>
    %247 = vector.extract_strided_slice %233 {offsets = [0, 256], sizes = [8, 128], strides = [1, 1]} : vector<8x384xf32> to vector<8x128xf32>
    %248 = math.tanh %246 : vector<8x128xf32>
    %249 = arith.mulf %247, %248 : vector<8x128xf32>
    %250 = vector.extract_strided_slice %239 {offsets = [0, 128], sizes = [8, 128], strides = [1, 1]} : vector<8x384xf32> to vector<8x128xf32>
    %251 = arith.mulf %250, %217 : vector<8x128xf32>
    %252 = vector.extract_strided_slice %239 {offsets = [0, 0], sizes = [8, 128], strides = [1, 1]} : vector<8x384xf32> to vector<8x128xf32>
    %253 = vector.extract_strided_slice %227 {offsets = [0, 384], sizes = [8, 128], strides = [1, 1]} : vector<8x512xf32> to vector<8x128xf32>
    %254 = math.tanh %253 : vector<8x128xf32>
    %255 = arith.mulf %252, %254 : vector<8x128xf32>
    %256 = arith.addf %251, %255 : vector<8x128xf32>
    %257 = vector.extract_strided_slice %239 {offsets = [0, 256], sizes = [8, 128], strides = [1, 1]} : vector<8x384xf32> to vector<8x128xf32>
    %258 = math.tanh %256 : vector<8x128xf32>
    %259 = arith.mulf %257, %258 : vector<8x128xf32>
    %c4_i32_72 = arith.constant 4 : i32
    %260 = arith.addi %15, %c4_i32_72 : i32
    %c20_i32_73 = arith.constant 20 : i32
    %261 = arith.cmpi slt, %260, %c20_i32_73 : i32
    %c2_i32_74 = arith.constant 2 : i32
    %262 = arith.addi %17, %c2_i32_74 : i32
    %c20_i32_75 = arith.constant 20 : i32
    %263 = arith.cmpi slt, %262, %c20_i32_75 : i32
    %264 = arith.select %261, %249, %214 : vector<8x128xf32>
    %265 = arith.select %261, %246, %215 : vector<8x128xf32>
    %266 = arith.select %263, %259, %216 : vector<8x128xf32>
    %267 = arith.select %263, %256, %217 : vector<8x128xf32>
    %c5_76 = arith.constant 5 : index
    %c0_77 = arith.constant 0 : index
    %c0_78 = arith.constant 0 : index
    %268 = vector.load %arg1[%c5_76, %c0_77, %c0_78] : memref<7x8x512xf32, #tpu.memory_space<vmem>>, vector<1x8x512xf32>
    %269 = vector.shape_cast %268 : vector<1x8x512xf32> to vector<8x512xf32>
    %270 = arith.truncf %264 : vector<8x128xf32> to vector<8x128xbf16>
    %cst_79 = arith.constant dense<0.000000e+00> : vector<8x512xf32>
    %271 = tpu.matmul %270, %12, %cst_79 {dimension_numbers = #tpu.dot_dimension_numbers<[1], [0], [0], [1], [0, 0, 1, 1], [], []>} : vector<8x128xbf16>, vector<128x512xbf16>, vector<8x512xf32> -> vector<8x512xf32>
    %272 = arith.addf %269, %271 : vector<8x512xf32>
    %c1_80 = arith.constant 1 : index
    %c0_81 = arith.constant 0 : index
    %c0_82 = arith.constant 0 : index
    %273 = vector.load %arg2[%c1_80, %c0_81, %c0_82] : memref<7x8x512xf32, #tpu.memory_space<vmem>>, vector<1x8x512xf32>
    %274 = vector.shape_cast %273 : vector<1x8x512xf32> to vector<8x512xf32>
    %275 = arith.truncf %266 : vector<8x128xf32> to vector<8x128xbf16>
    %cst_83 = arith.constant dense<0.000000e+00> : vector<8x512xf32>
    %276 = tpu.matmul %275, %14, %cst_83 {dimension_numbers = #tpu.dot_dimension_numbers<[1], [0], [0], [1], [0, 0, 1, 1], [], []>} : vector<8x128xbf16>, vector<128x512xbf16>, vector<8x512xf32> -> vector<8x512xf32>
    %277 = arith.addf %274, %276 : vector<8x512xf32>
    %278 = vector.extract_strided_slice %272 {offsets = [0, 0], sizes = [8, 384], strides = [1, 1]} : vector<8x512xf32> to vector<8x384xf32>
    %279 = arith.negf %278 : vector<8x384xf32>
    %280 = math.exp %279 : vector<8x384xf32>
    %cst_84 = arith.constant 1.000000e+00 : f32
    %281 = vector.broadcast %cst_84 : f32 to vector<8x384xf32>
    %282 = arith.addf %281, %280 : vector<8x384xf32>
    %283 = arith.divf %281, %282 : vector<8x384xf32>
    %284 = vector.extract_strided_slice %277 {offsets = [0, 0], sizes = [8, 384], strides = [1, 1]} : vector<8x512xf32> to vector<8x384xf32>
    %285 = arith.negf %284 : vector<8x384xf32>
    %286 = math.exp %285 : vector<8x384xf32>
    %cst_85 = arith.constant 1.000000e+00 : f32
    %287 = vector.broadcast %cst_85 : f32 to vector<8x384xf32>
    %288 = arith.addf %287, %286 : vector<8x384xf32>
    %289 = arith.divf %287, %288 : vector<8x384xf32>
    %290 = vector.extract_strided_slice %283 {offsets = [0, 128], sizes = [8, 128], strides = [1, 1]} : vector<8x384xf32> to vector<8x128xf32>
    %291 = arith.mulf %290, %265 : vector<8x128xf32>
    %292 = vector.extract_strided_slice %283 {offsets = [0, 0], sizes = [8, 128], strides = [1, 1]} : vector<8x384xf32> to vector<8x128xf32>
    %293 = vector.extract_strided_slice %272 {offsets = [0, 384], sizes = [8, 128], strides = [1, 1]} : vector<8x512xf32> to vector<8x128xf32>
    %294 = math.tanh %293 : vector<8x128xf32>
    %295 = arith.mulf %292, %294 : vector<8x128xf32>
    %296 = arith.addf %291, %295 : vector<8x128xf32>
    %297 = vector.extract_strided_slice %283 {offsets = [0, 256], sizes = [8, 128], strides = [1, 1]} : vector<8x384xf32> to vector<8x128xf32>
    %298 = math.tanh %296 : vector<8x128xf32>
    %299 = arith.mulf %297, %298 : vector<8x128xf32>
    %300 = vector.extract_strided_slice %289 {offsets = [0, 128], sizes = [8, 128], strides = [1, 1]} : vector<8x384xf32> to vector<8x128xf32>
    %301 = arith.mulf %300, %267 : vector<8x128xf32>
    %302 = vector.extract_strided_slice %289 {offsets = [0, 0], sizes = [8, 128], strides = [1, 1]} : vector<8x384xf32> to vector<8x128xf32>
    %303 = vector.extract_strided_slice %277 {offsets = [0, 384], sizes = [8, 128], strides = [1, 1]} : vector<8x512xf32> to vector<8x128xf32>
    %304 = math.tanh %303 : vector<8x128xf32>
    %305 = arith.mulf %302, %304 : vector<8x128xf32>
    %306 = arith.addf %301, %305 : vector<8x128xf32>
    %307 = vector.extract_strided_slice %289 {offsets = [0, 256], sizes = [8, 128], strides = [1, 1]} : vector<8x384xf32> to vector<8x128xf32>
    %308 = math.tanh %306 : vector<8x128xf32>
    %309 = arith.mulf %307, %308 : vector<8x128xf32>
    %c5_i32_86 = arith.constant 5 : i32
    %310 = arith.addi %15, %c5_i32_86 : i32
    %c20_i32_87 = arith.constant 20 : i32
    %311 = arith.cmpi slt, %310, %c20_i32_87 : i32
    %c1_i32_88 = arith.constant 1 : i32
    %312 = arith.addi %17, %c1_i32_88 : i32
    %c20_i32_89 = arith.constant 20 : i32
    %313 = arith.cmpi slt, %312, %c20_i32_89 : i32
    %314 = arith.select %311, %299, %264 : vector<8x128xf32>
    %315 = arith.select %311, %296, %265 : vector<8x128xf32>
    %316 = arith.select %313, %309, %266 : vector<8x128xf32>
    %317 = arith.select %313, %306, %267 : vector<8x128xf32>
    %c6_90 = arith.constant 6 : index
    %c0_91 = arith.constant 0 : index
    %c0_92 = arith.constant 0 : index
    %318 = vector.load %arg1[%c6_90, %c0_91, %c0_92] : memref<7x8x512xf32, #tpu.memory_space<vmem>>, vector<1x8x512xf32>
    %319 = vector.shape_cast %318 : vector<1x8x512xf32> to vector<8x512xf32>
    %320 = arith.truncf %314 : vector<8x128xf32> to vector<8x128xbf16>
    %cst_93 = arith.constant dense<0.000000e+00> : vector<8x512xf32>
    %321 = tpu.matmul %320, %12, %cst_93 {dimension_numbers = #tpu.dot_dimension_numbers<[1], [0], [0], [1], [0, 0, 1, 1], [], []>} : vector<8x128xbf16>, vector<128x512xbf16>, vector<8x512xf32> -> vector<8x512xf32>
    %322 = arith.addf %319, %321 : vector<8x512xf32>
    %c0_94 = arith.constant 0 : index
    %c0_95 = arith.constant 0 : index
    %c0_96 = arith.constant 0 : index
    %323 = vector.load %arg2[%c0_94, %c0_95, %c0_96] : memref<7x8x512xf32, #tpu.memory_space<vmem>>, vector<1x8x512xf32>
    %324 = vector.shape_cast %323 : vector<1x8x512xf32> to vector<8x512xf32>
    %325 = arith.truncf %316 : vector<8x128xf32> to vector<8x128xbf16>
    %cst_97 = arith.constant dense<0.000000e+00> : vector<8x512xf32>
    %326 = tpu.matmul %325, %14, %cst_97 {dimension_numbers = #tpu.dot_dimension_numbers<[1], [0], [0], [1], [0, 0, 1, 1], [], []>} : vector<8x128xbf16>, vector<128x512xbf16>, vector<8x512xf32> -> vector<8x512xf32>
    %327 = arith.addf %324, %326 : vector<8x512xf32>
    %328 = vector.extract_strided_slice %322 {offsets = [0, 0], sizes = [8, 384], strides = [1, 1]} : vector<8x512xf32> to vector<8x384xf32>
    %329 = arith.negf %328 : vector<8x384xf32>
    %330 = math.exp %329 : vector<8x384xf32>
    %cst_98 = arith.constant 1.000000e+00 : f32
    %331 = vector.broadcast %cst_98 : f32 to vector<8x384xf32>
    %332 = arith.addf %331, %330 : vector<8x384xf32>
    %333 = arith.divf %331, %332 : vector<8x384xf32>
    %334 = vector.extract_strided_slice %327 {offsets = [0, 0], sizes = [8, 384], strides = [1, 1]} : vector<8x512xf32> to vector<8x384xf32>
    %335 = arith.negf %334 : vector<8x384xf32>
    %336 = math.exp %335 : vector<8x384xf32>
    %cst_99 = arith.constant 1.000000e+00 : f32
    %337 = vector.broadcast %cst_99 : f32 to vector<8x384xf32>
    %338 = arith.addf %337, %336 : vector<8x384xf32>
    %339 = arith.divf %337, %338 : vector<8x384xf32>
    %340 = vector.extract_strided_slice %333 {offsets = [0, 128], sizes = [8, 128], strides = [1, 1]} : vector<8x384xf32> to vector<8x128xf32>
    %341 = arith.mulf %340, %315 : vector<8x128xf32>
    %342 = vector.extract_strided_slice %333 {offsets = [0, 0], sizes = [8, 128], strides = [1, 1]} : vector<8x384xf32> to vector<8x128xf32>
    %343 = vector.extract_strided_slice %322 {offsets = [0, 384], sizes = [8, 128], strides = [1, 1]} : vector<8x512xf32> to vector<8x128xf32>
    %344 = math.tanh %343 : vector<8x128xf32>
    %345 = arith.mulf %342, %344 : vector<8x128xf32>
    %346 = arith.addf %341, %345 : vector<8x128xf32>
    %347 = vector.extract_strided_slice %333 {offsets = [0, 256], sizes = [8, 128], strides = [1, 1]} : vector<8x384xf32> to vector<8x128xf32>
    %348 = math.tanh %346 : vector<8x128xf32>
    %349 = arith.mulf %347, %348 : vector<8x128xf32>
    %350 = vector.extract_strided_slice %339 {offsets = [0, 128], sizes = [8, 128], strides = [1, 1]} : vector<8x384xf32> to vector<8x128xf32>
    %351 = arith.mulf %350, %317 : vector<8x128xf32>
    %352 = vector.extract_strided_slice %339 {offsets = [0, 0], sizes = [8, 128], strides = [1, 1]} : vector<8x384xf32> to vector<8x128xf32>
    %353 = vector.extract_strided_slice %327 {offsets = [0, 384], sizes = [8, 128], strides = [1, 1]} : vector<8x512xf32> to vector<8x128xf32>
    %354 = math.tanh %353 : vector<8x128xf32>
    %355 = arith.mulf %352, %354 : vector<8x128xf32>
    %356 = arith.addf %351, %355 : vector<8x128xf32>
    %357 = vector.extract_strided_slice %339 {offsets = [0, 256], sizes = [8, 128], strides = [1, 1]} : vector<8x384xf32> to vector<8x128xf32>
    %358 = math.tanh %356 : vector<8x128xf32>
    %359 = arith.mulf %357, %358 : vector<8x128xf32>
    %c6_i32_100 = arith.constant 6 : i32
    %360 = arith.addi %15, %c6_i32_100 : i32
    %c20_i32_101 = arith.constant 20 : i32
    %361 = arith.cmpi slt, %360, %c20_i32_101 : i32
    %c0_i32_102 = arith.constant 0 : i32
    %362 = arith.addi %17, %c0_i32_102 : i32
    %c20_i32_103 = arith.constant 20 : i32
    %363 = arith.cmpi slt, %362, %c20_i32_103 : i32
    %364 = arith.select %361, %349, %314 : vector<8x128xf32>
    %365 = arith.select %361, %346, %315 : vector<8x128xf32>
    %366 = arith.select %363, %359, %316 : vector<8x128xf32>
    %367 = arith.select %363, %356, %317 : vector<8x128xf32>
    %c0_104 = arith.constant 0 : index
    %c0_105 = arith.constant 0 : index
    %c0_106 = arith.constant 0 : index
    %368 = vector.load %arg5[%c0_104, %c0_105, %c0_106] : memref<4x8x128xf32, #tpu.memory_space<vmem>>, vector<1x8x128xf32>
    %369 = vector.shape_cast %368 : vector<1x8x128xf32> to vector<8x128xf32>
    %370 = vector.shape_cast %364 : vector<8x128xf32> to vector<1x8x128xf32>
    tpu.vector_store %arg5[%c0_104, %c0_105, %c0_106], %370 {strides = array<i32>} : memref<4x8x128xf32, #tpu.memory_space<vmem>>, vector<1x8x128xf32>,
    %c1_107 = arith.constant 1 : index
    %c0_108 = arith.constant 0 : index
    %c0_109 = arith.constant 0 : index
    %371 = vector.load %arg5[%c1_107, %c0_108, %c0_109] : memref<4x8x128xf32, #tpu.memory_space<vmem>>, vector<1x8x128xf32>
    %372 = vector.shape_cast %371 : vector<1x8x128xf32> to vector<8x128xf32>
    %373 = vector.shape_cast %365 : vector<8x128xf32> to vector<1x8x128xf32>
    tpu.vector_store %arg5[%c1_107, %c0_108, %c0_109], %373 {strides = array<i32>} : memref<4x8x128xf32, #tpu.memory_space<vmem>>, vector<1x8x128xf32>,
    %c2_110 = arith.constant 2 : index
    %c0_111 = arith.constant 0 : index
    %c0_112 = arith.constant 0 : index
    %374 = vector.load %arg5[%c2_110, %c0_111, %c0_112] : memref<4x8x128xf32, #tpu.memory_space<vmem>>, vector<1x8x128xf32>
    %375 = vector.shape_cast %374 : vector<1x8x128xf32> to vector<8x128xf32>
    %376 = vector.shape_cast %366 : vector<8x128xf32> to vector<1x8x128xf32>
    tpu.vector_store %arg5[%c2_110, %c0_111, %c0_112], %376 {strides = array<i32>} : memref<4x8x128xf32, #tpu.memory_space<vmem>>, vector<1x8x128xf32>,
    %c3_113 = arith.constant 3 : index
    %c0_114 = arith.constant 0 : index
    %c0_115 = arith.constant 0 : index
    %377 = vector.load %arg5[%c3_113, %c0_114, %c0_115] : memref<4x8x128xf32, #tpu.memory_space<vmem>>, vector<1x8x128xf32>
    %378 = vector.shape_cast %377 : vector<1x8x128xf32> to vector<8x128xf32>
    %379 = vector.shape_cast %367 : vector<8x128xf32> to vector<1x8x128xf32>
    tpu.vector_store %arg5[%c3_113, %c0_114, %c0_115], %379 {strides = array<i32>} : memref<4x8x128xf32, #tpu.memory_space<vmem>>, vector<1x8x128xf32>,
    %c2_i32_116 = arith.constant 2 : i32
    %380 = arith.cmpi eq, %arg0, %c2_i32_116 : i32
    %381 = arith.extui %380 : i1 to i32
    %c0_i32_117 = arith.constant 0 : i32
    %382 = arith.cmpi ne, %381, %c0_i32_117 : i32
    scf.if %382 {
      %c0_118 = arith.constant 0 : index
      %c0_119 = arith.constant 0 : index
      %383 = vector.load %arg4[%c0_118, %c0_119] : memref<8x256xf32, #tpu.memory_space<vmem>>, vector<8x128xf32>
      tpu.vector_store %arg4[%c0_118, %c0_119], %364 {strides = array<i32>} : memref<8x256xf32, #tpu.memory_space<vmem>>, vector<8x128xf32>,
      %c0_120 = arith.constant 0 : index
      %c128 = arith.constant 128 : index
      %384 = vector.load %arg4[%c0_120, %c128] : memref<8x256xf32, #tpu.memory_space<vmem>>, vector<8x128xf32>
      tpu.vector_store %arg4[%c0_120, %c128], %366 {strides = array<i32>} : memref<8x256xf32, #tpu.memory_space<vmem>>, vector<8x128xf32>,
    } else {
    }
    return
  }
  func.func @transform_0(%arg0: i32) -> (i32, i32, i32) {
    %c0_i32 = arith.constant 0 : i32
    %c0_i32_0 = arith.constant 0 : i32
    %c0_i32_1 = arith.constant 0 : i32
    return %arg0, %c0_i32, %c0_i32_0 : i32, i32, i32
  }
  func.func @transform_1(%arg0: i32) -> (i32, i32, i32) {
    %c2_i32 = arith.constant 2 : i32
    %0 = arith.subi %c2_i32, %arg0 : i32
    %c0_i32 = arith.constant 0 : i32
    %c0_i32_0 = arith.constant 0 : i32
    %c0_i32_1 = arith.constant 0 : i32
    return %0, %c0_i32, %c0_i32_0 : i32, i32, i32
  }
  func.func @transform_2(%arg0: i32) -> (i32, i32, i32) {
    %c0_i32 = arith.constant 0 : i32
    %c0_i32_0 = arith.constant 0 : i32
    %c0_i32_1 = arith.constant 0 : i32
    %c0_i32_2 = arith.constant 0 : i32
    return %c0_i32, %c0_i32_0, %c0_i32_1 : i32, i32, i32
  }
  func.func @transform_3(%arg0: i32) -> (i32, i32) {
    %c0_i32 = arith.constant 0 : i32
    %c0_i32_0 = arith.constant 0 : i32
    %c0_i32_1 = arith.constant 0 : i32
    return %c0_i32, %c0_i32_0 : i32, i32
  }
}

</mosaic_0001>

<bundles_post_ra>
// kernel: lstm_model_forward.2
= control target key start
LH: loop header
LB: loop body
LE: loop exit
PB: predicated region body
PF: predicated region fallthrough
CT: control target
= control target key end

     0   :  { %11 = vsyncpa [#allocation4], 0  ;;  %s3304_s18 = smov 0   ;;  %s4879_s0 = inlined_call_operand.vmem [shape: f32[21,8,512], index: 0, kind: input, shape index: {}]   ;;  %s4880_s1 = inlined_call_operand.vmem [shape: f32[21,8,512], index: 1, kind: input, shape index: {}]   ;;  %s4881_s2 = inlined_call_operand.vmem [shape: bf16[2,128,512], index: 2, kind: input, shape index: {}]   ;;  %s4882_s3 = inlined_call_operand.vmem [shape: bf16[21,8,128], index: 3, kind: output, shape index: {0}]   ;;  %s4883_s4 = inlined_call_operand.vmem [shape: bf16[21,8,128], index: 4, kind: output, shape index: {1}]   ;;  %s4884_s5 = inlined_call_operand.hbm [shape: f32[8,256], index: 5, kind: output, shape index: {2}]  }
   0x1 LB: > { %s3310_s19 = sadd.s32 4294967295, %s3269_s18   ;;  %p2573_p0 = scmp.ge.s32.totalorder %s3269_s18, 1  ;;  %s3269_s18 = sphi %s3304_s18, %s17_s18  }
   0x2   : > { %p208_p1 = scmp.lt.s32.totalorder %s3269_s18, 4 }
   0x4   : > { %p209_p2 = pnand %p2573_p0, %p208_p1 }
   0x6   : > { %212 = sbr.rel (%p209_p2) target bundleno = 1875 (0x753), region = 32 }
   0xb   : > { %s3315_s20 = smul.u32 7, %s3310_s19  ;;  %s257_s21 = ssub.s32 2, %s3310_s19 }
   0xc   : > { %s3318_s22 = smul.u32 7, %s257_s21  ;;  %p2580_p5 = scmp.ne.s32.totalorder %s3310_s19, 0 }
   0xd   : > { %p251_p3 = scmp.lt.s32.totalorder %s3315_s20, 20 }
   0xe   : > { %p259_p4 = scmp.lt.s32.totalorder %s3318_s22, 20 }
   0xf   : > { %s252_s23 = scalar_select %p251_p3, %s3315_s20, 20 }
  0x10   : > { %s260_s24 = scalar_select %p259_p4, %s3318_s22, 20 }
  0x11   : > { %s2784_s25 = sshll.u32 %s252_s23, 5  ;;  %s2578_s26 = sshll.u32 %s252_s23, 2 }
  0x12   : > { %s3331_s29 = scalar_lea.vmem %s4879_s0, %s2784_s25  ;;  %s2785_s30 = sshll.u32 %s260_s24, 5 }
  0x13   : > { %s3336_s8 = scalar_lea.vmem %s4880_s1, %s2785_s30  ;;  %s3341_s11 = scalar_lea.vmem %s4882_s3, %s2578_s26 }
  0x14   : > { %s2579_s12 = sshll.u32 %s260_s24, 2  ;;  %284 = sbr.rel (%p2580_p5) target bundleno = 28 (0x1c), region = 36 }
  0x15   : > { %s3346_s15 = scalar_lea.vmem %s4883_s4, %s2579_s12 }
  0x19   : > { %v3271_v0 = vmov 0.0  }
  0x1a   : > { %285 = vst [vmem:[#allocation2 + $0x10] sm:$0xff] %v3271_v0  ;;  %286 = vst [vmem:[#allocation2] sm:$0xff] %v3271_v0 }
  0x1b   : > { %287 = vst [vmem:[#allocation2 + $0x18] sm:$0xff] %v3271_v0  ;;  %288 = vst [vmem:[#allocation2 + $0x8] sm:$0xff] %v3271_v0 }
  0x1c PF: > { %v3352_v1 = vld [vmem:[%s4881_s2 + $0xe4] ss:$16 sps:$4 sm:$0xff]   ;;  %v3357_v2 = vld [vmem:[%s4881_s2 + $0xe0] ss:$16 sps:$4 sm:$0xff]   ;;  %v4885_v3 = vmov 0   ;;  %s916_s6 = sadd.s32 6, %s3318_s22 }
  0x1d   : > { %561 = vmatprep.mubr.bf16.mxu0 %v4885_v3  ;;  %602 = vmatprep.mubr.bf16.mxu1 %v4885_v3  ;;  %v3365_v4 = vld [vmem:[%s4881_s2 + $0xc4] ss:$16 sps:$4 sm:$0xff]   ;;  %v3371_v5 = vld [vmem:[%s4881_s2 + $0xc0] ss:$16 sps:$4 sm:$0xff]   ;;  %v3382_v7 = vld [vmem:[%s4881_s2 + $0xec] ss:$16 sps:$4 sm:$0xff]  }
  0x1e   : > { %529 = vmatprep.subr.bf16.mxu0 %v3352_v1  ;;  %v3377_v6 = vld [vmem:[%s4881_s2 + $0xa4] ss:$16 sps:$4 sm:$0xff]   ;;  %v3387_v8 = vld [vmem:[%s4881_s2 + $0xe8] ss:$16 sps:$4 sm:$0xff]   ;;  %v3393_v9 = vld [vmem:[%s4881_s2 + $0xa0] ss:$16 sps:$4 sm:$0xff]   ;;  %570 = vmatprep.subr.bf16.mxu1 %v3382_v7 }
  0x1f   : > { %530 = vmatpush1.bf16.msra.mxu0 %v3357_v2  ;;  %v3400_v10 = vld [vmem:[%s4881_s2 + $0x84] ss:$16 sps:$4 sm:$0xff]   ;;  %571 = vmatpush1.bf16.msra.mxu1 %v3387_v8  ;;  %v3406_v11 = vld [vmem:[%s4881_s2 + $0xcc] ss:$16 sps:$4 sm:$0xff]   ;;  %v3411_v12 = vld [vmem:[%s4881_s2 + $0xc8] ss:$16 sps:$4 sm:$0xff]  }
  0x20   : > { %531 = vmatprep.subr.bf16.mxu0 %v3365_v4  ;;  %572 = vmatprep.subr.bf16.mxu1 %v3406_v11  ;;  %v3418_v13 = vld [vmem:[%s4881_s2 + $0x80] ss:$16 sps:$4 sm:$0xff]   ;;  %v3423_v14 = vld [vmem:[%s4881_s2 + $0x64] ss:$16 sps:$4 sm:$0xff]   ;;  %v3428_v15 = vld [vmem:[%s4881_s2 + $0xac] ss:$16 sps:$4 sm:$0xff]  }
  0x21   : > { %4972 = vst [vmem:[#allocation6_spill] sm:$0xff] %v3423_v14  ;;  %v3435_v16 = vld [vmem:[%s4881_s2 + $0xa8] ss:$16 sps:$4 sm:$0xff]   ;;  %v3441_v17 = vld [vmem:[%s4881_s2 + $0x8c] ss:$16 sps:$4 sm:$0xff]   ;;  %v3521_v31 = vld [vmem:[#allocation2 + $0x10] sm:$0xff] }
  0x22   : > { %v3447_v18 = vld [vmem:[%s4881_s2 + $0x60] ss:$16 sps:$4 sm:$0xff]   ;;  %v3453_v19 = vld [vmem:[%s4881_s2 + $0x44] ss:$16 sps:$4 sm:$0xff]   ;;  %v3459_v20 = vld [vmem:[%s4881_s2 + $0x88] ss:$16 sps:$4 sm:$0xff]   ;;  %v368_v35 = vpack.c.bf16 %v3521_v31, %v3521_v31 }
  0x23   : > { %532 = vmatpush1.bf16.msra.mxu0 %v3371_v5  ;;  %573 = vmatpush1.bf16.msra.mxu1 %v3411_v12  ;;  %4973 = vst [vmem:[#allocation7_spill] sm:$0xff] %v3447_v18  ;;  %4974 = vst [vmem:[#allocation8_spill] sm:$0xff] %v3453_v19  ;;  %v3465_v21 = vld [vmem:[%s4881_s2 + $0x6c] ss:$16 sps:$4 sm:$0xff]   ;;  %v3471_v22 = vld [vmem:[%s4881_s2 + $0x40] ss:$16 sps:$4 sm:$0xff]  }
  0x24   : > { %533 = vmatprep.subr.bf16.mxu0 %v3377_v6  ;;  %574 = vmatprep.subr.bf16.mxu1 %v3428_v15  ;;  %4975 = vst [vmem:[#allocation9_spill] sm:$0xff] %v3459_v20  ;;  %4976 = vst [vmem:[#allocation10_spill] sm:$0xff] %v3465_v21  ;;  %v3476_v23 = vld [vmem:[%s4881_s2 + $0x24] ss:$16 sps:$4 sm:$0xff]   ;;  %v3483_v24 = vld [vmem:[%s4881_s2 + $0x68] ss:$16 sps:$4 sm:$0xff]  }
  0x25   : > { %4977 = vst [vmem:[#allocation11_spill] sm:$0xff] %v3471_v22  ;;  %4978 = vst [vmem:[#allocation12_spill] sm:$0xff] %v3476_v23  ;;  %v3489_v25 = vld [vmem:[%s4881_s2 + $0x4c] ss:$16 sps:$4 sm:$0xff]   ;;  %v3494_v26 = vld [vmem:[%s4881_s2 + $0x20] ss:$16 sps:$4 sm:$0xff]  }
  0x26   : > { %4979 = vst [vmem:[#allocation13_spill] sm:$0xff] %v3483_v24  ;;  %4980 = vst [vmem:[#allocation14_spill] sm:$0xff] %v3489_v25  ;;  %v3500_v27 = vld [vmem:[%s4881_s2 + $0x4] ss:$16 sps:$4 sm:$0xff]   ;;  %v3507_v28 = vld [vmem:[%s4881_s2 + $0x48] ss:$16 sps:$4 sm:$0xff]  }
  0x27   : > { %534 = vmatpush1.bf16.msra.mxu0 %v3393_v9  ;;  %575 = vmatpush1.bf16.msra.mxu1 %v3435_v16  ;;  %4981 = vst [vmem:[#allocation15_spill] sm:$0xff] %v3494_v26  ;;  %4982 = vst [vmem:[#allocation16_spill] sm:$0xff] %v3500_v27  ;;  %v3513_v29 = vld [vmem:[%s4881_s2 + $0x2c] ss:$16 sps:$4 sm:$0xff]   ;;  %v3518_v30 = vld [vmem:[%s4881_s2] ss:$16 sps:$4 sm:$0xff]  }
  0x28   : > { %535 = vmatprep.subr.bf16.mxu0 %v3400_v10  ;;  %576 = vmatprep.subr.bf16.mxu1 %v3441_v17  ;;  %4983 = vst [vmem:[#allocation17_spill] sm:$0xff] %v3507_v28  ;;  %4984 = vst [vmem:[#allocation18_spill] sm:$0xff] %v3513_v29  ;;  %v3526_v32 = vld [vmem:[%s4881_s2 + $0x1e4] ss:$16 sps:$4 sm:$0xff]   ;;  %v3533_v33 = vld [vmem:[%s4881_s2 + $0x28] ss:$16 sps:$4 sm:$0xff]  }
  0x29   : > { %4985 = vst [vmem:[#allocation19_spill] sm:$0xff] %v3518_v30  ;;  %4986 = vst [vmem:[#allocation20_spill] sm:$0xff] %v3526_v32  ;;  %v3539_v34 = vld [vmem:[%s4881_s2 + $0xc] ss:$16 sps:$4 sm:$0xff]   ;;  %v3546_v36 = vld [vmem:[%s4881_s2 + $0x1e0] ss:$16 sps:$4 sm:$0xff]  }
  0x2a   : > { %4987 = vst [vmem:[#allocation21_spill] sm:$0xff] %v3533_v33  ;;  %4988 = vst [vmem:[#allocation22_spill] sm:$0xff] %v3539_v34  ;;  %v3552_v37 = vld [vmem:[%s4881_s2 + $0x1c4] ss:$16 sps:$4 sm:$0xff]   ;;  %v3559_v38 = vld [vmem:[%s4881_s2 + $0x8] ss:$16 sps:$4 sm:$0xff]  }
  0x2b   : > { %536 = vmatpush1.bf16.msra.mxu0 %v3418_v13  ;;  %577 = vmatpush1.bf16.msra.mxu1 %v3459_v20  ;;  %4989 = vst [vmem:[#allocation23_spill] sm:$0xff] %v3559_v38  ;;  %v3565_v39 = vld [vmem:[%s4881_s2 + $0x1ec] ss:$16 sps:$4 sm:$0xff]   ;;  %v3571_v40 = vld [vmem:[%s4881_s2 + $0x1c0] ss:$16 sps:$4 sm:$0xff]   ;;  %p3807_p6 = scmp.lt.s32.totalorder %s916_s6, 20 }
  0x2c   : > { %537 = vmatprep.subr.bf16.mxu0 %v3423_v14  ;;  %578 = vmatprep.subr.bf16.mxu1 %v3465_v21  ;;  %4990 = vst [vmem:[#allocation24_spill] sm:$0xff] %v3565_v39  ;;  %v3576_v41 = vld [vmem:[%s4881_s2 + $0x1a4] ss:$16 sps:$4 sm:$0xff]   ;;  %v3584_v42 = vld [vmem:[%s4881_s2 + $0x1e8] ss:$16 sps:$4 sm:$0xff]   ;;  %s1163_s10 = sadd.s32 1, %s3315_s20 }
  0x2d   : > { %v3590_v43 = vld [vmem:[%s4881_s2 + $0x1cc] ss:$16 sps:$4 sm:$0xff]   ;;  %v3596_v44 = vld [vmem:[%s4881_s2 + $0x1a0] ss:$16 sps:$4 sm:$0xff]   ;;  %v3602_v45 = vld [vmem:[%s4881_s2 + $0x184] ss:$16 sps:$4 sm:$0xff]  }
  0x2e   : > { %v3608_v46 = vld [vmem:[%s4881_s2 + $0x1c8] ss:$16 sps:$4 sm:$0xff]   ;;  %v3614_v47 = vld [vmem:[%s4881_s2 + $0x1ac] ss:$16 sps:$4 sm:$0xff]   ;;  %v3621_v48 = vld [vmem:[%s4881_s2 + $0x180] ss:$16 sps:$4 sm:$0xff]  }
  0x2f   : > { %538 = vmatpush1.bf16.msra.mxu0 %v3447_v18  ;;  %579 = vmatpush1.bf16.msra.mxu1 %v3483_v24  ;;  %v3627_v49 = vld [vmem:[%s4881_s2 + $0x164] ss:$16 sps:$4 sm:$0xff]   ;;  %v3633_v50 = vld [vmem:[%s4881_s2 + $0x1a8] ss:$16 sps:$4 sm:$0xff]   ;;  %v3639_v51 = vld [vmem:[%s4881_s2 + $0x18c] ss:$16 sps:$4 sm:$0xff]  }
  0x30   : > { %539 = vmatprep.subr.bf16.mxu0 %v3453_v19  ;;  %580 = vmatprep.subr.bf16.mxu1 %v3489_v25  ;;  %v3645_v52 = vld [vmem:[%s4881_s2 + $0x160] ss:$16 sps:$4 sm:$0xff]   ;;  %v3651_v53 = vld [vmem:[%s4881_s2 + $0x144] ss:$16 sps:$4 sm:$0xff]   ;;  %v3657_v54 = vld [vmem:[%s4881_s2 + $0x188] ss:$16 sps:$4 sm:$0xff]  }
  0x31   : > { %v3663_v55 = vld [vmem:[%s4881_s2 + $0x16c] ss:$16 sps:$4 sm:$0xff]   ;;  %v3669_v56 = vld [vmem:[%s4881_s2 + $0x140] ss:$16 sps:$4 sm:$0xff]   ;;  %v3675_v57 = vld [vmem:[%s4881_s2 + $0x124] ss:$16 sps:$4 sm:$0xff]  }
  0x32   : > { %4991 = vst [vmem:[#allocation25_spill] sm:$0xff] %v3675_v57  ;;  %v3681_v58 = vld [vmem:[%s4881_s2 + $0x168] ss:$16 sps:$4 sm:$0xff]   ;;  %v3687_v59 = vld [vmem:[%s4881_s2 + $0x14c] ss:$16 sps:$4 sm:$0xff]   ;;  %p3897_p7 = scmp.lt.s32.totalorder %s1163_s10, 20 }
  0x33   : > { %540 = vmatpush1.bf16.msra.mxu0 %v3471_v22  ;;  %581 = vmatpush1.bf16.msra.mxu1 %v3507_v28  ;;  %v3693_v60 = vld [vmem:[%s4881_s2 + $0x120] ss:$16 sps:$4 sm:$0xff]   ;;  %v3699_v61 = vld [vmem:[%s4881_s2 + $0x104] ss:$16 sps:$4 sm:$0xff]   ;;  %v3705_v62 = vld [vmem:[%s4881_s2 + $0x148] ss:$16 sps:$4 sm:$0xff]  }
  0x34   : > { %541 = vmatprep.subr.bf16.mxu0 %v3476_v23  ;;  %582 = vmatprep.subr.bf16.mxu1 %v3513_v29  ;;  %4992 = vst [vmem:[#allocation26_spill] sm:$0xff] %v3693_v60  ;;  %4993 = vst [vmem:[#allocation27_spill] sm:$0xff] %v3699_v61  ;;  %v3711_v63 = vld [vmem:[%s4881_s2 + $0x12c] ss:$16 sps:$4 sm:$0xff]   ;;  %v3717_v0 = vld [vmem:[%s4881_s2 + $0x100] ss:$16 sps:$4 sm:$0xff]  }
  0x35   : > { %4994 = vst [vmem:[#allocation28_spill] sm:$0xff] %v3711_v63  ;;  %s918_s30 = scalar_select %p251_p3, 1, 0 }
  0x36   : > { %s923_s9 = scalar_select %p3807_p6, 1, 0 }
  0x37   : > { %542 = vmatpush1.bf16.msra.mxu0 %v3494_v26  ;;  %583 = vmatpush1.bf16.msra.mxu1 %v3533_v33  ;;  %s1167_s13 = scalar_select %p3897_p7, 1, 0 }
  0x38   : > { %543 = vmatprep.subr.bf16.mxu0 %v3500_v27  ;;  %584 = vmatprep.subr.bf16.mxu1 %v3539_v34  ;;  %s1165_s14 = sadd.s32 5, %s3318_s22  ;;  %s1413_s24 = sadd.s32 2, %s3315_s20 }
  0x39   : > { %p3919_p8 = scmp.lt.s32.totalorder %s1165_s14, 20  ;;  %p4101_p9 = scmp.lt.s32.totalorder %s1413_s24, 20 }
  0x3a   : > { %s1415_s27 = sadd.s32 4, %s3318_s22  ;;  %s1665_s23 = sadd.s32 3, %s3318_s22 }
  0x3b   : > { %544 = vmatpush1.bf16.msra.mxu0 %v3518_v30  ;;  %585 = vmatpush1.bf16.msra.mxu1 %v3559_v38  ;;  %s1172_s17 = scalar_select %p3919_p8, 1, 0 }
  0x3c   : > { %781 = vmatprep.subr.bf16.mxu0 %v3526_v32  ;;  %822 = vmatprep.subr.bf16.mxu1 %v3565_v39  ;;  %s1417_s26 = scalar_select %p4101_p9, 1, 0 }
  0x3d   : > { %p4123_p10 = scmp.lt.s32.totalorder %s1415_s27, 20  ;;  %p4467_p12 = scmp.lt.s32.totalorder %s1665_s23, 20 }
  0x3e   : > { %562 = vmatmul.mubr.bf16.vlgmr.msra.gmra.mxu0 %v368_v35  ;;  %603 = vmatmul.mubr.bf16.vlgmr.msra.gmra.mxu1 %v368_v35  ;;  %v3719_v35 = vld [vmem:[#allocation2 + $0x18] sm:$0xff]  ;;  %s2163_s12 = sadd.s32 5, %s3315_s20 }
  0x3f   : > { %782 = vmatpush1.bf16.msra.mxu0 %v3546_v36  ;;  %813 = vmatprep.mubr.bf16.mxu0 %v4885_v3  ;;  %s1422_s16 = scalar_select %p4123_p10, 1, 0 }
  0x40   : > { %783 = vmatprep.subr.bf16.mxu0 %v3552_v37  ;;  %823 = vmatpush1.bf16.msra.mxu1 %v3584_v42  ;;  %s1672_s25 = scalar_select %p4467_p12, 1, 0 }
  0x41   : > { %824 = vmatprep.subr.bf16.mxu1 %v3590_v43  ;;  %854 = vmatprep.mubr.bf16.mxu1 %v4885_v3  ;;  %v3726_v3 = vld [vmem:[%s4881_s2 + $0x128] ss:$16 sps:$4 sm:$0xff]   ;;  %p4709_p1 = scmp.lt.s32.totalorder %s2163_s12, 20 }
  0x43   : > { %784 = vmatpush1.bf16.msra.mxu0 %v3571_v40  ;;  %s2167_s14 = scalar_select %p4709_p1, 1, 0 }
  0x44   : > { %785 = vmatprep.subr.bf16.mxu0 %v3576_v41  ;;  %825 = vmatpush1.bf16.msra.mxu1 %v3608_v46 }
  0x45   : > { %826 = vmatprep.subr.bf16.mxu1 %v3614_v47 }
  0x47   : > { %786 = vmatpush1.bf16.msra.mxu0 %v3596_v44 }
  0x48   : > { %787 = vmatprep.subr.bf16.mxu0 %v3602_v45  ;;  %827 = vmatpush1.bf16.msra.mxu1 %v3633_v50 }
  0x49   : > { %828 = vmatprep.subr.bf16.mxu1 %v3639_v51 }
  0x4b   : > { %788 = vmatpush1.bf16.msra.mxu0 %v3621_v48 }
  0x4c   : > { %789 = vmatprep.subr.bf16.mxu0 %v3627_v49  ;;  %829 = vmatpush1.bf16.msra.mxu1 %v3657_v54 }
  0x4d   : > { %830 = vmatprep.subr.bf16.mxu1 %v3663_v55 }
  0x4f   : > { %790 = vmatpush1.bf16.msra.mxu0 %v3645_v52 }
  0x50   : > { %791 = vmatprep.subr.bf16.mxu0 %v3651_v53  ;;  %831 = vmatpush1.bf16.msra.mxu1 %v3681_v58 }
  0x51   : > { %832 = vmatprep.subr.bf16.mxu1 %v3687_v59 }
  0x53   : > { %792 = vmatpush1.bf16.msra.mxu0 %v3669_v56 }
  0x54   : > { %793 = vmatprep.subr.bf16.mxu0 %v3675_v57  ;;  %833 = vmatpush1.bf16.msra.mxu1 %v3705_v62  ;;  %v620_v57 = vpack.c.bf16 %v3719_v35, %v3719_v35 }
  0x55   : > { %834 = vmatprep.subr.bf16.mxu1 %v3711_v63  ;;  %v4995_v63 = vmov 0  }
  0x57   : > { %794 = vmatpush1.bf16.msra.mxu0 %v3693_v60  ;;  %v3732_v60 = vld [vmem:[%s4881_s2 + $0x10c] ss:$16 sps:$4 sm:$0xff]  }
  0x58   : > { %795 = vmatprep.subr.bf16.mxu0 %v3699_v61  ;;  %835 = vmatpush1.bf16.msra.mxu1 %v3726_v3  ;;  %v3741_v61 = vld [vmem:[%s4881_s2 + $0x108] ss:$16 sps:$4 sm:$0xff]  }
  0x59   : > { %836 = vmatprep.subr.bf16.mxu1 %v3732_v60 }
  0x5b   : > { %796 = vmatpush1.bf16.msra.mxu0 %v3717_v0 }
  0x5c   : > { %938 = vmatprep.subr.bf16.mxu0 %v3352_v1  ;;  %837 = vmatpush1.bf16.msra.mxu1 %v3741_v61 }
  0x5d   : > { %979 = vmatprep.subr.bf16.mxu1 %v3382_v7 }
  0x5e   : > { %814 = vmatmul.mubr.bf16.vlgmr.msra.gmra.mxu0 %v620_v57 }
  0x5f   : > { %939 = vmatpush1.bf16.msra.mxu0 %v3357_v2  ;;  %970 = vmatprep.mubr.bf16.mxu0 %v4995_v63 }
  0x60   : > { %940 = vmatprep.subr.bf16.mxu0 %v3365_v4  ;;  %855 = vmatmul.mubr.bf16.vlgmr.msra.gmra.mxu1 %v620_v57  ;;  %v364_v57 = vld [vmem:[%s3331_s29] sm:$0xff] }
  0x61   : > { %980 = vmatpush1.bf16.msra.mxu1 %v3387_v8  ;;  %1011 = vmatprep.mubr.bf16.mxu1 %v4995_v63 }
  0x62   : > { %981 = vmatprep.subr.bf16.mxu1 %v3406_v11 }
  0x63   : > { %941 = vmatpush1.bf16.msra.mxu0 %v3371_v5 }
  0x64   : > { %942 = vmatprep.subr.bf16.mxu0 %v3377_v6 }
  0x65   : > { %982 = vmatpush1.bf16.msra.mxu1 %v3411_v12 }
  0x66   : > { %983 = vmatprep.subr.bf16.mxu1 %v3428_v15 }
  0x67   : > { %943 = vmatpush1.bf16.msra.mxu0 %v3393_v9 }
  0x68   : > { %944 = vmatprep.subr.bf16.mxu0 %v3400_v10 }
  0x69   : > { %984 = vmatpush1.bf16.msra.mxu1 %v3435_v16 }
  0x6a   : > { %985 = vmatprep.subr.bf16.mxu1 %v3441_v17 }
  0x6b   : > { %945 = vmatpush1.bf16.msra.mxu0 %v3418_v13 }
  0x6c   : > { %946 = vmatprep.subr.bf16.mxu0 %v3423_v14 }
  0x6d   : > { %986 = vmatpush1.bf16.msra.mxu1 %v3459_v20 }
  0x6e   : > { %987 = vmatprep.subr.bf16.mxu1 %v3465_v21 }
  0x6f   : > { %947 = vmatpush1.bf16.msra.mxu0 %v3447_v18  ;;  %v367_v18 = vld [vmem:[%s3331_s29 + $0x18] sm:$0xff] }
  0x70   : > { %948 = vmatprep.subr.bf16.mxu0 %v3453_v19 }
  0x71   : > { %988 = vmatpush1.bf16.msra.mxu1 %v3483_v24 }
  0x72   : > { %989 = vmatprep.subr.bf16.mxu1 %v3489_v25 }
  0x73   : > { %949 = vmatpush1.bf16.msra.mxu0 %v3471_v22 }
  0x74   : > { %950 = vmatprep.subr.bf16.mxu0 %v3476_v23  ;;  %v365_v23 = vld [vmem:[%s3331_s29 + $0x8] sm:$0xff] }
  0x75   : > { %990 = vmatpush1.bf16.msra.mxu1 %v3507_v28 }
  0x76   : > { %991 = vmatprep.subr.bf16.mxu1 %v3513_v29 }
  0x77   : > { %951 = vmatpush1.bf16.msra.mxu0 %v3494_v26 }
  0x78   : > { %952 = vmatprep.subr.bf16.mxu0 %v3500_v27 }
  0x79   : > { %992 = vmatpush1.bf16.msra.mxu1 %v3533_v33 }
  0x7a   : > { %993 = vmatprep.subr.bf16.mxu1 %v3539_v34  ;;  %v366_v34 = vld [vmem:[%s3331_s29 + $0x10] sm:$0xff] }
  0x7b   : > { %953 = vmatpush1.bf16.msra.mxu0 %v3518_v30 }
  0x7c   : > { %1029 = vmatprep.subr.bf16.mxu0 %v3526_v32 }
  0x7d   : > { %994 = vmatpush1.bf16.msra.mxu1 %v3559_v38 }
  0x7e   : > { %1070 = vmatprep.subr.bf16.mxu1 %v3565_v39 }
  0xfe   : > { %v563_v26 = vpop.f32.mrf.mxu0  ;;  %v604_v25 = vpop.f32.mrf.mxu1 }
  0xff   : > { %v611_v27 = vadd.f32 %v563_v26, %v364_v57  ;;  %v613_v39 = vadd.f32 %v604_v25, %v366_v34  ;;  %v2646_v25 = vld [vmem:[%s3336_s8 + $0xc8] sm:$0xff] }
 0x100   : > { %v565_v28 = vpop.f32.mrf.mxu0  ;;  %v606_v19 = vpop.f32.mrf.mxu1 }
 0x101   : > { %v2681_v29 = vmul.f32 -1.442695, %v611_v27  ;;  %v612_v22 = vadd.f32 %v565_v28, %v365_v23  ;;  %v2683_v21 = vmul.f32 -1.442695, %v613_v39  ;;  %v614_v26 = vadd.f32 %v606_v19, %v367_v18  ;;  %v2645_v28 = vld [vmem:[%s3336_s8 + $0xc0] sm:$0xff] }
 0x102   : > { %v567_v30 = vpop.f32.mrf.mxu0  ;;  %v608_v38 = vpop.f32.mrf.mxu1  ;;  %v291_v18 = vld [vmem:[#allocation2] sm:$0xff] }
 0x103   : > { %2899 = vpow2.f32 %v2681_v29  ;;  %v2682_v33 = vmul.f32 -1.442695, %v612_v22 }
 0x104   : > { %v568_v32 = vpop.f32.mrf.mxu0  ;;  %v609_v24 = vpop.f32.mrf.mxu1 }
 0x105   : > { %2901 = vpow2.f32 %v2682_v33 }
 0x106   : > { %2903 = vpow2.f32 %v2683_v21 }
 0x107   : > { %2905 = vtanh.f32 %v614_v26  ;;  %v919_v26 = vstv %s918_s30  ;;  %s1915_s30 = sadd.s32 2, %s3318_s22 }
 0x108   : > { %vm3789_vm0 = vcmp.eq.s32.totalorder %v919_v26, 1  ;;  %p4581_p0 = scmp.lt.s32.totalorder %s1915_s30, 20 }
 0x10a   : > { %s1922_s7 = scalar_select %p4581_p0, 1, 0 }
 0x110   : > { %v2900_v57 = vpop.eup %2899 }
 0x111   : > { %v876_v23 = vadd.f32 1.0, %v2900_v57 }
 0x112   : > { %v2902_v27 = vpop.eup %2901 }
 0x113   : > { %2907 = vrcp.f32 %v876_v23  ;;  %v877_v22 = vadd.f32 1.0, %v2902_v27  ;;  %v2904_v29 = vpop.eup %2903 }
 0x114   : > { %v2906_v30 = vpop.eup %2905  ;;  %v878_v34 = vadd.f32 1.0, %v2904_v29 }
 0x115   : > { %2909 = vrcp.f32 %v877_v22 }
 0x11e   : > { %v815_v32 = vpop.f32.mrf.mxu0 }
 0x11f   : > { %v863_v24 = vadd.f32 %v2645_v28, %v815_v32  ;;  %v2647_v32 = vld [vmem:[%s3336_s8 + $0xd0] sm:$0xff] }
 0x120   : > { %v2908_v33 = vpop.eup %2907  ;;  %v817_v38 = vpop.f32.mrf.mxu0 }
 0x121   : > { %v905_v19 = vmul.f32 %v2908_v33, %v2906_v30  ;;  %v2684_v21 = vmul.f32 -1.442695, %v863_v24  ;;  %v864_v39 = vadd.f32 %v2646_v25, %v817_v38  ;;  %v856_v22 = vpop.f32.mrf.mxu1 }
 0x122   : > { %v2910_v57 = vpop.eup %2909  ;;  %v819_v23 = vpop.f32.mrf.mxu0  ;;  %v865_v33 = vadd.f32 %v2647_v32, %v856_v22  ;;  %v924_v32 = vstv %s923_s9  ;;  %s2412_s9 = sadd.s32 6, %s3315_s20 }
 0x123   : > { %2911 = vpow2.f32 %v2684_v21  ;;  %v2685_v27 = vmul.f32 -1.442695, %v864_v39  ;;  %v903_v14 = vmul.f32 %v2910_v57, %v291_v18  ;;  %v858_v29 = vpop.f32.mrf.mxu1  ;;  %v2648_v21 = vld [vmem:[%s3336_s8 + $0xd8] sm:$0xff]  ;;  %vm925_vm1 = vcmp.eq.s32.totalorder %v924_v32, 1  ;;  %v2688_v32 = vld [vmem:[%s3331_s29 + $0x20] sm:$0xff]  ;;  %p2413_p3 = scmp.lt.s32.totalorder %s2412_s9, 20 }
 0x124   : > { %2913 = vrcp.f32 %v878_v34  ;;  %v820_v20 = vpop.f32.mrf.mxu0  ;;  %v2686_v34 = vmul.f32 -1.442695, %v865_v33 }
 0x125   : > { %2915 = vpow2.f32 %v2685_v27  ;;  %v906_v30 = vadd.f32 %v905_v19, %v903_v14  ;;  %v860_v24 = vpop.f32.mrf.mxu1  ;;  %v866_v20 = vadd.f32 %v2648_v21, %v858_v29  ;;  %s2415_s10 = scalar_select %p2413_p3, 1, 0 }
 0x127   : > { %2917 = vtanh.f32 %v906_v30  ;;  %v3796_v25 = vsel %vm3789_vm0, %v906_v30, %v291_v18  ;;  %v861_v38 = vpop.f32.mrf.mxu1  ;;  %v295_v30 = vld [vmem:[#allocation2 + $0x8] sm:$0xff] }
 0x128   : > { %2919 = vpow2.f32 %v2686_v34 }
 0x129   : > { %2921 = vtanh.f32 %v866_v20 }
 0x130   : > { %v2912_v39 = vpop.eup %2911 }
 0x131   : > { %v2914_v26 = vpop.eup %2913  ;;  %v894_v57 = vadd.f32 1.0, %v2912_v39  ;;  %v4999_v39 = vld [vmem:[#allocation25_spill] sm:$0xff] }
 0x132   : > { %v2916_v23 = vpop.eup %2915 }
 0x133   : > { %2923 = vrcp.f32 %v894_v57  ;;  %v895_v14 = vadd.f32 1.0, %v2916_v23  ;;  %v5001_v23 = vld [vmem:[#allocation26_spill] sm:$0xff] }
 0x134   : > { %v2918_v19 = vpop.eup %2917 }
 0x135   : > { %2925 = vrcp.f32 %v895_v14  ;;  %v908_v27 = vmul.f32 %v2918_v19, %v2914_v26  ;;  %v5000_v26 = vld [vmem:[#allocation28_spill] sm:$0xff]  ;;  %v5002_v19 = vld [vmem:[#allocation27_spill] sm:$0xff] }
 0x137   : > { %v3803_v18 = vsel %vm3789_vm0, %v908_v27, %v3521_v31  ;;  %v2920_v31 = vpop.eup %2919 }
 0x138   : > { %v928_v22 = vpack.c.bf16 %v3803_v18, %v3803_v18  ;;  %v2922_v28 = vpop.eup %2921  ;;  %v896_v33 = vadd.f32 1.0, %v2920_v31 }
 0x13a   : > { %929 = vst [vmem:[%s3341_s11] sm:$0xf] %v928_v22  ;;  %971 = vmatmul.mubr.bf16.vlgmr.msra.gmra.mxu0 %v928_v22  ;;  %1012 = vmatmul.mubr.bf16.vlgmr.msra.gmra.mxu1 %v928_v22  ;;  %2927 = vrcp.f32 %v896_v33 }
 0x13b   : > { %1030 = vmatpush1.bf16.msra.mxu0 %v3546_v36  ;;  %1071 = vmatpush1.bf16.msra.mxu1 %v3584_v42 }
 0x13c   : > { %1031 = vmatprep.subr.bf16.mxu0 %v3552_v37  ;;  %1072 = vmatprep.subr.bf16.mxu1 %v3590_v43 }
 0x13d   : > { %1061 = vmatprep.mubr.bf16.mxu0 %v4995_v63  ;;  %1102 = vmatprep.mubr.bf16.mxu1 %v4995_v63 }
 0x13f   : > { %1032 = vmatpush1.bf16.msra.mxu0 %v3571_v40  ;;  %1073 = vmatpush1.bf16.msra.mxu1 %v3608_v46 }
 0x140   : > { %v2924_v29 = vpop.eup %2923  ;;  %1033 = vmatprep.subr.bf16.mxu0 %v3576_v41  ;;  %1074 = vmatprep.subr.bf16.mxu1 %v3614_v47 }
 0x141   : > { %v911_v38 = vmul.f32 %v2924_v29, %v2922_v28  ;;  %v5019_v28 = vld [vmem:[#allocation23_spill] sm:$0xff]  ;;  %v5020_v29 = vld [vmem:[#allocation20_spill] sm:$0xff] }
 0x142   : > { %v2926_v24 = vpop.eup %2925 }
 0x143   : > { %1034 = vmatpush1.bf16.msra.mxu0 %v3596_v44  ;;  %1075 = vmatpush1.bf16.msra.mxu1 %v3633_v50  ;;  %v909_v21 = vmul.f32 %v2926_v24, %v295_v30 }
 0x144   : > { %1035 = vmatprep.subr.bf16.mxu0 %v3602_v45  ;;  %1076 = vmatprep.subr.bf16.mxu1 %v3639_v51 }
 0x145   : > { %v912_v34 = vadd.f32 %v911_v38, %v909_v21  ;;  %v2689_v38 = vld [vmem:[%s3331_s29 + $0x28] sm:$0xff] }
 0x147   : > { %1036 = vmatpush1.bf16.msra.mxu0 %v3621_v48  ;;  %1077 = vmatpush1.bf16.msra.mxu1 %v3657_v54  ;;  %2929 = vtanh.f32 %v912_v34  ;;  %v3831_v20 = vsel %vm925_vm1, %v912_v34, %v295_v30  ;;  %v2928_v57 = vpop.eup %2927  ;;  %v5021_v30 = vld [vmem:[#allocation24_spill] sm:$0xff] }
 0x148   : > { %1037 = vmatprep.subr.bf16.mxu0 %v3627_v49  ;;  %1078 = vmatprep.subr.bf16.mxu1 %v3663_v55 }
 0x14b   : > { %1038 = vmatpush1.bf16.msra.mxu0 %v3645_v52  ;;  %1079 = vmatpush1.bf16.msra.mxu1 %v3681_v58 }
 0x14c   : > { %1039 = vmatprep.subr.bf16.mxu0 %v3651_v53  ;;  %1080 = vmatprep.subr.bf16.mxu1 %v3687_v59 }
 0x14f   : > { %1040 = vmatpush1.bf16.msra.mxu0 %v3669_v56  ;;  %1081 = vmatpush1.bf16.msra.mxu1 %v3705_v62 }
 0x150   : > { %1041 = vmatprep.subr.bf16.mxu0 %v4999_v39  ;;  %1082 = vmatprep.subr.bf16.mxu1 %v5000_v26 }
 0x153   : > { %1042 = vmatpush1.bf16.msra.mxu0 %v5001_v23  ;;  %1083 = vmatpush1.bf16.msra.mxu1 %v3726_v3 }
 0x154   : > { %v2930_v14 = vpop.eup %2929  ;;  %1043 = vmatprep.subr.bf16.mxu0 %v5002_v19  ;;  %1084 = vmatprep.subr.bf16.mxu1 %v3732_v60 }
 0x155   : > { %v914_v27 = vmul.f32 %v2930_v14, %v2928_v57 }
 0x157   : > { %1044 = vmatpush1.bf16.msra.mxu0 %v3717_v0  ;;  %1085 = vmatpush1.bf16.msra.mxu1 %v3741_v61  ;;  %v3851_v22 = vsel %vm925_vm1, %v914_v27, %v3719_v35  ;;  %v5018_v35 = vld [vmem:[#allocation19_spill] sm:$0xff] }
 0x158   : > { %v930_v31 = vpack.c.bf16 %v3851_v22, %v3851_v22  ;;  %1188 = vmatprep.subr.bf16.mxu0 %v3352_v1  ;;  %1229 = vmatprep.subr.bf16.mxu1 %v3382_v7  ;;  %v5003_v1 = vld [vmem:[#allocation9_spill] sm:$0xff]  ;;  %v5008_v7 = vld [vmem:[#allocation8_spill] sm:$0xff] }
 0x15a   : > { %2687 = vst [vmem:[%s3346_s15 + $0x18] sm:$0xf] %v930_v31  ;;  %1062 = vmatmul.mubr.bf16.vlgmr.msra.gmra.mxu0 %v930_v31  ;;  %1103 = vmatmul.mubr.bf16.vlgmr.msra.gmra.mxu1 %v930_v31 }
 0x15b   : > { %1189 = vmatpush1.bf16.msra.mxu0 %v3357_v2  ;;  %1230 = vmatpush1.bf16.msra.mxu1 %v3387_v8  ;;  %v5004_v2 = vld [vmem:[#allocation6_spill] sm:$0xff] }
 0x15c   : > { %1190 = vmatprep.subr.bf16.mxu0 %v3365_v4  ;;  %1231 = vmatprep.subr.bf16.mxu1 %v3406_v11  ;;  %v5005_v4 = vld [vmem:[#allocation10_spill] sm:$0xff]  ;;  %v5012_v11 = vld [vmem:[#allocation12_spill] sm:$0xff] }
 0x15d   : > { %1220 = vmatprep.mubr.bf16.mxu0 %v4995_v63  ;;  %1261 = vmatprep.mubr.bf16.mxu1 %v4995_v63  ;;  %v5009_v8 = vld [vmem:[#allocation14_spill] sm:$0xff] }
 0x15f   : > { %1191 = vmatpush1.bf16.msra.mxu0 %v3371_v5  ;;  %1232 = vmatpush1.bf16.msra.mxu1 %v3411_v12  ;;  %v5006_v5 = vld [vmem:[#allocation7_spill] sm:$0xff]  ;;  %v5013_v12 = vld [vmem:[#allocation18_spill] sm:$0xff] }
 0x160   : > { %1192 = vmatprep.subr.bf16.mxu0 %v3377_v6  ;;  %1233 = vmatprep.subr.bf16.mxu1 %v3428_v15  ;;  %v5007_v6 = vld [vmem:[#allocation13_spill] sm:$0xff] }
 0x161   : > { %v5015_v15 = vld [vmem:[#allocation21_spill] sm:$0xff] }
 0x163   : > { %1193 = vmatpush1.bf16.msra.mxu0 %v3393_v9  ;;  %1234 = vmatpush1.bf16.msra.mxu1 %v3435_v16  ;;  %v5010_v9 = vld [vmem:[#allocation11_spill] sm:$0xff]  ;;  %v5016_v16 = vld [vmem:[#allocation16_spill] sm:$0xff] }
 0x164   : > { %1194 = vmatprep.subr.bf16.mxu0 %v3400_v10  ;;  %1235 = vmatprep.subr.bf16.mxu1 %v3441_v17  ;;  %v5011_v10 = vld [vmem:[#allocation17_spill] sm:$0xff]  ;;  %v5017_v17 = vld [vmem:[#allocation22_spill] sm:$0xff] }
 0x167   : > { %1195 = vmatpush1.bf16.msra.mxu0 %v3418_v13  ;;  %1236 = vmatpush1.bf16.msra.mxu1 %v5003_v1  ;;  %v5014_v13 = vld [vmem:[#allocation15_spill] sm:$0xff] }
 0x168   : > { %1196 = vmatprep.subr.bf16.mxu0 %v5004_v2  ;;  %1237 = vmatprep.subr.bf16.mxu1 %v5005_v4 }
 0x16b   : > { %1197 = vmatpush1.bf16.msra.mxu0 %v5006_v5  ;;  %1238 = vmatpush1.bf16.msra.mxu1 %v5007_v6 }
 0x16c   : > { %1198 = vmatprep.subr.bf16.mxu0 %v5008_v7  ;;  %1239 = vmatprep.subr.bf16.mxu1 %v5009_v8 }
 0x16f   : > { %1199 = vmatpush1.bf16.msra.mxu0 %v5010_v9  ;;  %1240 = vmatpush1.bf16.msra.mxu1 %v5011_v10 }
 0x170   : > { %1200 = vmatprep.subr.bf16.mxu0 %v5012_v11  ;;  %1241 = vmatprep.subr.bf16.mxu1 %v5013_v12 }
 0x173   : > { %1201 = vmatpush1.bf16.msra.mxu0 %v5014_v13  ;;  %1242 = vmatpush1.bf16.msra.mxu1 %v5015_v15 }
 0x174   : > { %1202 = vmatprep.subr.bf16.mxu0 %v5016_v16  ;;  %1243 = vmatprep.subr.bf16.mxu1 %v5017_v17 }
 0x177   : > { %1203 = vmatpush1.bf16.msra.mxu0 %v5018_v35  ;;  %1244 = vmatpush1.bf16.msra.mxu1 %v5019_v28  ;;  %v2691_v35 = vld [vmem:[%s3331_s29 + $0x38] sm:$0xff] }
 0x178   : > { %1279 = vmatprep.subr.bf16.mxu0 %v5020_v29  ;;  %1320 = vmatprep.subr.bf16.mxu1 %v5021_v30  ;;  %v2690_v30 = vld [vmem:[%s3331_s29 + $0x30] sm:$0xff] }
 0x1fa   : > { %v972_v24 = vpop.f32.mrf.mxu0  ;;  %v1013_v33 = vpop.f32.mrf.mxu1 }
 0x1fb   : > { %v1020_v21 = vadd.f32 %v2688_v32, %v972_v24  ;;  %v1022_v28 = vadd.f32 %v2690_v30, %v1013_v33  ;;  %v2693_v33 = vld [vmem:[%s3336_s8 + $0xa8] sm:$0xff] }
 0x1fc   : > { %v974_v34 = vpop.f32.mrf.mxu0  ;;  %v1015_v57 = vpop.f32.mrf.mxu1 }
 0x1fd   : > { %v2696_v14 = vmul.f32 -1.442695, %v1020_v21  ;;  %v1021_v27 = vadd.f32 %v2689_v38, %v974_v34  ;;  %v2698_v17 = vmul.f32 -1.442695, %v1022_v28  ;;  %v1023_v32 = vadd.f32 %v2691_v35, %v1015_v57 }
 0x1fe   : > { %v976_v31 = vpop.f32.mrf.mxu0  ;;  %v1017_v2 = vpop.f32.mrf.mxu1 }
 0x1ff   : > { %2931 = vpow2.f32 %v2696_v14  ;;  %v2697_v5 = vmul.f32 -1.442695, %v1021_v27  ;;  %v1168_v27 = vstv %s1167_s13 }
 0x200   : > { %v977_v7 = vpop.f32.mrf.mxu0  ;;  %v1018_v29 = vpop.f32.mrf.mxu1  ;;  %vm1169_vm2 = vcmp.eq.s32.totalorder %v1168_v27, 1 }
 0x201   : > { %2933 = vpow2.f32 %v2697_v5  ;;  %v2692_v29 = vld [vmem:[%s3336_s8 + $0xa0] sm:$0xff] }
 0x202   : > { %2935 = vpow2.f32 %v2698_v17 }
 0x20c   : > { %v2932_v16 = vpop.eup %2931 }
 0x20d   : > { %v1124_v24 = vadd.f32 1.0, %v2932_v16 }
 0x20e   : > { %v2934_v15 = vpop.eup %2933 }
 0x20f   : > { %2937 = vrcp.f32 %v1124_v24  ;;  %v1125_v38 = vadd.f32 1.0, %v2934_v15  ;;  %v2936_v35 = vpop.eup %2935 }
 0x210   : > { %2939 = vtanh.f32 %v1023_v32  ;;  %v1126_v2 = vadd.f32 1.0, %v2936_v35 }
 0x211   : > { %2941 = vrcp.f32 %v1125_v38 }
 0x21a   : > { %v1063_v28 = vpop.f32.mrf.mxu0  ;;  %v1104_v30 = vpop.f32.mrf.mxu1 }
 0x21b   : > { %v1111_v16 = vadd.f32 %v2692_v29, %v1063_v28 }
 0x21c   : > { %v2938_v21 = vpop.eup %2937  ;;  %v1065_v17 = vpop.f32.mrf.mxu0 }
 0x21d   : > { %v1106_v34 = vpop.f32.mrf.mxu1  ;;  %v2940_v15 = vpop.eup %2939  ;;  %v2699_v57 = vmul.f32 -1.442695, %v1111_v16  ;;  %v1112_v14 = vadd.f32 %v2693_v33, %v1065_v17  ;;  %v2694_v33 = vld [vmem:[%s3336_s8 + $0xb0] sm:$0xff]  ;;  %v2695_v17 = vld [vmem:[%s3336_s8 + $0xb8] sm:$0xff] }
 0x21e   : > { %v2942_v31 = vpop.eup %2941  ;;  %v1067_v5 = vpop.f32.mrf.mxu0  ;;  %v1153_v24 = vmul.f32 %v2940_v15, %v2938_v21  ;;  %v1113_v35 = vadd.f32 %v2694_v33, %v1104_v30  ;;  %v1114_v21 = vadd.f32 %v2695_v17, %v1106_v34 }
 0x21f   : > { %v1108_v7 = vpop.f32.mrf.mxu1  ;;  %v1151_v32 = vmul.f32 %v2942_v31, %v3796_v25  ;;  %2943 = vpow2.f32 %v2699_v57  ;;  %v2700_v38 = vmul.f32 -1.442695, %v1112_v14 }
 0x220   : > { %v1068_v13 = vpop.f32.mrf.mxu0  ;;  %v2701_v5 = vmul.f32 -1.442695, %v1113_v35 }
 0x221   : > { %v1109_v29 = vpop.f32.mrf.mxu1  ;;  %v1154_v28 = vadd.f32 %v1153_v24, %v1151_v32  ;;  %2945 = vpow2.f32 %v2700_v38  ;;  %v2705_v24 = vld [vmem:[%s3331_s29 + $0x48] sm:$0xff] }
 0x222   : > { %2947 = vrcp.f32 %v1126_v2 }
 0x223   : > { %2949 = vtanh.f32 %v1154_v28  ;;  %v3909_v16 = vsel %vm1169_vm2, %v1154_v28, %v3796_v25 }
 0x224   : > { %2951 = vpow2.f32 %v2701_v5 }
 0x22c   : > { %v2944_v31 = vpop.eup %2943 }
 0x22d   : > { %v1142_v15 = vadd.f32 1.0, %v2944_v31 }
 0x22e   : > { %v2946_v13 = vpop.eup %2945 }
 0x22f   : > { %v2948_v57 = vpop.eup %2947  ;;  %2953 = vrcp.f32 %v1142_v15  ;;  %v1143_v14 = vadd.f32 1.0, %v2946_v13  ;;  %v2706_v13 = vld [vmem:[%s3331_s29 + $0x50] sm:$0xff] }
 0x230   : > { %v2950_v2 = vpop.eup %2949  ;;  %2955 = vtanh.f32 %v1114_v21 }
 0x231   : > { %2957 = vrcp.f32 %v1143_v14  ;;  %v1156_v7 = vmul.f32 %v2950_v2, %v2948_v57  ;;  %v2707_v14 = vld [vmem:[%s3331_s29 + $0x58] sm:$0xff] }
 0x233   : > { %v3915_v25 = vsel %vm1169_vm2, %v1156_v7, %v3803_v18  ;;  %v2952_v18 = vpop.eup %2951 }
 0x234   : > { %v1177_v30 = vpack.c.bf16 %v3915_v25, %v3915_v25 }
 0x236   : > { %2702 = vst [vmem:[%s3341_s11 + $0x4] sm:$0xf] %v1177_v30  ;;  %1221 = vmatmul.mubr.bf16.vlgmr.msra.gmra.mxu0 %v1177_v30  ;;  %1262 = vmatmul.mubr.bf16.vlgmr.msra.gmra.mxu1 %v1177_v30 }
 0x237   : > { %1280 = vmatpush1.bf16.msra.mxu0 %v3546_v36  ;;  %1321 = vmatpush1.bf16.msra.mxu1 %v3584_v42 }
 0x238   : > { %1281 = vmatprep.subr.bf16.mxu0 %v3552_v37  ;;  %1322 = vmatprep.subr.bf16.mxu1 %v3590_v43  ;;  %v1173_v37 = vstv %s1172_s17  ;;  %v1144_v43 = vadd.f32 1.0, %v2952_v18 }
 0x239   : > { %1311 = vmatprep.mubr.bf16.mxu0 %v4995_v63  ;;  %1352 = vmatprep.mubr.bf16.mxu1 %v4995_v63  ;;  %vm1174_vm3 = vcmp.eq.s32.totalorder %v1173_v37, 1  ;;  %v2708_v37 = vld [vmem:[%s3336_s8 + $0x80] sm:$0xff] }
 0x23a   : > { %2959 = vrcp.f32 %v1144_v43 }
 0x23b   : > { %1282 = vmatpush1.bf16.msra.mxu0 %v3571_v40  ;;  %1323 = vmatpush1.bf16.msra.mxu1 %v3608_v46 }
 0x23c   : > { %v2954_v34 = vpop.eup %2953  ;;  %1283 = vmatprep.subr.bf16.mxu0 %v3576_v41  ;;  %1324 = vmatprep.subr.bf16.mxu1 %v3614_v47 }
 0x23d   : > { %v2956_v36 = vpop.eup %2955 }
 0x23e   : > { %v2958_v42 = vpop.eup %2957  ;;  %v1159_v32 = vmul.f32 %v2956_v36, %v2954_v34 }
 0x23f   : > { %v1157_v27 = vmul.f32 %v2958_v42, %v3831_v20  ;;  %1284 = vmatpush1.bf16.msra.mxu0 %v3596_v44  ;;  %1325 = vmatpush1.bf16.msra.mxu1 %v3633_v50  ;;  %v3985_v50 = vld [vmem:[%s4881_s2 + $0xe0] ss:$16 sps:$4 sm:$0xff]  }
 0x240   : > { %1285 = vmatprep.subr.bf16.mxu0 %v3602_v45  ;;  %1326 = vmatprep.subr.bf16.mxu1 %v3639_v51  ;;  %v3991_v51 = vld [vmem:[%s4881_s2 + $0xe8] ss:$16 sps:$4 sm:$0xff]  }
 0x241   : > { %v1160_v40 = vadd.f32 %v1159_v32, %v1157_v27  ;;  %v2709_v27 = vld [vmem:[%s3336_s8 + $0x88] sm:$0xff] }
 0x243   : > { %2961 = vtanh.f32 %v1160_v40  ;;  %1286 = vmatpush1.bf16.msra.mxu0 %v3621_v48  ;;  %1327 = vmatpush1.bf16.msra.mxu1 %v3657_v54  ;;  %v3945_v41 = vsel %vm1174_vm3, %v1160_v40, %v3831_v20  ;;  %v4011_v54 = vld [vmem:[%s4881_s2 + $0xc0] ss:$16 sps:$4 sm:$0xff]   ;;  %v4066_v20 = vld [vmem:[%s4881_s2 + $0x64] ss:$16 sps:$4 sm:$0xff]  }
 0x244   : > { %1287 = vmatprep.subr.bf16.mxu0 %v3627_v49  ;;  %1328 = vmatprep.subr.bf16.mxu1 %v3663_v55  ;;  %v3978_v49 = vld [vmem:[%s4881_s2 + $0xec] ss:$16 sps:$4 sm:$0xff]   ;;  %v4017_v55 = vld [vmem:[%s4881_s2 + $0xc8] ss:$16 sps:$4 sm:$0xff]   ;;  %5031 = vst [vmem:[#allocation7_spill] sm:$0xff] %v4066_v20 }
 0x247   : > { %1288 = vmatpush1.bf16.msra.mxu0 %v3645_v52  ;;  %1329 = vmatpush1.bf16.msra.mxu1 %v3681_v58  ;;  %v2960_v44 = vpop.eup %2959  ;;  %v3997_v52 = vld [vmem:[%s4881_s2 + $0xc4] ss:$16 sps:$4 sm:$0xff]   ;;  %v4029_v58 = vld [vmem:[%s4881_s2 + $0xac] ss:$16 sps:$4 sm:$0xff]  }
 0x248   : > { %1289 = vmatprep.subr.bf16.mxu0 %v3651_v53  ;;  %1330 = vmatprep.subr.bf16.mxu1 %v3687_v59  ;;  %v4003_v53 = vld [vmem:[%s4881_s2 + $0xcc] ss:$16 sps:$4 sm:$0xff]   ;;  %5025 = vst [vmem:[#allocation28_spill] sm:$0xff] %v4029_v58  ;;  %v4035_v59 = vld [vmem:[%s4881_s2 + $0xa0] ss:$16 sps:$4 sm:$0xff]  }
 0x249   : > { %5026 = vst [vmem:[#allocation26_spill] sm:$0xff] %v4035_v59 }
 0x24b   : > { %1290 = vmatpush1.bf16.msra.mxu0 %v3669_v56  ;;  %1331 = vmatpush1.bf16.msra.mxu1 %v3705_v62  ;;  %v4023_v56 = vld [vmem:[%s4881_s2 + $0xa4] ss:$16 sps:$4 sm:$0xff]   ;;  %v4053_v62 = vld [vmem:[%s4881_s2 + $0x8c] ss:$16 sps:$4 sm:$0xff]  }
 0x24c   : > { %1291 = vmatprep.subr.bf16.mxu0 %v4999_v39  ;;  %1332 = vmatprep.subr.bf16.mxu1 %v5000_v26  ;;  %5024 = vst [vmem:[#allocation25_spill] sm:$0xff] %v4023_v56  ;;  %5029 = vst [vmem:[#allocation6_spill] sm:$0xff] %v4053_v62  ;;  %v4073_v39 = vld [vmem:[%s4881_s2 + $0x60] ss:$16 sps:$4 sm:$0xff]   ;;  %v4080_v26 = vld [vmem:[%s4881_s2 + $0x44] ss:$16 sps:$4 sm:$0xff]  }
 0x24d   : > { %5032 = vst [vmem:[#allocation13_spill] sm:$0xff] %v4073_v39  ;;  %5033 = vst [vmem:[#allocation8_spill] sm:$0xff] %v4080_v26 }
 0x24f   : > { %1292 = vmatpush1.bf16.msra.mxu0 %v5001_v23  ;;  %1333 = vmatpush1.bf16.msra.mxu1 %v3726_v3  ;;  %v3972_v3 = vld [vmem:[%s4881_s2 + $0xe4] ss:$16 sps:$4 sm:$0xff]   ;;  %v5034_v23 = vld [vmem:[#allocation15_spill] sm:$0xff] }
 0x250   : > { %v2962_v45 = vpop.eup %2961  ;;  %1293 = vmatprep.subr.bf16.mxu0 %v5002_v19  ;;  %1334 = vmatprep.subr.bf16.mxu1 %v3732_v60  ;;  %v4041_v60 = vld [vmem:[%s4881_s2 + $0xa8] ss:$16 sps:$4 sm:$0xff]  }
 0x251   : > { %v1162_v46 = vmul.f32 %v2962_v45, %v2960_v44  ;;  %5027 = vst [vmem:[#allocation27_spill] sm:$0xff] %v4041_v60  ;;  %v5035_v19 = vld [vmem:[#allocation21_spill] sm:$0xff] }
 0x253   : > { %1294 = vmatpush1.bf16.msra.mxu0 %v3717_v0  ;;  %1335 = vmatpush1.bf16.msra.mxu1 %v3741_v61  ;;  %v3965_v47 = vsel %vm1174_vm3, %v1162_v46, %v3851_v22  ;;  %v4047_v61 = vld [vmem:[%s4881_s2 + $0x84] ss:$16 sps:$4 sm:$0xff]   ;;  %v4059_v0 = vld [vmem:[%s4881_s2 + $0x80] ss:$16 sps:$4 sm:$0xff]  }
 0x254   : > { %v1180_v48 = vpack.c.bf16 %v3965_v47, %v3965_v47  ;;  %1438 = vmatprep.subr.bf16.mxu0 %v3972_v3  ;;  %1479 = vmatprep.subr.bf16.mxu1 %v3978_v49  ;;  %5028 = vst [vmem:[#allocation9_spill] sm:$0xff] %v4047_v61  ;;  %5030 = vst [vmem:[#allocation10_spill] sm:$0xff] %v4059_v0  ;;  %v5036_v22 = vld [vmem:[#allocation16_spill] sm:$0xff] }
 0x256   : > { %2703 = vst [vmem:[%s3346_s15 + $0x14] sm:$0xf] %v1180_v48  ;;  %1312 = vmatmul.mubr.bf16.vlgmr.msra.gmra.mxu0 %v1180_v48  ;;  %1353 = vmatmul.mubr.bf16.vlgmr.msra.gmra.mxu1 %v1180_v48 }
 0x257   : > { %1439 = vmatpush1.bf16.msra.mxu0 %v3985_v50  ;;  %1480 = vmatpush1.bf16.msra.mxu1 %v3991_v51 }
 0x258   : > { %1440 = vmatprep.subr.bf16.mxu0 %v3997_v52  ;;  %1481 = vmatprep.subr.bf16.mxu1 %v4003_v53 }
 0x259   : > { %1470 = vmatprep.mubr.bf16.mxu0 %v4995_v63  ;;  %1511 = vmatprep.mubr.bf16.mxu1 %v4995_v63 }
 0x25b   : > { %1441 = vmatpush1.bf16.msra.mxu0 %v4011_v54  ;;  %1482 = vmatpush1.bf16.msra.mxu1 %v4017_v55 }
 0x25c   : > { %1442 = vmatprep.subr.bf16.mxu0 %v4023_v56  ;;  %1483 = vmatprep.subr.bf16.mxu1 %v4029_v58 }
 0x25f   : > { %1443 = vmatpush1.bf16.msra.mxu0 %v4035_v59  ;;  %1484 = vmatpush1.bf16.msra.mxu1 %v4041_v60 }
 0x260   : > { %1444 = vmatprep.subr.bf16.mxu0 %v4047_v61  ;;  %1485 = vmatprep.subr.bf16.mxu1 %v4053_v62 }
 0x263   : > { %1445 = vmatpush1.bf16.msra.mxu0 %v4059_v0  ;;  %1486 = vmatpush1.bf16.msra.mxu1 %v5003_v1  ;;  %v5037_v1 = vld [vmem:[#allocation22_spill] sm:$0xff] }
 0x264   : > { %1446 = vmatprep.subr.bf16.mxu0 %v4066_v20  ;;  %1487 = vmatprep.subr.bf16.mxu1 %v5005_v4  ;;  %v5038_v4 = vld [vmem:[#allocation19_spill] sm:$0xff] }
 0x267   : > { %1447 = vmatpush1.bf16.msra.mxu0 %v4073_v39  ;;  %1488 = vmatpush1.bf16.msra.mxu1 %v5007_v6  ;;  %v5039_v6 = vld [vmem:[#allocation23_spill] sm:$0xff] }
 0x268   : > { %1448 = vmatprep.subr.bf16.mxu0 %v4080_v26  ;;  %1489 = vmatprep.subr.bf16.mxu1 %v5009_v8  ;;  %v5040_v8 = vld [vmem:[#allocation20_spill] sm:$0xff] }
 0x26b   : > { %1449 = vmatpush1.bf16.msra.mxu0 %v5010_v9  ;;  %1490 = vmatpush1.bf16.msra.mxu1 %v5011_v10  ;;  %v5041_v9 = vld [vmem:[#allocation24_spill] sm:$0xff] }
 0x26c   : > { %1450 = vmatprep.subr.bf16.mxu0 %v5012_v11  ;;  %1491 = vmatprep.subr.bf16.mxu1 %v5013_v12  ;;  %v2704_v10 = vld [vmem:[%s3331_s29 + $0x40] sm:$0xff] }
 0x26f   : > { %1451 = vmatpush1.bf16.msra.mxu0 %v5034_v23  ;;  %1492 = vmatpush1.bf16.msra.mxu1 %v5035_v19 }
 0x270   : > { %1452 = vmatprep.subr.bf16.mxu0 %v5036_v22  ;;  %1493 = vmatprep.subr.bf16.mxu1 %v5037_v1  ;;  %v1418_v22 = vstv %s1417_s26  ;;  %s1913_s26 = sadd.s32 4, %s3315_s20 }
 0x271   : > { %vm1419_vm4 = vcmp.eq.s32.totalorder %v1418_v22, 1  ;;  %v4190_v22 = vld [vmem:[%s4881_s2 + $0x1a8] ss:$16 sps:$4 sm:$0xff]   ;;  %p4559_p13 = scmp.lt.s32.totalorder %s1913_s26, 20 }
 0x273   : > { %1453 = vmatpush1.bf16.msra.mxu0 %v5038_v4  ;;  %1494 = vmatpush1.bf16.msra.mxu1 %v5039_v6  ;;  %s1917_s28 = scalar_select %p4559_p13, 1, 0 }
 0x274   : > { %1529 = vmatprep.subr.bf16.mxu0 %v5040_v8  ;;  %1570 = vmatprep.subr.bf16.mxu1 %v5041_v9 }
 0x2f6   : > { %v1222_v11 = vpop.f32.mrf.mxu0  ;;  %v1263_v12 = vpop.f32.mrf.mxu1 }
 0x2f7   : > { %v1270_v38 = vadd.f32 %v2704_v10, %v1222_v11  ;;  %v1272_v57 = vadd.f32 %v2706_v13, %v1263_v12 }
 0x2f8   : > { %v1224_v29 = vpop.f32.mrf.mxu0  ;;  %v1265_v28 = vpop.f32.mrf.mxu1 }
 0x2f9   : > { %v2712_v33 = vmul.f32 -1.442695, %v1270_v38  ;;  %v1271_v35 = vadd.f32 %v2705_v24, %v1224_v29  ;;  %v2714_v2 = vmul.f32 -1.442695, %v1272_v57  ;;  %v1273_v30 = vadd.f32 %v2707_v14, %v1265_v28  ;;  %v2710_v29 = vld [vmem:[%s3336_s8 + $0x90] sm:$0xff] }
 0x2fa   : > { %v1226_v17 = vpop.f32.mrf.mxu0  ;;  %v1267_v5 = vpop.f32.mrf.mxu1 }
 0x2fb   : > { %2963 = vpow2.f32 %v2712_v33  ;;  %v2713_v31 = vmul.f32 -1.442695, %v1271_v35  ;;  %v2711_v35 = vld [vmem:[%s3336_s8 + $0x98] sm:$0xff] }
 0x2fc   : > { %v1227_v21 = vpop.f32.mrf.mxu0  ;;  %v1268_v15 = vpop.f32.mrf.mxu1 }
 0x2fd   : > { %2965 = vpow2.f32 %v2713_v31 }
 0x2fe   : > { %2967 = vpow2.f32 %v2714_v2 }
 0x308   : > { %v2964_v7 = vpop.eup %2963 }
 0x309   : > { %v1374_v18 = vadd.f32 1.0, %v2964_v7 }
 0x30a   : > { %v2966_v34 = vpop.eup %2965 }
 0x30b   : > { %2969 = vrcp.f32 %v1374_v18  ;;  %v1375_v36 = vadd.f32 1.0, %v2966_v34  ;;  %v2968_v32 = vpop.eup %2967  ;;  %v4143_v18 = vld [vmem:[%s4881_s2 + $0x1c4] ss:$16 sps:$4 sm:$0xff]   ;;  %v4149_v34 = vld [vmem:[%s4881_s2 + $0x1cc] ss:$16 sps:$4 sm:$0xff]  }
 0x30c   : > { %2971 = vtanh.f32 %v1273_v30  ;;  %v1376_v4 = vadd.f32 1.0, %v2968_v32  ;;  %v4131_v30 = vld [vmem:[%s4881_s2 + $0x1e0] ss:$16 sps:$4 sm:$0xff]   ;;  %v4177_v32 = vld [vmem:[%s4881_s2 + $0x1ac] ss:$16 sps:$4 sm:$0xff]  }
 0x30d   : > { %2973 = vrcp.f32 %v1375_v36 }
 0x316   : > { %v1313_v42 = vpop.f32.mrf.mxu0  ;;  %v1354_v43 = vpop.f32.mrf.mxu1 }
 0x317   : > { %v1361_v40 = vadd.f32 %v2708_v37, %v1313_v42  ;;  %v1363_v33 = vadd.f32 %v2710_v29, %v1354_v43  ;;  %v4159_v37 = vld [vmem:[%s4881_s2 + $0x1c0] ss:$16 sps:$4 sm:$0xff]   ;;  %v4165_v42 = vld [vmem:[%s4881_s2 + $0x1c8] ss:$16 sps:$4 sm:$0xff]   ;;  %v4254_v29 = vld [vmem:[%s4881_s2 + $0x14c] ss:$16 sps:$4 sm:$0xff]  }
 0x318   : > { %v2970_v44 = vpop.eup %2969  ;;  %v1315_v45 = vpop.f32.mrf.mxu0 }
 0x319   : > { %v1356_v46 = vpop.f32.mrf.mxu1  ;;  %v2972_v48 = vpop.eup %2971  ;;  %v2715_v23 = vmul.f32 -1.442695, %v1361_v40  ;;  %v1362_v19 = vadd.f32 %v2709_v27, %v1315_v45  ;;  %v2717_v17 = vmul.f32 -1.442695, %v1363_v33  ;;  %v4171_v27 = vld [vmem:[%s4881_s2 + $0x1a4] ss:$16 sps:$4 sm:$0xff]  }
 0x31a   : > { %v2974_v1 = vpop.eup %2973  ;;  %v1317_v6 = vpop.f32.mrf.mxu0  ;;  %v1403_v10 = vmul.f32 %v2972_v48, %v2970_v44  ;;  %v1364_v31 = vadd.f32 %v2711_v35, %v1356_v46  ;;  %v1423_v44 = vstv %s1422_s16  ;;  %v4260_v33 = vld [vmem:[%s4881_s2 + $0x140] ss:$16 sps:$4 sm:$0xff]   ;;  %v4266_v35 = vld [vmem:[%s4881_s2 + $0x148] ss:$16 sps:$4 sm:$0xff]   ;;  %s1663_s16 = sadd.s32 3, %s3315_s20 }
 0x31b   : > { %v1358_v8 = vpop.f32.mrf.mxu1  ;;  %v1401_v9 = vmul.f32 %v2974_v1, %v3909_v16  ;;  %2975 = vpow2.f32 %v2715_v23  ;;  %v2716_v11 = vmul.f32 -1.442695, %v1362_v19  ;;  %v4184_v19 = vld [vmem:[%s4881_s2 + $0x1a0] ss:$16 sps:$4 sm:$0xff]   ;;  %v4196_v1 = vld [vmem:[%s4881_s2 + $0x184] ss:$16 sps:$4 sm:$0xff]  }
 0x31c   : > { %v1318_v12 = vpop.f32.mrf.mxu0  ;;  %vm1424_vm5 = vcmp.eq.s32.totalorder %v1423_v44, 1  ;;  %v4208_v8 = vld [vmem:[%s4881_s2 + $0x180] ss:$16 sps:$4 sm:$0xff]   ;;  %v4351_v44 = vld [vmem:[%s4881_s2 + $0x6c] ss:$16 sps:$4 sm:$0xff]   ;;  %p4445_p11 = scmp.lt.s32.totalorder %s1663_s16, 20 }
 0x31d   : > { %v1359_v24 = vpop.f32.mrf.mxu1  ;;  %v1404_v38 = vadd.f32 %v1403_v10, %v1401_v9  ;;  %2977 = vpow2.f32 %v2716_v11  ;;  %v4214_v9 = vld [vmem:[%s4881_s2 + $0x188] ss:$16 sps:$4 sm:$0xff]   ;;  %v4224_v11 = vld [vmem:[%s4881_s2 + $0x164] ss:$16 sps:$4 sm:$0xff]   ;;  %v4230_v12 = vld [vmem:[%s4881_s2 + $0x16c] ss:$16 sps:$4 sm:$0xff]  }
 0x31e   : > { %2979 = vrcp.f32 %v1376_v4  ;;  %v4202_v4 = vld [vmem:[%s4881_s2 + $0x18c] ss:$16 sps:$4 sm:$0xff]   ;;  %v4236_v24 = vld [vmem:[%s4881_s2 + $0x160] ss:$16 sps:$4 sm:$0xff]   ;;  %5045 = vst [vmem:[#allocation11_spill] sm:$0xff] %v4351_v44  ;;  %s2165_s16 = sadd.s32 1, %s3318_s22 }
 0x31f   : > { %2981 = vtanh.f32 %v1404_v38  ;;  %v4113_v28 = vsel %vm1419_vm4, %v1404_v38, %v3909_v16  ;;  %v4248_v38 = vld [vmem:[%s4881_s2 + $0x144] ss:$16 sps:$4 sm:$0xff]   ;;  %s1667_s21 = scalar_select %p4445_p11, 1, 0 }
 0x320   : > { %2983 = vpow2.f32 %v2717_v17  ;;  %v4272_v17 = vld [vmem:[%s4881_s2 + $0x124] ss:$16 sps:$4 sm:$0xff]   ;;  %p4731_p2 = scmp.lt.s32.totalorder %s2165_s16, 20 }
 0x321   : > { %s2420_s20 = scalar_select %p259_p4, 1, 0 }
 0x322   : > { %s2172_s6 = scalar_select %p4731_p2, 1, 0 }
 0x323   : > { %p2779_p4 = scmp.ne.s32.totalorder %s3310_s19, 2 }
 0x328   : > { %v2976_v5 = vpop.eup %2975 }
 0x329   : > { %v1392_v21 = vadd.f32 1.0, %v2976_v5  ;;  %v4278_v5 = vld [vmem:[%s4881_s2 + $0x12c] ss:$16 sps:$4 sm:$0xff]  }
 0x32a   : > { %v2978_v15 = vpop.eup %2977 }
 0x32b   : > { %v2980_v13 = vpop.eup %2979  ;;  %2985 = vrcp.f32 %v1392_v21  ;;  %v1393_v57 = vadd.f32 1.0, %v2978_v15  ;;  %v4284_v21 = vld [vmem:[%s4881_s2 + $0x120] ss:$16 sps:$4 sm:$0xff]   ;;  %v4290_v15 = vld [vmem:[%s4881_s2 + $0x128] ss:$16 sps:$4 sm:$0xff]  }
 0x32c   : > { %v2982_v14 = vpop.eup %2981  ;;  %2987 = vtanh.f32 %v1364_v31 }
 0x32d   : > { %2989 = vrcp.f32 %v1393_v57  ;;  %v1406_v2 = vmul.f32 %v2982_v14, %v2980_v13  ;;  %v2984_v36 = vpop.eup %2983  ;;  %v4296_v57 = vld [vmem:[%s4881_s2 + $0x104] ss:$16 sps:$4 sm:$0xff]   ;;  %v4302_v14 = vld [vmem:[%s4881_s2 + $0x10c] ss:$16 sps:$4 sm:$0xff]  }
 0x32e   : > { %v1394_v46 = vadd.f32 1.0, %v2984_v36  ;;  %v4314_v36 = vld [vmem:[%s4881_s2 + $0x108] ss:$16 sps:$4 sm:$0xff]  }
 0x32f   : > { %v4119_v16 = vsel %vm1419_vm4, %v1406_v2, %v3915_v25  ;;  %v4137_v25 = vld [vmem:[%s4881_s2 + $0x1e8] ss:$16 sps:$4 sm:$0xff]  }
 0x330   : > { %v1427_v7 = vpack.c.bf16 %v4119_v16, %v4119_v16  ;;  %2991 = vrcp.f32 %v1394_v46  ;;  %v4365_v46 = vld [vmem:[%s4881_s2 + $0x4c] ss:$16 sps:$4 sm:$0xff]  }
 0x331   : > { %5047 = vst [vmem:[#allocation12_spill] sm:$0xff] %v4365_v46 }
 0x332   : > { %2718 = vst [vmem:[%s3341_s11 + $0x8] sm:$0xf] %v1427_v7  ;;  %1471 = vmatmul.mubr.bf16.vlgmr.msra.gmra.mxu0 %v1427_v7  ;;  %1512 = vmatmul.mubr.bf16.vlgmr.msra.gmra.mxu1 %v1427_v7  ;;  %v4308_v7 = vld [vmem:[%s4881_s2 + $0x100] ss:$16 sps:$4 sm:$0xff]  }
 0x333   : > { %1530 = vmatpush1.bf16.msra.mxu0 %v4131_v30  ;;  %1571 = vmatpush1.bf16.msra.mxu1 %v4137_v25 }
 0x334   : > { %1531 = vmatprep.subr.bf16.mxu0 %v4143_v18  ;;  %1572 = vmatprep.subr.bf16.mxu1 %v4149_v34 }
 0x335   : > { %1561 = vmatprep.mubr.bf16.mxu0 %v4995_v63  ;;  %1602 = vmatprep.mubr.bf16.mxu1 %v4995_v63 }
 0x337   : > { %1532 = vmatpush1.bf16.msra.mxu0 %v4159_v37  ;;  %1573 = vmatpush1.bf16.msra.mxu1 %v4165_v42 }
 0x338   : > { %v2986_v43 = vpop.eup %2985  ;;  %1533 = vmatprep.subr.bf16.mxu0 %v4171_v27  ;;  %1574 = vmatprep.subr.bf16.mxu1 %v4177_v32 }
 0x339   : > { %v2988_v40 = vpop.eup %2987 }
 0x33a   : > { %v2990_v45 = vpop.eup %2989  ;;  %v1409_v23 = vmul.f32 %v2988_v40, %v2986_v43 }
 0x33b   : > { %v1407_v48 = vmul.f32 %v2990_v45, %v3945_v41  ;;  %1534 = vmatpush1.bf16.msra.mxu0 %v4184_v19  ;;  %1575 = vmatpush1.bf16.msra.mxu1 %v4190_v22  ;;  %v4358_v45 = vld [vmem:[%s4881_s2 + $0x68] ss:$16 sps:$4 sm:$0xff]  }
 0x33c   : > { %1535 = vmatprep.subr.bf16.mxu0 %v4196_v1  ;;  %1576 = vmatprep.subr.bf16.mxu1 %v4202_v4  ;;  %5046 = vst [vmem:[#allocation17_spill] sm:$0xff] %v4358_v45 }
 0x33d   : > { %v1410_v6 = vadd.f32 %v1409_v23, %v1407_v48  ;;  %v2992_v31 = vpop.eup %2991  ;;  %v4371_v48 = vld [vmem:[%s4881_s2 + $0x40] ss:$16 sps:$4 sm:$0xff]   ;;  %v4377_v23 = vld [vmem:[%s4881_s2 + $0x48] ss:$16 sps:$4 sm:$0xff]  }
 0x33e   : > { %5048 = vst [vmem:[#allocation18_spill] sm:$0xff] %v4371_v48  ;;  %5049 = vst [vmem:[#allocation15_spill] sm:$0xff] %v4377_v23 }
 0x33f   : > { %2993 = vtanh.f32 %v1410_v6  ;;  %1536 = vmatpush1.bf16.msra.mxu0 %v4208_v8  ;;  %1577 = vmatpush1.bf16.msra.mxu1 %v4214_v9  ;;  %v4219_v10 = vsel %vm1424_vm5, %v1410_v6, %v3945_v41  ;;  %v4242_v41 = vld [vmem:[%s4881_s2 + $0x168] ss:$16 sps:$4 sm:$0xff]   ;;  %v4383_v6 = vld [vmem:[%s4881_s2 + $0x24] ss:$16 sps:$4 sm:$0xff]  }
 0x340   : > { %1537 = vmatprep.subr.bf16.mxu0 %v4224_v11  ;;  %1578 = vmatprep.subr.bf16.mxu1 %v4230_v12  ;;  %5050 = vst [vmem:[#allocation21_spill] sm:$0xff] %v4383_v6 }
 0x343   : > { %1538 = vmatpush1.bf16.msra.mxu0 %v4236_v24  ;;  %1579 = vmatpush1.bf16.msra.mxu1 %v4242_v41 }
 0x344   : > { %1539 = vmatprep.subr.bf16.mxu0 %v4248_v38  ;;  %1580 = vmatprep.subr.bf16.mxu1 %v4254_v29 }
 0x347   : > { %1540 = vmatpush1.bf16.msra.mxu0 %v4260_v33  ;;  %1581 = vmatpush1.bf16.msra.mxu1 %v4266_v35 }
 0x348   : > { %1541 = vmatprep.subr.bf16.mxu0 %v4272_v17  ;;  %1582 = vmatprep.subr.bf16.mxu1 %v4278_v5 }
 0x34b   : > { %1542 = vmatpush1.bf16.msra.mxu0 %v4284_v21  ;;  %1583 = vmatpush1.bf16.msra.mxu1 %v4290_v15 }
 0x34c   : > { %v2994_v13 = vpop.eup %2993  ;;  %1543 = vmatprep.subr.bf16.mxu0 %v4296_v57  ;;  %1584 = vmatprep.subr.bf16.mxu1 %v4302_v14 }
 0x34d   : > { %v1412_v2 = vmul.f32 %v2994_v13, %v2992_v31  ;;  %v4389_v31 = vld [vmem:[%s4881_s2 + $0x2c] ss:$16 sps:$4 sm:$0xff]   ;;  %v4395_v13 = vld [vmem:[%s4881_s2 + $0x20] ss:$16 sps:$4 sm:$0xff]  }
 0x34e   : > { %5051 = vst [vmem:[#allocation16_spill] sm:$0xff] %v4389_v31  ;;  %5052 = vst [vmem:[#allocation22_spill] sm:$0xff] %v4395_v13 }
 0x34f   : > { %1544 = vmatpush1.bf16.msra.mxu0 %v4308_v7  ;;  %1585 = vmatpush1.bf16.msra.mxu1 %v4314_v36  ;;  %v4319_v43 = vsel %vm1424_vm5, %v1412_v2, %v3965_v47  ;;  %v4344_v47 = vld [vmem:[%s4881_s2 + $0x88] ss:$16 sps:$4 sm:$0xff]  }
 0x350   : > { %v1430_v40 = vpack.c.bf16 %v4319_v43, %v4319_v43  ;;  %1688 = vmatprep.subr.bf16.mxu0 %v3972_v3  ;;  %1729 = vmatprep.subr.bf16.mxu1 %v3978_v49  ;;  %5044 = vst [vmem:[#allocation14_spill] sm:$0xff] %v4344_v47  ;;  %v4401_v2 = vld [vmem:[%s4881_s2 + $0x28] ss:$16 sps:$4 sm:$0xff]  }
 0x351   : > { %5053 = vst [vmem:[#allocation19_spill] sm:$0xff] %v4401_v2 }
 0x352   : > { %2719 = vst [vmem:[%s3346_s15 + $0x10] sm:$0xf] %v1430_v40  ;;  %1562 = vmatmul.mubr.bf16.vlgmr.msra.gmra.mxu0 %v1430_v40  ;;  %1603 = vmatmul.mubr.bf16.vlgmr.msra.gmra.mxu1 %v1430_v40  ;;  %v4407_v40 = vld [vmem:[%s4881_s2 + $0x4] ss:$16 sps:$4 sm:$0xff]  }
 0x353   : > { %1689 = vmatpush1.bf16.msra.mxu0 %v3985_v50  ;;  %1730 = vmatpush1.bf16.msra.mxu1 %v3991_v51  ;;  %5054 = vst [vmem:[#allocation23_spill] sm:$0xff] %v4407_v40 }
 0x354   : > { %1690 = vmatprep.subr.bf16.mxu0 %v3997_v52  ;;  %1731 = vmatprep.subr.bf16.mxu1 %v4003_v53 }
 0x355   : > { %1720 = vmatprep.mubr.bf16.mxu0 %v4995_v63  ;;  %1761 = vmatprep.mubr.bf16.mxu1 %v4995_v63 }
 0x357   : > { %1691 = vmatpush1.bf16.msra.mxu0 %v4011_v54  ;;  %1732 = vmatpush1.bf16.msra.mxu1 %v4017_v55 }
 0x358   : > { %1692 = vmatprep.subr.bf16.mxu0 %v4023_v56  ;;  %1733 = vmatprep.subr.bf16.mxu1 %v4029_v58 }
 0x35b   : > { %1693 = vmatpush1.bf16.msra.mxu0 %v4035_v59  ;;  %1734 = vmatpush1.bf16.msra.mxu1 %v4041_v60 }
 0x35c   : > { %1694 = vmatprep.subr.bf16.mxu0 %v4047_v61  ;;  %1735 = vmatprep.subr.bf16.mxu1 %v4053_v62  ;;  %v2723_v61 = vld [vmem:[%s3331_s29 + $0x78] sm:$0xff] }
 0x35f   : > { %1695 = vmatpush1.bf16.msra.mxu0 %v4059_v0  ;;  %1736 = vmatpush1.bf16.msra.mxu1 %v4344_v47 }
 0x360   : > { %1696 = vmatprep.subr.bf16.mxu0 %v4066_v20  ;;  %1737 = vmatprep.subr.bf16.mxu1 %v4351_v44 }
 0x363   : > { %1697 = vmatpush1.bf16.msra.mxu0 %v4073_v39  ;;  %1738 = vmatpush1.bf16.msra.mxu1 %v4358_v45 }
 0x364   : > { %1698 = vmatprep.subr.bf16.mxu0 %v4080_v26  ;;  %1739 = vmatprep.subr.bf16.mxu1 %v4365_v46 }
 0x367   : > { %1699 = vmatpush1.bf16.msra.mxu0 %v4371_v48  ;;  %1740 = vmatpush1.bf16.msra.mxu1 %v4377_v23 }
 0x368   : > { %1700 = vmatprep.subr.bf16.mxu0 %v4383_v6  ;;  %1741 = vmatprep.subr.bf16.mxu1 %v4389_v31  ;;  %v4413_v31 = vld [vmem:[%s4881_s2 + $0xc] ss:$16 sps:$4 sm:$0xff]  }
 0x369   : > { %5055 = vst [vmem:[#allocation20_spill] sm:$0xff] %v4413_v31 }
 0x36b   : > { %1701 = vmatpush1.bf16.msra.mxu0 %v4395_v13  ;;  %1742 = vmatpush1.bf16.msra.mxu1 %v4401_v2  ;;  %v4419_v13 = vld [vmem:[%s4881_s2] ss:$16 sps:$4 sm:$0xff]   ;;  %v4425_v2 = vld [vmem:[%s4881_s2 + $0x8] ss:$16 sps:$4 sm:$0xff]  }
 0x36c   : > { %1702 = vmatprep.subr.bf16.mxu0 %v4407_v40  ;;  %1743 = vmatprep.subr.bf16.mxu1 %v4413_v31  ;;  %5056 = vst [vmem:[#allocation24_spill] sm:$0xff] %v4419_v13  ;;  %5057 = vst [vmem:[#allocation29_spill] sm:$0xff] %v4425_v2  ;;  %v4431_v40 = vld [vmem:[%s4881_s2 + $0x1e4] ss:$16 sps:$4 sm:$0xff]   ;;  %v4437_v31 = vld [vmem:[%s4881_s2 + $0x1ec] ss:$16 sps:$4 sm:$0xff]  }
 0x36d   : > { %5058 = vst [vmem:[#allocation30_spill] sm:$0xff] %v4431_v40  ;;  %5059 = vst [vmem:[#allocation31_spill] sm:$0xff] %v4437_v31 }
 0x36f   : > { %1703 = vmatpush1.bf16.msra.mxu0 %v4419_v13  ;;  %1744 = vmatpush1.bf16.msra.mxu1 %v4425_v2  ;;  %v2720_v13 = vld [vmem:[%s3331_s29 + $0x60] sm:$0xff]  ;;  %v2721_v2 = vld [vmem:[%s3331_s29 + $0x68] sm:$0xff] }
 0x370   : > { %1779 = vmatprep.subr.bf16.mxu0 %v4431_v40  ;;  %1820 = vmatprep.subr.bf16.mxu1 %v4437_v31  ;;  %v2722_v31 = vld [vmem:[%s3331_s29 + $0x70] sm:$0xff] }
 0x3f2   : > { %v1472_v6 = vpop.f32.mrf.mxu0  ;;  %v1513_v23 = vpop.f32.mrf.mxu1 }
 0x3f3   : > { %v1520_v48 = vadd.f32 %v2720_v13, %v1472_v6  ;;  %v1522_v62 = vadd.f32 %v2722_v31, %v1513_v23 }
 0x3f4   : > { %v1474_v46 = vpop.f32.mrf.mxu0  ;;  %v1515_v26 = vpop.f32.mrf.mxu1 }
 0x3f5   : > { %v2728_v45 = vmul.f32 -1.442695, %v1520_v48  ;;  %v1521_v39 = vadd.f32 %v2721_v2, %v1474_v46  ;;  %v2730_v60 = vmul.f32 -1.442695, %v1522_v62  ;;  %v1523_v6 = vadd.f32 %v2723_v61, %v1515_v26 }
 0x3f6   : > { %v1476_v44 = vpop.f32.mrf.mxu0  ;;  %v1517_v40 = vpop.f32.mrf.mxu1  ;;  %v1668_v48 = vstv %s1667_s21 }
 0x3f7   : > { %2995 = vpow2.f32 %v2728_v45  ;;  %v2729_v20 = vmul.f32 -1.442695, %v1521_v39  ;;  %v2725_v39 = vld [vmem:[%s3336_s8 + $0x68] sm:$0xff]  ;;  %vm1669_vm6 = vcmp.eq.s32.totalorder %v1668_v48, 1 }
 0x3f8   : > { %v1477_v47 = vpop.f32.mrf.mxu0  ;;  %v1518_v0 = vpop.f32.mrf.mxu1 }
 0x3f9   : > { %2997 = vpow2.f32 %v2729_v20  ;;  %v2724_v0 = vld [vmem:[%s3336_s8 + $0x60] sm:$0xff] }
 0x3fa   : > { %2999 = vpow2.f32 %v2730_v60 }
 0x404   : > { %v2996_v59 = vpop.eup %2995 }
 0x405   : > { %v1624_v13 = vadd.f32 1.0, %v2996_v59 }
 0x406   : > { %v2998_v58 = vpop.eup %2997 }
 0x407   : > { %3001 = vrcp.f32 %v1624_v13  ;;  %v1625_v44 = vadd.f32 1.0, %v2998_v58  ;;  %v3000_v61 = vpop.eup %2999 }
 0x408   : > { %3003 = vtanh.f32 %v1523_v6  ;;  %v1626_v31 = vadd.f32 1.0, %v3000_v61 }
 0x409   : > { %3005 = vrcp.f32 %v1625_v44 }
 0x412   : > { %v1563_v62 = vpop.f32.mrf.mxu0  ;;  %v1604_v20 = vpop.f32.mrf.mxu1 }
 0x413   : > { %v1611_v59 = vadd.f32 %v2724_v0, %v1563_v62 }
 0x414   : > { %v3002_v26 = vpop.eup %3001  ;;  %v1565_v60 = vpop.f32.mrf.mxu0 }
 0x415   : > { %v1606_v47 = vpop.f32.mrf.mxu1  ;;  %v3004_v58 = vpop.eup %3003  ;;  %v2731_v45 = vmul.f32 -1.442695, %v1611_v59  ;;  %v1612_v46 = vadd.f32 %v2725_v39, %v1565_v60  ;;  %v2726_v39 = vld [vmem:[%s3336_s8 + $0x70] sm:$0xff]  ;;  %v2727_v60 = vld [vmem:[%s3336_s8 + $0x78] sm:$0xff] }
 0x416   : > { %v3006_v23 = vpop.eup %3005  ;;  %v1567_v2 = vpop.f32.mrf.mxu0  ;;  %v1653_v13 = vmul.f32 %v3004_v58, %v3002_v26  ;;  %v1613_v61 = vadd.f32 %v2726_v39, %v1604_v20  ;;  %v1614_v26 = vadd.f32 %v2727_v60, %v1606_v47 }
 0x417   : > { %v1608_v40 = vpop.f32.mrf.mxu1  ;;  %v1651_v6 = vmul.f32 %v3006_v23, %v4113_v28  ;;  %3007 = vpow2.f32 %v2731_v45  ;;  %v2732_v44 = vmul.f32 -1.442695, %v1612_v46 }
 0x418   : > { %v1568_v56 = vpop.f32.mrf.mxu0  ;;  %v2733_v2 = vmul.f32 -1.442695, %v1613_v61 }
 0x419   : > { %v1609_v0 = vpop.f32.mrf.mxu1  ;;  %v1654_v62 = vadd.f32 %v1653_v13, %v1651_v6  ;;  %3009 = vpow2.f32 %v2732_v44  ;;  %v1673_v6 = vstv %s1672_s25 }
 0x41a   : > { %3011 = vrcp.f32 %v1626_v31  ;;  %vm1674_vm7 = vcmp.eq.s32.totalorder %v1673_v6, 1  ;;  %v5081_v6 = vld [vmem:[#allocation19_spill] sm:$0xff] }
 0x41b   : > { %3013 = vtanh.f32 %v1654_v62  ;;  %v4457_v59 = vsel %vm1669_vm6, %v1654_v62, %v4113_v28 }
 0x41c   : > { %3015 = vpow2.f32 %v2733_v2 }
 0x424   : > { %v3008_v23 = vpop.eup %3007 }
 0x425   : > { %v1642_v58 = vadd.f32 1.0, %v3008_v23 }
 0x426   : > { %v3010_v56 = vpop.eup %3009 }
 0x427   : > { %v3012_v45 = vpop.eup %3011  ;;  %3017 = vrcp.f32 %v1642_v58  ;;  %v1643_v46 = vadd.f32 1.0, %v3010_v56  ;;  %v5069_v58 = vld [vmem:[#allocation14_spill] sm:$0xff]  ;;  %v5070_v56 = vld [vmem:[#allocation7_spill] sm:$0xff] }
 0x428   : > { %v3014_v31 = vpop.eup %3013  ;;  %3019 = vtanh.f32 %v1614_v26 }
 0x429   : > { %3021 = vrcp.f32 %v1643_v46  ;;  %v1656_v40 = vmul.f32 %v3014_v31, %v3012_v45  ;;  %v5073_v45 = vld [vmem:[#allocation17_spill] sm:$0xff]  ;;  %v5074_v46 = vld [vmem:[#allocation8_spill] sm:$0xff] }
 0x42a   : > { %v5075_v31 = vld [vmem:[#allocation12_spill] sm:$0xff] }
 0x42b   : > { %v4463_v28 = vsel %vm1669_vm6, %v1656_v40, %v4119_v16  ;;  %v3016_v16 = vpop.eup %3015  ;;  %v5076_v40 = vld [vmem:[#allocation18_spill] sm:$0xff] }
 0x42c   : > { %v1677_v20 = vpack.c.bf16 %v4463_v28, %v4463_v28  ;;  %v1644_v44 = vadd.f32 1.0, %v3016_v16  ;;  %v5078_v16 = vld [vmem:[#allocation21_spill] sm:$0xff] }
 0x42e   : > { %2734 = vst [vmem:[%s3341_s11 + $0xc] sm:$0xf] %v1677_v20  ;;  %1721 = vmatmul.mubr.bf16.vlgmr.msra.gmra.mxu0 %v1677_v20  ;;  %1762 = vmatmul.mubr.bf16.vlgmr.msra.gmra.mxu1 %v1677_v20  ;;  %3023 = vrcp.f32 %v1644_v44  ;;  %v5077_v20 = vld [vmem:[#allocation15_spill] sm:$0xff]  ;;  %v5083_v44 = vld [vmem:[#allocation20_spill] sm:$0xff] }
 0x42f   : > { %1780 = vmatpush1.bf16.msra.mxu0 %v4131_v30  ;;  %1821 = vmatpush1.bf16.msra.mxu1 %v4137_v25 }
 0x430   : > { %1781 = vmatprep.subr.bf16.mxu0 %v4143_v18  ;;  %1822 = vmatprep.subr.bf16.mxu1 %v4149_v34 }
 0x431   : > { %1811 = vmatprep.mubr.bf16.mxu0 %v4995_v63  ;;  %1852 = vmatprep.mubr.bf16.mxu1 %v4995_v63 }
 0x433   : > { %1782 = vmatpush1.bf16.msra.mxu0 %v4159_v37  ;;  %1823 = vmatpush1.bf16.msra.mxu1 %v4165_v42 }
 0x434   : > { %v3018_v47 = vpop.eup %3017  ;;  %1783 = vmatprep.subr.bf16.mxu0 %v4171_v27  ;;  %1824 = vmatprep.subr.bf16.mxu1 %v4177_v32 }
 0x435   : > { %v3020_v48 = vpop.eup %3019 }
 0x436   : > { %v3022_v13 = vpop.eup %3021  ;;  %v1659_v62 = vmul.f32 %v3020_v48, %v3018_v47  ;;  %v5079_v47 = vld [vmem:[#allocation16_spill] sm:$0xff]  ;;  %v5080_v48 = vld [vmem:[#allocation22_spill] sm:$0xff] }
 0x437   : > { %v1657_v0 = vmul.f32 %v3022_v13, %v4219_v10  ;;  %1784 = vmatpush1.bf16.msra.mxu0 %v4184_v19  ;;  %1825 = vmatpush1.bf16.msra.mxu1 %v4190_v22  ;;  %v5082_v13 = vld [vmem:[#allocation23_spill] sm:$0xff] }
 0x438   : > { %1785 = vmatprep.subr.bf16.mxu0 %v4196_v1  ;;  %1826 = vmatprep.subr.bf16.mxu1 %v4202_v4 }
 0x439   : > { %v1660_v39 = vadd.f32 %v1659_v62, %v1657_v0  ;;  %v5084_v0 = vld [vmem:[#allocation24_spill] sm:$0xff]  ;;  %v5085_v62 = vld [vmem:[#allocation29_spill] sm:$0xff] }
 0x43b   : > { %3025 = vtanh.f32 %v1660_v39  ;;  %1786 = vmatpush1.bf16.msra.mxu0 %v4208_v8  ;;  %1827 = vmatpush1.bf16.msra.mxu1 %v4214_v9  ;;  %v4493_v61 = vsel %vm1674_vm7, %v1660_v39, %v4219_v10  ;;  %v3024_v10 = vpop.eup %3023  ;;  %v5086_v39 = vld [vmem:[#allocation30_spill] sm:$0xff] }
 0x43c   : > { %1787 = vmatprep.subr.bf16.mxu0 %v4224_v11  ;;  %1828 = vmatprep.subr.bf16.mxu1 %v4230_v12 }
 0x43f   : > { %1788 = vmatpush1.bf16.msra.mxu0 %v4236_v24  ;;  %1829 = vmatpush1.bf16.msra.mxu1 %v4242_v41 }
 0x440   : > { %1789 = vmatprep.subr.bf16.mxu0 %v4248_v38  ;;  %1830 = vmatprep.subr.bf16.mxu1 %v4254_v29 }
 0x443   : > { %1790 = vmatpush1.bf16.msra.mxu0 %v4260_v33  ;;  %1831 = vmatpush1.bf16.msra.mxu1 %v4266_v35 }
 0x444   : > { %1791 = vmatprep.subr.bf16.mxu0 %v4272_v17  ;;  %1832 = vmatprep.subr.bf16.mxu1 %v4278_v5 }
 0x447   : > { %1792 = vmatpush1.bf16.msra.mxu0 %v4284_v21  ;;  %1833 = vmatpush1.bf16.msra.mxu1 %v4290_v15 }
 0x448   : > { %v3026_v60 = vpop.eup %3025  ;;  %1793 = vmatprep.subr.bf16.mxu0 %v4296_v57  ;;  %1834 = vmatprep.subr.bf16.mxu1 %v4302_v14 }
 0x449   : > { %v1662_v2 = vmul.f32 %v3026_v60, %v3024_v10  ;;  %v5087_v10 = vld [vmem:[#allocation31_spill] sm:$0xff]  ;;  %v2736_v60 = vld [vmem:[%s3331_s29 + $0x80] sm:$0xff] }
 0x44b   : > { %1794 = vmatpush1.bf16.msra.mxu0 %v4308_v7  ;;  %1835 = vmatpush1.bf16.msra.mxu1 %v4314_v36  ;;  %v4513_v23 = vsel %vm1674_vm7, %v1662_v2, %v4319_v43  ;;  %v5064_v43 = vld [vmem:[#allocation26_spill] sm:$0xff] }
 0x44c   : > { %v1680_v26 = vpack.c.bf16 %v4513_v23, %v4513_v23  ;;  %1938 = vmatprep.subr.bf16.mxu0 %v3972_v3  ;;  %1979 = vmatprep.subr.bf16.mxu1 %v3978_v49  ;;  %v5062_v3 = vld [vmem:[#allocation25_spill] sm:$0xff]  ;;  %v5063_v49 = vld [vmem:[#allocation28_spill] sm:$0xff] }
 0x44e   : > { %2735 = vst [vmem:[%s3346_s15 + $0xc] sm:$0xf] %v1680_v26  ;;  %1812 = vmatmul.mubr.bf16.vlgmr.msra.gmra.mxu0 %v1680_v26  ;;  %1853 = vmatmul.mubr.bf16.vlgmr.msra.gmra.mxu1 %v1680_v26 }
 0x44f   : > { %1939 = vmatpush1.bf16.msra.mxu0 %v3985_v50  ;;  %1980 = vmatpush1.bf16.msra.mxu1 %v3991_v51  ;;  %v5065_v50 = vld [vmem:[#allocation27_spill] sm:$0xff]  ;;  %v5066_v51 = vld [vmem:[#allocation9_spill] sm:$0xff] }
 0x450   : > { %1940 = vmatprep.subr.bf16.mxu0 %v3997_v52  ;;  %1981 = vmatprep.subr.bf16.mxu1 %v4003_v53  ;;  %v5067_v52 = vld [vmem:[#allocation6_spill] sm:$0xff] }
 0x451   : > { %1970 = vmatprep.mubr.bf16.mxu0 %v4995_v63  ;;  %2011 = vmatprep.mubr.bf16.mxu1 %v4995_v63  ;;  %v5068_v53 = vld [vmem:[#allocation10_spill] sm:$0xff] }
 0x453   : > { %1941 = vmatpush1.bf16.msra.mxu0 %v4011_v54  ;;  %1982 = vmatpush1.bf16.msra.mxu1 %v4017_v55  ;;  %v5071_v54 = vld [vmem:[#allocation11_spill] sm:$0xff]  ;;  %v5072_v55 = vld [vmem:[#allocation13_spill] sm:$0xff] }
 0x454   : > { %1942 = vmatprep.subr.bf16.mxu0 %v5062_v3  ;;  %1983 = vmatprep.subr.bf16.mxu1 %v5063_v49  ;;  %v2737_v3 = vld [vmem:[%s3331_s29 + $0x88] sm:$0xff] }
 0x457   : > { %1943 = vmatpush1.bf16.msra.mxu0 %v5064_v43  ;;  %1984 = vmatpush1.bf16.msra.mxu1 %v5065_v50 }
 0x458   : > { %1944 = vmatprep.subr.bf16.mxu0 %v5066_v51  ;;  %1985 = vmatprep.subr.bf16.mxu1 %v5067_v52 }
 0x45b   : > { %1945 = vmatpush1.bf16.msra.mxu0 %v5068_v53  ;;  %1986 = vmatpush1.bf16.msra.mxu1 %v5069_v58 }
 0x45c   : > { %1946 = vmatprep.subr.bf16.mxu0 %v5070_v56  ;;  %1987 = vmatprep.subr.bf16.mxu1 %v5071_v54 }
 0x45f   : > { %1947 = vmatpush1.bf16.msra.mxu0 %v5072_v55  ;;  %1988 = vmatpush1.bf16.msra.mxu1 %v5073_v45 }
 0x460   : > { %1948 = vmatprep.subr.bf16.mxu0 %v5074_v46  ;;  %1989 = vmatprep.subr.bf16.mxu1 %v5075_v31 }
 0x463   : > { %1949 = vmatpush1.bf16.msra.mxu0 %v5076_v40  ;;  %1990 = vmatpush1.bf16.msra.mxu1 %v5077_v20 }
 0x464   : > { %1950 = vmatprep.subr.bf16.mxu0 %v5078_v16  ;;  %1991 = vmatprep.subr.bf16.mxu1 %v5079_v47 }
 0x467   : > { %1951 = vmatpush1.bf16.msra.mxu0 %v5080_v48  ;;  %1992 = vmatpush1.bf16.msra.mxu1 %v5081_v6 }
 0x468   : > { %1952 = vmatprep.subr.bf16.mxu0 %v5082_v13  ;;  %1993 = vmatprep.subr.bf16.mxu1 %v5083_v44 }
 0x46b   : > { %1953 = vmatpush1.bf16.msra.mxu0 %v5084_v0  ;;  %1994 = vmatpush1.bf16.msra.mxu1 %v5085_v62  ;;  %v2739_v0 = vld [vmem:[%s3331_s29 + $0x98] sm:$0xff] }
 0x46c   : > { %2029 = vmatprep.subr.bf16.mxu0 %v5086_v39  ;;  %2070 = vmatprep.subr.bf16.mxu1 %v5087_v10  ;;  %v2738_v10 = vld [vmem:[%s3331_s29 + $0x90] sm:$0xff] }
 0x4ee   : > { %v1722_v2 = vpop.f32.mrf.mxu0  ;;  %v1763_v26 = vpop.f32.mrf.mxu1 }
 0x4ef   : > { %v1770_v49 = vadd.f32 %v2736_v60, %v1722_v2  ;;  %v1772_v62 = vadd.f32 %v2738_v10, %v1763_v26  ;;  %v2741_v26 = vld [vmem:[%s3336_s8 + $0x48] sm:$0xff] }
 0x4f0   : > { %v1724_v43 = vpop.f32.mrf.mxu0  ;;  %v1765_v50 = vpop.f32.mrf.mxu1 }
 0x4f1   : > { %v2744_v51 = vmul.f32 -1.442695, %v1770_v49  ;;  %v1771_v52 = vadd.f32 %v2737_v3, %v1724_v43  ;;  %v2746_v44 = vmul.f32 -1.442695, %v1772_v62  ;;  %v1773_v60 = vadd.f32 %v2739_v0, %v1765_v50 }
 0x4f2   : > { %v1726_v53 = vpop.f32.mrf.mxu0  ;;  %v1767_v56 = vpop.f32.mrf.mxu1 }
 0x4f3   : > { %3027 = vpow2.f32 %v2744_v51  ;;  %v2745_v55 = vmul.f32 -1.442695, %v1771_v52  ;;  %v1918_v52 = vstv %s1917_s28 }
 0x4f4   : > { %v1727_v46 = vpop.f32.mrf.mxu0  ;;  %v1768_v39 = vpop.f32.mrf.mxu1  ;;  %vm1919_vm8 = vcmp.eq.s32.totalorder %v1918_v52, 1 }
 0x4f5   : > { %3029 = vpow2.f32 %v2745_v55  ;;  %v2740_v39 = vld [vmem:[%s3336_s8 + $0x40] sm:$0xff] }
 0x4f6   : > { %3031 = vpow2.f32 %v2746_v44 }
 0x500   : > { %v3028_v13 = vpop.eup %3027 }
 0x501   : > { %v1874_v2 = vadd.f32 1.0, %v3028_v13 }
 0x502   : > { %v3030_v6 = vpop.eup %3029 }
 0x503   : > { %3033 = vrcp.f32 %v1874_v2  ;;  %v1875_v3 = vadd.f32 1.0, %v3030_v6  ;;  %v3032_v0 = vpop.eup %3031 }
 0x504   : > { %3035 = vtanh.f32 %v1773_v60  ;;  %v1876_v56 = vadd.f32 1.0, %v3032_v0 }
 0x505   : > { %3037 = vrcp.f32 %v1875_v3 }
 0x50e   : > { %v1813_v62 = vpop.f32.mrf.mxu0  ;;  %v1854_v10 = vpop.f32.mrf.mxu1 }
 0x50f   : > { %v1861_v13 = vadd.f32 %v2740_v39, %v1813_v62 }
 0x510   : > { %v3034_v49 = vpop.eup %3033  ;;  %v1815_v44 = vpop.f32.mrf.mxu0 }
 0x511   : > { %v1856_v43 = vpop.f32.mrf.mxu1  ;;  %v3036_v6 = vpop.eup %3035  ;;  %v2747_v50 = vmul.f32 -1.442695, %v1861_v13  ;;  %v1862_v51 = vadd.f32 %v2741_v26, %v1815_v44  ;;  %v2742_v26 = vld [vmem:[%s3336_s8 + $0x50] sm:$0xff]  ;;  %v2743_v44 = vld [vmem:[%s3336_s8 + $0x58] sm:$0xff] }
 0x512   : > { %v3038_v53 = vpop.eup %3037  ;;  %v1817_v55 = vpop.f32.mrf.mxu0  ;;  %v1903_v2 = vmul.f32 %v3036_v6, %v3034_v49  ;;  %v1863_v0 = vadd.f32 %v2742_v26, %v1854_v10  ;;  %v1864_v49 = vadd.f32 %v2743_v44, %v1856_v43 }
 0x513   : > { %v1858_v46 = vpop.f32.mrf.mxu1  ;;  %v1901_v60 = vmul.f32 %v3038_v53, %v4457_v59  ;;  %3039 = vpow2.f32 %v2747_v50  ;;  %v2748_v3 = vmul.f32 -1.442695, %v1862_v51 }
 0x514   : > { %v1818_v48 = vpop.f32.mrf.mxu0  ;;  %v2749_v55 = vmul.f32 -1.442695, %v1863_v0 }
 0x515   : > { %v1859_v39 = vpop.f32.mrf.mxu1  ;;  %v1904_v62 = vadd.f32 %v1903_v2, %v1901_v60  ;;  %3041 = vpow2.f32 %v2748_v3  ;;  %v2753_v2 = vld [vmem:[%s3331_s29 + $0xa8] sm:$0xff] }
 0x516   : > { %3043 = vrcp.f32 %v1876_v56 }
 0x517   : > { %3045 = vtanh.f32 %v1904_v62  ;;  %v4571_v13 = vsel %vm1919_vm8, %v1904_v62, %v4457_v59 }
 0x518   : > { %3047 = vpow2.f32 %v2749_v55 }
 0x520   : > { %v3040_v53 = vpop.eup %3039 }
 0x521   : > { %v1892_v6 = vadd.f32 1.0, %v3040_v53 }
 0x522   : > { %v3042_v48 = vpop.eup %3041 }
 0x523   : > { %v3044_v50 = vpop.eup %3043  ;;  %3049 = vrcp.f32 %v1892_v6  ;;  %v1893_v51 = vadd.f32 1.0, %v3042_v48  ;;  %v2754_v48 = vld [vmem:[%s3331_s29 + $0xb0] sm:$0xff] }
 0x524   : > { %v3046_v56 = vpop.eup %3045  ;;  %3051 = vtanh.f32 %v1864_v49 }
 0x525   : > { %3053 = vrcp.f32 %v1893_v51  ;;  %v1906_v46 = vmul.f32 %v3046_v56, %v3044_v50  ;;  %v2755_v51 = vld [vmem:[%s3331_s29 + $0xb8] sm:$0xff] }
 0x527   : > { %v4577_v59 = vsel %vm1919_vm8, %v1906_v46, %v4463_v28  ;;  %v3048_v28 = vpop.eup %3047 }
 0x528   : > { %v1927_v10 = vpack.c.bf16 %v4577_v59, %v4577_v59 }
 0x52a   : > { %2750 = vst [vmem:[%s3341_s11 + $0x10] sm:$0xf] %v1927_v10  ;;  %1971 = vmatmul.mubr.bf16.vlgmr.msra.gmra.mxu0 %v1927_v10  ;;  %2012 = vmatmul.mubr.bf16.vlgmr.msra.gmra.mxu1 %v1927_v10 }
 0x52b   : > { %2030 = vmatpush1.bf16.msra.mxu0 %v4131_v30  ;;  %2071 = vmatpush1.bf16.msra.mxu1 %v4137_v25  ;;  %v1923_v25 = vstv %s1922_s7 }
 0x52c   : > { %2031 = vmatprep.subr.bf16.mxu0 %v4143_v18  ;;  %2072 = vmatprep.subr.bf16.mxu1 %v4149_v34  ;;  %v1894_v34 = vadd.f32 1.0, %v3048_v28  ;;  %vm1924_vm9 = vcmp.eq.s32.totalorder %v1923_v25, 1  ;;  %v2756_v25 = vld [vmem:[%s3336_s8 + $0x20] sm:$0xff] }
 0x52d   : > { %2061 = vmatprep.mubr.bf16.mxu0 %v4995_v63  ;;  %2102 = vmatprep.mubr.bf16.mxu1 %v4995_v63 }
 0x52e   : > { %3055 = vrcp.f32 %v1894_v34 }
 0x52f   : > { %2032 = vmatpush1.bf16.msra.mxu0 %v4159_v37  ;;  %2073 = vmatpush1.bf16.msra.mxu1 %v4165_v42 }
 0x530   : > { %v3050_v43 = vpop.eup %3049  ;;  %2033 = vmatprep.subr.bf16.mxu0 %v4171_v27  ;;  %2074 = vmatprep.subr.bf16.mxu1 %v4177_v32 }
 0x531   : > { %v3052_v30 = vpop.eup %3051 }
 0x532   : > { %v3054_v18 = vpop.eup %3053  ;;  %v1909_v60 = vmul.f32 %v3052_v30, %v3050_v43 }
 0x533   : > { %v1907_v52 = vmul.f32 %v3054_v18, %v4493_v61  ;;  %2034 = vmatpush1.bf16.msra.mxu0 %v4184_v19  ;;  %2075 = vmatpush1.bf16.msra.mxu1 %v4190_v22 }
 0x534   : > { %2035 = vmatprep.subr.bf16.mxu0 %v4196_v1  ;;  %2076 = vmatprep.subr.bf16.mxu1 %v4202_v4  ;;  %v3187_v4 = vld [vmem:[%s4881_s2 + $0xe4] ss:$16 sps:$4 sm:$0xff]  }
 0x535   : > { %v1910_v37 = vadd.f32 %v1909_v60, %v1907_v52  ;;  %v2757_v52 = vld [vmem:[%s3336_s8 + $0x28] sm:$0xff] }
 0x537   : > { %3057 = vtanh.f32 %v1910_v37  ;;  %2036 = vmatpush1.bf16.msra.mxu0 %v4208_v8  ;;  %2077 = vmatpush1.bf16.msra.mxu1 %v4214_v9  ;;  %v4607_v42 = vsel %vm1924_vm9, %v1910_v37, %v4493_v61  ;;  %v3188_v8 = vld [vmem:[%s4881_s2 + $0xec] ss:$16 sps:$4 sm:$0xff]   ;;  %v3189_v9 = vld [vmem:[%s4881_s2 + $0xe0] ss:$16 sps:$4 sm:$0xff]  }
 0x538   : > { %2037 = vmatprep.subr.bf16.mxu0 %v4224_v11  ;;  %2078 = vmatprep.subr.bf16.mxu1 %v4230_v12  ;;  %v3190_v11 = vld [vmem:[%s4881_s2 + $0xe8] ss:$16 sps:$4 sm:$0xff]   ;;  %v3191_v12 = vld [vmem:[%s4881_s2 + $0xc4] ss:$16 sps:$4 sm:$0xff]  }
 0x539   : > { %v5091_v61 = vld [vmem:[#allocation19_spill] sm:$0xff] }
 0x53b   : > { %2038 = vmatpush1.bf16.msra.mxu0 %v4236_v24  ;;  %2079 = vmatpush1.bf16.msra.mxu1 %v4242_v41  ;;  %v3056_v27 = vpop.eup %3055  ;;  %v3192_v24 = vld [vmem:[%s4881_s2 + $0xcc] ss:$16 sps:$4 sm:$0xff]   ;;  %v3193_v41 = vld [vmem:[%s4881_s2 + $0xc0] ss:$16 sps:$4 sm:$0xff]  }
 0x53c   : > { %2039 = vmatprep.subr.bf16.mxu0 %v4248_v38  ;;  %2080 = vmatprep.subr.bf16.mxu1 %v4254_v29  ;;  %v3194_v38 = vld [vmem:[%s4881_s2 + $0xc8] ss:$16 sps:$4 sm:$0xff]   ;;  %v3195_v29 = vld [vmem:[%s4881_s2 + $0xa4] ss:$16 sps:$4 sm:$0xff]  }
 0x53f   : > { %2040 = vmatpush1.bf16.msra.mxu0 %v4260_v33  ;;  %2081 = vmatpush1.bf16.msra.mxu1 %v4266_v35  ;;  %v3196_v33 = vld [vmem:[%s4881_s2 + $0xac] ss:$16 sps:$4 sm:$0xff]   ;;  %v3197_v35 = vld [vmem:[%s4881_s2 + $0xa0] ss:$16 sps:$4 sm:$0xff]  }
 0x540   : > { %2041 = vmatprep.subr.bf16.mxu0 %v4272_v17  ;;  %2082 = vmatprep.subr.bf16.mxu1 %v4278_v5  ;;  %v3198_v17 = vld [vmem:[%s4881_s2 + $0xa8] ss:$16 sps:$4 sm:$0xff]   ;;  %v3199_v5 = vld [vmem:[%s4881_s2 + $0x84] ss:$16 sps:$4 sm:$0xff]  }
 0x543   : > { %2042 = vmatpush1.bf16.msra.mxu0 %v4284_v21  ;;  %2083 = vmatpush1.bf16.msra.mxu1 %v4290_v15  ;;  %v3200_v21 = vld [vmem:[%s4881_s2 + $0x8c] ss:$16 sps:$4 sm:$0xff]   ;;  %v3201_v15 = vld [vmem:[%s4881_s2 + $0x80] ss:$16 sps:$4 sm:$0xff]  }
 0x544   : > { %v3058_v32 = vpop.eup %3057  ;;  %2043 = vmatprep.subr.bf16.mxu0 %v4296_v57  ;;  %2084 = vmatprep.subr.bf16.mxu1 %v4302_v14  ;;  %v3202_v57 = vld [vmem:[%s4881_s2 + $0x64] ss:$16 sps:$4 sm:$0xff]   ;;  %v3203_v14 = vld [vmem:[%s4881_s2 + $0x60] ss:$16 sps:$4 sm:$0xff]  }
 0x545   : > { %v1912_v19 = vmul.f32 %v3058_v32, %v3056_v27 }
 0x547   : > { %2044 = vmatpush1.bf16.msra.mxu0 %v4308_v7  ;;  %2085 = vmatpush1.bf16.msra.mxu1 %v4314_v36  ;;  %v4627_v22 = vsel %vm1924_vm9, %v1912_v19, %v4513_v23  ;;  %v3204_v7 = vld [vmem:[%s4881_s2 + $0x44] ss:$16 sps:$4 sm:$0xff]   ;;  %v5092_v23 = vld [vmem:[#allocation23_spill] sm:$0xff] }
 0x548   : > { %v1930_v1 = vpack.c.bf16 %v4627_v22, %v4627_v22  ;;  %2188 = vmatprep.subr.bf16.mxu0 %v3187_v4  ;;  %2229 = vmatprep.subr.bf16.mxu1 %v3188_v8  ;;  %v5090_v36 = vld [vmem:[#allocation22_spill] sm:$0xff] }
 0x54a   : > { %2751 = vst [vmem:[%s3346_s15 + $0x8] sm:$0xf] %v1930_v1  ;;  %2062 = vmatmul.mubr.bf16.vlgmr.msra.gmra.mxu0 %v1930_v1  ;;  %2103 = vmatmul.mubr.bf16.vlgmr.msra.gmra.mxu1 %v1930_v1 }
 0x54b   : > { %2189 = vmatpush1.bf16.msra.mxu0 %v3189_v9  ;;  %2230 = vmatpush1.bf16.msra.mxu1 %v3190_v11  ;;  %v2168_v9 = vstv %s2167_s14 }
 0x54c   : > { %2190 = vmatprep.subr.bf16.mxu0 %v3191_v12  ;;  %2231 = vmatprep.subr.bf16.mxu1 %v3192_v24  ;;  %vm2169_vm10 = vcmp.eq.s32.totalorder %v2168_v9, 1 }
 0x54d   : > { %2220 = vmatprep.mubr.bf16.mxu0 %v4995_v63  ;;  %2261 = vmatprep.mubr.bf16.mxu1 %v4995_v63 }
 0x54f   : > { %2191 = vmatpush1.bf16.msra.mxu0 %v3193_v41  ;;  %2232 = vmatpush1.bf16.msra.mxu1 %v3194_v38 }
 0x550   : > { %2192 = vmatprep.subr.bf16.mxu0 %v3195_v29  ;;  %2233 = vmatprep.subr.bf16.mxu1 %v3196_v33 }
 0x553   : > { %2193 = vmatpush1.bf16.msra.mxu0 %v3197_v35  ;;  %2234 = vmatpush1.bf16.msra.mxu1 %v3198_v17 }
 0x554   : > { %2194 = vmatprep.subr.bf16.mxu0 %v3199_v5  ;;  %2235 = vmatprep.subr.bf16.mxu1 %v3200_v21  ;;  %v2758_v21 = vld [vmem:[%s3336_s8 + $0x30] sm:$0xff] }
 0x557   : > { %2195 = vmatpush1.bf16.msra.mxu0 %v3201_v15  ;;  %2236 = vmatpush1.bf16.msra.mxu1 %v5069_v58  ;;  %v5093_v58 = vld [vmem:[#allocation20_spill] sm:$0xff] }
 0x558   : > { %2196 = vmatprep.subr.bf16.mxu0 %v3202_v57  ;;  %2237 = vmatprep.subr.bf16.mxu1 %v5071_v54  ;;  %v5094_v54 = vld [vmem:[#allocation24_spill] sm:$0xff] }
 0x55b   : > { %2197 = vmatpush1.bf16.msra.mxu0 %v3203_v14  ;;  %2238 = vmatpush1.bf16.msra.mxu1 %v5073_v45  ;;  %v5095_v45 = vld [vmem:[#allocation29_spill] sm:$0xff]  ;;  %v2759_v14 = vld [vmem:[%s3336_s8 + $0x38] sm:$0xff] }
 0x55c   : > { %2198 = vmatprep.subr.bf16.mxu0 %v3204_v7  ;;  %2239 = vmatprep.subr.bf16.mxu1 %v5075_v31  ;;  %v5096_v31 = vld [vmem:[#allocation30_spill] sm:$0xff] }
 0x55f   : > { %2199 = vmatpush1.bf16.msra.mxu0 %v5076_v40  ;;  %2240 = vmatpush1.bf16.msra.mxu1 %v5077_v20  ;;  %v5097_v40 = vld [vmem:[#allocation31_spill] sm:$0xff]  ;;  %v2752_v20 = vld [vmem:[%s3331_s29 + $0xa0] sm:$0xff] }
 0x560   : > { %2200 = vmatprep.subr.bf16.mxu0 %v5078_v16  ;;  %2241 = vmatprep.subr.bf16.mxu1 %v5079_v47 }
 0x563   : > { %2201 = vmatpush1.bf16.msra.mxu0 %v5090_v36  ;;  %2242 = vmatpush1.bf16.msra.mxu1 %v5091_v61 }
 0x564   : > { %2202 = vmatprep.subr.bf16.mxu0 %v5092_v23  ;;  %2243 = vmatprep.subr.bf16.mxu1 %v5093_v58 }
 0x567   : > { %2203 = vmatpush1.bf16.msra.mxu0 %v5094_v54  ;;  %2244 = vmatpush1.bf16.msra.mxu1 %v5095_v45 }
 0x568   : > { %2278 = vmatprep.subr.bf16.mxu0 %v5096_v31  ;;  %2319 = vmatprep.subr.bf16.mxu1 %v5097_v40 }
 0x5ea   : > { %v1972_v16 = vpop.f32.mrf.mxu0  ;;  %v2013_v47 = vpop.f32.mrf.mxu1 }
 0x5eb   : > { %v2020_v3 = vadd.f32 %v2752_v20, %v1972_v16  ;;  %v2022_v50 = vadd.f32 %v2754_v48, %v2013_v47  ;;  %v3205_v16 = vld [vmem:[%s4881_s2 + $0x1e0] ss:$16 sps:$4 sm:$0xff]   ;;  %v3207_v47 = vld [vmem:[%s4881_s2 + $0x1c4] ss:$16 sps:$4 sm:$0xff]  }
 0x5ec   : > { %v1974_v39 = vpop.f32.mrf.mxu0  ;;  %v2015_v62 = vpop.f32.mrf.mxu1 }
 0x5ed   : > { %v2760_v26 = vmul.f32 -1.442695, %v2020_v3  ;;  %v2021_v0 = vadd.f32 %v2753_v2, %v1974_v39  ;;  %v2762_v56 = vmul.f32 -1.442695, %v2022_v50  ;;  %v2023_v10 = vadd.f32 %v2755_v51, %v2015_v62  ;;  %v3208_v2 = vld [vmem:[%s4881_s2 + $0x1cc] ss:$16 sps:$4 sm:$0xff]  }
 0x5ee   : > { %v1976_v44 = vpop.f32.mrf.mxu0  ;;  %v2017_v55 = vpop.f32.mrf.mxu1  ;;  %v3209_v39 = vld [vmem:[%s4881_s2 + $0x1c0] ss:$16 sps:$4 sm:$0xff]   ;;  %v3210_v62 = vld [vmem:[%s4881_s2 + $0x1c8] ss:$16 sps:$4 sm:$0xff]  }
 0x5ef   : > { %3059 = vpow2.f32 %v2760_v26  ;;  %v2761_v53 = vmul.f32 -1.442695, %v2021_v0  ;;  %v3211_v0 = vld [vmem:[%s4881_s2 + $0x1a4] ss:$16 sps:$4 sm:$0xff]   ;;  %v2173_v55 = vstv %s2172_s6  ;;  %v3213_v50 = vld [vmem:[%s4881_s2 + $0x1a0] ss:$16 sps:$4 sm:$0xff]  }
 0x5f0   : > { %v1977_v49 = vpop.f32.mrf.mxu0  ;;  %v2018_v6 = vpop.f32.mrf.mxu1  ;;  %v3214_v51 = vld [vmem:[%s4881_s2 + $0x1a8] ss:$16 sps:$4 sm:$0xff]   ;;  %vm2174_vm11 = vcmp.eq.s32.totalorder %v2173_v55, 1 }
 0x5f1   : > { %3061 = vpow2.f32 %v2761_v53 }
 0x5f2   : > { %3063 = vpow2.f32 %v2762_v56  ;;  %v3215_v56 = vld [vmem:[%s4881_s2 + $0x184] ss:$16 sps:$4 sm:$0xff]  }
 0x5fc   : > { %v3060_v46 = vpop.eup %3059 }
 0x5fd   : > { %v2124_v28 = vadd.f32 1.0, %v3060_v46  ;;  %v3216_v46 = vld [vmem:[%s4881_s2 + $0x18c] ss:$16 sps:$4 sm:$0xff]  }
 0x5fe   : > { %v3062_v43 = vpop.eup %3061 }
 0x5ff   : > { %3065 = vrcp.f32 %v2124_v28  ;;  %v2125_v30 = vadd.f32 1.0, %v3062_v43  ;;  %v3064_v60 = vpop.eup %3063  ;;  %v3217_v28 = vld [vmem:[%s4881_s2 + $0x180] ss:$16 sps:$4 sm:$0xff]   ;;  %v3218_v43 = vld [vmem:[%s4881_s2 + $0x188] ss:$16 sps:$4 sm:$0xff]  }
 0x600   : > { %3067 = vtanh.f32 %v2023_v10  ;;  %v2126_v12 = vadd.f32 1.0, %v3064_v60  ;;  %v3224_v60 = vld [vmem:[%s4881_s2 + $0x14c] ss:$16 sps:$4 sm:$0xff]  }
 0x601   : > { %3069 = vrcp.f32 %v2125_v30 }
 0x60a   : > { %v2063_v18 = vpop.f32.mrf.mxu0  ;;  %v2104_v34 = vpop.f32.mrf.mxu1 }
 0x60b   : > { %v2111_v37 = vadd.f32 %v2756_v25, %v2063_v18  ;;  %v2113_v57 = vadd.f32 %v2758_v21, %v2104_v34  ;;  %v3219_v25 = vld [vmem:[%s4881_s2 + $0x164] ss:$16 sps:$4 sm:$0xff]   ;;  %v3220_v18 = vld [vmem:[%s4881_s2 + $0x16c] ss:$16 sps:$4 sm:$0xff]   ;;  %v3221_v34 = vld [vmem:[%s4881_s2 + $0x160] ss:$16 sps:$4 sm:$0xff]  }
 0x60c   : > { %v3066_v27 = vpop.eup %3065  ;;  %v2065_v32 = vpop.f32.mrf.mxu0  ;;  %v2769_v21 = vld [vmem:[%s3331_s29 + $0xc8] sm:$0xff] }
 0x60d   : > { %v2106_v19 = vpop.f32.mrf.mxu1  ;;  %v3068_v1 = vpop.eup %3067  ;;  %v2763_v4 = vmul.f32 -1.442695, %v2111_v37  ;;  %v2112_v8 = vadd.f32 %v2757_v52, %v2065_v32  ;;  %v2765_v7 = vmul.f32 -1.442695, %v2113_v57  ;;  %v3223_v52 = vld [vmem:[%s4881_s2 + $0x144] ss:$16 sps:$4 sm:$0xff]  }
 0x60e   : > { %v3070_v11 = vpop.eup %3069  ;;  %v2067_v24 = vpop.f32.mrf.mxu0  ;;  %v2153_v29 = vmul.f32 %v3068_v1, %v3066_v27  ;;  %v2114_v61 = vadd.f32 %v2759_v14, %v2106_v19  ;;  %v3225_v37 = vld [vmem:[%s4881_s2 + $0x140] ss:$16 sps:$4 sm:$0xff]   ;;  %v3226_v27 = vld [vmem:[%s4881_s2 + $0x148] ss:$16 sps:$4 sm:$0xff]   ;;  %v3227_v32 = vld [vmem:[%s4881_s2 + $0x124] ss:$16 sps:$4 sm:$0xff]  }
 0x60f   : > { %v2108_v41 = vpop.f32.mrf.mxu1  ;;  %v2151_v38 = vmul.f32 %v3070_v11, %v4571_v13  ;;  %3071 = vpow2.f32 %v2763_v4  ;;  %v2764_v33 = vmul.f32 -1.442695, %v2112_v8  ;;  %v3228_v19 = vld [vmem:[%s4881_s2 + $0x12c] ss:$16 sps:$4 sm:$0xff]   ;;  %v3229_v4 = vld [vmem:[%s4881_s2 + $0x120] ss:$16 sps:$4 sm:$0xff]  }
 0x610   : > { %v2068_v35 = vpop.f32.mrf.mxu0  ;;  %v3230_v8 = vld [vmem:[%s4881_s2 + $0x128] ss:$16 sps:$4 sm:$0xff]   ;;  %v3231_v11 = vld [vmem:[%s4881_s2 + $0x104] ss:$16 sps:$4 sm:$0xff]   ;;  %v3233_v41 = vld [vmem:[%s4881_s2 + $0x100] ss:$16 sps:$4 sm:$0xff]  }
 0x611   : > { %v2109_v17 = vpop.f32.mrf.mxu1  ;;  %v2154_v5 = vadd.f32 %v2153_v29, %v2151_v38  ;;  %3073 = vpow2.f32 %v2764_v33  ;;  %v3234_v38 = vld [vmem:[%s4881_s2 + $0x108] ss:$16 sps:$4 sm:$0xff]   ;;  %v2768_v35 = vld [vmem:[%s3331_s29 + $0xc0] sm:$0xff] }
 0x612   : > { %3075 = vrcp.f32 %v2126_v12  ;;  %v3232_v12 = vld [vmem:[%s4881_s2 + $0x10c] ss:$16 sps:$4 sm:$0xff]  }
 0x613   : > { %3077 = vtanh.f32 %v2154_v5  ;;  %v4721_v15 = vsel %vm2169_vm10, %v2154_v5, %v4571_v13 }
 0x614   : > { %3079 = vpow2.f32 %v2765_v7 }
 0x61c   : > { %v3072_v36 = vpop.eup %3071 }
 0x61d   : > { %v2142_v23 = vadd.f32 1.0, %v3072_v36 }
 0x61e   : > { %v3074_v58 = vpop.eup %3073 }
 0x61f   : > { %v3076_v54 = vpop.eup %3075  ;;  %3081 = vrcp.f32 %v2142_v23  ;;  %v2143_v45 = vadd.f32 1.0, %v3074_v58 }
 0x620   : > { %v3078_v31 = vpop.eup %3077  ;;  %3083 = vtanh.f32 %v2114_v61 }
 0x621   : > { %3085 = vrcp.f32 %v2143_v45  ;;  %v2156_v40 = vmul.f32 %v3078_v31, %v3076_v54  ;;  %v3080_v3 = vpop.eup %3079  ;;  %v2770_v31 = vld [vmem:[%s3331_s29 + $0xd0] sm:$0xff] }
 0x622   : > { %v2144_v49 = vadd.f32 1.0, %v3080_v3 }
 0x623   : > { %v4727_v13 = vsel %vm2169_vm10, %v2156_v40, %v4577_v59  ;;  %v3206_v59 = vld [vmem:[%s4881_s2 + $0x1e8] ss:$16 sps:$4 sm:$0xff]  }
 0x624   : > { %v2177_v20 = vpack.c.bf16 %v4727_v13, %v4727_v13  ;;  %3087 = vrcp.f32 %v2144_v49 }
 0x626   : > { %2766 = vst [vmem:[%s3341_s11 + $0x14] sm:$0xf] %v2177_v20  ;;  %2221 = vmatmul.mubr.bf16.vlgmr.msra.gmra.mxu0 %v2177_v20  ;;  %2262 = vmatmul.mubr.bf16.vlgmr.msra.gmra.mxu1 %v2177_v20  ;;  %v2771_v20 = vld [vmem:[%s3331_s29 + $0xd8] sm:$0xff] }
 0x627   : > { %2279 = vmatpush1.bf16.msra.mxu0 %v3205_v16  ;;  %2320 = vmatpush1.bf16.msra.mxu1 %v3206_v59 }
 0x628   : > { %2280 = vmatprep.subr.bf16.mxu0 %v3207_v47  ;;  %2321 = vmatprep.subr.bf16.mxu1 %v3208_v2 }
 0x629   : > { %2310 = vmatprep.mubr.bf16.mxu0 %v4995_v63  ;;  %2351 = vmatprep.mubr.bf16.mxu1 %v4995_v63  ;;  %v3212_v63 = vld [vmem:[%s4881_s2 + $0x1ac] ss:$16 sps:$4 sm:$0xff]  }
 0x62b   : > { %2281 = vmatpush1.bf16.msra.mxu0 %v3209_v39  ;;  %2322 = vmatpush1.bf16.msra.mxu1 %v3210_v62  ;;  %v2274_v62 = vld [vmem:[%s3336_s8] sm:$0xff] }
 0x62c   : > { %v3082_v26 = vpop.eup %3081  ;;  %2282 = vmatprep.subr.bf16.mxu0 %v3211_v0  ;;  %2323 = vmatprep.subr.bf16.mxu1 %v3212_v63  ;;  %v2275_v63 = vld [vmem:[%s3336_s8 + $0x8] sm:$0xff] }
 0x62d   : > { %v3084_v44 = vpop.eup %3083 }
 0x62e   : > { %v3086_v53 = vpop.eup %3085  ;;  %v2159_v48 = vmul.f32 %v3084_v44, %v3082_v26 }
 0x62f   : > { %v2157_v6 = vmul.f32 %v3086_v53, %v4607_v42  ;;  %2283 = vmatpush1.bf16.msra.mxu0 %v3213_v50  ;;  %2324 = vmatpush1.bf16.msra.mxu1 %v3214_v51  ;;  %v2416_v50 = vstv %s2415_s10 }
 0x630   : > { %2284 = vmatprep.subr.bf16.mxu0 %v3215_v56  ;;  %2325 = vmatprep.subr.bf16.mxu1 %v3216_v46  ;;  %vm2417_vm12 = vcmp.eq.s32.totalorder %v2416_v50, 1 }
 0x631   : > { %v2160_v10 = vadd.f32 %v2159_v48, %v2157_v6  ;;  %v3088_v1 = vpop.eup %3087 }
 0x633   : > { %3089 = vtanh.f32 %v2160_v10  ;;  %2285 = vmatpush1.bf16.msra.mxu0 %v3217_v28  ;;  %2326 = vmatpush1.bf16.msra.mxu1 %v3218_v43  ;;  %v4785_v30 = vsel %vm2174_vm11, %v2160_v10, %v4607_v42  ;;  %v3222_v42 = vld [vmem:[%s4881_s2 + $0x168] ss:$16 sps:$4 sm:$0xff]  }
 0x634   : > { %2286 = vmatprep.subr.bf16.mxu0 %v3219_v25  ;;  %2327 = vmatprep.subr.bf16.mxu1 %v3220_v18 }
 0x637   : > { %2287 = vmatpush1.bf16.msra.mxu0 %v3221_v34  ;;  %2328 = vmatpush1.bf16.msra.mxu1 %v3222_v42 }
 0x638   : > { %2288 = vmatprep.subr.bf16.mxu0 %v3223_v52  ;;  %2329 = vmatprep.subr.bf16.mxu1 %v3224_v60 }
 0x63b   : > { %2289 = vmatpush1.bf16.msra.mxu0 %v3225_v37  ;;  %2330 = vmatpush1.bf16.msra.mxu1 %v3226_v27  ;;  %v2276_v27 = vld [vmem:[%s3336_s8 + $0x10] sm:$0xff] }
 0x63c   : > { %2290 = vmatprep.subr.bf16.mxu0 %v3227_v32  ;;  %2331 = vmatprep.subr.bf16.mxu1 %v3228_v19  ;;  %v2277_v19 = vld [vmem:[%s3336_s8 + $0x18] sm:$0xff] }
 0x63f   : > { %2291 = vmatpush1.bf16.msra.mxu0 %v3229_v4  ;;  %2332 = vmatpush1.bf16.msra.mxu1 %v3230_v8 }
 0x640   : > { %v3090_v9 = vpop.eup %3089  ;;  %2292 = vmatprep.subr.bf16.mxu0 %v3231_v11  ;;  %2333 = vmatprep.subr.bf16.mxu1 %v3232_v12 }
 0x641   : > { %v2162_v24 = vmul.f32 %v3090_v9, %v3088_v1 }
 0x643   : > { %2293 = vmatpush1.bf16.msra.mxu0 %v3233_v41  ;;  %2334 = vmatpush1.bf16.msra.mxu1 %v3234_v38  ;;  %v4837_v29 = vsel %vm2174_vm11, %v2162_v24, %v4627_v22 }
 0x644   : > { %v2180_v33 = vpack.c.bf16 %v4837_v29, %v4837_v29 }
 0x646   : > { %2767 = vst [vmem:[%s3346_s15 + $0x4] sm:$0xf] %v2180_v33  ;;  %2311 = vmatmul.mubr.bf16.vlgmr.msra.gmra.mxu0 %v2180_v33  ;;  %2352 = vmatmul.mubr.bf16.vlgmr.msra.gmra.mxu1 %v2180_v33 }
 0x6e6   : > { %v2222_v17 = vpop.f32.mrf.mxu0  ;;  %v2263_v5 = vpop.f32.mrf.mxu1 }
 0x6e7   : > { %v2270_v57 = vadd.f32 %v2768_v35, %v2222_v17  ;;  %v2272_v40 = vadd.f32 %v2770_v31, %v2263_v5 }
 0x6e8   : > { %v2224_v14 = vpop.f32.mrf.mxu0  ;;  %v2265_v7 = vpop.f32.mrf.mxu1 }
 0x6e9   : > { %v2772_v36 = vmul.f32 -1.442695, %v2270_v57  ;;  %v2271_v61 = vadd.f32 %v2769_v21, %v2224_v14  ;;  %v2774_v16 = vmul.f32 -1.442695, %v2272_v40  ;;  %v2273_v47 = vadd.f32 %v2771_v20, %v2265_v7 }
 0x6ea   : > { %v2226_v23 = vpop.f32.mrf.mxu0  ;;  %v2267_v22 = vpop.f32.mrf.mxu1  ;;  %v2421_v21 = vstv %s2420_s20 }
 0x6eb   : > { %3091 = vpow2.f32 %v2772_v36  ;;  %v2773_v58 = vmul.f32 -1.442695, %v2271_v61  ;;  %vm2422_vm13 = vcmp.eq.s32.totalorder %v2421_v21, 1 }
 0x6ec   : > { %v2227_v54 = vpop.f32.mrf.mxu0  ;;  %v2268_v45 = vpop.f32.mrf.mxu1 }
 0x6ed   : > { %3093 = vpow2.f32 %v2773_v58 }
 0x6ee   : > { %3095 = vpow2.f32 %v2774_v16 }
 0x6f8   : > { %v3092_v59 = vpop.eup %3091 }
 0x6f9   : > { %v2373_v2 = vadd.f32 1.0, %v3092_v59 }
 0x6fa   : > { %v3094_v3 = vpop.eup %3093 }
 0x6fb   : > { %3097 = vrcp.f32 %v2373_v2  ;;  %v2374_v39 = vadd.f32 1.0, %v3094_v3  ;;  %v3096_v44 = vpop.eup %3095 }
 0x6fc   : > { %3099 = vtanh.f32 %v2273_v47  ;;  %v2375_v10 = vadd.f32 1.0, %v3096_v44 }
 0x6fd   : > { %3101 = vrcp.f32 %v2374_v39 }
 0x706   : > { %v2312_v26 = vpop.f32.mrf.mxu0  ;;  %v2353_v0 = vpop.f32.mrf.mxu1 }
 0x707   : > { %v2360_v55 = vadd.f32 %v2312_v26, %v2274_v62  ;;  %v2362_v32 = vadd.f32 %v2353_v0, %v2276_v27 }
 0x708   : > { %v3098_v53 = vpop.eup %3097  ;;  %v2314_v49 = vpop.f32.mrf.mxu0 }
 0x709   : > { %v2355_v6 = vpop.f32.mrf.mxu1  ;;  %v3100_v48 = vpop.eup %3099  ;;  %v2775_v51 = vmul.f32 -1.442695, %v2360_v55  ;;  %v2361_v56 = vadd.f32 %v2314_v49, %v2275_v63  ;;  %v2777_v1 = vmul.f32 -1.442695, %v2362_v32 }
 0x70a   : > { %v3102_v46 = vpop.eup %3101  ;;  %v2316_v28 = vpop.f32.mrf.mxu0  ;;  %v2402_v18 = vmul.f32 %v3100_v48, %v3098_v53  ;;  %v2363_v8 = vadd.f32 %v2355_v6, %v2277_v19 }
 0x70b   : > { %v2357_v43 = vpop.f32.mrf.mxu1  ;;  %v2400_v25 = vmul.f32 %v3102_v46, %v4721_v15  ;;  %3103 = vpow2.f32 %v2775_v51  ;;  %v2776_v34 = vmul.f32 -1.442695, %v2361_v56 }
 0x70c   : > { %v2317_v42 = vpop.f32.mrf.mxu0 }
 0x70d   : > { %v2358_v52 = vpop.f32.mrf.mxu1  ;;  %v2403_v60 = vadd.f32 %v2402_v18, %v2400_v25  ;;  %3105 = vpow2.f32 %v2776_v34 }
 0x70e   : > { %3107 = vrcp.f32 %v2375_v10 }
 0x70f   : > { %3109 = vtanh.f32 %v2403_v60  ;;  %v2419_v37 = vsel %vm2417_vm12, %v2403_v60, %v4721_v15 }
 0x710   : > { %2431 = vst [vmem:[#allocation2] sm:$0xff] %v2419_v37  ;;  %3111 = vpow2.f32 %v2777_v1 }
 0x718   : > { %v3104_v4 = vpop.eup %3103 }
 0x719   : > { %v2391_v9 = vadd.f32 1.0, %v3104_v4 }
 0x71a   : > { %v3106_v11 = vpop.eup %3105 }
 0x71b   : > { %v3108_v12 = vpop.eup %3107  ;;  %3113 = vrcp.f32 %v2391_v9  ;;  %v2392_v24 = vadd.f32 1.0, %v3106_v11 }
 0x71c   : > { %v3110_v41 = vpop.eup %3109  ;;  %3115 = vtanh.f32 %v2363_v8 }
 0x71d   : > { %v2405_v38 = vmul.f32 %v3110_v41, %v3108_v12  ;;  %3117 = vrcp.f32 %v2392_v24  ;;  %v3112_v35 = vpop.eup %3111 }
 0x71e   : > { %v2393_v14 = vadd.f32 1.0, %v3112_v35 }
 0x71f   : > { %v2418_v15 = vsel %vm2417_vm12, %v2405_v38, %v4727_v13 }
 0x720   : > { %v2425_v33 = vpack.c.bf16 %v2418_v15, %v2418_v15  ;;  %2430 = vst [vmem:[#allocation2 + $0x10] sm:$0xff] %v2418_v15  ;;  %3119 = vrcp.f32 %v2393_v14 }
 0x722   : > { %2778 = vst [vmem:[%s3341_s11 + $0x18] sm:$0xf] %v2425_v33 }
 0x728   : > { %v3114_v17 = vpop.eup %3113 }
 0x729   : > { %v3116_v5 = vpop.eup %3115 }
 0x72a   : > { %v3118_v57 = vpop.eup %3117  ;;  %v2408_v36 = vmul.f32 %v3116_v5, %v3114_v17 }
 0x72b   : > { %v2406_v7 = vmul.f32 %v3118_v57, %v4785_v30 }
 0x72d   : > { %v2409_v61 = vadd.f32 %v2408_v36, %v2406_v7  ;;  %v3120_v23 = vpop.eup %3119 }
 0x72f   : > { %3121 = vtanh.f32 %v2409_v61  ;;  %v2424_v13 = vsel %vm2422_vm13, %v2409_v61, %v4785_v30 }
 0x730   : > { %2433 = vst [vmem:[#allocation2 + $0x8] sm:$0xff] %v2424_v13 }
 0x73c   : > { %v3122_v22 = vpop.eup %3121 }
 0x73d   : > { %v2411_v58 = vmul.f32 %v3122_v22, %v3120_v23 }
 0x73e   : > { %2437 = sbr.rel (%p2779_p4) target bundleno = 1860 (0x744), region = 40 }
 0x73f   : > { %v2423_v54 = vsel %vm2422_vm13, %v2411_v58, %v4837_v29 }
 0x740   : > { %v2428_v45 = vpack.c.bf16 %v2423_v54, %v2423_v54  ;;  %2432 = vst [vmem:[#allocation2 + $0x18] sm:$0xff] %v2423_v54 }
 0x742   : > { %2429 = vst [vmem:[%s3346_s15] sm:$0xf] %v2428_v45 }
 0x743   : > { %2438 = vst [vmem:[#allocation3] sm:$0xff] %v2418_v15  ;;  %2439 = vst [vmem:[#allocation3 + $0x8] sm:$0xff] %v2423_v54 }
 0x744 PF: > { %p2790_p5 = scmp.eq.s32.totalorder %s3310_s19, 2  ;;  %s3273_s22 = smov [#allocation3]  }
 0x745   : > { %s2467_s29 = sshll.u32 %s3273_s22, 4  ;;  %s2468_s29 = int_to_ptr.vmem [resolvable:$true] %s2467_s29 }
 0x746   : > { %s3235_s8 = scalar_lea.vmem %s2468_s29, 256  ;;  %p3242_p9 = scmp.lt.s32.totalorder %s2468_s29, %s2468_s29 }
 0x747   : > { %p3236_p6 = scmp.ne.s32.totalorder %s2468_s29, %s3235_s8  ;;  %p3243_p10 = scmp.lt.s32.totalorder %s3235_s8, %s3235_s8 }
 0x749   : > { %p3237_p7 = pnand %p3236_p6, %p2790_p5  ;;  %p3244_p11 = por %p3243_p10, %p3242_p9 }
 0x74b   : > { %p3238_p8 = pneg %p3237_p7 }
 0x74d   : > { %p3245_p12 = pnand %p3244_p11, %p3238_p8 }
 0x74f   : > { %3248 = shalt.err (!%p3245_p12)
}
 0x750   : > { %2787 = dma.vmem_to_hbm [thread:$0]  (%p2790_p5), %s2468_s29, 256, %s4884_s5, [#allocation4]  }
 0x751   : > { %3264 = dma.done.wait (%p2790_p5), [#allocation4], 256  }
 0x752   : > { %3266 = vsyncadd (%p2790_p5), [#allocation4], 4294967040 }
 0x753 PF: > { %s17_s18 = sadd.s32 1, %s3269_s18  }
 0x754   : > { %p14_p13 = scmp.ge.s32.totalorder %s17_s18, 5  }
 0x756   :  { %16 = sbr.rel (!%p14_p13) target bundleno = 1 (0x1), region = 122 }
 0x75b   :  { %2497 = vsyncpa [#allocation4], 1 }
 0x75c   :  { %2499 = vsyncpa [#allocation4 + $0x1], 1 }

// kernel: lstm_model_forward.3
= control target key start
LH: loop header
LB: loop body
LE: loop exit
PB: predicated region body
PF: predicated region fallthrough
CT: control target
= control target key end

     0   :  { %s3037_s12 = smov 0   ;;  %s4582_s0 = inlined_call_operand.vmem [shape: f32[21,8,512], index: 0, kind: input, shape index: {}]   ;;  %s4583_s1 = inlined_call_operand.vmem [shape: f32[21,8,512], index: 1, kind: input, shape index: {}]   ;;  %s4584_s2 = inlined_call_operand.vmem [shape: bf16[2,128,512], index: 2, kind: input, shape index: {}]   ;;  %s4585_s3 = inlined_call_operand.vmem [shape: f32[8,256], index: 3, kind: output, shape index: {}]  }
   0x1 LB: > { %s3043_s13 = sadd.s32 4294967295, %s3013_s12   ;;  %p2368_p0 = scmp.ge.s32.totalorder %s3013_s12, 1  ;;  %s3013_s12 = sphi %s3037_s12, %s13_s12  }
   0x2   : > { %p150_p1 = scmp.lt.s32.totalorder %s3013_s12, 4 }
   0x4   : > { %p151_p2 = pnand %p2368_p0, %p150_p1 }
   0x6   : > { %154 = sbr.rel (%p151_p2) target bundleno = 1855 (0x73f), region = 32 }
   0xb   : > { %s3048_s14 = smul.u32 7, %s3043_s13  ;;  %s184_s15 = ssub.s32 2, %s3043_s13 }
   0xc   : > { %s3051_s16 = smul.u32 7, %s184_s15  ;;  %p2373_p5 = scmp.ne.s32.totalorder %s3043_s13, 0 }
   0xd   : > { %p178_p3 = scmp.lt.s32.totalorder %s3048_s14, 20 }
   0xe   : > { %p186_p4 = scmp.lt.s32.totalorder %s3051_s16, 20 }
   0xf   : > { %s179_s17 = scalar_select %p178_p3, %s3048_s14, 20 }
  0x10   : > { %s187_s18 = scalar_select %p186_p4, %s3051_s16, 20 }
  0x11   : > { %s2563_s19 = sshll.u32 %s179_s17, 5  ;;  %197 = sbr.rel (%p2373_p5) target bundleno = 25 (0x19), region = 36 }
  0x12   : > { %s3064_s22 = scalar_lea.vmem %s4582_s0, %s2563_s19  ;;  %s2564_s23 = sshll.u32 %s187_s18, 5 }
  0x13   : > { %s3069_s26 = scalar_lea.vmem %s4583_s1, %s2564_s23 }
  0x16   : > { %v3015_v0 = vmov 0.0  }
  0x17   : > { %198 = vst [vmem:[#allocation2 + $0x10] sm:$0xff] %v3015_v0  ;;  %199 = vst [vmem:[#allocation2] sm:$0xff] %v3015_v0 }
  0x18   : > { %200 = vst [vmem:[#allocation2 + $0x18] sm:$0xff] %v3015_v0  ;;  %201 = vst [vmem:[#allocation2 + $0x8] sm:$0xff] %v3015_v0 }
  0x19 PF: > { %v3075_v1 = vld [vmem:[%s4584_s2 + $0xe4] ss:$16 sps:$4 sm:$0xff]   ;;  %v3080_v2 = vld [vmem:[%s4584_s2 + $0xe0] ss:$16 sps:$4 sm:$0xff]   ;;  %v4586_v3 = vmov 0   ;;  %s829_s30 = sadd.s32 6, %s3051_s16 }
  0x1a   : > { %474 = vmatprep.mubr.bf16.mxu0 %v4586_v3  ;;  %515 = vmatprep.mubr.bf16.mxu1 %v4586_v3  ;;  %v3088_v4 = vld [vmem:[%s4584_s2 + $0xc4] ss:$16 sps:$4 sm:$0xff]   ;;  %v3094_v5 = vld [vmem:[%s4584_s2 + $0xc0] ss:$16 sps:$4 sm:$0xff]   ;;  %v3105_v7 = vld [vmem:[%s4584_s2 + $0xec] ss:$16 sps:$4 sm:$0xff]  }
  0x1b   : > { %442 = vmatprep.subr.bf16.mxu0 %v3075_v1  ;;  %v3100_v6 = vld [vmem:[%s4584_s2 + $0xa4] ss:$16 sps:$4 sm:$0xff]   ;;  %v3110_v8 = vld [vmem:[%s4584_s2 + $0xe8] ss:$16 sps:$4 sm:$0xff]   ;;  %v3116_v9 = vld [vmem:[%s4584_s2 + $0xa0] ss:$16 sps:$4 sm:$0xff]   ;;  %483 = vmatprep.subr.bf16.mxu1 %v3105_v7 }
  0x1c   : > { %443 = vmatpush1.bf16.msra.mxu0 %v3080_v2  ;;  %v3123_v10 = vld [vmem:[%s4584_s2 + $0x84] ss:$16 sps:$4 sm:$0xff]   ;;  %484 = vmatpush1.bf16.msra.mxu1 %v3110_v8  ;;  %v3129_v11 = vld [vmem:[%s4584_s2 + $0xcc] ss:$16 sps:$4 sm:$0xff]   ;;  %v3134_v12 = vld [vmem:[%s4584_s2 + $0xc8] ss:$16 sps:$4 sm:$0xff]  }
  0x1d   : > { %444 = vmatprep.subr.bf16.mxu0 %v3088_v4  ;;  %485 = vmatprep.subr.bf16.mxu1 %v3129_v11  ;;  %v3141_v13 = vld [vmem:[%s4584_s2 + $0x80] ss:$16 sps:$4 sm:$0xff]   ;;  %v3146_v14 = vld [vmem:[%s4584_s2 + $0x64] ss:$16 sps:$4 sm:$0xff]   ;;  %v3151_v15 = vld [vmem:[%s4584_s2 + $0xac] ss:$16 sps:$4 sm:$0xff]  }
  0x1e   : > { %4673 = vst [vmem:[#allocation3_spill] sm:$0xff] %v3146_v14  ;;  %v3158_v16 = vld [vmem:[%s4584_s2 + $0xa8] ss:$16 sps:$4 sm:$0xff]   ;;  %v3164_v17 = vld [vmem:[%s4584_s2 + $0x8c] ss:$16 sps:$4 sm:$0xff]   ;;  %v3244_v31 = vld [vmem:[#allocation2 + $0x10] sm:$0xff] }
  0x1f   : > { %v3170_v18 = vld [vmem:[%s4584_s2 + $0x60] ss:$16 sps:$4 sm:$0xff]   ;;  %v3176_v19 = vld [vmem:[%s4584_s2 + $0x44] ss:$16 sps:$4 sm:$0xff]   ;;  %v3182_v20 = vld [vmem:[%s4584_s2 + $0x88] ss:$16 sps:$4 sm:$0xff]   ;;  %v281_v35 = vpack.c.bf16 %v3244_v31, %v3244_v31 }
  0x20   : > { %445 = vmatpush1.bf16.msra.mxu0 %v3094_v5  ;;  %486 = vmatpush1.bf16.msra.mxu1 %v3134_v12  ;;  %4674 = vst [vmem:[#allocation4_spill] sm:$0xff] %v3170_v18  ;;  %4675 = vst [vmem:[#allocation5_spill] sm:$0xff] %v3176_v19  ;;  %v3188_v21 = vld [vmem:[%s4584_s2 + $0x6c] ss:$16 sps:$4 sm:$0xff]   ;;  %v3194_v22 = vld [vmem:[%s4584_s2 + $0x40] ss:$16 sps:$4 sm:$0xff]  }
  0x21   : > { %446 = vmatprep.subr.bf16.mxu0 %v3100_v6  ;;  %487 = vmatprep.subr.bf16.mxu1 %v3151_v15  ;;  %4676 = vst [vmem:[#allocation6_spill] sm:$0xff] %v3182_v20  ;;  %4677 = vst [vmem:[#allocation7_spill] sm:$0xff] %v3188_v21  ;;  %v3199_v23 = vld [vmem:[%s4584_s2 + $0x24] ss:$16 sps:$4 sm:$0xff]   ;;  %v3206_v24 = vld [vmem:[%s4584_s2 + $0x68] ss:$16 sps:$4 sm:$0xff]  }
  0x22   : > { %4678 = vst [vmem:[#allocation8_spill] sm:$0xff] %v3194_v22  ;;  %4679 = vst [vmem:[#allocation9_spill] sm:$0xff] %v3199_v23  ;;  %v3212_v25 = vld [vmem:[%s4584_s2 + $0x4c] ss:$16 sps:$4 sm:$0xff]   ;;  %v3217_v26 = vld [vmem:[%s4584_s2 + $0x20] ss:$16 sps:$4 sm:$0xff]  }
  0x23   : > { %4680 = vst [vmem:[#allocation10_spill] sm:$0xff] %v3206_v24  ;;  %4681 = vst [vmem:[#allocation11_spill] sm:$0xff] %v3212_v25  ;;  %v3223_v27 = vld [vmem:[%s4584_s2 + $0x4] ss:$16 sps:$4 sm:$0xff]   ;;  %v3230_v28 = vld [vmem:[%s4584_s2 + $0x48] ss:$16 sps:$4 sm:$0xff]  }
  0x24   : > { %447 = vmatpush1.bf16.msra.mxu0 %v3116_v9  ;;  %488 = vmatpush1.bf16.msra.mxu1 %v3158_v16  ;;  %4682 = vst [vmem:[#allocation12_spill] sm:$0xff] %v3217_v26  ;;  %4683 = vst [vmem:[#allocation13_spill] sm:$0xff] %v3223_v27  ;;  %v3236_v29 = vld [vmem:[%s4584_s2 + $0x2c] ss:$16 sps:$4 sm:$0xff]   ;;  %v3241_v30 = vld [vmem:[%s4584_s2] ss:$16 sps:$4 sm:$0xff]  }
  0x25   : > { %448 = vmatprep.subr.bf16.mxu0 %v3123_v10  ;;  %489 = vmatprep.subr.bf16.mxu1 %v3164_v17  ;;  %4684 = vst [vmem:[#allocation14_spill] sm:$0xff] %v3230_v28  ;;  %4685 = vst [vmem:[#allocation15_spill] sm:$0xff] %v3236_v29  ;;  %v3249_v32 = vld [vmem:[%s4584_s2 + $0x1e4] ss:$16 sps:$4 sm:$0xff]   ;;  %v3256_v33 = vld [vmem:[%s4584_s2 + $0x28] ss:$16 sps:$4 sm:$0xff]  }
  0x26   : > { %4686 = vst [vmem:[#allocation16_spill] sm:$0xff] %v3241_v30  ;;  %4687 = vst [vmem:[#allocation17_spill] sm:$0xff] %v3249_v32  ;;  %v3262_v34 = vld [vmem:[%s4584_s2 + $0xc] ss:$16 sps:$4 sm:$0xff]   ;;  %v3269_v36 = vld [vmem:[%s4584_s2 + $0x1e0] ss:$16 sps:$4 sm:$0xff]  }
  0x27   : > { %4688 = vst [vmem:[#allocation18_spill] sm:$0xff] %v3256_v33  ;;  %4689 = vst [vmem:[#allocation19_spill] sm:$0xff] %v3262_v34  ;;  %v3275_v37 = vld [vmem:[%s4584_s2 + $0x1c4] ss:$16 sps:$4 sm:$0xff]   ;;  %v3282_v38 = vld [vmem:[%s4584_s2 + $0x8] ss:$16 sps:$4 sm:$0xff]  }
  0x28   : > { %449 = vmatpush1.bf16.msra.mxu0 %v3141_v13  ;;  %490 = vmatpush1.bf16.msra.mxu1 %v3182_v20  ;;  %4690 = vst [vmem:[#allocation20_spill] sm:$0xff] %v3282_v38  ;;  %v3288_v39 = vld [vmem:[%s4584_s2 + $0x1ec] ss:$16 sps:$4 sm:$0xff]   ;;  %v3294_v40 = vld [vmem:[%s4584_s2 + $0x1c0] ss:$16 sps:$4 sm:$0xff]   ;;  %p3530_p6 = scmp.lt.s32.totalorder %s829_s30, 20 }
  0x29   : > { %450 = vmatprep.subr.bf16.mxu0 %v3146_v14  ;;  %491 = vmatprep.subr.bf16.mxu1 %v3188_v21  ;;  %4691 = vst [vmem:[#allocation21_spill] sm:$0xff] %v3288_v39  ;;  %v3299_v41 = vld [vmem:[%s4584_s2 + $0x1a4] ss:$16 sps:$4 sm:$0xff]   ;;  %v3307_v42 = vld [vmem:[%s4584_s2 + $0x1e8] ss:$16 sps:$4 sm:$0xff]   ;;  %s1073_s6 = sadd.s32 1, %s3048_s14 }
  0x2a   : > { %v3313_v43 = vld [vmem:[%s4584_s2 + $0x1cc] ss:$16 sps:$4 sm:$0xff]   ;;  %v3319_v44 = vld [vmem:[%s4584_s2 + $0x1a0] ss:$16 sps:$4 sm:$0xff]   ;;  %v3325_v45 = vld [vmem:[%s4584_s2 + $0x184] ss:$16 sps:$4 sm:$0xff]  }
  0x2b   : > { %v3331_v46 = vld [vmem:[%s4584_s2 + $0x1c8] ss:$16 sps:$4 sm:$0xff]   ;;  %v3337_v47 = vld [vmem:[%s4584_s2 + $0x1ac] ss:$16 sps:$4 sm:$0xff]   ;;  %v3344_v48 = vld [vmem:[%s4584_s2 + $0x180] ss:$16 sps:$4 sm:$0xff]  }
  0x2c   : > { %451 = vmatpush1.bf16.msra.mxu0 %v3170_v18  ;;  %492 = vmatpush1.bf16.msra.mxu1 %v3206_v24  ;;  %v3350_v49 = vld [vmem:[%s4584_s2 + $0x164] ss:$16 sps:$4 sm:$0xff]   ;;  %v3356_v50 = vld [vmem:[%s4584_s2 + $0x1a8] ss:$16 sps:$4 sm:$0xff]   ;;  %v3362_v51 = vld [vmem:[%s4584_s2 + $0x18c] ss:$16 sps:$4 sm:$0xff]  }
  0x2d   : > { %452 = vmatprep.subr.bf16.mxu0 %v3176_v19  ;;  %493 = vmatprep.subr.bf16.mxu1 %v3212_v25  ;;  %v3368_v52 = vld [vmem:[%s4584_s2 + $0x160] ss:$16 sps:$4 sm:$0xff]   ;;  %v3374_v53 = vld [vmem:[%s4584_s2 + $0x144] ss:$16 sps:$4 sm:$0xff]   ;;  %v3380_v54 = vld [vmem:[%s4584_s2 + $0x188] ss:$16 sps:$4 sm:$0xff]  }
  0x2e   : > { %v3386_v55 = vld [vmem:[%s4584_s2 + $0x16c] ss:$16 sps:$4 sm:$0xff]   ;;  %v3392_v56 = vld [vmem:[%s4584_s2 + $0x140] ss:$16 sps:$4 sm:$0xff]   ;;  %v3398_v57 = vld [vmem:[%s4584_s2 + $0x124] ss:$16 sps:$4 sm:$0xff]  }
  0x2f   : > { %4692 = vst [vmem:[#allocation22_spill] sm:$0xff] %v3398_v57  ;;  %v3404_v58 = vld [vmem:[%s4584_s2 + $0x168] ss:$16 sps:$4 sm:$0xff]   ;;  %v3410_v59 = vld [vmem:[%s4584_s2 + $0x14c] ss:$16 sps:$4 sm:$0xff]   ;;  %p3618_p7 = scmp.lt.s32.totalorder %s1073_s6, 20 }
  0x30   : > { %453 = vmatpush1.bf16.msra.mxu0 %v3194_v22  ;;  %494 = vmatpush1.bf16.msra.mxu1 %v3230_v28  ;;  %v3416_v60 = vld [vmem:[%s4584_s2 + $0x120] ss:$16 sps:$4 sm:$0xff]   ;;  %v3422_v61 = vld [vmem:[%s4584_s2 + $0x104] ss:$16 sps:$4 sm:$0xff]   ;;  %v3428_v62 = vld [vmem:[%s4584_s2 + $0x148] ss:$16 sps:$4 sm:$0xff]  }
  0x31   : > { %454 = vmatprep.subr.bf16.mxu0 %v3199_v23  ;;  %495 = vmatprep.subr.bf16.mxu1 %v3236_v29  ;;  %4693 = vst [vmem:[#allocation23_spill] sm:$0xff] %v3416_v60  ;;  %4694 = vst [vmem:[#allocation24_spill] sm:$0xff] %v3422_v61  ;;  %v3434_v63 = vld [vmem:[%s4584_s2 + $0x12c] ss:$16 sps:$4 sm:$0xff]   ;;  %v3440_v0 = vld [vmem:[%s4584_s2 + $0x100] ss:$16 sps:$4 sm:$0xff]  }
  0x32   : > { %4695 = vst [vmem:[#allocation25_spill] sm:$0xff] %v3434_v63  ;;  %s831_s29 = scalar_select %p178_p3, 1, 0 }
  0x33   : > { %s836_s5 = scalar_select %p3530_p6, 1, 0 }
  0x34   : > { %455 = vmatpush1.bf16.msra.mxu0 %v3217_v26  ;;  %496 = vmatpush1.bf16.msra.mxu1 %v3256_v33  ;;  %s1077_s8 = scalar_select %p3618_p7, 1, 0 }
  0x35   : > { %456 = vmatprep.subr.bf16.mxu0 %v3223_v27  ;;  %497 = vmatprep.subr.bf16.mxu1 %v3262_v34  ;;  %s1075_s9 = sadd.s32 5, %s3051_s16  ;;  %s1319_s6 = sadd.s32 2, %s3048_s14 }
  0x36   : > { %p3640_p8 = scmp.lt.s32.totalorder %s1075_s9, 20  ;;  %p3820_p9 = scmp.lt.s32.totalorder %s1319_s6, 20 }
  0x37   : > { %s1321_s9 = sadd.s32 4, %s3051_s16  ;;  %s1565_s25 = sadd.s32 3, %s3048_s14 }
  0x38   : > { %457 = vmatpush1.bf16.msra.mxu0 %v3241_v30  ;;  %498 = vmatpush1.bf16.msra.mxu1 %v3282_v38  ;;  %s1082_s11 = scalar_select %p3640_p8, 1, 0 }
  0x39   : > { %694 = vmatprep.subr.bf16.mxu0 %v3249_v32  ;;  %735 = vmatprep.subr.bf16.mxu1 %v3288_v39  ;;  %p3842_p10 = scmp.lt.s32.totalorder %s1321_s9, 20  ;;  %p4162_p11 = scmp.lt.s32.totalorder %s1565_s25, 20 }
  0x3b   : > { %475 = vmatmul.mubr.bf16.vlgmr.msra.gmra.mxu0 %v281_v35  ;;  %516 = vmatmul.mubr.bf16.vlgmr.msra.gmra.mxu1 %v281_v35  ;;  %v3442_v35 = vld [vmem:[#allocation2 + $0x18] sm:$0xff]  ;;  %s1328_s24 = scalar_select %p3842_p10, 1, 0 }
  0x3c   : > { %695 = vmatpush1.bf16.msra.mxu0 %v3269_v36  ;;  %726 = vmatprep.mubr.bf16.mxu0 %v4586_v3  ;;  %s1569_s28 = scalar_select %p4162_p11, 1, 0 }
  0x3d   : > { %696 = vmatprep.subr.bf16.mxu0 %v3275_v37  ;;  %736 = vmatpush1.bf16.msra.mxu1 %v3307_v42 }
  0x3e   : > { %737 = vmatprep.subr.bf16.mxu1 %v3313_v43  ;;  %767 = vmatprep.mubr.bf16.mxu1 %v4586_v3  ;;  %v3449_v3 = vld [vmem:[%s4584_s2 + $0x128] ss:$16 sps:$4 sm:$0xff]  }
  0x40   : > { %697 = vmatpush1.bf16.msra.mxu0 %v3294_v40 }
  0x41   : > { %698 = vmatprep.subr.bf16.mxu0 %v3299_v41  ;;  %738 = vmatpush1.bf16.msra.mxu1 %v3331_v46 }
  0x42   : > { %739 = vmatprep.subr.bf16.mxu1 %v3337_v47 }
  0x44   : > { %699 = vmatpush1.bf16.msra.mxu0 %v3319_v44 }
  0x45   : > { %700 = vmatprep.subr.bf16.mxu0 %v3325_v45  ;;  %740 = vmatpush1.bf16.msra.mxu1 %v3356_v50 }
  0x46   : > { %741 = vmatprep.subr.bf16.mxu1 %v3362_v51 }
  0x48   : > { %701 = vmatpush1.bf16.msra.mxu0 %v3344_v48 }
  0x49   : > { %702 = vmatprep.subr.bf16.mxu0 %v3350_v49  ;;  %742 = vmatpush1.bf16.msra.mxu1 %v3380_v54 }
  0x4a   : > { %743 = vmatprep.subr.bf16.mxu1 %v3386_v55 }
  0x4c   : > { %703 = vmatpush1.bf16.msra.mxu0 %v3368_v52 }
  0x4d   : > { %704 = vmatprep.subr.bf16.mxu0 %v3374_v53  ;;  %744 = vmatpush1.bf16.msra.mxu1 %v3404_v58 }
  0x4e   : > { %745 = vmatprep.subr.bf16.mxu1 %v3410_v59 }
  0x50   : > { %705 = vmatpush1.bf16.msra.mxu0 %v3392_v56 }
  0x51   : > { %706 = vmatprep.subr.bf16.mxu0 %v3398_v57  ;;  %746 = vmatpush1.bf16.msra.mxu1 %v3428_v62  ;;  %v533_v57 = vpack.c.bf16 %v3442_v35, %v3442_v35 }
  0x52   : > { %747 = vmatprep.subr.bf16.mxu1 %v3434_v63  ;;  %v4696_v63 = vmov 0  }
  0x54   : > { %707 = vmatpush1.bf16.msra.mxu0 %v3416_v60  ;;  %v3455_v60 = vld [vmem:[%s4584_s2 + $0x10c] ss:$16 sps:$4 sm:$0xff]  }
  0x55   : > { %708 = vmatprep.subr.bf16.mxu0 %v3422_v61  ;;  %748 = vmatpush1.bf16.msra.mxu1 %v3449_v3  ;;  %v3464_v61 = vld [vmem:[%s4584_s2 + $0x108] ss:$16 sps:$4 sm:$0xff]  }
  0x56   : > { %749 = vmatprep.subr.bf16.mxu1 %v3455_v60 }
  0x58   : > { %709 = vmatpush1.bf16.msra.mxu0 %v3440_v0 }
  0x59   : > { %847 = vmatprep.subr.bf16.mxu0 %v3075_v1  ;;  %750 = vmatpush1.bf16.msra.mxu1 %v3464_v61 }
  0x5a   : > { %888 = vmatprep.subr.bf16.mxu1 %v3105_v7 }
  0x5b   : > { %727 = vmatmul.mubr.bf16.vlgmr.msra.gmra.mxu0 %v533_v57 }
  0x5c   : > { %848 = vmatpush1.bf16.msra.mxu0 %v3080_v2  ;;  %879 = vmatprep.mubr.bf16.mxu0 %v4696_v63 }
  0x5d   : > { %849 = vmatprep.subr.bf16.mxu0 %v3088_v4  ;;  %768 = vmatmul.mubr.bf16.vlgmr.msra.gmra.mxu1 %v533_v57  ;;  %v277_v57 = vld [vmem:[%s3064_s22] sm:$0xff] }
  0x5e   : > { %889 = vmatpush1.bf16.msra.mxu1 %v3110_v8  ;;  %920 = vmatprep.mubr.bf16.mxu1 %v4696_v63 }
  0x5f   : > { %890 = vmatprep.subr.bf16.mxu1 %v3129_v11 }
  0x60   : > { %850 = vmatpush1.bf16.msra.mxu0 %v3094_v5 }
  0x61   : > { %851 = vmatprep.subr.bf16.mxu0 %v3100_v6 }
  0x62   : > { %891 = vmatpush1.bf16.msra.mxu1 %v3134_v12 }
  0x63   : > { %892 = vmatprep.subr.bf16.mxu1 %v3151_v15 }
  0x64   : > { %852 = vmatpush1.bf16.msra.mxu0 %v3116_v9 }
  0x65   : > { %853 = vmatprep.subr.bf16.mxu0 %v3123_v10 }
  0x66   : > { %893 = vmatpush1.bf16.msra.mxu1 %v3158_v16 }
  0x67   : > { %894 = vmatprep.subr.bf16.mxu1 %v3164_v17 }
  0x68   : > { %854 = vmatpush1.bf16.msra.mxu0 %v3141_v13 }
  0x69   : > { %855 = vmatprep.subr.bf16.mxu0 %v3146_v14 }
  0x6a   : > { %895 = vmatpush1.bf16.msra.mxu1 %v3182_v20 }
  0x6b   : > { %896 = vmatprep.subr.bf16.mxu1 %v3188_v21 }
  0x6c   : > { %856 = vmatpush1.bf16.msra.mxu0 %v3170_v18  ;;  %v280_v18 = vld [vmem:[%s3064_s22 + $0x18] sm:$0xff] }
  0x6d   : > { %857 = vmatprep.subr.bf16.mxu0 %v3176_v19 }
  0x6e   : > { %897 = vmatpush1.bf16.msra.mxu1 %v3206_v24 }
  0x6f   : > { %898 = vmatprep.subr.bf16.mxu1 %v3212_v25 }
  0x70   : > { %858 = vmatpush1.bf16.msra.mxu0 %v3194_v22 }
  0x71   : > { %859 = vmatprep.subr.bf16.mxu0 %v3199_v23  ;;  %v278_v23 = vld [vmem:[%s3064_s22 + $0x8] sm:$0xff] }
  0x72   : > { %899 = vmatpush1.bf16.msra.mxu1 %v3230_v28 }
  0x73   : > { %900 = vmatprep.subr.bf16.mxu1 %v3236_v29 }
  0x74   : > { %860 = vmatpush1.bf16.msra.mxu0 %v3217_v26 }
  0x75   : > { %861 = vmatprep.subr.bf16.mxu0 %v3223_v27 }
  0x76   : > { %901 = vmatpush1.bf16.msra.mxu1 %v3256_v33 }
  0x77   : > { %902 = vmatprep.subr.bf16.mxu1 %v3262_v34  ;;  %v279_v34 = vld [vmem:[%s3064_s22 + $0x10] sm:$0xff] }
  0x78   : > { %862 = vmatpush1.bf16.msra.mxu0 %v3241_v30 }
  0x79   : > { %939 = vmatprep.subr.bf16.mxu0 %v3249_v32 }
  0x7a   : > { %903 = vmatpush1.bf16.msra.mxu1 %v3282_v38 }
  0x7b   : > { %980 = vmatprep.subr.bf16.mxu1 %v3288_v39 }
  0xfb   : > { %v476_v26 = vpop.f32.mrf.mxu0  ;;  %v517_v25 = vpop.f32.mrf.mxu1 }
  0xfc   : > { %v524_v27 = vadd.f32 %v476_v26, %v277_v57  ;;  %v526_v39 = vadd.f32 %v517_v25, %v279_v34  ;;  %v2439_v25 = vld [vmem:[%s3069_s26 + $0xc8] sm:$0xff] }
  0xfd   : > { %v478_v28 = vpop.f32.mrf.mxu0  ;;  %v519_v19 = vpop.f32.mrf.mxu1 }
  0xfe   : > { %v2474_v29 = vmul.f32 -1.442695, %v524_v27  ;;  %v525_v22 = vadd.f32 %v478_v28, %v278_v23  ;;  %v2476_v21 = vmul.f32 -1.442695, %v526_v39  ;;  %v527_v26 = vadd.f32 %v519_v19, %v280_v18  ;;  %v2438_v28 = vld [vmem:[%s3069_s26 + $0xc0] sm:$0xff] }
  0xff   : > { %v480_v30 = vpop.f32.mrf.mxu0  ;;  %v521_v38 = vpop.f32.mrf.mxu1  ;;  %v204_v18 = vld [vmem:[#allocation2] sm:$0xff] }
 0x100   : > { %2671 = vpow2.f32 %v2474_v29  ;;  %v2475_v33 = vmul.f32 -1.442695, %v525_v22 }
 0x101   : > { %v481_v32 = vpop.f32.mrf.mxu0  ;;  %v522_v24 = vpop.f32.mrf.mxu1 }
 0x102   : > { %2673 = vpow2.f32 %v2475_v33 }
 0x103   : > { %2675 = vpow2.f32 %v2476_v21 }
 0x104   : > { %2677 = vtanh.f32 %v527_v26  ;;  %v832_v26 = vstv %s831_s29  ;;  %s1567_s29 = sadd.s32 3, %s3051_s16 }
 0x105   : > { %vm3512_vm0 = vcmp.eq.s32.totalorder %v832_v26, 1  ;;  %p4184_p12 = scmp.lt.s32.totalorder %s1567_s29, 20 }
 0x107   : > { %s1574_s4 = scalar_select %p4184_p12, 1, 0 }
 0x10d   : > { %v2672_v57 = vpop.eup %2671 }
 0x10e   : > { %v789_v23 = vadd.f32 1.0, %v2672_v57 }
 0x10f   : > { %v2674_v27 = vpop.eup %2673 }
 0x110   : > { %2679 = vrcp.f32 %v789_v23  ;;  %v790_v22 = vadd.f32 1.0, %v2674_v27  ;;  %v2676_v29 = vpop.eup %2675 }
 0x111   : > { %v2678_v30 = vpop.eup %2677  ;;  %v791_v34 = vadd.f32 1.0, %v2676_v29 }
 0x112   : > { %2681 = vrcp.f32 %v790_v22 }
 0x11b   : > { %v728_v32 = vpop.f32.mrf.mxu0 }
 0x11c   : > { %v776_v24 = vadd.f32 %v2438_v28, %v728_v32  ;;  %v2440_v32 = vld [vmem:[%s3069_s26 + $0xd0] sm:$0xff] }
 0x11d   : > { %v2680_v33 = vpop.eup %2679  ;;  %v730_v38 = vpop.f32.mrf.mxu0 }
 0x11e   : > { %v818_v19 = vmul.f32 %v2680_v33, %v2678_v30  ;;  %v2477_v21 = vmul.f32 -1.442695, %v776_v24  ;;  %v777_v39 = vadd.f32 %v2439_v25, %v730_v38  ;;  %v769_v22 = vpop.f32.mrf.mxu1 }
 0x11f   : > { %v2682_v57 = vpop.eup %2681  ;;  %v732_v23 = vpop.f32.mrf.mxu0  ;;  %v778_v33 = vadd.f32 %v2440_v32, %v769_v22  ;;  %v837_v32 = vstv %s836_s5  ;;  %s1811_s5 = sadd.s32 4, %s3048_s14 }
 0x120   : > { %2683 = vpow2.f32 %v2477_v21  ;;  %v2478_v27 = vmul.f32 -1.442695, %v777_v39  ;;  %v816_v14 = vmul.f32 %v2682_v57, %v204_v18  ;;  %v771_v29 = vpop.f32.mrf.mxu1  ;;  %v2441_v21 = vld [vmem:[%s3069_s26 + $0xd8] sm:$0xff]  ;;  %vm838_vm1 = vcmp.eq.s32.totalorder %v837_v32, 1  ;;  %v2480_v32 = vld [vmem:[%s3064_s22 + $0x20] sm:$0xff]  ;;  %p4274_p13 = scmp.lt.s32.totalorder %s1811_s5, 20 }
 0x121   : > { %2685 = vrcp.f32 %v791_v34  ;;  %v733_v20 = vpop.f32.mrf.mxu0  ;;  %v2479_v34 = vmul.f32 -1.442695, %v778_v33  ;;  %s2057_s5 = sadd.s32 5, %s3048_s14 }
 0x122   : > { %2687 = vpow2.f32 %v2478_v27  ;;  %v819_v30 = vadd.f32 %v818_v19, %v816_v14  ;;  %v773_v24 = vpop.f32.mrf.mxu1  ;;  %v779_v20 = vadd.f32 %v2441_v21, %v771_v29  ;;  %s1815_s7 = scalar_select %p4274_p13, 1, 0 }
 0x123   : > { %p4422_p1 = scmp.lt.s32.totalorder %s2057_s5, 20 }
 0x124   : > { %2689 = vtanh.f32 %v819_v30  ;;  %v3519_v25 = vsel %vm3512_vm0, %v819_v30, %v204_v18  ;;  %v774_v38 = vpop.f32.mrf.mxu1  ;;  %v208_v30 = vld [vmem:[#allocation2 + $0x8] sm:$0xff] }
 0x125   : > { %2691 = vpow2.f32 %v2479_v34 }
 0x126   : > { %2693 = vtanh.f32 %v779_v20 }
 0x12d   : > { %v2684_v39 = vpop.eup %2683 }
 0x12e   : > { %v2686_v26 = vpop.eup %2685  ;;  %v807_v57 = vadd.f32 1.0, %v2684_v39  ;;  %v4700_v39 = vld [vmem:[#allocation22_spill] sm:$0xff] }
 0x12f   : > { %v2688_v23 = vpop.eup %2687 }
 0x130   : > { %2695 = vrcp.f32 %v807_v57  ;;  %v808_v14 = vadd.f32 1.0, %v2688_v23  ;;  %v4702_v23 = vld [vmem:[#allocation23_spill] sm:$0xff] }
 0x131   : > { %v2690_v19 = vpop.eup %2689 }
 0x132   : > { %2697 = vrcp.f32 %v808_v14  ;;  %v821_v27 = vmul.f32 %v2690_v19, %v2686_v26  ;;  %v4701_v26 = vld [vmem:[#allocation25_spill] sm:$0xff]  ;;  %v4703_v19 = vld [vmem:[#allocation24_spill] sm:$0xff] }
 0x134   : > { %v3526_v18 = vsel %vm3512_vm0, %v821_v27, %v3244_v31  ;;  %v2692_v31 = vpop.eup %2691 }
 0x135   : > { %v846_v22 = vpack.c.bf16 %v3526_v18, %v3526_v18  ;;  %v2694_v28 = vpop.eup %2693  ;;  %v809_v33 = vadd.f32 1.0, %v2692_v31 }
 0x137   : > { %880 = vmatmul.mubr.bf16.vlgmr.msra.gmra.mxu0 %v846_v22  ;;  %921 = vmatmul.mubr.bf16.vlgmr.msra.gmra.mxu1 %v846_v22  ;;  %2699 = vrcp.f32 %v809_v33 }
 0x138   : > { %940 = vmatpush1.bf16.msra.mxu0 %v3269_v36  ;;  %981 = vmatpush1.bf16.msra.mxu1 %v3307_v42 }
 0x139   : > { %941 = vmatprep.subr.bf16.mxu0 %v3275_v37  ;;  %982 = vmatprep.subr.bf16.mxu1 %v3313_v43 }
 0x13a   : > { %971 = vmatprep.mubr.bf16.mxu0 %v4696_v63  ;;  %1012 = vmatprep.mubr.bf16.mxu1 %v4696_v63 }
 0x13c   : > { %942 = vmatpush1.bf16.msra.mxu0 %v3294_v40  ;;  %983 = vmatpush1.bf16.msra.mxu1 %v3331_v46 }
 0x13d   : > { %v2696_v29 = vpop.eup %2695  ;;  %943 = vmatprep.subr.bf16.mxu0 %v3299_v41  ;;  %984 = vmatprep.subr.bf16.mxu1 %v3337_v47 }
 0x13e   : > { %v824_v38 = vmul.f32 %v2696_v29, %v2694_v28  ;;  %v4720_v28 = vld [vmem:[#allocation20_spill] sm:$0xff]  ;;  %v4721_v29 = vld [vmem:[#allocation17_spill] sm:$0xff] }
 0x13f   : > { %v2698_v24 = vpop.eup %2697 }
 0x140   : > { %944 = vmatpush1.bf16.msra.mxu0 %v3319_v44  ;;  %985 = vmatpush1.bf16.msra.mxu1 %v3356_v50  ;;  %v822_v21 = vmul.f32 %v2698_v24, %v208_v30 }
 0x141   : > { %945 = vmatprep.subr.bf16.mxu0 %v3325_v45  ;;  %986 = vmatprep.subr.bf16.mxu1 %v3362_v51 }
 0x142   : > { %v825_v34 = vadd.f32 %v824_v38, %v822_v21  ;;  %v2481_v38 = vld [vmem:[%s3064_s22 + $0x28] sm:$0xff] }
 0x144   : > { %946 = vmatpush1.bf16.msra.mxu0 %v3344_v48  ;;  %987 = vmatpush1.bf16.msra.mxu1 %v3380_v54  ;;  %2701 = vtanh.f32 %v825_v34  ;;  %v3553_v20 = vsel %vm838_vm1, %v825_v34, %v208_v30  ;;  %v2700_v57 = vpop.eup %2699  ;;  %v4722_v30 = vld [vmem:[#allocation21_spill] sm:$0xff] }
 0x145   : > { %947 = vmatprep.subr.bf16.mxu0 %v3350_v49  ;;  %988 = vmatprep.subr.bf16.mxu1 %v3386_v55 }
 0x148   : > { %948 = vmatpush1.bf16.msra.mxu0 %v3368_v52  ;;  %989 = vmatpush1.bf16.msra.mxu1 %v3404_v58 }
 0x149   : > { %949 = vmatprep.subr.bf16.mxu0 %v3374_v53  ;;  %990 = vmatprep.subr.bf16.mxu1 %v3410_v59 }
 0x14c   : > { %950 = vmatpush1.bf16.msra.mxu0 %v3392_v56  ;;  %991 = vmatpush1.bf16.msra.mxu1 %v3428_v62 }
 0x14d   : > { %951 = vmatprep.subr.bf16.mxu0 %v4700_v39  ;;  %992 = vmatprep.subr.bf16.mxu1 %v4701_v26 }
 0x150   : > { %952 = vmatpush1.bf16.msra.mxu0 %v4702_v23  ;;  %993 = vmatpush1.bf16.msra.mxu1 %v3449_v3 }
 0x151   : > { %v2702_v14 = vpop.eup %2701  ;;  %953 = vmatprep.subr.bf16.mxu0 %v4703_v19  ;;  %994 = vmatprep.subr.bf16.mxu1 %v3455_v60 }
 0x152   : > { %v827_v27 = vmul.f32 %v2702_v14, %v2700_v57 }
 0x154   : > { %954 = vmatpush1.bf16.msra.mxu0 %v3440_v0  ;;  %995 = vmatpush1.bf16.msra.mxu1 %v3464_v61  ;;  %v3573_v22 = vsel %vm838_vm1, %v827_v27, %v3442_v35  ;;  %v4719_v35 = vld [vmem:[#allocation16_spill] sm:$0xff] }
 0x155   : > { %v938_v31 = vpack.c.bf16 %v3573_v22, %v3573_v22  ;;  %1093 = vmatprep.subr.bf16.mxu0 %v3075_v1  ;;  %1134 = vmatprep.subr.bf16.mxu1 %v3105_v7  ;;  %v4704_v1 = vld [vmem:[#allocation6_spill] sm:$0xff]  ;;  %v4709_v7 = vld [vmem:[#allocation5_spill] sm:$0xff] }
 0x157   : > { %972 = vmatmul.mubr.bf16.vlgmr.msra.gmra.mxu0 %v938_v31  ;;  %1013 = vmatmul.mubr.bf16.vlgmr.msra.gmra.mxu1 %v938_v31 }
 0x158   : > { %1094 = vmatpush1.bf16.msra.mxu0 %v3080_v2  ;;  %1135 = vmatpush1.bf16.msra.mxu1 %v3110_v8  ;;  %v4705_v2 = vld [vmem:[#allocation3_spill] sm:$0xff] }
 0x159   : > { %1095 = vmatprep.subr.bf16.mxu0 %v3088_v4  ;;  %1136 = vmatprep.subr.bf16.mxu1 %v3129_v11  ;;  %v4706_v4 = vld [vmem:[#allocation7_spill] sm:$0xff]  ;;  %v4713_v11 = vld [vmem:[#allocation9_spill] sm:$0xff] }
 0x15a   : > { %1125 = vmatprep.mubr.bf16.mxu0 %v4696_v63  ;;  %1166 = vmatprep.mubr.bf16.mxu1 %v4696_v63  ;;  %v4710_v8 = vld [vmem:[#allocation11_spill] sm:$0xff] }
 0x15c   : > { %1096 = vmatpush1.bf16.msra.mxu0 %v3094_v5  ;;  %1137 = vmatpush1.bf16.msra.mxu1 %v3134_v12  ;;  %v4707_v5 = vld [vmem:[#allocation4_spill] sm:$0xff]  ;;  %v4714_v12 = vld [vmem:[#allocation15_spill] sm:$0xff] }
 0x15d   : > { %1097 = vmatprep.subr.bf16.mxu0 %v3100_v6  ;;  %1138 = vmatprep.subr.bf16.mxu1 %v3151_v15  ;;  %v4708_v6 = vld [vmem:[#allocation10_spill] sm:$0xff] }
 0x15e   : > { %v4716_v15 = vld [vmem:[#allocation18_spill] sm:$0xff] }
 0x160   : > { %1098 = vmatpush1.bf16.msra.mxu0 %v3116_v9  ;;  %1139 = vmatpush1.bf16.msra.mxu1 %v3158_v16  ;;  %v4711_v9 = vld [vmem:[#allocation8_spill] sm:$0xff]  ;;  %v4717_v16 = vld [vmem:[#allocation13_spill] sm:$0xff] }
 0x161   : > { %1099 = vmatprep.subr.bf16.mxu0 %v3123_v10  ;;  %1140 = vmatprep.subr.bf16.mxu1 %v3164_v17  ;;  %v4712_v10 = vld [vmem:[#allocation14_spill] sm:$0xff]  ;;  %v4718_v17 = vld [vmem:[#allocation19_spill] sm:$0xff] }
 0x164   : > { %1100 = vmatpush1.bf16.msra.mxu0 %v3141_v13  ;;  %1141 = vmatpush1.bf16.msra.mxu1 %v4704_v1  ;;  %v4715_v13 = vld [vmem:[#allocation12_spill] sm:$0xff] }
 0x165   : > { %1101 = vmatprep.subr.bf16.mxu0 %v4705_v2  ;;  %1142 = vmatprep.subr.bf16.mxu1 %v4706_v4 }
 0x168   : > { %1102 = vmatpush1.bf16.msra.mxu0 %v4707_v5  ;;  %1143 = vmatpush1.bf16.msra.mxu1 %v4708_v6 }
 0x169   : > { %1103 = vmatprep.subr.bf16.mxu0 %v4709_v7  ;;  %1144 = vmatprep.subr.bf16.mxu1 %v4710_v8 }
 0x16c   : > { %1104 = vmatpush1.bf16.msra.mxu0 %v4711_v9  ;;  %1145 = vmatpush1.bf16.msra.mxu1 %v4712_v10 }
 0x16d   : > { %1105 = vmatprep.subr.bf16.mxu0 %v4713_v11  ;;  %1146 = vmatprep.subr.bf16.mxu1 %v4714_v12 }
 0x170   : > { %1106 = vmatpush1.bf16.msra.mxu0 %v4715_v13  ;;  %1147 = vmatpush1.bf16.msra.mxu1 %v4716_v15 }
 0x171   : > { %1107 = vmatprep.subr.bf16.mxu0 %v4717_v16  ;;  %1148 = vmatprep.subr.bf16.mxu1 %v4718_v17 }
 0x174   : > { %1108 = vmatpush1.bf16.msra.mxu0 %v4719_v35  ;;  %1149 = vmatpush1.bf16.msra.mxu1 %v4720_v28  ;;  %v2483_v35 = vld [vmem:[%s3064_s22 + $0x38] sm:$0xff] }
 0x175   : > { %1185 = vmatprep.subr.bf16.mxu0 %v4721_v29  ;;  %1226 = vmatprep.subr.bf16.mxu1 %v4722_v30  ;;  %v2482_v30 = vld [vmem:[%s3064_s22 + $0x30] sm:$0xff] }
 0x1f7   : > { %v881_v24 = vpop.f32.mrf.mxu0  ;;  %v922_v33 = vpop.f32.mrf.mxu1 }
 0x1f8   : > { %v929_v21 = vadd.f32 %v2480_v32, %v881_v24  ;;  %v931_v28 = vadd.f32 %v2482_v30, %v922_v33  ;;  %v2485_v33 = vld [vmem:[%s3069_s26 + $0xa8] sm:$0xff] }
 0x1f9   : > { %v883_v34 = vpop.f32.mrf.mxu0  ;;  %v924_v57 = vpop.f32.mrf.mxu1 }
 0x1fa   : > { %v2488_v14 = vmul.f32 -1.442695, %v929_v21  ;;  %v930_v27 = vadd.f32 %v2481_v38, %v883_v34  ;;  %v2490_v17 = vmul.f32 -1.442695, %v931_v28  ;;  %v932_v32 = vadd.f32 %v2483_v35, %v924_v57 }
 0x1fb   : > { %v885_v31 = vpop.f32.mrf.mxu0  ;;  %v926_v2 = vpop.f32.mrf.mxu1 }
 0x1fc   : > { %2703 = vpow2.f32 %v2488_v14  ;;  %v2489_v5 = vmul.f32 -1.442695, %v930_v27  ;;  %v1078_v27 = vstv %s1077_s8  ;;  %s1323_s8 = scalar_select %p3820_p9, 1, 0 }
 0x1fd   : > { %v886_v7 = vpop.f32.mrf.mxu0  ;;  %v927_v29 = vpop.f32.mrf.mxu1  ;;  %vm1079_vm2 = vcmp.eq.s32.totalorder %v1078_v27, 1 }
 0x1fe   : > { %2705 = vpow2.f32 %v2489_v5  ;;  %v2484_v29 = vld [vmem:[%s3069_s26 + $0xa0] sm:$0xff] }
 0x1ff   : > { %2707 = vpow2.f32 %v2490_v17 }
 0x209   : > { %v2704_v16 = vpop.eup %2703 }
 0x20a   : > { %v1034_v24 = vadd.f32 1.0, %v2704_v16 }
 0x20b   : > { %v2706_v15 = vpop.eup %2705 }
 0x20c   : > { %2709 = vrcp.f32 %v1034_v24  ;;  %v1035_v38 = vadd.f32 1.0, %v2706_v15  ;;  %v2708_v35 = vpop.eup %2707 }
 0x20d   : > { %2711 = vtanh.f32 %v932_v32  ;;  %v1036_v2 = vadd.f32 1.0, %v2708_v35 }
 0x20e   : > { %2713 = vrcp.f32 %v1035_v38 }
 0x217   : > { %v973_v28 = vpop.f32.mrf.mxu0  ;;  %v1014_v30 = vpop.f32.mrf.mxu1 }
 0x218   : > { %v1021_v16 = vadd.f32 %v2484_v29, %v973_v28 }
 0x219   : > { %v2710_v21 = vpop.eup %2709  ;;  %v975_v17 = vpop.f32.mrf.mxu0 }
 0x21a   : > { %v1016_v34 = vpop.f32.mrf.mxu1  ;;  %v2712_v15 = vpop.eup %2711  ;;  %v2491_v57 = vmul.f32 -1.442695, %v1021_v16  ;;  %v1022_v14 = vadd.f32 %v2485_v33, %v975_v17  ;;  %v2486_v33 = vld [vmem:[%s3069_s26 + $0xb0] sm:$0xff]  ;;  %v2487_v17 = vld [vmem:[%s3069_s26 + $0xb8] sm:$0xff] }
 0x21b   : > { %v2714_v31 = vpop.eup %2713  ;;  %v977_v5 = vpop.f32.mrf.mxu0  ;;  %v1063_v24 = vmul.f32 %v2712_v15, %v2710_v21  ;;  %v1023_v35 = vadd.f32 %v2486_v33, %v1014_v30  ;;  %v1024_v21 = vadd.f32 %v2487_v17, %v1016_v34 }
 0x21c   : > { %v1018_v7 = vpop.f32.mrf.mxu1  ;;  %v1061_v32 = vmul.f32 %v2714_v31, %v3519_v25  ;;  %2715 = vpow2.f32 %v2491_v57  ;;  %v2492_v38 = vmul.f32 -1.442695, %v1022_v14 }
 0x21d   : > { %v978_v13 = vpop.f32.mrf.mxu0  ;;  %v2493_v5 = vmul.f32 -1.442695, %v1023_v35 }
 0x21e   : > { %v1019_v29 = vpop.f32.mrf.mxu1  ;;  %v1064_v28 = vadd.f32 %v1063_v24, %v1061_v32  ;;  %2717 = vpow2.f32 %v2492_v38  ;;  %v2495_v24 = vld [vmem:[%s3064_s22 + $0x48] sm:$0xff] }
 0x21f   : > { %2719 = vrcp.f32 %v1036_v2 }
 0x220   : > { %2721 = vtanh.f32 %v1064_v28  ;;  %v3630_v16 = vsel %vm1079_vm2, %v1064_v28, %v3519_v25 }
 0x221   : > { %2723 = vpow2.f32 %v2493_v5 }
 0x229   : > { %v2716_v31 = vpop.eup %2715 }
 0x22a   : > { %v1052_v15 = vadd.f32 1.0, %v2716_v31 }
 0x22b   : > { %v2718_v57 = vpop.eup %2717 }
 0x22c   : > { %v2720_v13 = vpop.eup %2719  ;;  %2725 = vrcp.f32 %v1052_v15  ;;  %v1053_v14 = vadd.f32 1.0, %v2718_v57  ;;  %v2496_v57 = vld [vmem:[%s3064_s22 + $0x50] sm:$0xff] }
 0x22d   : > { %v2722_v7 = vpop.eup %2721  ;;  %2727 = vtanh.f32 %v1024_v21 }
 0x22e   : > { %2729 = vrcp.f32 %v1053_v14  ;;  %v1066_v2 = vmul.f32 %v2722_v7, %v2720_v13  ;;  %v2497_v14 = vld [vmem:[%s3064_s22 + $0x58] sm:$0xff] }
 0x230   : > { %v3636_v25 = vsel %vm1079_vm2, %v1066_v2, %v3526_v18  ;;  %v2724_v18 = vpop.eup %2723 }
 0x231   : > { %v1092_v30 = vpack.c.bf16 %v3636_v25, %v3636_v25 }
 0x233   : > { %1126 = vmatmul.mubr.bf16.vlgmr.msra.gmra.mxu0 %v1092_v30  ;;  %1167 = vmatmul.mubr.bf16.vlgmr.msra.gmra.mxu1 %v1092_v30 }
 0x234   : > { %1186 = vmatpush1.bf16.msra.mxu0 %v3269_v36  ;;  %1227 = vmatpush1.bf16.msra.mxu1 %v3307_v42 }
 0x235   : > { %1187 = vmatprep.subr.bf16.mxu0 %v3275_v37  ;;  %1228 = vmatprep.subr.bf16.mxu1 %v3313_v43  ;;  %v1083_v37 = vstv %s1082_s11  ;;  %v1054_v43 = vadd.f32 1.0, %v2724_v18 }
 0x236   : > { %1217 = vmatprep.mubr.bf16.mxu0 %v4696_v63  ;;  %1258 = vmatprep.mubr.bf16.mxu1 %v4696_v63  ;;  %vm1084_vm3 = vcmp.eq.s32.totalorder %v1083_v37, 1  ;;  %v2498_v37 = vld [vmem:[%s3069_s26 + $0x80] sm:$0xff] }
 0x237   : > { %2731 = vrcp.f32 %v1054_v43 }
 0x238   : > { %1188 = vmatpush1.bf16.msra.mxu0 %v3294_v40  ;;  %1229 = vmatpush1.bf16.msra.mxu1 %v3331_v46 }
 0x239   : > { %v2726_v34 = vpop.eup %2725  ;;  %1189 = vmatprep.subr.bf16.mxu0 %v3299_v41  ;;  %1230 = vmatprep.subr.bf16.mxu1 %v3337_v47 }
 0x23a   : > { %v2728_v36 = vpop.eup %2727 }
 0x23b   : > { %v2730_v42 = vpop.eup %2729  ;;  %v1069_v32 = vmul.f32 %v2728_v36, %v2726_v34 }
 0x23c   : > { %v1067_v27 = vmul.f32 %v2730_v42, %v3553_v20  ;;  %1190 = vmatpush1.bf16.msra.mxu0 %v3319_v44  ;;  %1231 = vmatpush1.bf16.msra.mxu1 %v3356_v50  ;;  %v3704_v50 = vld [vmem:[%s4584_s2 + $0xe0] ss:$16 sps:$4 sm:$0xff]  }
 0x23d   : > { %1191 = vmatprep.subr.bf16.mxu0 %v3325_v45  ;;  %1232 = vmatprep.subr.bf16.mxu1 %v3362_v51  ;;  %v3710_v51 = vld [vmem:[%s4584_s2 + $0xe8] ss:$16 sps:$4 sm:$0xff]  }
 0x23e   : > { %v1070_v40 = vadd.f32 %v1069_v32, %v1067_v27  ;;  %v2499_v27 = vld [vmem:[%s3069_s26 + $0x88] sm:$0xff] }
 0x240   : > { %2733 = vtanh.f32 %v1070_v40  ;;  %1192 = vmatpush1.bf16.msra.mxu0 %v3344_v48  ;;  %1233 = vmatpush1.bf16.msra.mxu1 %v3380_v54  ;;  %v3665_v41 = vsel %vm1084_vm3, %v1070_v40, %v3553_v20  ;;  %v3730_v54 = vld [vmem:[%s4584_s2 + $0xc0] ss:$16 sps:$4 sm:$0xff]   ;;  %v3785_v20 = vld [vmem:[%s4584_s2 + $0x64] ss:$16 sps:$4 sm:$0xff]  }
 0x241   : > { %1193 = vmatprep.subr.bf16.mxu0 %v3350_v49  ;;  %1234 = vmatprep.subr.bf16.mxu1 %v3386_v55  ;;  %v3698_v49 = vld [vmem:[%s4584_s2 + $0xec] ss:$16 sps:$4 sm:$0xff]   ;;  %v3736_v55 = vld [vmem:[%s4584_s2 + $0xc8] ss:$16 sps:$4 sm:$0xff]   ;;  %4732 = vst [vmem:[#allocation4_spill] sm:$0xff] %v3785_v20 }
 0x244   : > { %1194 = vmatpush1.bf16.msra.mxu0 %v3368_v52  ;;  %1235 = vmatpush1.bf16.msra.mxu1 %v3404_v58  ;;  %v2732_v44 = vpop.eup %2731  ;;  %v3716_v52 = vld [vmem:[%s4584_s2 + $0xc4] ss:$16 sps:$4 sm:$0xff]   ;;  %v3748_v58 = vld [vmem:[%s4584_s2 + $0xac] ss:$16 sps:$4 sm:$0xff]  }
 0x245   : > { %1195 = vmatprep.subr.bf16.mxu0 %v3374_v53  ;;  %1236 = vmatprep.subr.bf16.mxu1 %v3410_v59  ;;  %v3722_v53 = vld [vmem:[%s4584_s2 + $0xcc] ss:$16 sps:$4 sm:$0xff]   ;;  %4726 = vst [vmem:[#allocation25_spill] sm:$0xff] %v3748_v58  ;;  %v3754_v59 = vld [vmem:[%s4584_s2 + $0xa0] ss:$16 sps:$4 sm:$0xff]  }
 0x246   : > { %4727 = vst [vmem:[#allocation23_spill] sm:$0xff] %v3754_v59 }
 0x248   : > { %1196 = vmatpush1.bf16.msra.mxu0 %v3392_v56  ;;  %1237 = vmatpush1.bf16.msra.mxu1 %v3428_v62  ;;  %v3742_v56 = vld [vmem:[%s4584_s2 + $0xa4] ss:$16 sps:$4 sm:$0xff]   ;;  %v3772_v62 = vld [vmem:[%s4584_s2 + $0x8c] ss:$16 sps:$4 sm:$0xff]  }
 0x249   : > { %1197 = vmatprep.subr.bf16.mxu0 %v4700_v39  ;;  %1238 = vmatprep.subr.bf16.mxu1 %v4701_v26  ;;  %4725 = vst [vmem:[#allocation22_spill] sm:$0xff] %v3742_v56  ;;  %4730 = vst [vmem:[#allocation3_spill] sm:$0xff] %v3772_v62  ;;  %v3792_v39 = vld [vmem:[%s4584_s2 + $0x60] ss:$16 sps:$4 sm:$0xff]   ;;  %v3799_v26 = vld [vmem:[%s4584_s2 + $0x44] ss:$16 sps:$4 sm:$0xff]  }
 0x24a   : > { %4733 = vst [vmem:[#allocation10_spill] sm:$0xff] %v3792_v39  ;;  %4734 = vst [vmem:[#allocation5_spill] sm:$0xff] %v3799_v26 }
 0x24c   : > { %1198 = vmatpush1.bf16.msra.mxu0 %v4702_v23  ;;  %1239 = vmatpush1.bf16.msra.mxu1 %v3449_v3  ;;  %v3692_v3 = vld [vmem:[%s4584_s2 + $0xe4] ss:$16 sps:$4 sm:$0xff]   ;;  %v4735_v23 = vld [vmem:[#allocation12_spill] sm:$0xff] }
 0x24d   : > { %v2734_v45 = vpop.eup %2733  ;;  %1199 = vmatprep.subr.bf16.mxu0 %v4703_v19  ;;  %1240 = vmatprep.subr.bf16.mxu1 %v3455_v60  ;;  %v3760_v60 = vld [vmem:[%s4584_s2 + $0xa8] ss:$16 sps:$4 sm:$0xff]  }
 0x24e   : > { %v1072_v46 = vmul.f32 %v2734_v45, %v2732_v44  ;;  %4728 = vst [vmem:[#allocation24_spill] sm:$0xff] %v3760_v60  ;;  %v4736_v19 = vld [vmem:[#allocation18_spill] sm:$0xff] }
 0x250   : > { %1200 = vmatpush1.bf16.msra.mxu0 %v3440_v0  ;;  %1241 = vmatpush1.bf16.msra.mxu1 %v3464_v61  ;;  %v3685_v47 = vsel %vm1084_vm3, %v1072_v46, %v3573_v22  ;;  %v3766_v61 = vld [vmem:[%s4584_s2 + $0x84] ss:$16 sps:$4 sm:$0xff]   ;;  %v3778_v0 = vld [vmem:[%s4584_s2 + $0x80] ss:$16 sps:$4 sm:$0xff]  }
 0x251   : > { %v1184_v48 = vpack.c.bf16 %v3685_v47, %v3685_v47  ;;  %1339 = vmatprep.subr.bf16.mxu0 %v3692_v3  ;;  %1380 = vmatprep.subr.bf16.mxu1 %v3698_v49  ;;  %4729 = vst [vmem:[#allocation6_spill] sm:$0xff] %v3766_v61  ;;  %4731 = vst [vmem:[#allocation7_spill] sm:$0xff] %v3778_v0  ;;  %v4737_v22 = vld [vmem:[#allocation13_spill] sm:$0xff] }
 0x253   : > { %1218 = vmatmul.mubr.bf16.vlgmr.msra.gmra.mxu0 %v1184_v48  ;;  %1259 = vmatmul.mubr.bf16.vlgmr.msra.gmra.mxu1 %v1184_v48 }
 0x254   : > { %1340 = vmatpush1.bf16.msra.mxu0 %v3704_v50  ;;  %1381 = vmatpush1.bf16.msra.mxu1 %v3710_v51 }
 0x255   : > { %1341 = vmatprep.subr.bf16.mxu0 %v3716_v52  ;;  %1382 = vmatprep.subr.bf16.mxu1 %v3722_v53 }
 0x256   : > { %1371 = vmatprep.mubr.bf16.mxu0 %v4696_v63  ;;  %1412 = vmatprep.mubr.bf16.mxu1 %v4696_v63 }
 0x258   : > { %1342 = vmatpush1.bf16.msra.mxu0 %v3730_v54  ;;  %1383 = vmatpush1.bf16.msra.mxu1 %v3736_v55 }
 0x259   : > { %1343 = vmatprep.subr.bf16.mxu0 %v3742_v56  ;;  %1384 = vmatprep.subr.bf16.mxu1 %v3748_v58 }
 0x25c   : > { %1344 = vmatpush1.bf16.msra.mxu0 %v3754_v59  ;;  %1385 = vmatpush1.bf16.msra.mxu1 %v3760_v60 }
 0x25d   : > { %1345 = vmatprep.subr.bf16.mxu0 %v3766_v61  ;;  %1386 = vmatprep.subr.bf16.mxu1 %v3772_v62 }
 0x260   : > { %1346 = vmatpush1.bf16.msra.mxu0 %v3778_v0  ;;  %1387 = vmatpush1.bf16.msra.mxu1 %v4704_v1  ;;  %v4738_v1 = vld [vmem:[#allocation19_spill] sm:$0xff] }
 0x261   : > { %1347 = vmatprep.subr.bf16.mxu0 %v3785_v20  ;;  %1388 = vmatprep.subr.bf16.mxu1 %v4706_v4  ;;  %v4739_v4 = vld [vmem:[#allocation16_spill] sm:$0xff] }
 0x264   : > { %1348 = vmatpush1.bf16.msra.mxu0 %v3792_v39  ;;  %1389 = vmatpush1.bf16.msra.mxu1 %v4708_v6  ;;  %v4740_v6 = vld [vmem:[#allocation20_spill] sm:$0xff] }
 0x265   : > { %1349 = vmatprep.subr.bf16.mxu0 %v3799_v26  ;;  %1390 = vmatprep.subr.bf16.mxu1 %v4710_v8  ;;  %v4741_v8 = vld [vmem:[#allocation17_spill] sm:$0xff] }
 0x268   : > { %1350 = vmatpush1.bf16.msra.mxu0 %v4711_v9  ;;  %1391 = vmatpush1.bf16.msra.mxu1 %v4712_v10  ;;  %v4742_v9 = vld [vmem:[#allocation21_spill] sm:$0xff]  ;;  %v2494_v10 = vld [vmem:[%s3064_s22 + $0x40] sm:$0xff] }
 0x269   : > { %1351 = vmatprep.subr.bf16.mxu0 %v4713_v11  ;;  %1392 = vmatprep.subr.bf16.mxu1 %v4714_v12 }
 0x26c   : > { %1352 = vmatpush1.bf16.msra.mxu0 %v4735_v23  ;;  %1393 = vmatpush1.bf16.msra.mxu1 %v4736_v19 }
 0x26d   : > { %1353 = vmatprep.subr.bf16.mxu0 %v4737_v22  ;;  %1394 = vmatprep.subr.bf16.mxu1 %v4738_v1  ;;  %v1324_v22 = vstv %s1323_s8  ;;  %s1813_s8 = sadd.s32 2, %s3051_s16 }
 0x26e   : > { %vm1325_vm4 = vcmp.eq.s32.totalorder %v1324_v22, 1  ;;  %v3908_v22 = vld [vmem:[%s4584_s2 + $0x1a8] ss:$16 sps:$4 sm:$0xff]   ;;  %p4296_p0 = scmp.lt.s32.totalorder %s1813_s8, 20  ;;  %s2059_s8 = sadd.s32 1, %s3051_s16 }
 0x26f   : > { %p4444_p2 = scmp.lt.s32.totalorder %s2059_s8, 20  ;;  %s2302_s8 = sadd.s32 6, %s3048_s14 }
 0x270   : > { %1354 = vmatpush1.bf16.msra.mxu0 %v4739_v4  ;;  %1395 = vmatpush1.bf16.msra.mxu1 %v4740_v6  ;;  %s1820_s10 = scalar_select %p4296_p0, 1, 0 }
 0x271   : > { %1431 = vmatprep.subr.bf16.mxu0 %v4741_v8  ;;  %1472 = vmatprep.subr.bf16.mxu1 %v4742_v9  ;;  %s2066_s23 = scalar_select %p4444_p2, 1, 0 }
 0x272   : > { %p2303_p3 = scmp.lt.s32.totalorder %s2302_s8, 20 }
 0x273   : > { %s2310_s14 = scalar_select %p186_p4, 1, 0 }
 0x274   : > { %s2305_s9 = scalar_select %p2303_p3, 1, 0 }
 0x275   : > { %p2560_p4 = scmp.ne.s32.totalorder %s3043_s13, 2 }
 0x2f3   : > { %v1127_v11 = vpop.f32.mrf.mxu0  ;;  %v1168_v12 = vpop.f32.mrf.mxu1 }
 0x2f4   : > { %v1175_v38 = vadd.f32 %v2494_v10, %v1127_v11  ;;  %v1177_v13 = vadd.f32 %v2496_v57, %v1168_v12 }
 0x2f5   : > { %v1129_v29 = vpop.f32.mrf.mxu0  ;;  %v1170_v28 = vpop.f32.mrf.mxu1 }
 0x2f6   : > { %v2502_v33 = vmul.f32 -1.442695, %v1175_v38  ;;  %v1176_v35 = vadd.f32 %v2495_v24, %v1129_v29  ;;  %v2504_v7 = vmul.f32 -1.442695, %v1177_v13  ;;  %v1178_v30 = vadd.f32 %v2497_v14, %v1170_v28  ;;  %v2500_v29 = vld [vmem:[%s3069_s26 + $0x90] sm:$0xff] }
 0x2f7   : > { %v1131_v17 = vpop.f32.mrf.mxu0  ;;  %v1172_v5 = vpop.f32.mrf.mxu1 }
 0x2f8   : > { %2735 = vpow2.f32 %v2502_v33  ;;  %v2503_v31 = vmul.f32 -1.442695, %v1176_v35  ;;  %v2501_v35 = vld [vmem:[%s3069_s26 + $0x98] sm:$0xff] }
 0x2f9   : > { %v1132_v21 = vpop.f32.mrf.mxu0  ;;  %v1173_v15 = vpop.f32.mrf.mxu1 }
 0x2fa   : > { %2737 = vpow2.f32 %v2503_v31 }
 0x2fb   : > { %2739 = vpow2.f32 %v2504_v7 }
 0x305   : > { %v2736_v2 = vpop.eup %2735 }
 0x306   : > { %v1280_v18 = vadd.f32 1.0, %v2736_v2 }
 0x307   : > { %v2738_v34 = vpop.eup %2737 }
 0x308   : > { %2741 = vrcp.f32 %v1280_v18  ;;  %v1281_v36 = vadd.f32 1.0, %v2738_v34  ;;  %v2740_v32 = vpop.eup %2739  ;;  %v3861_v18 = vld [vmem:[%s4584_s2 + $0x1c4] ss:$16 sps:$4 sm:$0xff]   ;;  %v3867_v34 = vld [vmem:[%s4584_s2 + $0x1cc] ss:$16 sps:$4 sm:$0xff]  }
 0x309   : > { %2743 = vtanh.f32 %v1178_v30  ;;  %v1282_v4 = vadd.f32 1.0, %v2740_v32  ;;  %v3849_v30 = vld [vmem:[%s4584_s2 + $0x1e0] ss:$16 sps:$4 sm:$0xff]   ;;  %v3895_v32 = vld [vmem:[%s4584_s2 + $0x1ac] ss:$16 sps:$4 sm:$0xff]  }
 0x30a   : > { %2745 = vrcp.f32 %v1281_v36 }
 0x313   : > { %v1219_v42 = vpop.f32.mrf.mxu0  ;;  %v1260_v43 = vpop.f32.mrf.mxu1 }
 0x314   : > { %v1267_v40 = vadd.f32 %v2498_v37, %v1219_v42  ;;  %v1269_v33 = vadd.f32 %v2500_v29, %v1260_v43  ;;  %v3877_v37 = vld [vmem:[%s4584_s2 + $0x1c0] ss:$16 sps:$4 sm:$0xff]   ;;  %v3883_v42 = vld [vmem:[%s4584_s2 + $0x1c8] ss:$16 sps:$4 sm:$0xff]   ;;  %v3972_v29 = vld [vmem:[%s4584_s2 + $0x14c] ss:$16 sps:$4 sm:$0xff]  }
 0x315   : > { %v2742_v44 = vpop.eup %2741  ;;  %v1221_v45 = vpop.f32.mrf.mxu0 }
 0x316   : > { %v1262_v46 = vpop.f32.mrf.mxu1  ;;  %v2744_v48 = vpop.eup %2743  ;;  %v2505_v23 = vmul.f32 -1.442695, %v1267_v40  ;;  %v1268_v19 = vadd.f32 %v2499_v27, %v1221_v45  ;;  %v2507_v17 = vmul.f32 -1.442695, %v1269_v33  ;;  %v3889_v27 = vld [vmem:[%s4584_s2 + $0x1a4] ss:$16 sps:$4 sm:$0xff]  }
 0x317   : > { %v2746_v1 = vpop.eup %2745  ;;  %v1223_v6 = vpop.f32.mrf.mxu0  ;;  %v1309_v10 = vmul.f32 %v2744_v48, %v2742_v44  ;;  %v1270_v31 = vadd.f32 %v2501_v35, %v1262_v46  ;;  %v1329_v44 = vstv %s1328_s24  ;;  %v3978_v33 = vld [vmem:[%s4584_s2 + $0x140] ss:$16 sps:$4 sm:$0xff]   ;;  %v3984_v35 = vld [vmem:[%s4584_s2 + $0x148] ss:$16 sps:$4 sm:$0xff]  }
 0x318   : > { %v1264_v8 = vpop.f32.mrf.mxu1  ;;  %v1307_v9 = vmul.f32 %v2746_v1, %v3630_v16  ;;  %2747 = vpow2.f32 %v2505_v23  ;;  %v2506_v11 = vmul.f32 -1.442695, %v1268_v19  ;;  %v3902_v19 = vld [vmem:[%s4584_s2 + $0x1a0] ss:$16 sps:$4 sm:$0xff]   ;;  %v3914_v1 = vld [vmem:[%s4584_s2 + $0x184] ss:$16 sps:$4 sm:$0xff]  }
 0x319   : > { %v1224_v12 = vpop.f32.mrf.mxu0  ;;  %vm1330_vm5 = vcmp.eq.s32.totalorder %v1329_v44, 1  ;;  %v3926_v8 = vld [vmem:[%s4584_s2 + $0x180] ss:$16 sps:$4 sm:$0xff]   ;;  %v4068_v44 = vld [vmem:[%s4584_s2 + $0x6c] ss:$16 sps:$4 sm:$0xff]  }
 0x31a   : > { %v1265_v24 = vpop.f32.mrf.mxu1  ;;  %v1310_v38 = vadd.f32 %v1309_v10, %v1307_v9  ;;  %2749 = vpow2.f32 %v2506_v11  ;;  %v3932_v9 = vld [vmem:[%s4584_s2 + $0x188] ss:$16 sps:$4 sm:$0xff]   ;;  %v3942_v11 = vld [vmem:[%s4584_s2 + $0x164] ss:$16 sps:$4 sm:$0xff]   ;;  %v3948_v12 = vld [vmem:[%s4584_s2 + $0x16c] ss:$16 sps:$4 sm:$0xff]  }
 0x31b   : > { %2751 = vrcp.f32 %v1282_v4  ;;  %v3920_v4 = vld [vmem:[%s4584_s2 + $0x18c] ss:$16 sps:$4 sm:$0xff]   ;;  %v3954_v24 = vld [vmem:[%s4584_s2 + $0x160] ss:$16 sps:$4 sm:$0xff]   ;;  %4746 = vst [vmem:[#allocation8_spill] sm:$0xff] %v4068_v44 }
 0x31c   : > { %2753 = vtanh.f32 %v1310_v38  ;;  %v3832_v28 = vsel %vm1325_vm4, %v1310_v38, %v3630_v16  ;;  %v3966_v38 = vld [vmem:[%s4584_s2 + $0x144] ss:$16 sps:$4 sm:$0xff]  }
 0x31d   : > { %2755 = vpow2.f32 %v2507_v17  ;;  %v3990_v17 = vld [vmem:[%s4584_s2 + $0x124] ss:$16 sps:$4 sm:$0xff]  }
 0x325   : > { %v2748_v5 = vpop.eup %2747 }
 0x326   : > { %v1298_v21 = vadd.f32 1.0, %v2748_v5  ;;  %v3996_v5 = vld [vmem:[%s4584_s2 + $0x12c] ss:$16 sps:$4 sm:$0xff]  }
 0x327   : > { %v2750_v15 = vpop.eup %2749 }
 0x328   : > { %v2752_v57 = vpop.eup %2751  ;;  %2757 = vrcp.f32 %v1298_v21  ;;  %v1299_v13 = vadd.f32 1.0, %v2750_v15  ;;  %v4002_v21 = vld [vmem:[%s4584_s2 + $0x120] ss:$16 sps:$4 sm:$0xff]   ;;  %v4008_v15 = vld [vmem:[%s4584_s2 + $0x128] ss:$16 sps:$4 sm:$0xff]  }
 0x329   : > { %v2754_v14 = vpop.eup %2753  ;;  %2759 = vtanh.f32 %v1270_v31 }
 0x32a   : > { %2761 = vrcp.f32 %v1299_v13  ;;  %v1312_v7 = vmul.f32 %v2754_v14, %v2752_v57  ;;  %v2756_v36 = vpop.eup %2755  ;;  %v4014_v13 = vld [vmem:[%s4584_s2 + $0x104] ss:$16 sps:$4 sm:$0xff]   ;;  %v4020_v14 = vld [vmem:[%s4584_s2 + $0x10c] ss:$16 sps:$4 sm:$0xff]  }
 0x32b   : > { %v1300_v46 = vadd.f32 1.0, %v2756_v36  ;;  %v4032_v36 = vld [vmem:[%s4584_s2 + $0x108] ss:$16 sps:$4 sm:$0xff]  }
 0x32c   : > { %v3838_v16 = vsel %vm1325_vm4, %v1312_v7, %v3636_v25  ;;  %v3855_v25 = vld [vmem:[%s4584_s2 + $0x1e8] ss:$16 sps:$4 sm:$0xff]  }
 0x32d   : > { %v1338_v2 = vpack.c.bf16 %v3838_v16, %v3838_v16  ;;  %2763 = vrcp.f32 %v1300_v46  ;;  %v4082_v46 = vld [vmem:[%s4584_s2 + $0x4c] ss:$16 sps:$4 sm:$0xff]  }
 0x32e   : > { %4748 = vst [vmem:[#allocation9_spill] sm:$0xff] %v4082_v46 }
 0x32f   : > { %1372 = vmatmul.mubr.bf16.vlgmr.msra.gmra.mxu0 %v1338_v2  ;;  %1413 = vmatmul.mubr.bf16.vlgmr.msra.gmra.mxu1 %v1338_v2  ;;  %v4026_v2 = vld [vmem:[%s4584_s2 + $0x100] ss:$16 sps:$4 sm:$0xff]  }
 0x330   : > { %1432 = vmatpush1.bf16.msra.mxu0 %v3849_v30  ;;  %1473 = vmatpush1.bf16.msra.mxu1 %v3855_v25 }
 0x331   : > { %1433 = vmatprep.subr.bf16.mxu0 %v3861_v18  ;;  %1474 = vmatprep.subr.bf16.mxu1 %v3867_v34 }
 0x332   : > { %1463 = vmatprep.mubr.bf16.mxu0 %v4696_v63  ;;  %1504 = vmatprep.mubr.bf16.mxu1 %v4696_v63 }
 0x334   : > { %1434 = vmatpush1.bf16.msra.mxu0 %v3877_v37  ;;  %1475 = vmatpush1.bf16.msra.mxu1 %v3883_v42 }
 0x335   : > { %v2758_v43 = vpop.eup %2757  ;;  %1435 = vmatprep.subr.bf16.mxu0 %v3889_v27  ;;  %1476 = vmatprep.subr.bf16.mxu1 %v3895_v32 }
 0x336   : > { %v2760_v40 = vpop.eup %2759 }
 0x337   : > { %v2762_v45 = vpop.eup %2761  ;;  %v1315_v23 = vmul.f32 %v2760_v40, %v2758_v43 }
 0x338   : > { %v1313_v48 = vmul.f32 %v2762_v45, %v3665_v41  ;;  %1436 = vmatpush1.bf16.msra.mxu0 %v3902_v19  ;;  %1477 = vmatpush1.bf16.msra.mxu1 %v3908_v22  ;;  %v4075_v45 = vld [vmem:[%s4584_s2 + $0x68] ss:$16 sps:$4 sm:$0xff]  }
 0x339   : > { %1437 = vmatprep.subr.bf16.mxu0 %v3914_v1  ;;  %1478 = vmatprep.subr.bf16.mxu1 %v3920_v4  ;;  %4747 = vst [vmem:[#allocation14_spill] sm:$0xff] %v4075_v45 }
 0x33a   : > { %v1316_v6 = vadd.f32 %v1315_v23, %v1313_v48  ;;  %v2764_v31 = vpop.eup %2763  ;;  %v4088_v48 = vld [vmem:[%s4584_s2 + $0x40] ss:$16 sps:$4 sm:$0xff]   ;;  %v4094_v23 = vld [vmem:[%s4584_s2 + $0x48] ss:$16 sps:$4 sm:$0xff]  }
 0x33b   : > { %4749 = vst [vmem:[#allocation15_spill] sm:$0xff] %v4088_v48  ;;  %4750 = vst [vmem:[#allocation12_spill] sm:$0xff] %v4094_v23 }
 0x33c   : > { %2765 = vtanh.f32 %v1316_v6  ;;  %1438 = vmatpush1.bf16.msra.mxu0 %v3926_v8  ;;  %1479 = vmatpush1.bf16.msra.mxu1 %v3932_v9  ;;  %v3937_v10 = vsel %vm1330_vm5, %v1316_v6, %v3665_v41  ;;  %v3960_v41 = vld [vmem:[%s4584_s2 + $0x168] ss:$16 sps:$4 sm:$0xff]   ;;  %v4100_v6 = vld [vmem:[%s4584_s2 + $0x24] ss:$16 sps:$4 sm:$0xff]  }
 0x33d   : > { %1439 = vmatprep.subr.bf16.mxu0 %v3942_v11  ;;  %1480 = vmatprep.subr.bf16.mxu1 %v3948_v12  ;;  %4751 = vst [vmem:[#allocation18_spill] sm:$0xff] %v4100_v6 }
 0x340   : > { %1440 = vmatpush1.bf16.msra.mxu0 %v3954_v24  ;;  %1481 = vmatpush1.bf16.msra.mxu1 %v3960_v41 }
 0x341   : > { %1441 = vmatprep.subr.bf16.mxu0 %v3966_v38  ;;  %1482 = vmatprep.subr.bf16.mxu1 %v3972_v29 }
 0x344   : > { %1442 = vmatpush1.bf16.msra.mxu0 %v3978_v33  ;;  %1483 = vmatpush1.bf16.msra.mxu1 %v3984_v35 }
 0x345   : > { %1443 = vmatprep.subr.bf16.mxu0 %v3990_v17  ;;  %1484 = vmatprep.subr.bf16.mxu1 %v3996_v5 }
 0x348   : > { %1444 = vmatpush1.bf16.msra.mxu0 %v4002_v21  ;;  %1485 = vmatpush1.bf16.msra.mxu1 %v4008_v15 }
 0x349   : > { %v2766_v57 = vpop.eup %2765  ;;  %1445 = vmatprep.subr.bf16.mxu0 %v4014_v13  ;;  %1486 = vmatprep.subr.bf16.mxu1 %v4020_v14 }
 0x34a   : > { %v1318_v7 = vmul.f32 %v2766_v57, %v2764_v31  ;;  %v4106_v31 = vld [vmem:[%s4584_s2 + $0x2c] ss:$16 sps:$4 sm:$0xff]   ;;  %v4112_v57 = vld [vmem:[%s4584_s2 + $0x20] ss:$16 sps:$4 sm:$0xff]  }
 0x34b   : > { %4752 = vst [vmem:[#allocation13_spill] sm:$0xff] %v4106_v31  ;;  %4753 = vst [vmem:[#allocation19_spill] sm:$0xff] %v4112_v57 }
 0x34c   : > { %1446 = vmatpush1.bf16.msra.mxu0 %v4026_v2  ;;  %1487 = vmatpush1.bf16.msra.mxu1 %v4032_v36  ;;  %v4037_v43 = vsel %vm1330_vm5, %v1318_v7, %v3685_v47  ;;  %v4061_v47 = vld [vmem:[%s4584_s2 + $0x88] ss:$16 sps:$4 sm:$0xff]  }
 0x34d   : > { %v1430_v40 = vpack.c.bf16 %v4037_v43, %v4037_v43  ;;  %1585 = vmatprep.subr.bf16.mxu0 %v3692_v3  ;;  %1626 = vmatprep.subr.bf16.mxu1 %v3698_v49  ;;  %4745 = vst [vmem:[#allocation11_spill] sm:$0xff] %v4061_v47  ;;  %v4118_v7 = vld [vmem:[%s4584_s2 + $0x28] ss:$16 sps:$4 sm:$0xff]  }
 0x34e   : > { %4754 = vst [vmem:[#allocation16_spill] sm:$0xff] %v4118_v7 }
 0x34f   : > { %1464 = vmatmul.mubr.bf16.vlgmr.msra.gmra.mxu0 %v1430_v40  ;;  %1505 = vmatmul.mubr.bf16.vlgmr.msra.gmra.mxu1 %v1430_v40  ;;  %v4124_v40 = vld [vmem:[%s4584_s2 + $0x4] ss:$16 sps:$4 sm:$0xff]  }
 0x350   : > { %1586 = vmatpush1.bf16.msra.mxu0 %v3704_v50  ;;  %1627 = vmatpush1.bf16.msra.mxu1 %v3710_v51  ;;  %4755 = vst [vmem:[#allocation20_spill] sm:$0xff] %v4124_v40 }
 0x351   : > { %1587 = vmatprep.subr.bf16.mxu0 %v3716_v52  ;;  %1628 = vmatprep.subr.bf16.mxu1 %v3722_v53 }
 0x352   : > { %1617 = vmatprep.mubr.bf16.mxu0 %v4696_v63  ;;  %1658 = vmatprep.mubr.bf16.mxu1 %v4696_v63 }
 0x354   : > { %1588 = vmatpush1.bf16.msra.mxu0 %v3730_v54  ;;  %1629 = vmatpush1.bf16.msra.mxu1 %v3736_v55 }
 0x355   : > { %1589 = vmatprep.subr.bf16.mxu0 %v3742_v56  ;;  %1630 = vmatprep.subr.bf16.mxu1 %v3748_v58 }
 0x358   : > { %1590 = vmatpush1.bf16.msra.mxu0 %v3754_v59  ;;  %1631 = vmatpush1.bf16.msra.mxu1 %v3760_v60 }
 0x359   : > { %1591 = vmatprep.subr.bf16.mxu0 %v3766_v61  ;;  %1632 = vmatprep.subr.bf16.mxu1 %v3772_v62  ;;  %v2511_v61 = vld [vmem:[%s3064_s22 + $0x78] sm:$0xff] }
 0x35c   : > { %1592 = vmatpush1.bf16.msra.mxu0 %v3778_v0  ;;  %1633 = vmatpush1.bf16.msra.mxu1 %v4061_v47 }
 0x35d   : > { %1593 = vmatprep.subr.bf16.mxu0 %v3785_v20  ;;  %1634 = vmatprep.subr.bf16.mxu1 %v4068_v44 }
 0x360   : > { %1594 = vmatpush1.bf16.msra.mxu0 %v3792_v39  ;;  %1635 = vmatpush1.bf16.msra.mxu1 %v4075_v45 }
 0x361   : > { %1595 = vmatprep.subr.bf16.mxu0 %v3799_v26  ;;  %1636 = vmatprep.subr.bf16.mxu1 %v4082_v46 }
 0x364   : > { %1596 = vmatpush1.bf16.msra.mxu0 %v4088_v48  ;;  %1637 = vmatpush1.bf16.msra.mxu1 %v4094_v23 }
 0x365   : > { %1597 = vmatprep.subr.bf16.mxu0 %v4100_v6  ;;  %1638 = vmatprep.subr.bf16.mxu1 %v4106_v31  ;;  %v4130_v31 = vld [vmem:[%s4584_s2 + $0xc] ss:$16 sps:$4 sm:$0xff]  }
 0x366   : > { %4756 = vst [vmem:[#allocation17_spill] sm:$0xff] %v4130_v31 }
 0x368   : > { %1598 = vmatpush1.bf16.msra.mxu0 %v4112_v57  ;;  %1639 = vmatpush1.bf16.msra.mxu1 %v4118_v7  ;;  %v4136_v57 = vld [vmem:[%s4584_s2] ss:$16 sps:$4 sm:$0xff]   ;;  %v4142_v7 = vld [vmem:[%s4584_s2 + $0x8] ss:$16 sps:$4 sm:$0xff]  }
 0x369   : > { %1599 = vmatprep.subr.bf16.mxu0 %v4124_v40  ;;  %1640 = vmatprep.subr.bf16.mxu1 %v4130_v31  ;;  %4757 = vst [vmem:[#allocation21_spill] sm:$0xff] %v4136_v57  ;;  %4758 = vst [vmem:[#allocation26_spill] sm:$0xff] %v4142_v7  ;;  %v4148_v40 = vld [vmem:[%s4584_s2 + $0x1e4] ss:$16 sps:$4 sm:$0xff]   ;;  %v4154_v31 = vld [vmem:[%s4584_s2 + $0x1ec] ss:$16 sps:$4 sm:$0xff]  }
 0x36a   : > { %4759 = vst [vmem:[#allocation27_spill] sm:$0xff] %v4148_v40  ;;  %4760 = vst [vmem:[#allocation28_spill] sm:$0xff] %v4154_v31 }
 0x36c   : > { %1600 = vmatpush1.bf16.msra.mxu0 %v4136_v57  ;;  %1641 = vmatpush1.bf16.msra.mxu1 %v4142_v7  ;;  %v2508_v57 = vld [vmem:[%s3064_s22 + $0x60] sm:$0xff]  ;;  %v2509_v7 = vld [vmem:[%s3064_s22 + $0x68] sm:$0xff] }
 0x36d   : > { %1677 = vmatprep.subr.bf16.mxu0 %v4148_v40  ;;  %1718 = vmatprep.subr.bf16.mxu1 %v4154_v31  ;;  %v2510_v31 = vld [vmem:[%s3064_s22 + $0x70] sm:$0xff] }
 0x3ef   : > { %v1373_v6 = vpop.f32.mrf.mxu0  ;;  %v1414_v23 = vpop.f32.mrf.mxu1 }
 0x3f0   : > { %v1421_v48 = vadd.f32 %v2508_v57, %v1373_v6  ;;  %v1423_v62 = vadd.f32 %v2510_v31, %v1414_v23 }
 0x3f1   : > { %v1375_v46 = vpop.f32.mrf.mxu0  ;;  %v1416_v26 = vpop.f32.mrf.mxu1 }
 0x3f2   : > { %v2516_v45 = vmul.f32 -1.442695, %v1421_v48  ;;  %v1422_v39 = vadd.f32 %v2509_v7, %v1375_v46  ;;  %v2518_v60 = vmul.f32 -1.442695, %v1423_v62  ;;  %v1424_v6 = vadd.f32 %v2511_v61, %v1416_v26 }
 0x3f3   : > { %v1377_v44 = vpop.f32.mrf.mxu0  ;;  %v1418_v40 = vpop.f32.mrf.mxu1  ;;  %v1570_v48 = vstv %s1569_s28 }
 0x3f4   : > { %2767 = vpow2.f32 %v2516_v45  ;;  %v2517_v20 = vmul.f32 -1.442695, %v1422_v39  ;;  %v2513_v39 = vld [vmem:[%s3069_s26 + $0x68] sm:$0xff]  ;;  %vm1571_vm6 = vcmp.eq.s32.totalorder %v1570_v48, 1 }
 0x3f5   : > { %v1378_v47 = vpop.f32.mrf.mxu0  ;;  %v1419_v0 = vpop.f32.mrf.mxu1 }
 0x3f6   : > { %2769 = vpow2.f32 %v2517_v20  ;;  %v2512_v0 = vld [vmem:[%s3069_s26 + $0x60] sm:$0xff] }
 0x3f7   : > { %2771 = vpow2.f32 %v2518_v60 }
 0x401   : > { %v2768_v59 = vpop.eup %2767 }
 0x402   : > { %v1526_v57 = vadd.f32 1.0, %v2768_v59 }
 0x403   : > { %v2770_v58 = vpop.eup %2769 }
 0x404   : > { %2773 = vrcp.f32 %v1526_v57  ;;  %v1527_v44 = vadd.f32 1.0, %v2770_v58  ;;  %v2772_v61 = vpop.eup %2771 }
 0x405   : > { %2775 = vtanh.f32 %v1424_v6  ;;  %v1528_v31 = vadd.f32 1.0, %v2772_v61 }
 0x406   : > { %2777 = vrcp.f32 %v1527_v44 }
 0x40f   : > { %v1465_v62 = vpop.f32.mrf.mxu0  ;;  %v1506_v20 = vpop.f32.mrf.mxu1 }
 0x410   : > { %v1513_v59 = vadd.f32 %v2512_v0, %v1465_v62 }
 0x411   : > { %v2774_v26 = vpop.eup %2773  ;;  %v1467_v60 = vpop.f32.mrf.mxu0 }
 0x412   : > { %v1508_v47 = vpop.f32.mrf.mxu1  ;;  %v2776_v58 = vpop.eup %2775  ;;  %v2519_v45 = vmul.f32 -1.442695, %v1513_v59  ;;  %v1514_v46 = vadd.f32 %v2513_v39, %v1467_v60  ;;  %v2514_v39 = vld [vmem:[%s3069_s26 + $0x70] sm:$0xff]  ;;  %v2515_v60 = vld [vmem:[%s3069_s26 + $0x78] sm:$0xff] }
 0x413   : > { %v2778_v23 = vpop.eup %2777  ;;  %v1469_v7 = vpop.f32.mrf.mxu0  ;;  %v1555_v57 = vmul.f32 %v2776_v58, %v2774_v26  ;;  %v1515_v61 = vadd.f32 %v2514_v39, %v1506_v20  ;;  %v1516_v26 = vadd.f32 %v2515_v60, %v1508_v47 }
 0x414   : > { %v1510_v40 = vpop.f32.mrf.mxu1  ;;  %v1553_v6 = vmul.f32 %v2778_v23, %v3832_v28  ;;  %2779 = vpow2.f32 %v2519_v45  ;;  %v2520_v44 = vmul.f32 -1.442695, %v1514_v46 }
 0x415   : > { %v1470_v56 = vpop.f32.mrf.mxu0  ;;  %v2521_v7 = vmul.f32 -1.442695, %v1515_v61 }
 0x416   : > { %v1511_v0 = vpop.f32.mrf.mxu1  ;;  %v1556_v62 = vadd.f32 %v1555_v57, %v1553_v6  ;;  %2781 = vpow2.f32 %v2520_v44  ;;  %v1575_v6 = vstv %s1574_s4 }
 0x417   : > { %2783 = vrcp.f32 %v1528_v31  ;;  %vm1576_vm7 = vcmp.eq.s32.totalorder %v1575_v6, 1  ;;  %v4782_v6 = vld [vmem:[#allocation16_spill] sm:$0xff] }
 0x418   : > { %2785 = vtanh.f32 %v1556_v62  ;;  %v4174_v59 = vsel %vm1571_vm6, %v1556_v62, %v3832_v28 }
 0x419   : > { %2787 = vpow2.f32 %v2521_v7 }
 0x421   : > { %v2780_v23 = vpop.eup %2779 }
 0x422   : > { %v1544_v58 = vadd.f32 1.0, %v2780_v23 }
 0x423   : > { %v2782_v45 = vpop.eup %2781 }
 0x424   : > { %v2784_v56 = vpop.eup %2783  ;;  %2789 = vrcp.f32 %v1544_v58  ;;  %v1545_v46 = vadd.f32 1.0, %v2782_v45  ;;  %v4770_v58 = vld [vmem:[#allocation11_spill] sm:$0xff]  ;;  %v4771_v45 = vld [vmem:[#allocation4_spill] sm:$0xff] }
 0x425   : > { %v2786_v40 = vpop.eup %2785  ;;  %2791 = vtanh.f32 %v1516_v26 }
 0x426   : > { %2793 = vrcp.f32 %v1545_v46  ;;  %v1558_v31 = vmul.f32 %v2786_v40, %v2784_v56  ;;  %v4774_v56 = vld [vmem:[#allocation14_spill] sm:$0xff]  ;;  %v4775_v46 = vld [vmem:[#allocation5_spill] sm:$0xff] }
 0x427   : > { %v4776_v40 = vld [vmem:[#allocation9_spill] sm:$0xff] }
 0x428   : > { %v4180_v28 = vsel %vm1571_vm6, %v1558_v31, %v3838_v16  ;;  %v2788_v16 = vpop.eup %2787  ;;  %v4777_v31 = vld [vmem:[#allocation15_spill] sm:$0xff] }
 0x429   : > { %v1584_v20 = vpack.c.bf16 %v4180_v28, %v4180_v28  ;;  %v1546_v44 = vadd.f32 1.0, %v2788_v16  ;;  %v4779_v16 = vld [vmem:[#allocation18_spill] sm:$0xff] }
 0x42b   : > { %1618 = vmatmul.mubr.bf16.vlgmr.msra.gmra.mxu0 %v1584_v20  ;;  %1659 = vmatmul.mubr.bf16.vlgmr.msra.gmra.mxu1 %v1584_v20  ;;  %2795 = vrcp.f32 %v1546_v44  ;;  %v4778_v20 = vld [vmem:[#allocation12_spill] sm:$0xff]  ;;  %v4784_v44 = vld [vmem:[#allocation17_spill] sm:$0xff] }
 0x42c   : > { %1678 = vmatpush1.bf16.msra.mxu0 %v3849_v30  ;;  %1719 = vmatpush1.bf16.msra.mxu1 %v3855_v25 }
 0x42d   : > { %1679 = vmatprep.subr.bf16.mxu0 %v3861_v18  ;;  %1720 = vmatprep.subr.bf16.mxu1 %v3867_v34 }
 0x42e   : > { %1709 = vmatprep.mubr.bf16.mxu0 %v4696_v63  ;;  %1750 = vmatprep.mubr.bf16.mxu1 %v4696_v63 }
 0x430   : > { %1680 = vmatpush1.bf16.msra.mxu0 %v3877_v37  ;;  %1721 = vmatpush1.bf16.msra.mxu1 %v3883_v42 }
 0x431   : > { %v2790_v47 = vpop.eup %2789  ;;  %1681 = vmatprep.subr.bf16.mxu0 %v3889_v27  ;;  %1722 = vmatprep.subr.bf16.mxu1 %v3895_v32 }
 0x432   : > { %v2792_v48 = vpop.eup %2791 }
 0x433   : > { %v2794_v57 = vpop.eup %2793  ;;  %v1561_v62 = vmul.f32 %v2792_v48, %v2790_v47  ;;  %v4780_v47 = vld [vmem:[#allocation13_spill] sm:$0xff]  ;;  %v4781_v48 = vld [vmem:[#allocation19_spill] sm:$0xff] }
 0x434   : > { %v1559_v0 = vmul.f32 %v2794_v57, %v3937_v10  ;;  %1682 = vmatpush1.bf16.msra.mxu0 %v3902_v19  ;;  %1723 = vmatpush1.bf16.msra.mxu1 %v3908_v22  ;;  %v4783_v57 = vld [vmem:[#allocation20_spill] sm:$0xff] }
 0x435   : > { %1683 = vmatprep.subr.bf16.mxu0 %v3914_v1  ;;  %1724 = vmatprep.subr.bf16.mxu1 %v3920_v4 }
 0x436   : > { %v1562_v39 = vadd.f32 %v1561_v62, %v1559_v0  ;;  %v4785_v0 = vld [vmem:[#allocation21_spill] sm:$0xff]  ;;  %v4786_v62 = vld [vmem:[#allocation26_spill] sm:$0xff] }
 0x438   : > { %2797 = vtanh.f32 %v1562_v39  ;;  %1684 = vmatpush1.bf16.msra.mxu0 %v3926_v8  ;;  %1725 = vmatpush1.bf16.msra.mxu1 %v3932_v9  ;;  %v4209_v61 = vsel %vm1576_vm7, %v1562_v39, %v3937_v10  ;;  %v2796_v10 = vpop.eup %2795  ;;  %v4787_v39 = vld [vmem:[#allocation27_spill] sm:$0xff] }
 0x439   : > { %1685 = vmatprep.subr.bf16.mxu0 %v3942_v11  ;;  %1726 = vmatprep.subr.bf16.mxu1 %v3948_v12 }
 0x43c   : > { %1686 = vmatpush1.bf16.msra.mxu0 %v3954_v24  ;;  %1727 = vmatpush1.bf16.msra.mxu1 %v3960_v41 }
 0x43d   : > { %1687 = vmatprep.subr.bf16.mxu0 %v3966_v38  ;;  %1728 = vmatprep.subr.bf16.mxu1 %v3972_v29 }
 0x440   : > { %1688 = vmatpush1.bf16.msra.mxu0 %v3978_v33  ;;  %1729 = vmatpush1.bf16.msra.mxu1 %v3984_v35 }
 0x441   : > { %1689 = vmatprep.subr.bf16.mxu0 %v3990_v17  ;;  %1730 = vmatprep.subr.bf16.mxu1 %v3996_v5 }
 0x444   : > { %1690 = vmatpush1.bf16.msra.mxu0 %v4002_v21  ;;  %1731 = vmatpush1.bf16.msra.mxu1 %v4008_v15 }
 0x445   : > { %v2798_v60 = vpop.eup %2797  ;;  %1691 = vmatprep.subr.bf16.mxu0 %v4014_v13  ;;  %1732 = vmatprep.subr.bf16.mxu1 %v4020_v14 }
 0x446   : > { %v1564_v7 = vmul.f32 %v2798_v60, %v2796_v10  ;;  %v4788_v10 = vld [vmem:[#allocation28_spill] sm:$0xff]  ;;  %v2522_v60 = vld [vmem:[%s3064_s22 + $0x80] sm:$0xff] }
 0x448   : > { %1692 = vmatpush1.bf16.msra.mxu0 %v4026_v2  ;;  %1733 = vmatpush1.bf16.msra.mxu1 %v4032_v36  ;;  %v4229_v23 = vsel %vm1576_vm7, %v1564_v7, %v4037_v43  ;;  %v4765_v43 = vld [vmem:[#allocation23_spill] sm:$0xff] }
 0x449   : > { %v1676_v26 = vpack.c.bf16 %v4229_v23, %v4229_v23  ;;  %1831 = vmatprep.subr.bf16.mxu0 %v3692_v3  ;;  %1872 = vmatprep.subr.bf16.mxu1 %v3698_v49  ;;  %v4763_v3 = vld [vmem:[#allocation22_spill] sm:$0xff]  ;;  %v4764_v49 = vld [vmem:[#allocation25_spill] sm:$0xff] }
 0x44b   : > { %1710 = vmatmul.mubr.bf16.vlgmr.msra.gmra.mxu0 %v1676_v26  ;;  %1751 = vmatmul.mubr.bf16.vlgmr.msra.gmra.mxu1 %v1676_v26 }
 0x44c   : > { %1832 = vmatpush1.bf16.msra.mxu0 %v3704_v50  ;;  %1873 = vmatpush1.bf16.msra.mxu1 %v3710_v51  ;;  %v4766_v50 = vld [vmem:[#allocation24_spill] sm:$0xff]  ;;  %v4767_v51 = vld [vmem:[#allocation6_spill] sm:$0xff] }
 0x44d   : > { %1833 = vmatprep.subr.bf16.mxu0 %v3716_v52  ;;  %1874 = vmatprep.subr.bf16.mxu1 %v3722_v53  ;;  %v4768_v52 = vld [vmem:[#allocation3_spill] sm:$0xff] }
 0x44e   : > { %1863 = vmatprep.mubr.bf16.mxu0 %v4696_v63  ;;  %1904 = vmatprep.mubr.bf16.mxu1 %v4696_v63  ;;  %v4769_v53 = vld [vmem:[#allocation7_spill] sm:$0xff] }
 0x450   : > { %1834 = vmatpush1.bf16.msra.mxu0 %v3730_v54  ;;  %1875 = vmatpush1.bf16.msra.mxu1 %v3736_v55  ;;  %v4772_v54 = vld [vmem:[#allocation8_spill] sm:$0xff]  ;;  %v4773_v55 = vld [vmem:[#allocation10_spill] sm:$0xff] }
 0x451   : > { %1835 = vmatprep.subr.bf16.mxu0 %v4763_v3  ;;  %1876 = vmatprep.subr.bf16.mxu1 %v4764_v49  ;;  %v2523_v3 = vld [vmem:[%s3064_s22 + $0x88] sm:$0xff] }
 0x454   : > { %1836 = vmatpush1.bf16.msra.mxu0 %v4765_v43  ;;  %1877 = vmatpush1.bf16.msra.mxu1 %v4766_v50 }
 0x455   : > { %1837 = vmatprep.subr.bf16.mxu0 %v4767_v51  ;;  %1878 = vmatprep.subr.bf16.mxu1 %v4768_v52 }
 0x458   : > { %1838 = vmatpush1.bf16.msra.mxu0 %v4769_v53  ;;  %1879 = vmatpush1.bf16.msra.mxu1 %v4770_v58 }
 0x459   : > { %1839 = vmatprep.subr.bf16.mxu0 %v4771_v45  ;;  %1880 = vmatprep.subr.bf16.mxu1 %v4772_v54 }
 0x45c   : > { %1840 = vmatpush1.bf16.msra.mxu0 %v4773_v55  ;;  %1881 = vmatpush1.bf16.msra.mxu1 %v4774_v56 }
 0x45d   : > { %1841 = vmatprep.subr.bf16.mxu0 %v4775_v46  ;;  %1882 = vmatprep.subr.bf16.mxu1 %v4776_v40 }
 0x460   : > { %1842 = vmatpush1.bf16.msra.mxu0 %v4777_v31  ;;  %1883 = vmatpush1.bf16.msra.mxu1 %v4778_v20 }
 0x461   : > { %1843 = vmatprep.subr.bf16.mxu0 %v4779_v16  ;;  %1884 = vmatprep.subr.bf16.mxu1 %v4780_v47 }
 0x464   : > { %1844 = vmatpush1.bf16.msra.mxu0 %v4781_v48  ;;  %1885 = vmatpush1.bf16.msra.mxu1 %v4782_v6 }
 0x465   : > { %1845 = vmatprep.subr.bf16.mxu0 %v4783_v57  ;;  %1886 = vmatprep.subr.bf16.mxu1 %v4784_v44 }
 0x468   : > { %1846 = vmatpush1.bf16.msra.mxu0 %v4785_v0  ;;  %1887 = vmatpush1.bf16.msra.mxu1 %v4786_v62  ;;  %v2525_v0 = vld [vmem:[%s3064_s22 + $0x98] sm:$0xff] }
 0x469   : > { %1923 = vmatprep.subr.bf16.mxu0 %v4787_v39  ;;  %1964 = vmatprep.subr.bf16.mxu1 %v4788_v10  ;;  %v2524_v10 = vld [vmem:[%s3064_s22 + $0x90] sm:$0xff] }
 0x4eb   : > { %v1619_v7 = vpop.f32.mrf.mxu0  ;;  %v1660_v26 = vpop.f32.mrf.mxu1 }
 0x4ec   : > { %v1667_v49 = vadd.f32 %v2522_v60, %v1619_v7  ;;  %v1669_v62 = vadd.f32 %v2524_v10, %v1660_v26  ;;  %v2527_v26 = vld [vmem:[%s3069_s26 + $0x48] sm:$0xff] }
 0x4ed   : > { %v1621_v43 = vpop.f32.mrf.mxu0  ;;  %v1662_v50 = vpop.f32.mrf.mxu1 }
 0x4ee   : > { %v2530_v51 = vmul.f32 -1.442695, %v1667_v49  ;;  %v1668_v52 = vadd.f32 %v2523_v3, %v1621_v43  ;;  %v2532_v44 = vmul.f32 -1.442695, %v1669_v62  ;;  %v1670_v60 = vadd.f32 %v2525_v0, %v1662_v50 }
 0x4ef   : > { %v1623_v53 = vpop.f32.mrf.mxu0  ;;  %v1664_v45 = vpop.f32.mrf.mxu1 }
 0x4f0   : > { %2799 = vpow2.f32 %v2530_v51  ;;  %v2531_v55 = vmul.f32 -1.442695, %v1668_v52  ;;  %v1816_v52 = vstv %s1815_s7  ;;  %s2061_s7 = scalar_select %p4422_p1, 1, 0 }
 0x4f1   : > { %v1624_v46 = vpop.f32.mrf.mxu0  ;;  %v1665_v39 = vpop.f32.mrf.mxu1  ;;  %vm1817_vm8 = vcmp.eq.s32.totalorder %v1816_v52, 1 }
 0x4f2   : > { %2801 = vpow2.f32 %v2531_v55  ;;  %v2526_v39 = vld [vmem:[%s3069_s26 + $0x40] sm:$0xff] }
 0x4f3   : > { %2803 = vpow2.f32 %v2532_v44 }
 0x4fd   : > { %v2800_v57 = vpop.eup %2799 }
 0x4fe   : > { %v1772_v7 = vadd.f32 1.0, %v2800_v57 }
 0x4ff   : > { %v2802_v6 = vpop.eup %2801 }
 0x500   : > { %2805 = vrcp.f32 %v1772_v7  ;;  %v1773_v3 = vadd.f32 1.0, %v2802_v6  ;;  %v2804_v0 = vpop.eup %2803 }
 0x501   : > { %2807 = vtanh.f32 %v1670_v60  ;;  %v1774_v45 = vadd.f32 1.0, %v2804_v0 }
 0x502   : > { %2809 = vrcp.f32 %v1773_v3 }
 0x50b   : > { %v1711_v62 = vpop.f32.mrf.mxu0  ;;  %v1752_v10 = vpop.f32.mrf.mxu1 }
 0x50c   : > { %v1759_v57 = vadd.f32 %v2526_v39, %v1711_v62 }
 0x50d   : > { %v2806_v49 = vpop.eup %2805  ;;  %v1713_v44 = vpop.f32.mrf.mxu0 }
 0x50e   : > { %v1754_v43 = vpop.f32.mrf.mxu1  ;;  %v2808_v6 = vpop.eup %2807  ;;  %v2533_v50 = vmul.f32 -1.442695, %v1759_v57  ;;  %v1760_v51 = vadd.f32 %v2527_v26, %v1713_v44  ;;  %v2528_v26 = vld [vmem:[%s3069_s26 + $0x50] sm:$0xff]  ;;  %v2529_v44 = vld [vmem:[%s3069_s26 + $0x58] sm:$0xff] }
 0x50f   : > { %v2810_v53 = vpop.eup %2809  ;;  %v1715_v55 = vpop.f32.mrf.mxu0  ;;  %v1801_v7 = vmul.f32 %v2808_v6, %v2806_v49  ;;  %v1761_v0 = vadd.f32 %v2528_v26, %v1752_v10  ;;  %v1762_v49 = vadd.f32 %v2529_v44, %v1754_v43 }
 0x510   : > { %v1756_v46 = vpop.f32.mrf.mxu1  ;;  %v1799_v60 = vmul.f32 %v2810_v53, %v4174_v59  ;;  %2811 = vpow2.f32 %v2533_v50  ;;  %v2534_v3 = vmul.f32 -1.442695, %v1760_v51 }
 0x511   : > { %v1716_v48 = vpop.f32.mrf.mxu0  ;;  %v2535_v55 = vmul.f32 -1.442695, %v1761_v0 }
 0x512   : > { %v1757_v39 = vpop.f32.mrf.mxu1  ;;  %v1802_v62 = vadd.f32 %v1801_v7, %v1799_v60  ;;  %2813 = vpow2.f32 %v2534_v3  ;;  %v2537_v7 = vld [vmem:[%s3064_s22 + $0xa8] sm:$0xff] }
 0x513   : > { %2815 = vrcp.f32 %v1774_v45 }
 0x514   : > { %2817 = vtanh.f32 %v1802_v62  ;;  %v4286_v57 = vsel %vm1817_vm8, %v1802_v62, %v4174_v59 }
 0x515   : > { %2819 = vpow2.f32 %v2535_v55 }
 0x51d   : > { %v2812_v53 = vpop.eup %2811 }
 0x51e   : > { %v1790_v6 = vadd.f32 1.0, %v2812_v53 }
 0x51f   : > { %v2814_v50 = vpop.eup %2813 }
 0x520   : > { %v2816_v48 = vpop.eup %2815  ;;  %2821 = vrcp.f32 %v1790_v6  ;;  %v1791_v51 = vadd.f32 1.0, %v2814_v50  ;;  %v2538_v50 = vld [vmem:[%s3064_s22 + $0xb0] sm:$0xff] }
 0x521   : > { %v2818_v46 = vpop.eup %2817  ;;  %2823 = vtanh.f32 %v1762_v49 }
 0x522   : > { %2825 = vrcp.f32 %v1791_v51  ;;  %v1804_v45 = vmul.f32 %v2818_v46, %v2816_v48  ;;  %v2539_v51 = vld [vmem:[%s3064_s22 + $0xb8] sm:$0xff] }
 0x524   : > { %v4292_v59 = vsel %vm1817_vm8, %v1804_v45, %v4180_v28  ;;  %v2820_v28 = vpop.eup %2819 }
 0x525   : > { %v1830_v10 = vpack.c.bf16 %v4292_v59, %v4292_v59 }
 0x527   : > { %1864 = vmatmul.mubr.bf16.vlgmr.msra.gmra.mxu0 %v1830_v10  ;;  %1905 = vmatmul.mubr.bf16.vlgmr.msra.gmra.mxu1 %v1830_v10 }
 0x528   : > { %1924 = vmatpush1.bf16.msra.mxu0 %v3849_v30  ;;  %1965 = vmatpush1.bf16.msra.mxu1 %v3855_v25  ;;  %v1821_v25 = vstv %s1820_s10 }
 0x529   : > { %1925 = vmatprep.subr.bf16.mxu0 %v3861_v18  ;;  %1966 = vmatprep.subr.bf16.mxu1 %v3867_v34  ;;  %v1792_v34 = vadd.f32 1.0, %v2820_v28  ;;  %vm1822_vm9 = vcmp.eq.s32.totalorder %v1821_v25, 1  ;;  %v2540_v25 = vld [vmem:[%s3069_s26 + $0x20] sm:$0xff] }
 0x52a   : > { %1955 = vmatprep.mubr.bf16.mxu0 %v4696_v63  ;;  %1996 = vmatprep.mubr.bf16.mxu1 %v4696_v63 }
 0x52b   : > { %2827 = vrcp.f32 %v1792_v34 }
 0x52c   : > { %1926 = vmatpush1.bf16.msra.mxu0 %v3877_v37  ;;  %1967 = vmatpush1.bf16.msra.mxu1 %v3883_v42 }
 0x52d   : > { %v2822_v43 = vpop.eup %2821  ;;  %1927 = vmatprep.subr.bf16.mxu0 %v3889_v27  ;;  %1968 = vmatprep.subr.bf16.mxu1 %v3895_v32 }
 0x52e   : > { %v2824_v30 = vpop.eup %2823 }
 0x52f   : > { %v2826_v18 = vpop.eup %2825  ;;  %v1807_v60 = vmul.f32 %v2824_v30, %v2822_v43 }
 0x530   : > { %v1805_v52 = vmul.f32 %v2826_v18, %v4209_v61  ;;  %1928 = vmatpush1.bf16.msra.mxu0 %v3902_v19  ;;  %1969 = vmatpush1.bf16.msra.mxu1 %v3908_v22 }
 0x531   : > { %1929 = vmatprep.subr.bf16.mxu0 %v3914_v1  ;;  %1970 = vmatprep.subr.bf16.mxu1 %v3920_v4  ;;  %v2959_v4 = vld [vmem:[%s4584_s2 + $0xe4] ss:$16 sps:$4 sm:$0xff]  }
 0x532   : > { %v1808_v37 = vadd.f32 %v1807_v60, %v1805_v52  ;;  %v2541_v52 = vld [vmem:[%s3069_s26 + $0x28] sm:$0xff] }
 0x534   : > { %2829 = vtanh.f32 %v1808_v37  ;;  %1930 = vmatpush1.bf16.msra.mxu0 %v3926_v8  ;;  %1971 = vmatpush1.bf16.msra.mxu1 %v3932_v9  ;;  %v4321_v42 = vsel %vm1822_vm9, %v1808_v37, %v4209_v61  ;;  %v2960_v8 = vld [vmem:[%s4584_s2 + $0xec] ss:$16 sps:$4 sm:$0xff]   ;;  %v2961_v9 = vld [vmem:[%s4584_s2 + $0xe0] ss:$16 sps:$4 sm:$0xff]  }
 0x535   : > { %1931 = vmatprep.subr.bf16.mxu0 %v3942_v11  ;;  %1972 = vmatprep.subr.bf16.mxu1 %v3948_v12  ;;  %v2962_v11 = vld [vmem:[%s4584_s2 + $0xe8] ss:$16 sps:$4 sm:$0xff]   ;;  %v2963_v12 = vld [vmem:[%s4584_s2 + $0xc4] ss:$16 sps:$4 sm:$0xff]  }
 0x536   : > { %v4792_v61 = vld [vmem:[#allocation16_spill] sm:$0xff] }
 0x538   : > { %1932 = vmatpush1.bf16.msra.mxu0 %v3954_v24  ;;  %1973 = vmatpush1.bf16.msra.mxu1 %v3960_v41  ;;  %v2828_v27 = vpop.eup %2827  ;;  %v2964_v24 = vld [vmem:[%s4584_s2 + $0xcc] ss:$16 sps:$4 sm:$0xff]   ;;  %v2965_v41 = vld [vmem:[%s4584_s2 + $0xc0] ss:$16 sps:$4 sm:$0xff]  }
 0x539   : > { %1933 = vmatprep.subr.bf16.mxu0 %v3966_v38  ;;  %1974 = vmatprep.subr.bf16.mxu1 %v3972_v29  ;;  %v2966_v38 = vld [vmem:[%s4584_s2 + $0xc8] ss:$16 sps:$4 sm:$0xff]   ;;  %v2967_v29 = vld [vmem:[%s4584_s2 + $0xa4] ss:$16 sps:$4 sm:$0xff]  }
 0x53c   : > { %1934 = vmatpush1.bf16.msra.mxu0 %v3978_v33  ;;  %1975 = vmatpush1.bf16.msra.mxu1 %v3984_v35  ;;  %v2968_v33 = vld [vmem:[%s4584_s2 + $0xac] ss:$16 sps:$4 sm:$0xff]   ;;  %v2969_v35 = vld [vmem:[%s4584_s2 + $0xa0] ss:$16 sps:$4 sm:$0xff]  }
 0x53d   : > { %1935 = vmatprep.subr.bf16.mxu0 %v3990_v17  ;;  %1976 = vmatprep.subr.bf16.mxu1 %v3996_v5  ;;  %v2970_v17 = vld [vmem:[%s4584_s2 + $0xa8] ss:$16 sps:$4 sm:$0xff]   ;;  %v2971_v5 = vld [vmem:[%s4584_s2 + $0x84] ss:$16 sps:$4 sm:$0xff]  }
 0x540   : > { %1936 = vmatpush1.bf16.msra.mxu0 %v4002_v21  ;;  %1977 = vmatpush1.bf16.msra.mxu1 %v4008_v15  ;;  %v2972_v21 = vld [vmem:[%s4584_s2 + $0x8c] ss:$16 sps:$4 sm:$0xff]   ;;  %v2973_v15 = vld [vmem:[%s4584_s2 + $0x80] ss:$16 sps:$4 sm:$0xff]  }
 0x541   : > { %v2830_v32 = vpop.eup %2829  ;;  %1937 = vmatprep.subr.bf16.mxu0 %v4014_v13  ;;  %1978 = vmatprep.subr.bf16.mxu1 %v4020_v14  ;;  %v2974_v13 = vld [vmem:[%s4584_s2 + $0x64] ss:$16 sps:$4 sm:$0xff]   ;;  %v2975_v14 = vld [vmem:[%s4584_s2 + $0x60] ss:$16 sps:$4 sm:$0xff]  }
 0x542   : > { %v1810_v19 = vmul.f32 %v2830_v32, %v2828_v27 }
 0x544   : > { %1938 = vmatpush1.bf16.msra.mxu0 %v4026_v2  ;;  %1979 = vmatpush1.bf16.msra.mxu1 %v4032_v36  ;;  %v4341_v22 = vsel %vm1822_vm9, %v1810_v19, %v4229_v23  ;;  %v2976_v2 = vld [vmem:[%s4584_s2 + $0x44] ss:$16 sps:$4 sm:$0xff]   ;;  %v4793_v23 = vld [vmem:[#allocation20_spill] sm:$0xff] }
 0x545   : > { %v1922_v1 = vpack.c.bf16 %v4341_v22, %v4341_v22  ;;  %2077 = vmatprep.subr.bf16.mxu0 %v2959_v4  ;;  %2118 = vmatprep.subr.bf16.mxu1 %v2960_v8  ;;  %v4791_v36 = vld [vmem:[#allocation19_spill] sm:$0xff] }
 0x547   : > { %1956 = vmatmul.mubr.bf16.vlgmr.msra.gmra.mxu0 %v1922_v1  ;;  %1997 = vmatmul.mubr.bf16.vlgmr.msra.gmra.mxu1 %v1922_v1 }
 0x548   : > { %2078 = vmatpush1.bf16.msra.mxu0 %v2961_v9  ;;  %2119 = vmatpush1.bf16.msra.mxu1 %v2962_v11  ;;  %v2062_v9 = vstv %s2061_s7 }
 0x549   : > { %2079 = vmatprep.subr.bf16.mxu0 %v2963_v12  ;;  %2120 = vmatprep.subr.bf16.mxu1 %v2964_v24  ;;  %vm2063_vm10 = vcmp.eq.s32.totalorder %v2062_v9, 1 }
 0x54a   : > { %2109 = vmatprep.mubr.bf16.mxu0 %v4696_v63  ;;  %2150 = vmatprep.mubr.bf16.mxu1 %v4696_v63 }
 0x54c   : > { %2080 = vmatpush1.bf16.msra.mxu0 %v2965_v41  ;;  %2121 = vmatpush1.bf16.msra.mxu1 %v2966_v38 }
 0x54d   : > { %2081 = vmatprep.subr.bf16.mxu0 %v2967_v29  ;;  %2122 = vmatprep.subr.bf16.mxu1 %v2968_v33 }
 0x550   : > { %2082 = vmatpush1.bf16.msra.mxu0 %v2969_v35  ;;  %2123 = vmatpush1.bf16.msra.mxu1 %v2970_v17 }
 0x551   : > { %2083 = vmatprep.subr.bf16.mxu0 %v2971_v5  ;;  %2124 = vmatprep.subr.bf16.mxu1 %v2972_v21  ;;  %v2542_v21 = vld [vmem:[%s3069_s26 + $0x30] sm:$0xff] }
 0x554   : > { %2084 = vmatpush1.bf16.msra.mxu0 %v2973_v15  ;;  %2125 = vmatpush1.bf16.msra.mxu1 %v4770_v58  ;;  %v4794_v58 = vld [vmem:[#allocation17_spill] sm:$0xff] }
 0x555   : > { %2085 = vmatprep.subr.bf16.mxu0 %v2974_v13  ;;  %2126 = vmatprep.subr.bf16.mxu1 %v4772_v54  ;;  %v4795_v54 = vld [vmem:[#allocation21_spill] sm:$0xff] }
 0x558   : > { %2086 = vmatpush1.bf16.msra.mxu0 %v2975_v14  ;;  %2127 = vmatpush1.bf16.msra.mxu1 %v4774_v56  ;;  %v4796_v56 = vld [vmem:[#allocation26_spill] sm:$0xff] }
 0x559   : > { %2087 = vmatprep.subr.bf16.mxu0 %v2976_v2  ;;  %2128 = vmatprep.subr.bf16.mxu1 %v4776_v40  ;;  %v4797_v40 = vld [vmem:[#allocation27_spill] sm:$0xff]  ;;  %v2543_v14 = vld [vmem:[%s3069_s26 + $0x38] sm:$0xff] }
 0x55c   : > { %2088 = vmatpush1.bf16.msra.mxu0 %v4777_v31  ;;  %2129 = vmatpush1.bf16.msra.mxu1 %v4778_v20  ;;  %v4798_v31 = vld [vmem:[#allocation28_spill] sm:$0xff]  ;;  %v2536_v20 = vld [vmem:[%s3064_s22 + $0xa0] sm:$0xff] }
 0x55d   : > { %2089 = vmatprep.subr.bf16.mxu0 %v4779_v16  ;;  %2130 = vmatprep.subr.bf16.mxu1 %v4780_v47 }
 0x560   : > { %2090 = vmatpush1.bf16.msra.mxu0 %v4791_v36  ;;  %2131 = vmatpush1.bf16.msra.mxu1 %v4792_v61 }
 0x561   : > { %2091 = vmatprep.subr.bf16.mxu0 %v4793_v23  ;;  %2132 = vmatprep.subr.bf16.mxu1 %v4794_v58 }
 0x564   : > { %2092 = vmatpush1.bf16.msra.mxu0 %v4795_v54  ;;  %2133 = vmatpush1.bf16.msra.mxu1 %v4796_v56 }
 0x565   : > { %2168 = vmatprep.subr.bf16.mxu0 %v4797_v40  ;;  %2209 = vmatprep.subr.bf16.mxu1 %v4798_v31 }
 0x5e7   : > { %v1865_v16 = vpop.f32.mrf.mxu0  ;;  %v1906_v47 = vpop.f32.mrf.mxu1 }
 0x5e8   : > { %v1913_v3 = vadd.f32 %v2536_v20, %v1865_v16  ;;  %v1915_v48 = vadd.f32 %v2538_v50, %v1906_v47  ;;  %v2977_v16 = vld [vmem:[%s4584_s2 + $0x1e0] ss:$16 sps:$4 sm:$0xff]   ;;  %v2979_v47 = vld [vmem:[%s4584_s2 + $0x1c4] ss:$16 sps:$4 sm:$0xff]  }
 0x5e9   : > { %v1867_v39 = vpop.f32.mrf.mxu0  ;;  %v1908_v62 = vpop.f32.mrf.mxu1 }
 0x5ea   : > { %v2544_v26 = vmul.f32 -1.442695, %v1913_v3  ;;  %v1914_v0 = vadd.f32 %v2537_v7, %v1867_v39  ;;  %v2546_v46 = vmul.f32 -1.442695, %v1915_v48  ;;  %v1916_v10 = vadd.f32 %v2539_v51, %v1908_v62  ;;  %v2980_v7 = vld [vmem:[%s4584_s2 + $0x1cc] ss:$16 sps:$4 sm:$0xff]  }
 0x5eb   : > { %v1869_v44 = vpop.f32.mrf.mxu0  ;;  %v1910_v55 = vpop.f32.mrf.mxu1  ;;  %v2981_v39 = vld [vmem:[%s4584_s2 + $0x1c0] ss:$16 sps:$4 sm:$0xff]   ;;  %v2982_v62 = vld [vmem:[%s4584_s2 + $0x1c8] ss:$16 sps:$4 sm:$0xff]  }
 0x5ec   : > { %2831 = vpow2.f32 %v2544_v26  ;;  %v2545_v53 = vmul.f32 -1.442695, %v1914_v0  ;;  %v2983_v0 = vld [vmem:[%s4584_s2 + $0x1a4] ss:$16 sps:$4 sm:$0xff]   ;;  %v2067_v55 = vstv %s2066_s23  ;;  %v2985_v48 = vld [vmem:[%s4584_s2 + $0x1a0] ss:$16 sps:$4 sm:$0xff]  }
 0x5ed   : > { %v1870_v49 = vpop.f32.mrf.mxu0  ;;  %v1911_v6 = vpop.f32.mrf.mxu1  ;;  %v2986_v51 = vld [vmem:[%s4584_s2 + $0x1a8] ss:$16 sps:$4 sm:$0xff]   ;;  %vm2068_vm11 = vcmp.eq.s32.totalorder %v2067_v55, 1 }
 0x5ee   : > { %2833 = vpow2.f32 %v2545_v53 }
 0x5ef   : > { %2835 = vpow2.f32 %v2546_v46  ;;  %v2987_v46 = vld [vmem:[%s4584_s2 + $0x184] ss:$16 sps:$4 sm:$0xff]  }
 0x5f9   : > { %v2832_v45 = vpop.eup %2831 }
 0x5fa   : > { %v2018_v28 = vadd.f32 1.0, %v2832_v45  ;;  %v2988_v45 = vld [vmem:[%s4584_s2 + $0x18c] ss:$16 sps:$4 sm:$0xff]  }
 0x5fb   : > { %v2834_v43 = vpop.eup %2833 }
 0x5fc   : > { %2837 = vrcp.f32 %v2018_v28  ;;  %v2019_v30 = vadd.f32 1.0, %v2834_v43  ;;  %v2836_v60 = vpop.eup %2835  ;;  %v2989_v28 = vld [vmem:[%s4584_s2 + $0x180] ss:$16 sps:$4 sm:$0xff]   ;;  %v2990_v43 = vld [vmem:[%s4584_s2 + $0x188] ss:$16 sps:$4 sm:$0xff]  }
 0x5fd   : > { %2839 = vtanh.f32 %v1916_v10  ;;  %v2020_v12 = vadd.f32 1.0, %v2836_v60  ;;  %v2996_v60 = vld [vmem:[%s4584_s2 + $0x14c] ss:$16 sps:$4 sm:$0xff]  }
 0x5fe   : > { %2841 = vrcp.f32 %v2019_v30 }
 0x607   : > { %v1957_v18 = vpop.f32.mrf.mxu0  ;;  %v1998_v34 = vpop.f32.mrf.mxu1 }
 0x608   : > { %v2005_v37 = vadd.f32 %v2540_v25, %v1957_v18  ;;  %v2007_v13 = vadd.f32 %v2542_v21, %v1998_v34  ;;  %v2991_v25 = vld [vmem:[%s4584_s2 + $0x164] ss:$16 sps:$4 sm:$0xff]   ;;  %v2992_v18 = vld [vmem:[%s4584_s2 + $0x16c] ss:$16 sps:$4 sm:$0xff]   ;;  %v2993_v34 = vld [vmem:[%s4584_s2 + $0x160] ss:$16 sps:$4 sm:$0xff]  }
 0x609   : > { %v2838_v27 = vpop.eup %2837  ;;  %v1959_v32 = vpop.f32.mrf.mxu0  ;;  %v2551_v21 = vld [vmem:[%s3064_s22 + $0xc8] sm:$0xff] }
 0x60a   : > { %v2000_v19 = vpop.f32.mrf.mxu1  ;;  %v2840_v1 = vpop.eup %2839  ;;  %v2547_v4 = vmul.f32 -1.442695, %v2005_v37  ;;  %v2006_v8 = vadd.f32 %v2541_v52, %v1959_v32  ;;  %v2549_v2 = vmul.f32 -1.442695, %v2007_v13  ;;  %v2995_v52 = vld [vmem:[%s4584_s2 + $0x144] ss:$16 sps:$4 sm:$0xff]  }
 0x60b   : > { %v2842_v11 = vpop.eup %2841  ;;  %v1961_v24 = vpop.f32.mrf.mxu0  ;;  %v2047_v29 = vmul.f32 %v2840_v1, %v2838_v27  ;;  %v2008_v61 = vadd.f32 %v2543_v14, %v2000_v19  ;;  %v2997_v37 = vld [vmem:[%s4584_s2 + $0x140] ss:$16 sps:$4 sm:$0xff]   ;;  %v2998_v27 = vld [vmem:[%s4584_s2 + $0x148] ss:$16 sps:$4 sm:$0xff]   ;;  %v2999_v32 = vld [vmem:[%s4584_s2 + $0x124] ss:$16 sps:$4 sm:$0xff]  }
 0x60c   : > { %v2002_v41 = vpop.f32.mrf.mxu1  ;;  %v2045_v38 = vmul.f32 %v2842_v11, %v4286_v57  ;;  %2843 = vpow2.f32 %v2547_v4  ;;  %v2548_v33 = vmul.f32 -1.442695, %v2006_v8  ;;  %v3000_v19 = vld [vmem:[%s4584_s2 + $0x12c] ss:$16 sps:$4 sm:$0xff]   ;;  %v3001_v4 = vld [vmem:[%s4584_s2 + $0x120] ss:$16 sps:$4 sm:$0xff]  }
 0x60d   : > { %v1962_v35 = vpop.f32.mrf.mxu0  ;;  %v3002_v8 = vld [vmem:[%s4584_s2 + $0x128] ss:$16 sps:$4 sm:$0xff]   ;;  %v3003_v11 = vld [vmem:[%s4584_s2 + $0x104] ss:$16 sps:$4 sm:$0xff]   ;;  %v3005_v41 = vld [vmem:[%s4584_s2 + $0x100] ss:$16 sps:$4 sm:$0xff]  }
 0x60e   : > { %v2003_v17 = vpop.f32.mrf.mxu1  ;;  %v2048_v5 = vadd.f32 %v2047_v29, %v2045_v38  ;;  %2845 = vpow2.f32 %v2548_v33  ;;  %v3006_v38 = vld [vmem:[%s4584_s2 + $0x108] ss:$16 sps:$4 sm:$0xff]   ;;  %v2550_v35 = vld [vmem:[%s3064_s22 + $0xc0] sm:$0xff] }
 0x60f   : > { %2847 = vrcp.f32 %v2020_v12  ;;  %v3004_v12 = vld [vmem:[%s4584_s2 + $0x10c] ss:$16 sps:$4 sm:$0xff]  }
 0x610   : > { %2849 = vtanh.f32 %v2048_v5  ;;  %v4434_v15 = vsel %vm2063_vm10, %v2048_v5, %v4286_v57 }
 0x611   : > { %2851 = vpow2.f32 %v2549_v2 }
 0x619   : > { %v2844_v36 = vpop.eup %2843 }
 0x61a   : > { %v2036_v23 = vadd.f32 1.0, %v2844_v36 }
 0x61b   : > { %v2846_v58 = vpop.eup %2845 }
 0x61c   : > { %v2848_v54 = vpop.eup %2847  ;;  %2853 = vrcp.f32 %v2036_v23  ;;  %v2037_v56 = vadd.f32 1.0, %v2846_v58 }
 0x61d   : > { %v2850_v40 = vpop.eup %2849  ;;  %2855 = vtanh.f32 %v2008_v61 }
 0x61e   : > { %2857 = vrcp.f32 %v2037_v56  ;;  %v2050_v31 = vmul.f32 %v2850_v40, %v2848_v54  ;;  %v2852_v3 = vpop.eup %2851  ;;  %v2552_v40 = vld [vmem:[%s3064_s22 + $0xd0] sm:$0xff] }
 0x61f   : > { %v2038_v49 = vadd.f32 1.0, %v2852_v3 }
 0x620   : > { %v4440_v57 = vsel %vm2063_vm10, %v2050_v31, %v4292_v59  ;;  %v2978_v59 = vld [vmem:[%s4584_s2 + $0x1e8] ss:$16 sps:$4 sm:$0xff]  }
 0x621   : > { %v2076_v20 = vpack.c.bf16 %v4440_v57, %v4440_v57  ;;  %2859 = vrcp.f32 %v2038_v49 }
 0x623   : > { %2110 = vmatmul.mubr.bf16.vlgmr.msra.gmra.mxu0 %v2076_v20  ;;  %2151 = vmatmul.mubr.bf16.vlgmr.msra.gmra.mxu1 %v2076_v20  ;;  %v2553_v20 = vld [vmem:[%s3064_s22 + $0xd8] sm:$0xff] }
 0x624   : > { %2169 = vmatpush1.bf16.msra.mxu0 %v2977_v16  ;;  %2210 = vmatpush1.bf16.msra.mxu1 %v2978_v59 }
 0x625   : > { %2170 = vmatprep.subr.bf16.mxu0 %v2979_v47  ;;  %2211 = vmatprep.subr.bf16.mxu1 %v2980_v7 }
 0x626   : > { %2200 = vmatprep.mubr.bf16.mxu0 %v4696_v63  ;;  %2241 = vmatprep.mubr.bf16.mxu1 %v4696_v63  ;;  %v2984_v63 = vld [vmem:[%s4584_s2 + $0x1ac] ss:$16 sps:$4 sm:$0xff]  }
 0x628   : > { %2171 = vmatpush1.bf16.msra.mxu0 %v2981_v39  ;;  %2212 = vmatpush1.bf16.msra.mxu1 %v2982_v62  ;;  %v2163_v62 = vld [vmem:[%s3069_s26] sm:$0xff] }
 0x629   : > { %v2854_v26 = vpop.eup %2853  ;;  %2172 = vmatprep.subr.bf16.mxu0 %v2983_v0  ;;  %2213 = vmatprep.subr.bf16.mxu1 %v2984_v63  ;;  %v2164_v63 = vld [vmem:[%s3069_s26 + $0x8] sm:$0xff] }
 0x62a   : > { %v2856_v44 = vpop.eup %2855 }
 0x62b   : > { %v2858_v53 = vpop.eup %2857  ;;  %v2053_v50 = vmul.f32 %v2856_v44, %v2854_v26 }
 0x62c   : > { %v2051_v6 = vmul.f32 %v2858_v53, %v4321_v42  ;;  %2173 = vmatpush1.bf16.msra.mxu0 %v2985_v48  ;;  %2214 = vmatpush1.bf16.msra.mxu1 %v2986_v51  ;;  %v2306_v48 = vstv %s2305_s9 }
 0x62d   : > { %2174 = vmatprep.subr.bf16.mxu0 %v2987_v46  ;;  %2215 = vmatprep.subr.bf16.mxu1 %v2988_v45  ;;  %vm2307_vm12 = vcmp.eq.s32.totalorder %v2306_v48, 1 }
 0x62e   : > { %v2054_v10 = vadd.f32 %v2053_v50, %v2051_v6  ;;  %v2860_v1 = vpop.eup %2859 }
 0x630   : > { %2861 = vtanh.f32 %v2054_v10  ;;  %2175 = vmatpush1.bf16.msra.mxu0 %v2989_v28  ;;  %2216 = vmatpush1.bf16.msra.mxu1 %v2990_v43  ;;  %v4497_v30 = vsel %vm2068_vm11, %v2054_v10, %v4321_v42  ;;  %v2994_v42 = vld [vmem:[%s4584_s2 + $0x168] ss:$16 sps:$4 sm:$0xff]  }
 0x631   : > { %2176 = vmatprep.subr.bf16.mxu0 %v2991_v25  ;;  %2217 = vmatprep.subr.bf16.mxu1 %v2992_v18 }
 0x634   : > { %2177 = vmatpush1.bf16.msra.mxu0 %v2993_v34  ;;  %2218 = vmatpush1.bf16.msra.mxu1 %v2994_v42 }
 0x635   : > { %2178 = vmatprep.subr.bf16.mxu0 %v2995_v52  ;;  %2219 = vmatprep.subr.bf16.mxu1 %v2996_v60 }
 0x638   : > { %2179 = vmatpush1.bf16.msra.mxu0 %v2997_v37  ;;  %2220 = vmatpush1.bf16.msra.mxu1 %v2998_v27  ;;  %v2165_v27 = vld [vmem:[%s3069_s26 + $0x10] sm:$0xff] }
 0x639   : > { %2180 = vmatprep.subr.bf16.mxu0 %v2999_v32  ;;  %2221 = vmatprep.subr.bf16.mxu1 %v3000_v19  ;;  %v2166_v19 = vld [vmem:[%s3069_s26 + $0x18] sm:$0xff] }
 0x63c   : > { %2181 = vmatpush1.bf16.msra.mxu0 %v3001_v4  ;;  %2222 = vmatpush1.bf16.msra.mxu1 %v3002_v8 }
 0x63d   : > { %v2862_v9 = vpop.eup %2861  ;;  %2182 = vmatprep.subr.bf16.mxu0 %v3003_v11  ;;  %2223 = vmatprep.subr.bf16.mxu1 %v3004_v12 }
 0x63e   : > { %v2056_v24 = vmul.f32 %v2862_v9, %v2860_v1 }
 0x640   : > { %2183 = vmatpush1.bf16.msra.mxu0 %v3005_v41  ;;  %2224 = vmatpush1.bf16.msra.mxu1 %v3006_v38  ;;  %v4549_v29 = vsel %vm2068_vm11, %v2056_v24, %v4341_v22 }
 0x641   : > { %v2167_v33 = vpack.c.bf16 %v4549_v29, %v4549_v29 }
 0x643   : > { %2201 = vmatmul.mubr.bf16.vlgmr.msra.gmra.mxu0 %v2167_v33  ;;  %2242 = vmatmul.mubr.bf16.vlgmr.msra.gmra.mxu1 %v2167_v33 }
 0x6e3   : > { %v2111_v17 = vpop.f32.mrf.mxu0  ;;  %v2152_v5 = vpop.f32.mrf.mxu1 }
 0x6e4   : > { %v2159_v13 = vadd.f32 %v2550_v35, %v2111_v17  ;;  %v2161_v31 = vadd.f32 %v2552_v40, %v2152_v5  ;;  %v2311_v5 = vstv %s2310_s14 }
 0x6e5   : > { %v2113_v14 = vpop.f32.mrf.mxu0  ;;  %v2154_v2 = vpop.f32.mrf.mxu1  ;;  %vm2312_vm13 = vcmp.eq.s32.totalorder %v2311_v5, 1 }
 0x6e6   : > { %v2554_v36 = vmul.f32 -1.442695, %v2159_v13  ;;  %v2160_v61 = vadd.f32 %v2551_v21, %v2113_v14  ;;  %v2556_v16 = vmul.f32 -1.442695, %v2161_v31  ;;  %v2162_v47 = vadd.f32 %v2553_v20, %v2154_v2 }
 0x6e7   : > { %v2115_v23 = vpop.f32.mrf.mxu0  ;;  %v2156_v58 = vpop.f32.mrf.mxu1 }
 0x6e8   : > { %2863 = vpow2.f32 %v2554_v36  ;;  %v2555_v22 = vmul.f32 -1.442695, %v2160_v61 }
 0x6e9   : > { %v2116_v54 = vpop.f32.mrf.mxu0  ;;  %v2157_v56 = vpop.f32.mrf.mxu1 }
 0x6ea   : > { %2865 = vpow2.f32 %v2555_v22 }
 0x6eb   : > { %2867 = vpow2.f32 %v2556_v16 }
 0x6f5   : > { %v2864_v59 = vpop.eup %2863 }
 0x6f6   : > { %v2263_v7 = vadd.f32 1.0, %v2864_v59 }
 0x6f7   : > { %v2866_v3 = vpop.eup %2865 }
 0x6f8   : > { %2869 = vrcp.f32 %v2263_v7  ;;  %v2264_v39 = vadd.f32 1.0, %v2866_v3  ;;  %v2868_v44 = vpop.eup %2867 }
 0x6f9   : > { %2871 = vtanh.f32 %v2162_v47  ;;  %v2265_v10 = vadd.f32 1.0, %v2868_v44 }
 0x6fa   : > { %2873 = vrcp.f32 %v2264_v39 }
 0x703   : > { %v2202_v26 = vpop.f32.mrf.mxu0  ;;  %v2243_v0 = vpop.f32.mrf.mxu1 }
 0x704   : > { %v2250_v55 = vadd.f32 %v2202_v26, %v2163_v62  ;;  %v2252_v32 = vadd.f32 %v2243_v0, %v2165_v27 }
 0x705   : > { %v2870_v53 = vpop.eup %2869  ;;  %v2204_v49 = vpop.f32.mrf.mxu0 }
 0x706   : > { %v2245_v6 = vpop.f32.mrf.mxu1  ;;  %v2872_v50 = vpop.eup %2871  ;;  %v2557_v51 = vmul.f32 -1.442695, %v2250_v55  ;;  %v2251_v46 = vadd.f32 %v2204_v49, %v2164_v63  ;;  %v2559_v1 = vmul.f32 -1.442695, %v2252_v32 }
 0x707   : > { %v2874_v45 = vpop.eup %2873  ;;  %v2206_v28 = vpop.f32.mrf.mxu0  ;;  %v2292_v18 = vmul.f32 %v2872_v50, %v2870_v53  ;;  %v2253_v8 = vadd.f32 %v2245_v6, %v2166_v19 }
 0x708   : > { %v2247_v43 = vpop.f32.mrf.mxu1  ;;  %v2290_v25 = vmul.f32 %v2874_v45, %v4434_v15  ;;  %2875 = vpow2.f32 %v2557_v51  ;;  %v2558_v34 = vmul.f32 -1.442695, %v2251_v46 }
 0x709   : > { %v2207_v42 = vpop.f32.mrf.mxu0 }
 0x70a   : > { %v2248_v52 = vpop.f32.mrf.mxu1  ;;  %v2293_v60 = vadd.f32 %v2292_v18, %v2290_v25  ;;  %2877 = vpow2.f32 %v2558_v34 }
 0x70b   : > { %2879 = vrcp.f32 %v2265_v10 }
 0x70c   : > { %2881 = vtanh.f32 %v2293_v60  ;;  %v2309_v37 = vsel %vm2307_vm12, %v2293_v60, %v4434_v15 }
 0x70d   : > { %2316 = vst [vmem:[#allocation2] sm:$0xff] %v2309_v37  ;;  %2883 = vpow2.f32 %v2559_v1 }
 0x715   : > { %v2876_v4 = vpop.eup %2875 }
 0x716   : > { %v2281_v9 = vadd.f32 1.0, %v2876_v4 }
 0x717   : > { %v2878_v11 = vpop.eup %2877 }
 0x718   : > { %v2880_v12 = vpop.eup %2879  ;;  %2885 = vrcp.f32 %v2281_v9  ;;  %v2282_v24 = vadd.f32 1.0, %v2878_v11 }
 0x719   : > { %v2882_v41 = vpop.eup %2881  ;;  %2887 = vtanh.f32 %v2253_v8 }
 0x71a   : > { %v2295_v38 = vmul.f32 %v2882_v41, %v2880_v12  ;;  %2889 = vrcp.f32 %v2282_v24  ;;  %v2884_v33 = vpop.eup %2883 }
 0x71b   : > { %v2283_v13 = vadd.f32 1.0, %v2884_v33 }
 0x71c   : > { %v2308_v15 = vsel %vm2307_vm12, %v2295_v38, %v4440_v57 }
 0x71d   : > { %2315 = vst [vmem:[#allocation2 + $0x10] sm:$0xff] %v2308_v15  ;;  %2891 = vrcp.f32 %v2283_v13 }
 0x725   : > { %v2886_v35 = vpop.eup %2885 }
 0x726   : > { %v2888_v17 = vpop.eup %2887 }
 0x727   : > { %v2890_v21 = vpop.eup %2889  ;;  %v2298_v2 = vmul.f32 %v2888_v17, %v2886_v35 }
 0x728   : > { %v2296_v14 = vmul.f32 %v2890_v21, %v4497_v30 }
 0x72a   : > { %v2299_v36 = vadd.f32 %v2298_v2, %v2296_v14  ;;  %v2892_v57 = vpop.eup %2891 }
 0x72c   : > { %2893 = vtanh.f32 %v2299_v36  ;;  %v2314_v61 = vsel %vm2312_vm13, %v2299_v36, %v4497_v30 }
 0x72d   : > { %2318 = vst [vmem:[#allocation2 + $0x8] sm:$0xff] %v2314_v61 }
 0x739   : > { %v2894_v23 = vpop.eup %2893  ;;  %2322 = sbr.rel (%p2560_p4) target bundleno = 1855 (0x73f), region = 40 }
 0x73a   : > { %v2301_v58 = vmul.f32 %v2894_v23, %v2892_v57 }
 0x73c   : > { %v2313_v22 = vsel %vm2312_vm13, %v2301_v58, %v4549_v29 }
 0x73d   : > { %2317 = vst [vmem:[#allocation2 + $0x18] sm:$0xff] %v2313_v22 }
 0x73e   : > { %2323 = vst [vmem:[%s4585_s3] sm:$0xff] %v2308_v15  ;;  %2324 = vst [vmem:[%s4585_s3 + $0x8] sm:$0xff] %v2313_v22 }
 0x73f PF: > { %s13_s12 = sadd.s32 1, %s3013_s12  }
 0x740   : > { %p10_p5 = scmp.ge.s32.totalorder %s13_s12, 5  }
 0x742   :  { %12 = sbr.rel (!%p10_p5) target bundleno = 1 (0x1), region = 85 }

</bundles_post_ra>
